<compile_context>
chip_gen: v6e
topology: v6e:2x2x1
jax: 0.10.0
libtpu: 0.0.40
codegen_flags: <defaults>
</compile_context>

<pallas_src>
import functools

import jax
import jax.numpy as jnp
from jax import lax
from jax.experimental import pallas as pl
from jax.experimental.pallas import tpu as pltpu

LN_EPS = 1e-5  # torch nn.LayerNorm default


def _layer_norm(v, g, b):
    mu = jnp.mean(v, axis=-1, keepdims=True)
    var = jnp.mean((v - mu) ** 2, axis=-1, keepdims=True)
    return (v - mu) * lax.rsqrt(var + LN_EPS) * g + b


def _gelu_exact(x):
    # torch nn.GELU() default (exact erf form).
    # TODO(synk): switch to tanh-approx GELU (EUP slot) if the FFN stage turns
    # out VALU-bound at production sizes (changes numerics slightly).
    return 0.5 * x * (1.0 + lax.erf(x * 0.7071067811865476))


def _model_kernel(x_ref, wqkv_ref, wp_ref, w1_ref, w2_ref, vecs_ref, b1_ref,
                  o_ref, *, heads):
    """One grid step = (batch block bb, layer l).  The residual stream lives in
    the resident output block across the inner ("arbitrary") layer axis."""
    l = pl.program_id(1)

    @pl.when(l == 0)
    def _():
        o_ref[...] = x_ref[...]

    xb = o_ref[...].astype(jnp.float32)            # (Bb, N, C) residual stream
    Bb, N, C = xb.shape
    M = Bb * N
    x2 = xb.reshape(M, C)                          # fat-M slab for QKV / FFN

    vecs = vecs_ref[...]                           # (6, C) f32
    ln1_g, ln1_b = vecs[0:1], vecs[1:2]
    bproj = vecs[2:3]
    ln2_g, ln2_b = vecs[3:4], vecs[4:5]
    b2 = vecs[5:6]

    # ---- Residual(PreNormDrop(SelfAttention)); dropout_rate=0 -> identity ----
    hn = _layer_norm(x2, ln1_g, ln1_b)             # (M, C) f32
    hn_bf = hn.astype(jnp.bfloat16)                # bf16 MXU operand

    def head_body(h, attn):
        wq_h = wqkv_ref[h]                         # (C, dh) bf16, scale folded
        wk_h = wqkv_ref[heads + h]
        wv_h = wqkv_ref[2 * heads + h]
        wp_h = wp_ref[h]                           # (dh, C) bf16
        q = jnp.dot(hn_bf, wq_h, preferred_element_type=jnp.float32)
        k = jnp.dot(hn_bf, wk_h, preferred_element_type=jnp.float32)
        v = jnp.dot(hn_bf, wv_h, preferred_element_type=jnp.float32)
        qb = q.reshape(Bb, N, -1).astype(jnp.bfloat16)
        kb = k.reshape(Bb, N, -1).astype(jnp.bfloat16)
        vb = v.reshape(Bb, N, -1).astype(jnp.bfloat16)
        s = jnp.einsum("bqd,bkd->bqk", qb, kb,
                       preferred_element_type=jnp.float32)     # (Bb, N, N) f32
        s = s - jnp.max(s, axis=-1, keepdims=True)
        e = jnp.exp(s)
        p = e * pl.reciprocal(jnp.sum(e, axis=-1, keepdims=True), approx=True)
        o_h = jnp.einsum("bqk,bkd->bqd", p.astype(jnp.bfloat16), vb,
                         preferred_element_type=jnp.float32)   # (Bb, N, dh)
        # fold the head-concat into the output projection (no concatenate)
        return attn + jnp.dot(o_h.reshape(M, -1).astype(jnp.bfloat16), wp_h,
                              preferred_element_type=jnp.float32)

    attn = lax.fori_loop(0, heads, head_body,
                         jnp.zeros((M, C), jnp.float32), unroll=True)
    x2 = x2 + attn + bproj

    # ---- Residual(PreNorm(FeedForward)) ----
    hn2 = _layer_norm(x2, ln2_g, ln2_b)
    f = jnp.dot(hn2.astype(jnp.bfloat16), w1_ref[...],
                preferred_element_type=jnp.float32) + b1_ref[...]
    f = _gelu_exact(f)
    f = jnp.dot(f.astype(jnp.bfloat16), w2_ref[...],
                preferred_element_type=jnp.float32) + b2
    x2 = x2 + f

    # o_ref is f32 here, so accumulating the residual stream in it is exact.
    # TODO(synk): for a low-precision output dtype, reintroduce an f32 VMEM
    # scratch accumulator and cast only on the last layer.
    o_ref[...] = x2.reshape(Bb, N, C).astype(o_ref.dtype)


def pack_params(params, heads):
    """One-time packing of per-layer weights into stacked, head-major, bf16
    arrays (kept OUT of the forward path; do this once at init/load time)."""
    C = params[0]["wq"].shape[0]
    Hm = params[0]["w1"].shape[1]
    assert C % heads == 0
    dh = C // heads
    scale = dh ** -0.5

    def heads_cols(w):   # (C, C) -> (heads, C, dh): per-head column blocks
        return w.reshape(C, heads, dh).transpose(1, 0, 2)

    def heads_rows(w):   # (C, C) -> (heads, dh, C): per-head row blocks
        return w.reshape(heads, dh, C)

    wqkv = jnp.stack([jnp.concatenate([heads_cols(p["wq"] * scale),  # fold scale
                                       heads_cols(p["wk"]),
                                       heads_cols(p["wv"])], axis=0)
                      for p in params]).astype(jnp.bfloat16)    # (L, 3H, C, dh)
    wproj = jnp.stack([heads_rows(p["wproj"])
                       for p in params]).astype(jnp.bfloat16)   # (L, H, dh, C)
    w1 = jnp.stack([p["w1"] for p in params]).astype(jnp.bfloat16)  # (L, C, Hm)
    w2 = jnp.stack([p["w2"] for p in params]).astype(jnp.bfloat16)  # (L, Hm, C)
    vecs = jnp.stack([jnp.stack([p["ln1_g"], p["ln1_b"], p["bproj"],
                                 p["ln2_g"], p["ln2_b"], p["b2"]])
                      for p in params]).astype(jnp.float32)         # (L, 6, C)
    b1 = jnp.stack([p["b1"] for p in params])[:, None, :].astype(jnp.float32)
    return dict(wqkv=wqkv, wproj=wproj, w1=w1, w2=w2, vecs=vecs, b1=b1,
                heads=heads, depth=len(params), dim=C, mlp_dim=Hm)


def _vmem_limit_bytes():
    # ~7/8 of physical VMEM, capped at 100 MiB: ~56 MiB on v7x, ~100 MiB on
    # v5e/v6e.  Fallback (64 MiB * 7/8) is safe on every generation.
    try:
        cap = pltpu.get_tpu_info().vmem_capacity_bytes
    except Exception:
        cap = 64 * 1024 * 1024
    return int(min(cap * 7 // 8, 100 * 1024 * 1024))


def transformer_model(x, packed, *, b_block=None):
    # TODO(synk): IntermediateSequential also exposes per-layer intermediate
    # outputs; here only the final output is returned.
    B, N, C = x.shape
    heads, L, Hm = packed["heads"], packed["depth"], packed["mlp_dim"]
    dh = C // heads
    if b_block is None:  # largest divisor of B that is <= 8
        b_block = max(d for d in range(1, min(B, 8) + 1) if B % d == 0)
    assert B % b_block == 0, "b_block must divide the batch"

    in_specs = [
        pl.BlockSpec((b_block, N, C), lambda b, l: (b, 0, 0)),            # x
        pl.BlockSpec((None, 3 * heads, C, dh), lambda b, l: (l, 0, 0, 0)),  # Wq|Wk|Wv
        pl.BlockSpec((None, heads, dh, C), lambda b, l: (l, 0, 0, 0)),    # Wproj
        pl.BlockSpec((None, C, Hm), lambda b, l: (l, 0, 0)),              # W1
        pl.BlockSpec((None, Hm, C), lambda b, l: (l, 0, 0)),              # W2
        pl.BlockSpec((None, 6, C), lambda b, l: (l, 0, 0)),               # LN/bias vecs
        pl.BlockSpec((None, 1, Hm), lambda b, l: (l, 0, 0)),              # b1
    ]
    out_spec = pl.BlockSpec((b_block, N, C), lambda b, l: (b, 0, 0))      # resident over l

    # TODO(synk): for v7x with B == 1 (or very long N), add an extra
    # "parallel" query-row tile axis so both TensorCores stay busy; for very
    # large mlp_dim on v7x, additionally tile W1/W2 over Hm.
    return pl.pallas_call(
        functools.partial(_model_kernel, heads=heads),
        out_shape=jax.ShapeDtypeStruct((B, N, C), x.dtype),
        grid=(B // b_block, L),
        in_specs=in_specs,
        out_specs=out_spec,
        compiler_params=pltpu.CompilerParams(
            dimension_semantics=("parallel", "arbitrary"),
            vmem_limit_bytes=_vmem_limit_bytes()),
    )(x, packed["wqkv"], packed["wproj"], packed["w1"], packed["w2"],
      packed["vecs"], packed["b1"])


def init_params(key, dim, heads, mlp_dim, depth):
    params = []
    for _ in range(depth):
        key, *ks = jax.random.split(key, 14)

        def nrm(k, shape, fan_in):
            return jax.random.normal(k, shape, jnp.float32) / jnp.sqrt(float(fan_in))

        params.append(dict(
            ln1_g=1.0 + 0.1 * jax.random.normal(ks[0], (dim,), jnp.float32),
            ln1_b=0.1 * jax.random.normal(ks[1], (dim,), jnp.float32),
            wq=nrm(ks[2], (dim, dim), dim),
            wk=nrm(ks[3], (dim, dim), dim),     # torch kv weight rows [0:dim]
            wv=nrm(ks[4], (dim, dim), dim),     # torch kv weight rows [dim:2*dim]
            wproj=nrm(ks[5], (dim, dim), dim),
            bproj=0.1 * jax.random.normal(ks[6], (dim,), jnp.float32),
            ln2_g=1.0 + 0.1 * jax.random.normal(ks[7], (dim,), jnp.float32),
            ln2_b=0.1 * jax.random.normal(ks[8], (dim,), jnp.float32),
            w1=nrm(ks[9], (dim, mlp_dim), dim),
            b1=0.05 * jax.random.normal(ks[11], (mlp_dim,), jnp.float32),
            w2=nrm(ks[10], (mlp_dim, dim), mlp_dim),
            b2=0.05 * jax.random.normal(ks[12], (dim,), jnp.float32),
        ))
    return params


def reference(x, params, heads):
    # pure-JAX f32 mirror of the PyTorch forward (sr_ratio=1, eval / dropout=0)
    B, N, C = x.shape
    dh = C // heads

    def ln(v, g, b):
        mu = v.mean(-1, keepdims=True)
        var = ((v - mu) ** 2).mean(-1, keepdims=True)
        return (v - mu) / jnp.sqrt(var + LN_EPS) * g + b

    for p in params:
        h = ln(x, p["ln1_g"], p["ln1_b"])
        q = (h @ p["wq"]).reshape(B, N, heads, dh).transpose(0, 2, 1, 3)
        k = (h @ p["wk"]).reshape(B, N, heads, dh).transpose(0, 2, 1, 3)
        v = (h @ p["wv"]).reshape(B, N, heads, dh).transpose(0, 2, 1, 3)
        attn = jax.nn.softmax((q @ k.transpose(0, 1, 3, 2)) * dh ** -0.5, axis=-1)
        o = (attn @ v).transpose(0, 2, 1, 3).reshape(B, N, C)
        x = x + (o @ p["wproj"] + p["bproj"])
        h2 = ln(x, p["ln2_g"], p["ln2_b"])
        f = h2 @ p["w1"] + p["b1"]
        f = 0.5 * f * (1.0 + jax.lax.erf(f / jnp.sqrt(2.0)))
        x = x + (f @ p["w2"] + p["b2"])
    return x


if __name__ == "__main__":
    # Small but lane-dense demo sizes (C a multiple of 128 so vregs are not
    # mostly padding — see perf review).
    dim, depth, heads, mlp_dim = 128, 2, 4, 256
    B, N = 2, 128

    key = jax.random.PRNGKey(0)
    kx, kp = jax.random.split(key)
    x = jax.random.normal(kx, (B, N, dim), jnp.float32)
    params = init_params(kp, dim, heads, mlp_dim, depth)
    packed = pack_params(params, heads)      # one-time packing, outside fwd path

    out = jax.block_until_ready(transformer_model(x, packed, b_block=B))

    ref = reference(x, params, heads)
    assert out.shape == (B, N, dim)
    # Tolerance sized for bf16 MXU operands (weights + activations at every dot
    # boundary) and the EUP approx-reciprocal softmax vs. the f32 reference.
    err = float(jnp.max(jnp.abs(out - ref)))
    assert jnp.allclose(out, ref, atol=1e-1, rtol=1e-1), f"max abs err {err}"

    print("KERNEL_OK")
</pallas_src>

<mosaic_0001>
module attributes {stable_mosaic.version = 11 : i64} {
  func.func @_model_kernel(%arg0: i32, %arg1: i32, %arg2: memref<2x128x128xf32, #tpu.memory_space<vmem>>, %arg3: memref<1x12x128x32xbf16, #tpu.memory_space<vmem>>, %arg4: memref<1x4x32x128xbf16, #tpu.memory_space<vmem>>, %arg5: memref<1x128x256xbf16, #tpu.memory_space<vmem>>, %arg6: memref<1x256x128xbf16, #tpu.memory_space<vmem>>, %arg7: memref<1x6x128xf32, #tpu.memory_space<vmem>>, %arg8: memref<1x1x256xf32, #tpu.memory_space<vmem>>, %arg9: memref<2x128x128xf32, #tpu.memory_space<vmem>>) attributes {dimension_semantics = [#tpu.dimension_semantics<parallel>, #tpu.dimension_semantics<arbitrary>], iteration_bounds = array<i64: 1, 2>, scalar_prefetch = 0 : i64, scratch_operands = 0 : i64, tpu.core_type = #tpu.core_type<tc>, window_params = [{transform_indices = @transform_0, window_bounds = array<i64: 2, 128, 128>}, {transform_indices = @transform_1, window_bounds = array<i64: 1, 12, 128, 32>}, {transform_indices = @transform_2, window_bounds = array<i64: 1, 4, 32, 128>}, {transform_indices = @transform_3, window_bounds = array<i64: 1, 128, 256>}, {transform_indices = @transform_4, window_bounds = array<i64: 1, 256, 128>}, {transform_indices = @transform_5, window_bounds = array<i64: 1, 6, 128>}, {transform_indices = @transform_6, window_bounds = array<i64: 1, 1, 256>}, {transform_indices = @transform_7, window_bounds = array<i64: 2, 128, 128>}]} {
    %c0_i32 = arith.constant 0 : i32
    %0 = arith.cmpi eq, %arg1, %c0_i32 : i32
    %1 = arith.extui %0 : i1 to i32
    %c0_i32_0 = arith.constant 0 : i32
    %2 = arith.cmpi ne, %1, %c0_i32_0 : i32
    scf.if %2 {
      %c0_121 = arith.constant 0 : index
      %c0_122 = arith.constant 0 : index
      %c0_123 = arith.constant 0 : index
      %247 = vector.load %arg2[%c0_121, %c0_122, %c0_123] : memref<2x128x128xf32, #tpu.memory_space<vmem>>, vector<2x128x128xf32>
      %c0_124 = arith.constant 0 : index
      %c0_125 = arith.constant 0 : index
      %c0_126 = arith.constant 0 : index
      %248 = vector.load %arg9[%c0_124, %c0_125, %c0_126] : memref<2x128x128xf32, #tpu.memory_space<vmem>>, vector<2x128x128xf32>
      tpu.vector_store %arg9[%c0_124, %c0_125, %c0_126], %247 {strides = array<i32>} : memref<2x128x128xf32, #tpu.memory_space<vmem>>, vector<2x128x128xf32>,
    } else {
    }
    %c0 = arith.constant 0 : index
    %c0_1 = arith.constant 0 : index
    %c0_2 = arith.constant 0 : index
    %3 = vector.load %arg9[%c0, %c0_1, %c0_2] : memref<2x128x128xf32, #tpu.memory_space<vmem>>, vector<2x128x128xf32>
    %4 = vector.shape_cast %3 : vector<2x128x128xf32> to vector<256x128xf32>
    %c0_3 = arith.constant 0 : index
    %c0_4 = arith.constant 0 : index
    %c0_5 = arith.constant 0 : index
    %5 = vector.load %arg7[%c0_3, %c0_4, %c0_5] : memref<1x6x128xf32, #tpu.memory_space<vmem>>, vector<1x6x128xf32>
    %6 = vector.shape_cast %5 : vector<1x6x128xf32> to vector<6x128xf32>
    %7 = vector.extract_strided_slice %6 {offsets = [0, 0], sizes = [1, 128], strides = [1, 1]} : vector<6x128xf32> to vector<1x128xf32>
    %8 = vector.extract_strided_slice %6 {offsets = [1, 0], sizes = [1, 128], strides = [1, 1]} : vector<6x128xf32> to vector<1x128xf32>
    %9 = vector.extract_strided_slice %6 {offsets = [2, 0], sizes = [1, 128], strides = [1, 1]} : vector<6x128xf32> to vector<1x128xf32>
    %10 = vector.extract_strided_slice %6 {offsets = [3, 0], sizes = [1, 128], strides = [1, 1]} : vector<6x128xf32> to vector<1x128xf32>
    %11 = vector.extract_strided_slice %6 {offsets = [4, 0], sizes = [1, 128], strides = [1, 1]} : vector<6x128xf32> to vector<1x128xf32>
    %12 = vector.extract_strided_slice %6 {offsets = [5, 0], sizes = [1, 128], strides = [1, 1]} : vector<6x128xf32> to vector<1x128xf32>
    %cst = arith.constant dense<0.000000e+00> : vector<256xf32>
    %13 = vector.multi_reduction <add>, %4, %cst [1] : vector<256x128xf32> to vector<256xf32>
    %14 = vector.shape_cast %13 : vector<256xf32> to vector<256x1xf32>
    %cst_6 = arith.constant 1.280000e+02 : f32
    %15 = vector.broadcast %cst_6 : f32 to vector<256x1xf32>
    %16 = arith.divf %14, %15 : vector<256x1xf32>
    %17 = vector.broadcast %16 : vector<256x1xf32> to vector<256x128xf32>
    %18 = arith.subf %4, %17 : vector<256x128xf32>
    %19 = arith.mulf %18, %18 : vector<256x128xf32>
    %cst_7 = arith.constant dense<0.000000e+00> : vector<256xf32>
    %20 = vector.multi_reduction <add>, %19, %cst_7 [1] : vector<256x128xf32> to vector<256xf32>
    %21 = vector.shape_cast %20 : vector<256xf32> to vector<256x1xf32>
    %cst_8 = arith.constant 1.280000e+02 : f32
    %22 = vector.broadcast %cst_8 : f32 to vector<256x1xf32>
    %23 = arith.divf %21, %22 : vector<256x1xf32>
    %24 = vector.broadcast %16 : vector<256x1xf32> to vector<256x128xf32>
    %25 = arith.subf %4, %24 : vector<256x128xf32>
    %cst_9 = arith.constant 9.99999974E-6 : f32
    %26 = vector.broadcast %cst_9 : f32 to vector<256x1xf32>
    %27 = arith.addf %23, %26 : vector<256x1xf32>
    %28 = math.rsqrt %27 : vector<256x1xf32>
    %29 = vector.broadcast %28 : vector<256x1xf32> to vector<256x128xf32>
    %30 = arith.mulf %25, %29 : vector<256x128xf32>
    %31 = vector.broadcast %7 : vector<1x128xf32> to vector<256x128xf32>
    %32 = arith.mulf %30, %31 : vector<256x128xf32>
    %33 = vector.broadcast %8 : vector<1x128xf32> to vector<256x128xf32>
    %34 = arith.addf %32, %33 : vector<256x128xf32>
    %35 = arith.truncf %34 : vector<256x128xf32> to vector<256x128xbf16>
    %cst_10 = arith.constant 0.000000e+00 : f32
    %36 = vector.broadcast %cst_10 : f32 to vector<256x128xf32>
    %c0_i32_11 = arith.constant 0 : i32
    %c0_12 = arith.constant 0 : index
    %37 = arith.index_cast %c0_i32_11 : i32 to index
    %c0_13 = arith.constant 0 : index
    %c0_14 = arith.constant 0 : index
    %38 = vector.load %arg3[%c0_12, %37, %c0_13, %c0_14] : memref<1x12x128x32xbf16, #tpu.memory_space<vmem>>, vector<1x1x128x32xbf16>
    %39 = vector.shape_cast %38 : vector<1x1x128x32xbf16> to vector<128x32xbf16>
    %c4_i32 = arith.constant 4 : i32
    %40 = arith.addi %c4_i32, %c0_i32_11 : i32
    %c0_15 = arith.constant 0 : index
    %41 = arith.index_cast %40 : i32 to index
    %c0_16 = arith.constant 0 : index
    %c0_17 = arith.constant 0 : index
    %42 = vector.load %arg3[%c0_15, %41, %c0_16, %c0_17] : memref<1x12x128x32xbf16, #tpu.memory_space<vmem>>, vector<1x1x128x32xbf16>
    %43 = vector.shape_cast %42 : vector<1x1x128x32xbf16> to vector<128x32xbf16>
    %c8_i32 = arith.constant 8 : i32
    %44 = arith.addi %c8_i32, %c0_i32_11 : i32
    %c0_18 = arith.constant 0 : index
    %45 = arith.index_cast %44 : i32 to index
    %c0_19 = arith.constant 0 : index
    %c0_20 = arith.constant 0 : index
    %46 = vector.load %arg3[%c0_18, %45, %c0_19, %c0_20] : memref<1x12x128x32xbf16, #tpu.memory_space<vmem>>, vector<1x1x128x32xbf16>
    %47 = vector.shape_cast %46 : vector<1x1x128x32xbf16> to vector<128x32xbf16>
    %c0_21 = arith.constant 0 : index
    %48 = arith.index_cast %c0_i32_11 : i32 to index
    %c0_22 = arith.constant 0 : index
    %c0_23 = arith.constant 0 : index
    %49 = vector.load %arg4[%c0_21, %48, %c0_22, %c0_23] : memref<1x4x32x128xbf16, #tpu.memory_space<vmem>>, vector<1x1x32x128xbf16>
    %50 = vector.shape_cast %49 : vector<1x1x32x128xbf16> to vector<32x128xbf16>
    %cst_24 = arith.constant dense<0.000000e+00> : vector<256x32xf32>
    %51 = tpu.matmul %35, %39, %cst_24 {dimension_numbers = #tpu.dot_dimension_numbers<[1], [0], [0], [1], [0, 0, 1, 1], [], []>} : vector<256x128xbf16>, vector<128x32xbf16>, vector<256x32xf32> -> vector<256x32xf32>
    %cst_25 = arith.constant dense<0.000000e+00> : vector<256x32xf32>
    %52 = tpu.matmul %35, %43, %cst_25 {dimension_numbers = #tpu.dot_dimension_numbers<[1], [0], [0], [1], [0, 0, 1, 1], [], []>} : vector<256x128xbf16>, vector<128x32xbf16>, vector<256x32xf32> -> vector<256x32xf32>
    %cst_26 = arith.constant dense<0.000000e+00> : vector<256x32xf32>
    %53 = tpu.matmul %35, %47, %cst_26 {dimension_numbers = #tpu.dot_dimension_numbers<[1], [0], [0], [1], [0, 0, 1, 1], [], []>} : vector<256x128xbf16>, vector<128x32xbf16>, vector<256x32xf32> -> vector<256x32xf32>
    %54 = vector.shape_cast %51 : vector<256x32xf32> to vector<2x128x32xf32>
    %55 = arith.truncf %54 : vector<2x128x32xf32> to vector<2x128x32xbf16>
    %56 = vector.shape_cast %52 : vector<256x32xf32> to vector<2x128x32xf32>
    %57 = arith.truncf %56 : vector<2x128x32xf32> to vector<2x128x32xbf16>
    %58 = vector.shape_cast %53 : vector<256x32xf32> to vector<2x128x32xf32>
    %59 = arith.truncf %58 : vector<2x128x32xf32> to vector<2x128x32xbf16>
    "tpu.trace_start"() <{level = 10 : i32, message = "bqd,bkd->bqk"}> : () -> ()
    %cst_27 = arith.constant dense<0.000000e+00> : vector<2x128x128xf32>
    %60 = tpu.matmul %55, %57, %cst_27 {dimension_numbers = #tpu.dot_dimension_numbers<[2], [2], [1], [1], [0, 0, 0, 1, 1, 1], [0], [0]>} : vector<2x128x32xbf16>, vector<2x128x32xbf16>, vector<2x128x128xf32> -> vector<2x128x128xf32>
    "tpu.trace_stop"() : () -> ()
    %cst_28 = arith.constant dense<0xFF800000> : vector<2x128xf32>
    %61 = vector.multi_reduction <maximumf>, %60, %cst_28 [2] : vector<2x128x128xf32> to vector<2x128xf32>
    %62 = vector.shape_cast %61 : vector<2x128xf32> to vector<2x128x1xf32>
    %63 = vector.broadcast %62 : vector<2x128x1xf32> to vector<2x128x128xf32>
    %64 = arith.subf %60, %63 : vector<2x128x128xf32>
    %65 = math.exp %64 : vector<2x128x128xf32>
    %cst_29 = arith.constant dense<0.000000e+00> : vector<2x128xf32>
    %66 = vector.multi_reduction <add>, %65, %cst_29 [2] : vector<2x128x128xf32> to vector<2x128xf32>
    %67 = vector.shape_cast %66 : vector<2x128xf32> to vector<2x128x1xf32>
    %68 = tpu.reciprocal %67 {approx = true} : vector<2x128x1xf32> -> vector<2x128x1xf32>
    %69 = vector.broadcast %68 : vector<2x128x1xf32> to vector<2x128x128xf32>
    %70 = arith.mulf %65, %69 : vector<2x128x128xf32>
    %71 = arith.truncf %70 : vector<2x128x128xf32> to vector<2x128x128xbf16>
    "tpu.trace_start"() <{level = 10 : i32, message = "bqk,bkd->bqd"}> : () -> ()
    %cst_30 = arith.constant dense<0.000000e+00> : vector<2x128x32xf32>
    %72 = tpu.matmul %71, %59, %cst_30 {dimension_numbers = #tpu.dot_dimension_numbers<[2], [1], [1], [2], [0, 0, 0, 1, 1, 2], [0], [0]>} : vector<2x128x128xbf16>, vector<2x128x32xbf16>, vector<2x128x32xf32> -> vector<2x128x32xf32>
    "tpu.trace_stop"() : () -> ()
    %73 = vector.shape_cast %72 : vector<2x128x32xf32> to vector<256x32xf32>
    %74 = arith.truncf %73 : vector<256x32xf32> to vector<256x32xbf16>
    %cst_31 = arith.constant dense<0.000000e+00> : vector<256x128xf32>
    %75 = tpu.matmul %74, %50, %cst_31 {dimension_numbers = #tpu.dot_dimension_numbers<[1], [0], [0], [1], [0, 0, 1, 1], [], []>} : vector<256x32xbf16>, vector<32x128xbf16>, vector<256x128xf32> -> vector<256x128xf32>
    %76 = arith.addf %36, %75 : vector<256x128xf32>
    %c1_i32 = arith.constant 1 : i32
    %c0_32 = arith.constant 0 : index
    %77 = arith.index_cast %c1_i32 : i32 to index
    %c0_33 = arith.constant 0 : index
    %c0_34 = arith.constant 0 : index
    %78 = vector.load %arg3[%c0_32, %77, %c0_33, %c0_34] : memref<1x12x128x32xbf16, #tpu.memory_space<vmem>>, vector<1x1x128x32xbf16>
    %79 = vector.shape_cast %78 : vector<1x1x128x32xbf16> to vector<128x32xbf16>
    %c4_i32_35 = arith.constant 4 : i32
    %80 = arith.addi %c4_i32_35, %c1_i32 : i32
    %c0_36 = arith.constant 0 : index
    %81 = arith.index_cast %80 : i32 to index
    %c0_37 = arith.constant 0 : index
    %c0_38 = arith.constant 0 : index
    %82 = vector.load %arg3[%c0_36, %81, %c0_37, %c0_38] : memref<1x12x128x32xbf16, #tpu.memory_space<vmem>>, vector<1x1x128x32xbf16>
    %83 = vector.shape_cast %82 : vector<1x1x128x32xbf16> to vector<128x32xbf16>
    %c8_i32_39 = arith.constant 8 : i32
    %84 = arith.addi %c8_i32_39, %c1_i32 : i32
    %c0_40 = arith.constant 0 : index
    %85 = arith.index_cast %84 : i32 to index
    %c0_41 = arith.constant 0 : index
    %c0_42 = arith.constant 0 : index
    %86 = vector.load %arg3[%c0_40, %85, %c0_41, %c0_42] : memref<1x12x128x32xbf16, #tpu.memory_space<vmem>>, vector<1x1x128x32xbf16>
    %87 = vector.shape_cast %86 : vector<1x1x128x32xbf16> to vector<128x32xbf16>
    %c0_43 = arith.constant 0 : index
    %88 = arith.index_cast %c1_i32 : i32 to index
    %c0_44 = arith.constant 0 : index
    %c0_45 = arith.constant 0 : index
    %89 = vector.load %arg4[%c0_43, %88, %c0_44, %c0_45] : memref<1x4x32x128xbf16, #tpu.memory_space<vmem>>, vector<1x1x32x128xbf16>
    %90 = vector.shape_cast %89 : vector<1x1x32x128xbf16> to vector<32x128xbf16>
    %cst_46 = arith.constant dense<0.000000e+00> : vector<256x32xf32>
    %91 = tpu.matmul %35, %79, %cst_46 {dimension_numbers = #tpu.dot_dimension_numbers<[1], [0], [0], [1], [0, 0, 1, 1], [], []>} : vector<256x128xbf16>, vector<128x32xbf16>, vector<256x32xf32> -> vector<256x32xf32>
    %cst_47 = arith.constant dense<0.000000e+00> : vector<256x32xf32>
    %92 = tpu.matmul %35, %83, %cst_47 {dimension_numbers = #tpu.dot_dimension_numbers<[1], [0], [0], [1], [0, 0, 1, 1], [], []>} : vector<256x128xbf16>, vector<128x32xbf16>, vector<256x32xf32> -> vector<256x32xf32>
    %cst_48 = arith.constant dense<0.000000e+00> : vector<256x32xf32>
    %93 = tpu.matmul %35, %87, %cst_48 {dimension_numbers = #tpu.dot_dimension_numbers<[1], [0], [0], [1], [0, 0, 1, 1], [], []>} : vector<256x128xbf16>, vector<128x32xbf16>, vector<256x32xf32> -> vector<256x32xf32>
    %94 = vector.shape_cast %91 : vector<256x32xf32> to vector<2x128x32xf32>
    %95 = arith.truncf %94 : vector<2x128x32xf32> to vector<2x128x32xbf16>
    %96 = vector.shape_cast %92 : vector<256x32xf32> to vector<2x128x32xf32>
    %97 = arith.truncf %96 : vector<2x128x32xf32> to vector<2x128x32xbf16>
    %98 = vector.shape_cast %93 : vector<256x32xf32> to vector<2x128x32xf32>
    %99 = arith.truncf %98 : vector<2x128x32xf32> to vector<2x128x32xbf16>
    "tpu.trace_start"() <{level = 10 : i32, message = "bqd,bkd->bqk"}> : () -> ()
    %cst_49 = arith.constant dense<0.000000e+00> : vector<2x128x128xf32>
    %100 = tpu.matmul %95, %97, %cst_49 {dimension_numbers = #tpu.dot_dimension_numbers<[2], [2], [1], [1], [0, 0, 0, 1, 1, 1], [0], [0]>} : vector<2x128x32xbf16>, vector<2x128x32xbf16>, vector<2x128x128xf32> -> vector<2x128x128xf32>
    "tpu.trace_stop"() : () -> ()
    %cst_50 = arith.constant dense<0xFF800000> : vector<2x128xf32>
    %101 = vector.multi_reduction <maximumf>, %100, %cst_50 [2] : vector<2x128x128xf32> to vector<2x128xf32>
    %102 = vector.shape_cast %101 : vector<2x128xf32> to vector<2x128x1xf32>
    %103 = vector.broadcast %102 : vector<2x128x1xf32> to vector<2x128x128xf32>
    %104 = arith.subf %100, %103 : vector<2x128x128xf32>
    %105 = math.exp %104 : vector<2x128x128xf32>
    %cst_51 = arith.constant dense<0.000000e+00> : vector<2x128xf32>
    %106 = vector.multi_reduction <add>, %105, %cst_51 [2] : vector<2x128x128xf32> to vector<2x128xf32>
    %107 = vector.shape_cast %106 : vector<2x128xf32> to vector<2x128x1xf32>
    %108 = tpu.reciprocal %107 {approx = true} : vector<2x128x1xf32> -> vector<2x128x1xf32>
    %109 = vector.broadcast %108 : vector<2x128x1xf32> to vector<2x128x128xf32>
    %110 = arith.mulf %105, %109 : vector<2x128x128xf32>
    %111 = arith.truncf %110 : vector<2x128x128xf32> to vector<2x128x128xbf16>
    "tpu.trace_start"() <{level = 10 : i32, message = "bqk,bkd->bqd"}> : () -> ()
    %cst_52 = arith.constant dense<0.000000e+00> : vector<2x128x32xf32>
    %112 = tpu.matmul %111, %99, %cst_52 {dimension_numbers = #tpu.dot_dimension_numbers<[2], [1], [1], [2], [0, 0, 0, 1, 1, 2], [0], [0]>} : vector<2x128x128xbf16>, vector<2x128x32xbf16>, vector<2x128x32xf32> -> vector<2x128x32xf32>
    "tpu.trace_stop"() : () -> ()
    %113 = vector.shape_cast %112 : vector<2x128x32xf32> to vector<256x32xf32>
    %114 = arith.truncf %113 : vector<256x32xf32> to vector<256x32xbf16>
    %cst_53 = arith.constant dense<0.000000e+00> : vector<256x128xf32>
    %115 = tpu.matmul %114, %90, %cst_53 {dimension_numbers = #tpu.dot_dimension_numbers<[1], [0], [0], [1], [0, 0, 1, 1], [], []>} : vector<256x32xbf16>, vector<32x128xbf16>, vector<256x128xf32> -> vector<256x128xf32>
    %116 = arith.addf %76, %115 : vector<256x128xf32>
    %c2_i32 = arith.constant 2 : i32
    %c0_54 = arith.constant 0 : index
    %117 = arith.index_cast %c2_i32 : i32 to index
    %c0_55 = arith.constant 0 : index
    %c0_56 = arith.constant 0 : index
    %118 = vector.load %arg3[%c0_54, %117, %c0_55, %c0_56] : memref<1x12x128x32xbf16, #tpu.memory_space<vmem>>, vector<1x1x128x32xbf16>
    %119 = vector.shape_cast %118 : vector<1x1x128x32xbf16> to vector<128x32xbf16>
    %c4_i32_57 = arith.constant 4 : i32
    %120 = arith.addi %c4_i32_57, %c2_i32 : i32
    %c0_58 = arith.constant 0 : index
    %121 = arith.index_cast %120 : i32 to index
    %c0_59 = arith.constant 0 : index
    %c0_60 = arith.constant 0 : index
    %122 = vector.load %arg3[%c0_58, %121, %c0_59, %c0_60] : memref<1x12x128x32xbf16, #tpu.memory_space<vmem>>, vector<1x1x128x32xbf16>
    %123 = vector.shape_cast %122 : vector<1x1x128x32xbf16> to vector<128x32xbf16>
    %c8_i32_61 = arith.constant 8 : i32
    %124 = arith.addi %c8_i32_61, %c2_i32 : i32
    %c0_62 = arith.constant 0 : index
    %125 = arith.index_cast %124 : i32 to index
    %c0_63 = arith.constant 0 : index
    %c0_64 = arith.constant 0 : index
    %126 = vector.load %arg3[%c0_62, %125, %c0_63, %c0_64] : memref<1x12x128x32xbf16, #tpu.memory_space<vmem>>, vector<1x1x128x32xbf16>
    %127 = vector.shape_cast %126 : vector<1x1x128x32xbf16> to vector<128x32xbf16>
    %c0_65 = arith.constant 0 : index
    %128 = arith.index_cast %c2_i32 : i32 to index
    %c0_66 = arith.constant 0 : index
    %c0_67 = arith.constant 0 : index
    %129 = vector.load %arg4[%c0_65, %128, %c0_66, %c0_67] : memref<1x4x32x128xbf16, #tpu.memory_space<vmem>>, vector<1x1x32x128xbf16>
    %130 = vector.shape_cast %129 : vector<1x1x32x128xbf16> to vector<32x128xbf16>
    %cst_68 = arith.constant dense<0.000000e+00> : vector<256x32xf32>
    %131 = tpu.matmul %35, %119, %cst_68 {dimension_numbers = #tpu.dot_dimension_numbers<[1], [0], [0], [1], [0, 0, 1, 1], [], []>} : vector<256x128xbf16>, vector<128x32xbf16>, vector<256x32xf32> -> vector<256x32xf32>
    %cst_69 = arith.constant dense<0.000000e+00> : vector<256x32xf32>
    %132 = tpu.matmul %35, %123, %cst_69 {dimension_numbers = #tpu.dot_dimension_numbers<[1], [0], [0], [1], [0, 0, 1, 1], [], []>} : vector<256x128xbf16>, vector<128x32xbf16>, vector<256x32xf32> -> vector<256x32xf32>
    %cst_70 = arith.constant dense<0.000000e+00> : vector<256x32xf32>
    %133 = tpu.matmul %35, %127, %cst_70 {dimension_numbers = #tpu.dot_dimension_numbers<[1], [0], [0], [1], [0, 0, 1, 1], [], []>} : vector<256x128xbf16>, vector<128x32xbf16>, vector<256x32xf32> -> vector<256x32xf32>
    %134 = vector.shape_cast %131 : vector<256x32xf32> to vector<2x128x32xf32>
    %135 = arith.truncf %134 : vector<2x128x32xf32> to vector<2x128x32xbf16>
    %136 = vector.shape_cast %132 : vector<256x32xf32> to vector<2x128x32xf32>
    %137 = arith.truncf %136 : vector<2x128x32xf32> to vector<2x128x32xbf16>
    %138 = vector.shape_cast %133 : vector<256x32xf32> to vector<2x128x32xf32>
    %139 = arith.truncf %138 : vector<2x128x32xf32> to vector<2x128x32xbf16>
    "tpu.trace_start"() <{level = 10 : i32, message = "bqd,bkd->bqk"}> : () -> ()
    %cst_71 = arith.constant dense<0.000000e+00> : vector<2x128x128xf32>
    %140 = tpu.matmul %135, %137, %cst_71 {dimension_numbers = #tpu.dot_dimension_numbers<[2], [2], [1], [1], [0, 0, 0, 1, 1, 1], [0], [0]>} : vector<2x128x32xbf16>, vector<2x128x32xbf16>, vector<2x128x128xf32> -> vector<2x128x128xf32>
    "tpu.trace_stop"() : () -> ()
    %cst_72 = arith.constant dense<0xFF800000> : vector<2x128xf32>
    %141 = vector.multi_reduction <maximumf>, %140, %cst_72 [2] : vector<2x128x128xf32> to vector<2x128xf32>
    %142 = vector.shape_cast %141 : vector<2x128xf32> to vector<2x128x1xf32>
    %143 = vector.broadcast %142 : vector<2x128x1xf32> to vector<2x128x128xf32>
    %144 = arith.subf %140, %143 : vector<2x128x128xf32>
    %145 = math.exp %144 : vector<2x128x128xf32>
    %cst_73 = arith.constant dense<0.000000e+00> : vector<2x128xf32>
    %146 = vector.multi_reduction <add>, %145, %cst_73 [2] : vector<2x128x128xf32> to vector<2x128xf32>
    %147 = vector.shape_cast %146 : vector<2x128xf32> to vector<2x128x1xf32>
    %148 = tpu.reciprocal %147 {approx = true} : vector<2x128x1xf32> -> vector<2x128x1xf32>
    %149 = vector.broadcast %148 : vector<2x128x1xf32> to vector<2x128x128xf32>
    %150 = arith.mulf %145, %149 : vector<2x128x128xf32>
    %151 = arith.truncf %150 : vector<2x128x128xf32> to vector<2x128x128xbf16>
    "tpu.trace_start"() <{level = 10 : i32, message = "bqk,bkd->bqd"}> : () -> ()
    %cst_74 = arith.constant dense<0.000000e+00> : vector<2x128x32xf32>
    %152 = tpu.matmul %151, %139, %cst_74 {dimension_numbers = #tpu.dot_dimension_numbers<[2], [1], [1], [2], [0, 0, 0, 1, 1, 2], [0], [0]>} : vector<2x128x128xbf16>, vector<2x128x32xbf16>, vector<2x128x32xf32> -> vector<2x128x32xf32>
    "tpu.trace_stop"() : () -> ()
    %153 = vector.shape_cast %152 : vector<2x128x32xf32> to vector<256x32xf32>
    %154 = arith.truncf %153 : vector<256x32xf32> to vector<256x32xbf16>
    %cst_75 = arith.constant dense<0.000000e+00> : vector<256x128xf32>
    %155 = tpu.matmul %154, %130, %cst_75 {dimension_numbers = #tpu.dot_dimension_numbers<[1], [0], [0], [1], [0, 0, 1, 1], [], []>} : vector<256x32xbf16>, vector<32x128xbf16>, vector<256x128xf32> -> vector<256x128xf32>
    %156 = arith.addf %116, %155 : vector<256x128xf32>
    %c3_i32 = arith.constant 3 : i32
    %c0_76 = arith.constant 0 : index
    %157 = arith.index_cast %c3_i32 : i32 to index
    %c0_77 = arith.constant 0 : index
    %c0_78 = arith.constant 0 : index
    %158 = vector.load %arg3[%c0_76, %157, %c0_77, %c0_78] : memref<1x12x128x32xbf16, #tpu.memory_space<vmem>>, vector<1x1x128x32xbf16>
    %159 = vector.shape_cast %158 : vector<1x1x128x32xbf16> to vector<128x32xbf16>
    %c4_i32_79 = arith.constant 4 : i32
    %160 = arith.addi %c4_i32_79, %c3_i32 : i32
    %c0_80 = arith.constant 0 : index
    %161 = arith.index_cast %160 : i32 to index
    %c0_81 = arith.constant 0 : index
    %c0_82 = arith.constant 0 : index
    %162 = vector.load %arg3[%c0_80, %161, %c0_81, %c0_82] : memref<1x12x128x32xbf16, #tpu.memory_space<vmem>>, vector<1x1x128x32xbf16>
    %163 = vector.shape_cast %162 : vector<1x1x128x32xbf16> to vector<128x32xbf16>
    %c8_i32_83 = arith.constant 8 : i32
    %164 = arith.addi %c8_i32_83, %c3_i32 : i32
    %c0_84 = arith.constant 0 : index
    %165 = arith.index_cast %164 : i32 to index
    %c0_85 = arith.constant 0 : index
    %c0_86 = arith.constant 0 : index
    %166 = vector.load %arg3[%c0_84, %165, %c0_85, %c0_86] : memref<1x12x128x32xbf16, #tpu.memory_space<vmem>>, vector<1x1x128x32xbf16>
    %167 = vector.shape_cast %166 : vector<1x1x128x32xbf16> to vector<128x32xbf16>
    %c0_87 = arith.constant 0 : index
    %168 = arith.index_cast %c3_i32 : i32 to index
    %c0_88 = arith.constant 0 : index
    %c0_89 = arith.constant 0 : index
    %169 = vector.load %arg4[%c0_87, %168, %c0_88, %c0_89] : memref<1x4x32x128xbf16, #tpu.memory_space<vmem>>, vector<1x1x32x128xbf16>
    %170 = vector.shape_cast %169 : vector<1x1x32x128xbf16> to vector<32x128xbf16>
    %cst_90 = arith.constant dense<0.000000e+00> : vector<256x32xf32>
    %171 = tpu.matmul %35, %159, %cst_90 {dimension_numbers = #tpu.dot_dimension_numbers<[1], [0], [0], [1], [0, 0, 1, 1], [], []>} : vector<256x128xbf16>, vector<128x32xbf16>, vector<256x32xf32> -> vector<256x32xf32>
    %cst_91 = arith.constant dense<0.000000e+00> : vector<256x32xf32>
    %172 = tpu.matmul %35, %163, %cst_91 {dimension_numbers = #tpu.dot_dimension_numbers<[1], [0], [0], [1], [0, 0, 1, 1], [], []>} : vector<256x128xbf16>, vector<128x32xbf16>, vector<256x32xf32> -> vector<256x32xf32>
    %cst_92 = arith.constant dense<0.000000e+00> : vector<256x32xf32>
    %173 = tpu.matmul %35, %167, %cst_92 {dimension_numbers = #tpu.dot_dimension_numbers<[1], [0], [0], [1], [0, 0, 1, 1], [], []>} : vector<256x128xbf16>, vector<128x32xbf16>, vector<256x32xf32> -> vector<256x32xf32>
    %174 = vector.shape_cast %171 : vector<256x32xf32> to vector<2x128x32xf32>
    %175 = arith.truncf %174 : vector<2x128x32xf32> to vector<2x128x32xbf16>
    %176 = vector.shape_cast %172 : vector<256x32xf32> to vector<2x128x32xf32>
    %177 = arith.truncf %176 : vector<2x128x32xf32> to vector<2x128x32xbf16>
    %178 = vector.shape_cast %173 : vector<256x32xf32> to vector<2x128x32xf32>
    %179 = arith.truncf %178 : vector<2x128x32xf32> to vector<2x128x32xbf16>
    "tpu.trace_start"() <{level = 10 : i32, message = "bqd,bkd->bqk"}> : () -> ()
    %cst_93 = arith.constant dense<0.000000e+00> : vector<2x128x128xf32>
    %180 = tpu.matmul %175, %177, %cst_93 {dimension_numbers = #tpu.dot_dimension_numbers<[2], [2], [1], [1], [0, 0, 0, 1, 1, 1], [0], [0]>} : vector<2x128x32xbf16>, vector<2x128x32xbf16>, vector<2x128x128xf32> -> vector<2x128x128xf32>
    "tpu.trace_stop"() : () -> ()
    %cst_94 = arith.constant dense<0xFF800000> : vector<2x128xf32>
    %181 = vector.multi_reduction <maximumf>, %180, %cst_94 [2] : vector<2x128x128xf32> to vector<2x128xf32>
    %182 = vector.shape_cast %181 : vector<2x128xf32> to vector<2x128x1xf32>
    %183 = vector.broadcast %182 : vector<2x128x1xf32> to vector<2x128x128xf32>
    %184 = arith.subf %180, %183 : vector<2x128x128xf32>
    %185 = math.exp %184 : vector<2x128x128xf32>
    %cst_95 = arith.constant dense<0.000000e+00> : vector<2x128xf32>
    %186 = vector.multi_reduction <add>, %185, %cst_95 [2] : vector<2x128x128xf32> to vector<2x128xf32>
    %187 = vector.shape_cast %186 : vector<2x128xf32> to vector<2x128x1xf32>
    %188 = tpu.reciprocal %187 {approx = true} : vector<2x128x1xf32> -> vector<2x128x1xf32>
    %189 = vector.broadcast %188 : vector<2x128x1xf32> to vector<2x128x128xf32>
    %190 = arith.mulf %185, %189 : vector<2x128x128xf32>
    %191 = arith.truncf %190 : vector<2x128x128xf32> to vector<2x128x128xbf16>
    "tpu.trace_start"() <{level = 10 : i32, message = "bqk,bkd->bqd"}> : () -> ()
    %cst_96 = arith.constant dense<0.000000e+00> : vector<2x128x32xf32>
    %192 = tpu.matmul %191, %179, %cst_96 {dimension_numbers = #tpu.dot_dimension_numbers<[2], [1], [1], [2], [0, 0, 0, 1, 1, 2], [0], [0]>} : vector<2x128x128xbf16>, vector<2x128x32xbf16>, vector<2x128x32xf32> -> vector<2x128x32xf32>
    "tpu.trace_stop"() : () -> ()
    %193 = vector.shape_cast %192 : vector<2x128x32xf32> to vector<256x32xf32>
    %194 = arith.truncf %193 : vector<256x32xf32> to vector<256x32xbf16>
    %cst_97 = arith.constant dense<0.000000e+00> : vector<256x128xf32>
    %195 = tpu.matmul %194, %170, %cst_97 {dimension_numbers = #tpu.dot_dimension_numbers<[1], [0], [0], [1], [0, 0, 1, 1], [], []>} : vector<256x32xbf16>, vector<32x128xbf16>, vector<256x128xf32> -> vector<256x128xf32>
    %196 = arith.addf %156, %195 : vector<256x128xf32>
    %c4_i32_98 = arith.constant 4 : i32
    %197 = arith.addf %4, %196 : vector<256x128xf32>
    %198 = vector.broadcast %9 : vector<1x128xf32> to vector<256x128xf32>
    %199 = arith.addf %197, %198 : vector<256x128xf32>
    %cst_99 = arith.constant dense<0.000000e+00> : vector<256xf32>
    %200 = vector.multi_reduction <add>, %199, %cst_99 [1] : vector<256x128xf32> to vector<256xf32>
    %201 = vector.shape_cast %200 : vector<256xf32> to vector<256x1xf32>
    %cst_100 = arith.constant 1.280000e+02 : f32
    %202 = vector.broadcast %cst_100 : f32 to vector<256x1xf32>
    %203 = arith.divf %201, %202 : vector<256x1xf32>
    %204 = vector.broadcast %203 : vector<256x1xf32> to vector<256x128xf32>
    %205 = arith.subf %199, %204 : vector<256x128xf32>
    %206 = arith.mulf %205, %205 : vector<256x128xf32>
    %cst_101 = arith.constant dense<0.000000e+00> : vector<256xf32>
    %207 = vector.multi_reduction <add>, %206, %cst_101 [1] : vector<256x128xf32> to vector<256xf32>
    %208 = vector.shape_cast %207 : vector<256xf32> to vector<256x1xf32>
    %cst_102 = arith.constant 1.280000e+02 : f32
    %209 = vector.broadcast %cst_102 : f32 to vector<256x1xf32>
    %210 = arith.divf %208, %209 : vector<256x1xf32>
    %211 = vector.broadcast %203 : vector<256x1xf32> to vector<256x128xf32>
    %212 = arith.subf %199, %211 : vector<256x128xf32>
    %cst_103 = arith.constant 9.99999974E-6 : f32
    %213 = vector.broadcast %cst_103 : f32 to vector<256x1xf32>
    %214 = arith.addf %210, %213 : vector<256x1xf32>
    %215 = math.rsqrt %214 : vector<256x1xf32>
    %216 = vector.broadcast %215 : vector<256x1xf32> to vector<256x128xf32>
    %217 = arith.mulf %212, %216 : vector<256x128xf32>
    %218 = vector.broadcast %10 : vector<1x128xf32> to vector<256x128xf32>
    %219 = arith.mulf %217, %218 : vector<256x128xf32>
    %220 = vector.broadcast %11 : vector<1x128xf32> to vector<256x128xf32>
    %221 = arith.addf %219, %220 : vector<256x128xf32>
    %222 = arith.truncf %221 : vector<256x128xf32> to vector<256x128xbf16>
    %c0_104 = arith.constant 0 : index
    %c0_105 = arith.constant 0 : index
    %c0_106 = arith.constant 0 : index
    %223 = vector.load %arg5[%c0_104, %c0_105, %c0_106] : memref<1x128x256xbf16, #tpu.memory_space<vmem>>, vector<1x128x256xbf16>
    %224 = vector.shape_cast %223 : vector<1x128x256xbf16> to vector<128x256xbf16>
    %cst_107 = arith.constant dense<0.000000e+00> : vector<256x256xf32>
    %225 = tpu.matmul %222, %224, %cst_107 {dimension_numbers = #tpu.dot_dimension_numbers<[1], [0], [0], [1], [0, 0, 1, 1], [], []>} : vector<256x128xbf16>, vector<128x256xbf16>, vector<256x256xf32> -> vector<256x256xf32>
    %c0_108 = arith.constant 0 : index
    %c0_109 = arith.constant 0 : index
    %c0_110 = arith.constant 0 : index
    %226 = vector.load %arg8[%c0_108, %c0_109, %c0_110] : memref<1x1x256xf32, #tpu.memory_space<vmem>>, vector<1x1x256xf32>
    %227 = vector.shape_cast %226 : vector<1x1x256xf32> to vector<1x256xf32>
    %228 = vector.broadcast %227 : vector<1x256xf32> to vector<256x256xf32>
    %229 = arith.addf %225, %228 : vector<256x256xf32>
    %cst_111 = arith.constant 5.000000e-01 : f32
    %230 = vector.broadcast %cst_111 : f32 to vector<256x256xf32>
    %231 = arith.mulf %230, %229 : vector<256x256xf32>
    %cst_112 = arith.constant 0.707106769 : f32
    %232 = vector.broadcast %cst_112 : f32 to vector<256x256xf32>
    %233 = arith.mulf %229, %232 : vector<256x256xf32>
    %234 = math.erf %233 : vector<256x256xf32>
    %cst_113 = arith.constant 1.000000e+00 : f32
    %235 = vector.broadcast %cst_113 : f32 to vector<256x256xf32>
    %236 = arith.addf %235, %234 : vector<256x256xf32>
    %237 = arith.mulf %231, %236 : vector<256x256xf32>
    %238 = arith.truncf %237 : vector<256x256xf32> to vector<256x256xbf16>
    %c0_114 = arith.constant 0 : index
    %c0_115 = arith.constant 0 : index
    %c0_116 = arith.constant 0 : index
    %239 = vector.load %arg6[%c0_114, %c0_115, %c0_116] : memref<1x256x128xbf16, #tpu.memory_space<vmem>>, vector<1x256x128xbf16>
    %240 = vector.shape_cast %239 : vector<1x256x128xbf16> to vector<256x128xbf16>
    %cst_117 = arith.constant dense<0.000000e+00> : vector<256x128xf32>
    %241 = tpu.matmul %238, %240, %cst_117 {dimension_numbers = #tpu.dot_dimension_numbers<[1], [0], [0], [1], [0, 0, 1, 1], [], []>} : vector<256x256xbf16>, vector<256x128xbf16>, vector<256x128xf32> -> vector<256x128xf32>
    %242 = vector.broadcast %12 : vector<1x128xf32> to vector<256x128xf32>
    %243 = arith.addf %241, %242 : vector<256x128xf32>
    %244 = arith.addf %199, %243 : vector<256x128xf32>
    %245 = vector.shape_cast %244 : vector<256x128xf32> to vector<2x128x128xf32>
    %c0_118 = arith.constant 0 : index
    %c0_119 = arith.constant 0 : index
    %c0_120 = arith.constant 0 : index
    %246 = vector.load %arg9[%c0_118, %c0_119, %c0_120] : memref<2x128x128xf32, #tpu.memory_space<vmem>>, vector<2x128x128xf32>
    tpu.vector_store %arg9[%c0_118, %c0_119, %c0_120], %245 {strides = array<i32>} : memref<2x128x128xf32, #tpu.memory_space<vmem>>, vector<2x128x128xf32>,
    return
  }
  func.func @transform_0(%arg0: i32, %arg1: i32) -> (i32, i32, i32) {
    %c0_i32 = arith.constant 0 : i32
    %c0_i32_0 = arith.constant 0 : i32
    %c0_i32_1 = arith.constant 0 : i32
    return %arg0, %c0_i32, %c0_i32_0 : i32, i32, i32
  }
  func.func @transform_1(%arg0: i32, %arg1: i32) -> (i32, i32, i32, i32) {
    %c0_i32 = arith.constant 0 : i32
    %c0_i32_0 = arith.constant 0 : i32
    %c0_i32_1 = arith.constant 0 : i32
    %c0_i32_2 = arith.constant 0 : i32
    return %arg1, %c0_i32, %c0_i32_0, %c0_i32_1 : i32, i32, i32, i32
  }
  func.func @transform_2(%arg0: i32, %arg1: i32) -> (i32, i32, i32, i32) {
    %c0_i32 = arith.constant 0 : i32
    %c0_i32_0 = arith.constant 0 : i32
    %c0_i32_1 = arith.constant 0 : i32
    %c0_i32_2 = arith.constant 0 : i32
    return %arg1, %c0_i32, %c0_i32_0, %c0_i32_1 : i32, i32, i32, i32
  }
  func.func @transform_3(%arg0: i32, %arg1: i32) -> (i32, i32, i32) {
    %c0_i32 = arith.constant 0 : i32
    %c0_i32_0 = arith.constant 0 : i32
    %c0_i32_1 = arith.constant 0 : i32
    return %arg1, %c0_i32, %c0_i32_0 : i32, i32, i32
  }
  func.func @transform_4(%arg0: i32, %arg1: i32) -> (i32, i32, i32) {
    %c0_i32 = arith.constant 0 : i32
    %c0_i32_0 = arith.constant 0 : i32
    %c0_i32_1 = arith.constant 0 : i32
    return %arg1, %c0_i32, %c0_i32_0 : i32, i32, i32
  }
  func.func @transform_5(%arg0: i32, %arg1: i32) -> (i32, i32, i32) {
    %c0_i32 = arith.constant 0 : i32
    %c0_i32_0 = arith.constant 0 : i32
    %c0_i32_1 = arith.constant 0 : i32
    return %arg1, %c0_i32, %c0_i32_0 : i32, i32, i32
  }
  func.func @transform_6(%arg0: i32, %arg1: i32) -> (i32, i32, i32) {
    %c0_i32 = arith.constant 0 : i32
    %c0_i32_0 = arith.constant 0 : i32
    %c0_i32_1 = arith.constant 0 : i32
    return %arg1, %c0_i32, %c0_i32_0 : i32, i32, i32
  }
  func.func @transform_7(%arg0: i32, %arg1: i32) -> (i32, i32, i32) {
    %c0_i32 = arith.constant 0 : i32
    %c0_i32_0 = arith.constant 0 : i32
    %c0_i32_1 = arith.constant 0 : i32
    return %arg0, %c0_i32, %c0_i32_0 : i32, i32, i32
  }
}

</mosaic_0001>

<bundles_post_ra>
// kernel: tpu_custom_call.1
= control target key start
LH: loop header
LB: loop body
LE: loop exit
PB: predicated region body
PF: predicated region fallthrough
CT: control target
= control target key end

     0   :  { %12 = vsyncpa [#allocation3], 0  ;;  %s13279_s24 = smov 0   ;;  %s13281_s25 = smov 0   ;;  %s17280_s0 = inlined_call_operand.vmem [shape: f32[2,128,128], index: 0, kind: input, shape index: {}]   ;;  %s17281_s1 = inlined_call_operand.vmem [shape: bf16[2,12,128,32], index: 1, kind: input, shape index: {}]   ;;  %s17282_s2 = inlined_call_operand.vmem [shape: bf16[2,4,32,128], index: 2, kind: input, shape index: {}]   ;;  %s17283_s3 = inlined_call_operand.vmem [shape: bf16[2,128,256], index: 3, kind: input, shape index: {}]   ;;  %s17284_s4 = inlined_call_operand.vmem [shape: bf16[2,256,128], index: 4, kind: input, shape index: {}]   ;;  %s17285_s5 = inlined_call_operand.vmem [shape: f32[2,6,128], index: 5, kind: input, shape index: {}]   ;;  %s17286_s6 = inlined_call_operand.vmem [shape: f32[2,1,256], index: 6, kind: input, shape index: {}]   ;;  %s17287_s7 = inlined_call_operand.hbm [shape: f32[2,128,128], index: 7, kind: output, shape index: {}]  }
   0x1   :  { %s13283_s26 = smov 0  }
   0x2 LB: > { %s9688_s27 = sadd.s32 4294967295, %s13233_s26   ;;  %s27_s28 = sadd.s32 1, %s13229_s25  ;;  %s13233_s26 = sphi %s13283_s26, %s18_s26   ;;  %s13229_s25 = sphi %s13281_s25, %s17920_s25   ;;  %s13225_s24 = sphi %s13279_s24, %s17919_s24  }
   0x3   : > { %p28_p0 = scmp.ge.s32.totalorder %s27_s28, 2  ;;  %p9692_p1 = scmp.ge.s32.totalorder %s13233_s26, 1 }
   0x4   : > { %p310_p2 = scmp.lt.s32.totalorder %s13233_s26, 3 }
   0x5   : > { %s17922_s28 = smov (%p28_p0, %s27_s28), 0 }
   0x6   : > { %p311_p3 = pnand %p9692_p1, %p310_p2 }
   0x8   : > { %314 = sbr.rel (%p311_p3) target bundleno = 5456 (0x1550), region = 48 }
   0xd   : > { %p373_p4 = scmp.lt.s32.totalorder %s13225_s24, 1  ;;  %p9702_p5 = scmp.ne.s32.totalorder %s13225_s24, 0 }
   0xf   : > { %s374_s29 = scalar_select %p373_p4, %s13225_s24, 1 }
  0x11   : > { %s12202_s30 = smul.u32 768, %s374_s29  ;;  %s10159_s8 = sshll.u32 %s374_s29, 6 }
  0x12   : > { %s13301_s11 = scalar_lea.vmem %s17282_s2, %s10159_s8  ;;  %s10160_s12 = sshll.u32 %s374_s29, 7 }
  0x13   : > { %s13306_s15 = scalar_lea.vmem %s17281_s1, %s12202_s30  ;;  %s13311_s18 = scalar_lea.vmem %s17283_s3, %s10160_s12 }
  0x14   : > { %s13316_s21 = scalar_lea.vmem %s17284_s4, %s10160_s12  ;;  %s9700_s22 = sshll.u32 %s374_s29, 3 }
  0x15   : > { %s13321_s9 = scalar_lea.vmem %s17285_s5, %s9700_s22  ;;  %s9701_s10 = sshll.u32 %s374_s29, 1 }
  0x16   : > { %s13326_s14 = scalar_lea.vmem %s17286_s6, %s9701_s10  ;;  %406 = sbr.rel (%p9702_p5) target bundleno = 44 (0x2c), region = 52 }
  0x1b   : > { %v407_v0 = vld [vmem:[%s17280_s0] sm:$0xff]  ;;  %v408_v1 = vld [vmem:[%s17280_s0 + $0x8] sm:$0xff]  ;;  %v409_v2 = vld [vmem:[%s17280_s0 + $0x10] sm:$0xff] }
  0x1c   : > { %439 = vst [vmem:[#allocation2] sm:$0xff] %v407_v0  ;;  %440 = vst [vmem:[#allocation2 + $0x8] sm:$0xff] %v408_v1  ;;  %v410_v3 = vld [vmem:[%s17280_s0 + $0x18] sm:$0xff]  ;;  %v411_v4 = vld [vmem:[%s17280_s0 + $0x20] sm:$0xff] }
  0x1d   : > { %441 = vst [vmem:[#allocation2 + $0x10] sm:$0xff] %v409_v2  ;;  %v412_v5 = vld [vmem:[%s17280_s0 + $0x28] sm:$0xff]  ;;  %442 = vst [vmem:[#allocation2 + $0x18] sm:$0xff] %v410_v3  ;;  %v413_v6 = vld [vmem:[%s17280_s0 + $0x30] sm:$0xff] }
  0x1e   : > { %443 = vst [vmem:[#allocation2 + $0x20] sm:$0xff] %v411_v4  ;;  %444 = vst [vmem:[#allocation2 + $0x28] sm:$0xff] %v412_v5  ;;  %v414_v7 = vld [vmem:[%s17280_s0 + $0x38] sm:$0xff]  ;;  %v415_v8 = vld [vmem:[%s17280_s0 + $0x40] sm:$0xff] }
  0x1f   : > { %445 = vst [vmem:[#allocation2 + $0x30] sm:$0xff] %v413_v6  ;;  %446 = vst [vmem:[#allocation2 + $0x38] sm:$0xff] %v414_v7  ;;  %v416_v9 = vld [vmem:[%s17280_s0 + $0x48] sm:$0xff]  ;;  %v417_v10 = vld [vmem:[%s17280_s0 + $0x50] sm:$0xff] }
  0x20   : > { %447 = vst [vmem:[#allocation2 + $0x40] sm:$0xff] %v415_v8  ;;  %v418_v11 = vld [vmem:[%s17280_s0 + $0x58] sm:$0xff]  ;;  %448 = vst [vmem:[#allocation2 + $0x48] sm:$0xff] %v416_v9  ;;  %v419_v12 = vld [vmem:[%s17280_s0 + $0x60] sm:$0xff] }
  0x21   : > { %449 = vst [vmem:[#allocation2 + $0x50] sm:$0xff] %v417_v10  ;;  %450 = vst [vmem:[#allocation2 + $0x58] sm:$0xff] %v418_v11  ;;  %v420_v13 = vld [vmem:[%s17280_s0 + $0x68] sm:$0xff]  ;;  %v421_v14 = vld [vmem:[%s17280_s0 + $0x70] sm:$0xff] }
  0x22   : > { %451 = vst [vmem:[#allocation2 + $0x60] sm:$0xff] %v419_v12  ;;  %452 = vst [vmem:[#allocation2 + $0x68] sm:$0xff] %v420_v13  ;;  %v422_v15 = vld [vmem:[%s17280_s0 + $0x78] sm:$0xff]  ;;  %v423_v16 = vld [vmem:[%s17280_s0 + $0x80] sm:$0xff] }
  0x23   : > { %453 = vst [vmem:[#allocation2 + $0x70] sm:$0xff] %v421_v14  ;;  %v424_v17 = vld [vmem:[%s17280_s0 + $0x88] sm:$0xff]  ;;  %454 = vst [vmem:[#allocation2 + $0x78] sm:$0xff] %v422_v15  ;;  %v425_v18 = vld [vmem:[%s17280_s0 + $0x90] sm:$0xff] }
  0x24   : > { %455 = vst [vmem:[#allocation2 + $0x80] sm:$0xff] %v423_v16  ;;  %456 = vst [vmem:[#allocation2 + $0x88] sm:$0xff] %v424_v17  ;;  %v426_v19 = vld [vmem:[%s17280_s0 + $0x98] sm:$0xff]  ;;  %v427_v20 = vld [vmem:[%s17280_s0 + $0xa0] sm:$0xff] }
  0x25   : > { %457 = vst [vmem:[#allocation2 + $0x90] sm:$0xff] %v425_v18  ;;  %458 = vst [vmem:[#allocation2 + $0x98] sm:$0xff] %v426_v19  ;;  %v428_v21 = vld [vmem:[%s17280_s0 + $0xa8] sm:$0xff]  ;;  %v429_v22 = vld [vmem:[%s17280_s0 + $0xb0] sm:$0xff] }
  0x26   : > { %459 = vst [vmem:[#allocation2 + $0xa0] sm:$0xff] %v427_v20  ;;  %v430_v23 = vld [vmem:[%s17280_s0 + $0xb8] sm:$0xff]  ;;  %460 = vst [vmem:[#allocation2 + $0xa8] sm:$0xff] %v428_v21  ;;  %v431_v24 = vld [vmem:[%s17280_s0 + $0xc0] sm:$0xff] }
  0x27   : > { %461 = vst [vmem:[#allocation2 + $0xb0] sm:$0xff] %v429_v22  ;;  %462 = vst [vmem:[#allocation2 + $0xb8] sm:$0xff] %v430_v23  ;;  %v432_v25 = vld [vmem:[%s17280_s0 + $0xc8] sm:$0xff]  ;;  %v433_v26 = vld [vmem:[%s17280_s0 + $0xd0] sm:$0xff] }
  0x28   : > { %463 = vst [vmem:[#allocation2 + $0xc0] sm:$0xff] %v431_v24  ;;  %464 = vst [vmem:[#allocation2 + $0xc8] sm:$0xff] %v432_v25  ;;  %v434_v27 = vld [vmem:[%s17280_s0 + $0xd8] sm:$0xff]  ;;  %v435_v28 = vld [vmem:[%s17280_s0 + $0xe0] sm:$0xff] }
  0x29   : > { %465 = vst [vmem:[#allocation2 + $0xd0] sm:$0xff] %v433_v26  ;;  %v436_v29 = vld [vmem:[%s17280_s0 + $0xe8] sm:$0xff]  ;;  %466 = vst [vmem:[#allocation2 + $0xd8] sm:$0xff] %v434_v27  ;;  %v437_v30 = vld [vmem:[%s17280_s0 + $0xf0] sm:$0xff] }
  0x2a   : > { %467 = vst [vmem:[#allocation2 + $0xe0] sm:$0xff] %v435_v28  ;;  %468 = vst [vmem:[#allocation2 + $0xe8] sm:$0xff] %v436_v29  ;;  %v438_v31 = vld [vmem:[%s17280_s0 + $0xf8] sm:$0xff] }
  0x2b   : > { %469 = vst [vmem:[#allocation2 + $0xf0] sm:$0xff] %v437_v30  ;;  %470 = vst [vmem:[#allocation2 + $0xf8] sm:$0xff] %v438_v31 }
  0x2c PF: > { %v13424_v32 = vld [vmem:[#allocation2 + $0x80] sm:$0xff]  ;;  %v13426_v33 = vld [vmem:[#allocation2 + $0x90] sm:$0xff]  ;;  %v13430_v34 = vld [vmem:[#allocation2 + $0x88] sm:$0xff]  ;;  %vm1674_vm0 = vcmask 261120   ;;  %p17255_p6 = scmp.eq.s32.totalorder %s9688_s27, 1 }
  0x2d   : > { %536 = vadd.xlane.f32.xlu0 %v13424_v32  ;;  %540 = vadd.xlane.f32.xlu1 %v13426_v33  ;;  %v13432_v35 = vld [vmem:[#allocation2 + $0x98] sm:$0xff]  ;;  %v13436_v36 = vld [vmem:[#allocation2 + $0xa0] sm:$0xff]  ;;  %v13438_v37 = vld [vmem:[#allocation2 + $0xa8] sm:$0xff] }
  0x2e   : > { %v13442_v38 = vld [vmem:[#allocation2 + $0xb0] sm:$0xff]  ;;  %v13444_v39 = vld [vmem:[#allocation2 + $0xb8] sm:$0xff]  ;;  %v13470_v48 = vld [vmem:[#allocation2] sm:$0xff] }
  0x2f   : > { %v13446_v40 = vld [vmem:[#allocation2 + $0xc0] sm:$0xff]  ;;  %v13448_v41 = vld [vmem:[#allocation2 + $0xc8] sm:$0xff]  ;;  %v13476_v50 = vld [vmem:[#allocation2 + $0x10] sm:$0xff] }
  0x30   : > { %v13452_v42 = vld [vmem:[#allocation2 + $0xd0] sm:$0xff]  ;;  %v13454_v43 = vld [vmem:[#allocation2 + $0xd8] sm:$0xff]  ;;  %v13472_v49 = vld [vmem:[#allocation2 + $0x8] sm:$0xff] }
  0x31   : > { %538 = vadd.xlane.f32.xlu0 %v13430_v34  ;;  %542 = vadd.xlane.f32.xlu1 %v13432_v35  ;;  %v13458_v44 = vld [vmem:[#allocation2 + $0xe0] sm:$0xff]  ;;  %v13460_v45 = vld [vmem:[#allocation2 + $0xe8] sm:$0xff]  ;;  %v13478_v51 = vld [vmem:[#allocation2 + $0x18] sm:$0xff] }
  0x32   : > { %v13464_v46 = vld [vmem:[#allocation2 + $0xf0] sm:$0xff]  ;;  %v13466_v47 = vld [vmem:[#allocation2 + $0xf8] sm:$0xff]  ;;  %v13482_v52 = vld [vmem:[#allocation2 + $0x20] sm:$0xff] }
  0x33   : > { %v13484_v53 = vld [vmem:[#allocation2 + $0x28] sm:$0xff]  ;;  %v13488_v54 = vld [vmem:[#allocation2 + $0x30] sm:$0xff]  ;;  %v13490_v55 = vld [vmem:[#allocation2 + $0x38] sm:$0xff] }
  0x34   : > { %v13494_v56 = vld [vmem:[#allocation2 + $0x40] sm:$0xff]  ;;  %v13496_v57 = vld [vmem:[#allocation2 + $0x48] sm:$0xff]  ;;  %v13500_v58 = vld [vmem:[#allocation2 + $0x50] sm:$0xff] }
  0x35   : > { %544 = vadd.xlane.f32.xlu0 %v13436_v36  ;;  %546 = vadd.xlane.f32.xlu1 %v13438_v37  ;;  %v13502_v59 = vld [vmem:[#allocation2 + $0x58] sm:$0xff]  ;;  %v13506_v60 = vld [vmem:[#allocation2 + $0x60] sm:$0xff]  ;;  %v13508_v61 = vld [vmem:[#allocation2 + $0x68] sm:$0xff] }
  0x36   : > { %v13512_v62 = vld [vmem:[#allocation2 + $0x70] sm:$0xff]  ;;  %v13514_v63 = vld [vmem:[#allocation2 + $0x78] sm:$0xff] }
  0x39   : > { %548 = vadd.xlane.f32.xlu0 %v13442_v38  ;;  %550 = vadd.xlane.f32.xlu1 %v13444_v39 }
  0x3d   : > { %552 = vadd.xlane.f32.xlu0 %v13446_v40  ;;  %554 = vadd.xlane.f32.xlu1 %v13448_v41 }
  0x41   : > { %556 = vadd.xlane.f32.xlu0 %v13452_v42  ;;  %558 = vadd.xlane.f32.xlu1 %v13454_v43 }
  0x45   : > { %560 = vadd.xlane.f32.xlu0 %v13458_v44  ;;  %562 = vadd.xlane.f32.xlu1 %v13460_v45 }
  0x49   : > { %564 = vadd.xlane.f32.xlu0 %v13464_v46  ;;  %566 = vadd.xlane.f32.xlu1 %v13466_v47 }
  0x4d   : > { %504 = vadd.xlane.f32.xlu0 %v13470_v48  ;;  %506 = vadd.xlane.f32.xlu1 %v13472_v49 }
  0x51   : > { %508 = vadd.xlane.f32.xlu0 %v13476_v50  ;;  %510 = vadd.xlane.f32.xlu1 %v13478_v51 }
  0x55   : > { %512 = vadd.xlane.f32.xlu0 %v13482_v52  ;;  %514 = vadd.xlane.f32.xlu1 %v13484_v53 }
  0x59   : > { %516 = vadd.xlane.f32.xlu0 %v13488_v54  ;;  %518 = vadd.xlane.f32.xlu1 %v13490_v55 }
  0x5d   : > { %520 = vadd.xlane.f32.xlu0 %v13494_v56  ;;  %522 = vadd.xlane.f32.xlu1 %v13496_v57 }
  0x61   : > { %524 = vadd.xlane.f32.xlu0 %v13500_v58  ;;  %526 = vadd.xlane.f32.xlu1 %v13502_v59 }
  0x65   : > { %528 = vadd.xlane.f32.xlu0 %v13506_v60  ;;  %530 = vadd.xlane.f32.xlu1 %v13508_v61 }
  0x69   : > { %532 = vadd.xlane.f32.xlu0 %v13512_v62  ;;  %534 = vadd.xlane.f32.xlu1 %v13514_v63 }
  0xb6   : > { %v537_v0 = vpop.xlane.xlu0 %536  ;;  %v541_v1 = vpop.xlane.xlu1 %540 }
  0xb7   : > { %v585_v2 = vmul.f32 0.0078125, %v537_v0  ;;  %v587_v3 = vmul.f32 0.0078125, %v541_v1 }
  0xb9   : > { %v13521_v4 = vsub.f32 %v13424_v32, %v585_v2  ;;  %v13524_v5 = vsub.f32 %v13426_v33, %v587_v3 }
  0xba   : > { %v539_v6 = vpop.xlane.xlu0 %538  ;;  %v543_v7 = vpop.xlane.xlu1 %542 }
  0xbb   : > { %v586_v8 = vmul.f32 0.0078125, %v539_v6  ;;  %v649_v9 = vmul.f32 %v13521_v4, %v13521_v4  ;;  %v588_v10 = vmul.f32 0.0078125, %v543_v7  ;;  %v651_v12 = vmul.f32 %v13524_v5, %v13524_v5  ;;  %v12238_v6 = vld [vmem:[%s13306_s15 + $0x30] sm:$0xff]  }
  0xbd   : > { %697 = vadd.xlane.f32.xlu0 %v649_v9  ;;  %v13529_v11 = vsub.f32 %v13430_v34, %v586_v8  ;;  %v13534_v13 = vsub.f32 %v13432_v35, %v588_v10  ;;  %v12237_v35 = vld [vmem:[%s13306_s15 + $0x38] sm:$0xff]  }
  0xbe   : > { %v545_v14 = vpop.xlane.xlu0 %544  ;;  %v547_v15 = vpop.xlane.xlu1 %546  ;;  %12122 = vmatprep.subr.bf16.mxu1 %v12237_v35  ;;  %10890 = vmatprep.subr.bf16.mxu0 %v12237_v35 }
  0xbf   : > { %v589_v16 = vmul.f32 0.0078125, %v545_v14  ;;  %v650_v17 = vmul.f32 %v13529_v11, %v13529_v11  ;;  %v590_v18 = vmul.f32 0.0078125, %v547_v15  ;;  %v652_v19 = vmul.f32 %v13534_v13, %v13534_v13  ;;  %12130 = vmatpush3.bf16.msra.mxu1 %v12237_v35  ;;  %10891 = vmatpush3.bf16.msra.mxu0 %v12237_v35  ;;  %v12239_v15 = vld [vmem:[%s13306_s15 + $0x28] sm:$0xff]  }
  0xc0   : > { %12123 = vmatprep.subr.bf16.mxu1 %v12238_v6  ;;  %10892 = vmatprep.subr.bf16.mxu0 %v12238_v6 }
  0xc1   : > { %699 = vadd.xlane.f32.xlu1 %v650_v17  ;;  %701 = vadd.xlane.f32.xlu0 %v651_v12  ;;  %v13541_v20 = vsub.f32 %v13436_v36, %v589_v16  ;;  %v13544_v21 = vsub.f32 %v13438_v37, %v590_v18 }
  0xc2   : > { %v549_v22 = vpop.xlane.xlu0 %548  ;;  %v551_v23 = vpop.xlane.xlu1 %550 }
  0xc3   : > { %v591_v24 = vmul.f32 0.0078125, %v549_v22  ;;  %v653_v25 = vmul.f32 %v13541_v20, %v13541_v20  ;;  %v592_v26 = vmul.f32 0.0078125, %v551_v23  ;;  %v654_v27 = vmul.f32 %v13544_v21, %v13544_v21  ;;  %12131 = vmatpush3.bf16.msra.mxu1 %v12238_v6  ;;  %10893 = vmatpush3.bf16.msra.mxu0 %v12238_v6 }
  0xc4   : > { %12124 = vmatprep.subr.bf16.mxu1 %v12239_v15  ;;  %10894 = vmatprep.subr.bf16.mxu0 %v12239_v15 }
  0xc5   : > { %703 = vadd.xlane.f32.xlu1 %v652_v19  ;;  %705 = vadd.xlane.f32.xlu0 %v653_v25  ;;  %v13551_v28 = vsub.f32 %v13442_v38, %v591_v24  ;;  %v13554_v29 = vsub.f32 %v13444_v39, %v592_v26  ;;  %v12240_v24 = vld [vmem:[%s13306_s15 + $0x20] sm:$0xff]  }
  0xc6   : > { %v553_v30 = vpop.xlane.xlu0 %552  ;;  %v555_v31 = vpop.xlane.xlu1 %554 }
  0xc7   : > { %v593_v32 = vmul.f32 0.0078125, %v553_v30  ;;  %v655_v33 = vmul.f32 %v13551_v28, %v13551_v28  ;;  %v594_v34 = vmul.f32 0.0078125, %v555_v31  ;;  %v656_v36 = vmul.f32 %v13554_v29, %v13554_v29  ;;  %12132 = vmatpush3.bf16.msra.mxu1 %v12239_v15  ;;  %10895 = vmatpush3.bf16.msra.mxu0 %v12239_v15 }
  0xc8   : > { %12125 = vmatprep.subr.bf16.mxu1 %v12240_v24  ;;  %10896 = vmatprep.subr.bf16.mxu0 %v12240_v24 }
  0xc9   : > { %707 = vadd.xlane.f32.xlu1 %v654_v27  ;;  %709 = vadd.xlane.f32.xlu0 %v655_v33  ;;  %v13562_v37 = vsub.f32 %v13446_v40, %v593_v32  ;;  %v13565_v38 = vsub.f32 %v13448_v41, %v594_v34  ;;  %v12241_v33 = vld [vmem:[%s13306_s15 + $0x18] sm:$0xff]  }
  0xca   : > { %v557_v39 = vpop.xlane.xlu0 %556  ;;  %v559_v0 = vpop.xlane.xlu1 %558 }
  0xcb   : > { %v595_v1 = vmul.f32 0.0078125, %v557_v39  ;;  %v657_v2 = vmul.f32 %v13562_v37, %v13562_v37  ;;  %v596_v3 = vmul.f32 0.0078125, %v559_v0  ;;  %v658_v40 = vmul.f32 %v13565_v38, %v13565_v38  ;;  %12133 = vmatpush3.bf16.msra.mxu1 %v12240_v24  ;;  %10897 = vmatpush3.bf16.msra.mxu0 %v12240_v24 }
  0xcc   : > { %12126 = vmatprep.subr.bf16.mxu1 %v12241_v33  ;;  %10898 = vmatprep.subr.bf16.mxu0 %v12241_v33 }
  0xcd   : > { %711 = vadd.xlane.f32.xlu1 %v656_v36  ;;  %713 = vadd.xlane.f32.xlu0 %v657_v2  ;;  %v13573_v41 = vsub.f32 %v13452_v42, %v595_v1  ;;  %v13576_v7 = vsub.f32 %v13454_v43, %v596_v3  ;;  %v12242_v2 = vld [vmem:[%s13306_s15 + $0x10] sm:$0xff]  }
  0xce   : > { %v561_v8 = vpop.xlane.xlu0 %560  ;;  %v563_v9 = vpop.xlane.xlu1 %562 }
  0xcf   : > { %v597_v10 = vmul.f32 0.0078125, %v561_v8  ;;  %v659_v12 = vmul.f32 %v13573_v41, %v13573_v41  ;;  %v598_v14 = vmul.f32 0.0078125, %v563_v9  ;;  %v660_v42 = vmul.f32 %v13576_v7, %v13576_v7  ;;  %12134 = vmatpush3.bf16.msra.mxu1 %v12241_v33  ;;  %10899 = vmatpush3.bf16.msra.mxu0 %v12241_v33 }
  0xd0   : > { %12127 = vmatprep.subr.bf16.mxu1 %v12242_v2  ;;  %10900 = vmatprep.subr.bf16.mxu0 %v12242_v2 }
  0xd1   : > { %715 = vadd.xlane.f32.xlu1 %v658_v40  ;;  %717 = vadd.xlane.f32.xlu0 %v659_v12  ;;  %v13584_v43 = vsub.f32 %v13458_v44, %v597_v10  ;;  %v13587_v16 = vsub.f32 %v13460_v45, %v598_v14  ;;  %v12243_v12 = vld [vmem:[%s13306_s15 + $0x8] sm:$0xff]  }
  0xd2   : > { %v565_v17 = vpop.xlane.xlu0 %564  ;;  %v567_v18 = vpop.xlane.xlu1 %566 }
  0xd3   : > { %v599_v19 = vmul.f32 0.0078125, %v565_v17  ;;  %v661_v22 = vmul.f32 %v13584_v43, %v13584_v43  ;;  %v600_v23 = vmul.f32 0.0078125, %v567_v18  ;;  %v662_v44 = vmul.f32 %v13587_v16, %v13587_v16  ;;  %12135 = vmatpush3.bf16.msra.mxu1 %v12242_v2  ;;  %10901 = vmatpush3.bf16.msra.mxu0 %v12242_v2 }
  0xd4   : > { %12128 = vmatprep.subr.bf16.mxu1 %v12243_v12  ;;  %10902 = vmatprep.subr.bf16.mxu0 %v12243_v12 }
  0xd5   : > { %719 = vadd.xlane.f32.xlu1 %v660_v42  ;;  %721 = vadd.xlane.f32.xlu0 %v661_v22  ;;  %v13595_v45 = vsub.f32 %v13464_v46, %v599_v19  ;;  %v13598_v25 = vsub.f32 %v13466_v47, %v600_v23  ;;  %v12244_v22 = vld [vmem:[%s13306_s15] sm:$0xff]  }
  0xd6   : > { %v505_v26 = vpop.xlane.xlu0 %504  ;;  %v507_v27 = vpop.xlane.xlu1 %506 }
  0xd7   : > { %v569_v30 = vmul.f32 0.0078125, %v505_v26  ;;  %v663_v31 = vmul.f32 %v13595_v45, %v13595_v45  ;;  %v570_v32 = vmul.f32 0.0078125, %v507_v27  ;;  %v664_v46 = vmul.f32 %v13598_v25, %v13598_v25  ;;  %12136 = vmatpush3.bf16.msra.mxu1 %v12243_v12  ;;  %10903 = vmatpush3.bf16.msra.mxu0 %v12243_v12 }
  0xd8   : > { %12129 = vmatprep.subr.bf16.mxu1 %v12244_v22  ;;  %10904 = vmatprep.subr.bf16.mxu0 %v12244_v22 }
  0xd9   : > { %723 = vadd.xlane.f32.xlu1 %v662_v44  ;;  %725 = vadd.xlane.f32.xlu0 %v663_v31  ;;  %v13606_v47 = vsub.f32 %v13470_v48, %v569_v30  ;;  %v13609_v34 = vsub.f32 %v13472_v49, %v570_v32  ;;  %v13647_v31 = vld [vmem:[%s13306_s15 + $0x138] sm:$0xff]  }
  0xda   : > { %v509_v35 = vpop.xlane.xlu0 %508  ;;  %v511_v36 = vpop.xlane.xlu1 %510 }
  0xdb   : > { %v571_v39 = vmul.f32 0.0078125, %v509_v35  ;;  %v633_v0 = vmul.f32 %v13606_v47, %v13606_v47  ;;  %v572_v1 = vmul.f32 0.0078125, %v511_v36  ;;  %v634_v48 = vmul.f32 %v13609_v34, %v13609_v34  ;;  %12137 = vmatpush3.bf16.msra.mxu1 %v12244_v22  ;;  %10905 = vmatpush3.bf16.msra.mxu0 %v12244_v22 }
  0xdc   : > { %10938 = vmatprep.subr.bf16.mxu1 %v13647_v31 }
  0xdd   : > { %727 = vadd.xlane.f32.xlu1 %v664_v46  ;;  %665 = vadd.xlane.f32.xlu0 %v633_v0  ;;  %v13617_v49 = vsub.f32 %v13476_v50, %v571_v39  ;;  %v13620_v3 = vsub.f32 %v13478_v51, %v572_v1 }
  0xde   : > { %v513_v6 = vpop.xlane.xlu0 %512  ;;  %v515_v40 = vpop.xlane.xlu1 %514 }
  0xdf   : > { %v573_v8 = vmul.f32 0.0078125, %v513_v6  ;;  %v635_v9 = vmul.f32 %v13617_v49, %v13617_v49  ;;  %v574_v10 = vmul.f32 0.0078125, %v515_v40  ;;  %v636_v50 = vmul.f32 %v13620_v3, %v13620_v3 }
  0xe1   : > { %667 = vadd.xlane.f32.xlu1 %v634_v48  ;;  %669 = vadd.xlane.f32.xlu0 %v635_v9  ;;  %v13628_v51 = vsub.f32 %v13482_v52, %v573_v8  ;;  %v13631_v14 = vsub.f32 %v13484_v53, %v574_v10 }
  0xe2   : > { %v517_v15 = vpop.xlane.xlu0 %516  ;;  %v519_v42 = vpop.xlane.xlu1 %518 }
  0xe3   : > { %v575_v17 = vmul.f32 0.0078125, %v517_v15  ;;  %v637_v18 = vmul.f32 %v13628_v51, %v13628_v51  ;;  %v576_v19 = vmul.f32 0.0078125, %v519_v42  ;;  %v638_v52 = vmul.f32 %v13631_v14, %v13631_v14 }
  0xe5   : > { %671 = vadd.xlane.f32.xlu1 %v636_v50  ;;  %673 = vadd.xlane.f32.xlu0 %v637_v18  ;;  %v13639_v53 = vsub.f32 %v13488_v54, %v575_v17  ;;  %v13642_v23 = vsub.f32 %v13490_v55, %v576_v19  ;;  %v13693_v19 = vld [vmem:[%s13306_s15 + $0x238] sm:$0xff]  }
  0xe6   : > { %v521_v24 = vpop.xlane.xlu0 %520  ;;  %v523_v44 = vpop.xlane.xlu1 %522  ;;  %10986 = vmatprep.subr.bf16.mxu0 %v13693_v19 }
  0xe7   : > { %v577_v26 = vmul.f32 0.0078125, %v521_v24  ;;  %v639_v27 = vmul.f32 %v13639_v53, %v13639_v53  ;;  %v578_v30 = vmul.f32 0.0078125, %v523_v44  ;;  %v640_v54 = vmul.f32 %v13642_v23, %v13642_v23 }
  0xe9   : > { %675 = vadd.xlane.f32.xlu1 %v638_v52  ;;  %677 = vadd.xlane.f32.xlu0 %v639_v27  ;;  %v13652_v55 = vsub.f32 %v13494_v56, %v577_v26  ;;  %v13655_v32 = vsub.f32 %v13496_v57, %v578_v30  ;;  %v857_v27 = vlaneseq }
  0xea   : > { %v525_v33 = vpop.xlane.xlu0 %524  ;;  %v527_v46 = vpop.xlane.xlu1 %526 }
  0xeb   : > { %v579_v35 = vmul.f32 0.0078125, %v525_v33  ;;  %v641_v36 = vmul.f32 %v13652_v55, %v13652_v55  ;;  %v580_v39 = vmul.f32 0.0078125, %v527_v46  ;;  %v642_v0 = vmul.f32 %v13655_v32, %v13655_v32 }
  0xed   : > { %679 = vadd.xlane.f32.xlu1 %v640_v54  ;;  %681 = vadd.xlane.f32.xlu0 %v641_v36  ;;  %v13663_v56 = vsub.f32 %v13500_v58, %v579_v35  ;;  %v13666_v57 = vsub.f32 %v13502_v59, %v580_v39  ;;  %v13696_v39 = vshrl.u32 %v857_v27, 7 }
  0xee   : > { %v529_v1 = vpop.xlane.xlu0 %528  ;;  %v531_v2 = vpop.xlane.xlu1 %530 }
  0xef   : > { %v581_v48 = vmul.f32 0.0078125, %v529_v1  ;;  %v643_v6 = vmul.f32 %v13663_v56, %v13663_v56  ;;  %v582_v40 = vmul.f32 0.0078125, %v531_v2  ;;  %v644_v8 = vmul.f32 %v13666_v57, %v13666_v57  ;;  %17410 = vst [vmem:[#allocation5_spill] sm:$0xff] %v13696_v39 }
  0xf1   : > { %683 = vadd.xlane.f32.xlu1 %v642_v0  ;;  %685 = vadd.xlane.f32.xlu0 %v643_v6  ;;  %v13673_v9 = vsub.f32 %v13506_v60, %v581_v48  ;;  %v13676_v58 = vsub.f32 %v13508_v61, %v582_v40 }
  0xf2   : > { %v533_v59 = vpop.xlane.xlu0 %532  ;;  %v535_v10 = vpop.xlane.xlu1 %534 }
  0xf3   : > { %v583_v12 = vmul.f32 0.0078125, %v533_v59  ;;  %v645_v50 = vmul.f32 %v13673_v9, %v13673_v9  ;;  %v584_v15 = vmul.f32 0.0078125, %v535_v10  ;;  %v646_v42 = vmul.f32 %v13676_v58, %v13676_v58  ;;  %v503_v59 = vld [vmem:[%s13321_s9] sm:$0x3f] }
  0xf5   : > { %687 = vadd.xlane.f32.xlu1 %v644_v8  ;;  %689 = vadd.xlane.f32.xlu0 %v645_v50  ;;  %v13683_v17 = vsub.f32 %v13512_v62, %v583_v12  ;;  %v13686_v60 = vsub.f32 %v13514_v63, %v584_v15  ;;  %v17289_v8 = vsub.s32 0, %v13696_v39 }
  0xf7   : > { %v647_v61 = vmul.f32 %v13683_v17, %v13683_v17  ;;  %v648_v18 = vmul.f32 %v13686_v60, %v13686_v60 }
  0xf9   : > { %691 = vadd.xlane.f32.xlu1 %v646_v42  ;;  %693 = vadd.xlane.f32.xlu0 %v647_v61 }
  0xfd   : > { %695 = vadd.xlane.f32.xlu1 %v648_v18 }
 0x146   : > { %v698_v22 = vpop.xlane.xlu0 %697 }
 0x147   : > { %v745_v52 = vmul.f32 0.0078125, %v698_v22  ;;  %v13702_v22 = vrot.slane %v503_v59, %v17289_v8 }
 0x149   : > { %v777_v62 = vadd.f32 1e-05, %v745_v52  ;;  %v17288_v52 = vsub.s32 1, %v13696_v39 }
 0x14a   : > { %v700_v24 = vpop.xlane.xlu1 %699  ;;  %v702_v44 = vpop.xlane.xlu0 %701 }
 0x14b   : > { %12381 = vrsqrt.f32 %v777_v62  ;;  %v746_v63 = vmul.f32 0.0078125, %v700_v24  ;;  %v747_v26 = vmul.f32 0.0078125, %v702_v44 }
 0x14d   : > { %v778_v30 = vadd.f32 1e-05, %v746_v63  ;;  %v779_v54 = vadd.f32 1e-05, %v747_v26 }
 0x14e   : > { %v704_v33 = vpop.xlane.xlu1 %703  ;;  %v706_v46 = vpop.xlane.xlu0 %705 }
 0x14f   : > { %12383 = vrsqrt.f32 %v778_v30  ;;  %v748_v35 = vmul.f32 0.0078125, %v704_v33  ;;  %v749_v36 = vmul.f32 0.0078125, %v706_v46  ;;  %v13708_v33 = vrot.slane %v503_v59, %v17288_v52 }
 0x150   : > { %12385 = vrsqrt.f32 %v779_v54 }
 0x151   : > { %v780_v0 = vadd.f32 1e-05, %v748_v35  ;;  %v781_v1 = vadd.f32 1e-05, %v749_v36 }
 0x152   : > { %v708_v2 = vpop.xlane.xlu1 %707  ;;  %v710_v48 = vpop.xlane.xlu0 %709 }
 0x153   : > { %12387 = vrsqrt.f32 %v780_v0  ;;  %v750_v6 = vmul.f32 0.0078125, %v708_v2  ;;  %v751_v40 = vmul.f32 0.0078125, %v710_v48 }
 0x154   : > { %12389 = vrsqrt.f32 %v781_v1 }
 0x155   : > { %v782_v10 = vadd.f32 1e-05, %v750_v6  ;;  %v783_v12 = vadd.f32 1e-05, %v751_v40 }
 0x156   : > { %v712_v50 = vpop.xlane.xlu1 %711  ;;  %v714_v15 = vpop.xlane.xlu0 %713 }
 0x157   : > { %12391 = vrsqrt.f32 %v782_v10  ;;  %v752_v42 = vmul.f32 0.0078125, %v712_v50  ;;  %v753_v61 = vmul.f32 0.0078125, %v714_v15 }
 0x158   : > { %v12382_v18 = vpop.eup %12381  ;;  %12393 = vrsqrt.f32 %v783_v12 }
 0x159   : > { %v841_v62 = vmul.f32 %v12382_v18, %v13521_v4  ;;  %v784_v24 = vadd.f32 1e-05, %v752_v42  ;;  %v785_v44 = vadd.f32 1e-05, %v753_v61 }
 0x15a   : > { %v716_v63 = vpop.xlane.xlu1 %715  ;;  %v718_v26 = vpop.xlane.xlu0 %717 }
 0x15b   : > { %12395 = vrsqrt.f32 %v784_v24  ;;  %v754_v27 = vmul.f32 0.0078125, %v716_v63  ;;  %v755_v30 = vmul.f32 0.0078125, %v718_v26  ;;  %v877_v46 = vmul.f32 %v13702_v22, %v841_v62 }
 0x15c   : > { %v12384_v54 = vpop.eup %12383  ;;  %12397 = vrsqrt.f32 %v785_v44 }
 0x15d   : > { %v12386_v35 = vpop.eup %12385  ;;  %v842_v36 = vmul.f32 %v12384_v54, %v13529_v11  ;;  %v786_v0 = vadd.f32 1e-05, %v754_v27  ;;  %v787_v4 = vadd.f32 1e-05, %v755_v30  ;;  %v913_v59 = vadd.f32 %v13708_v33, %v877_v46 }
 0x15e   : > { %v843_v1 = vmul.f32 %v12386_v35, %v13524_v5  ;;  %v720_v2 = vpop.xlane.xlu1 %719  ;;  %v722_v48 = vpop.xlane.xlu0 %721 }
 0x15f   : > { %v878_v6 = vmul.f32 %v13702_v22, %v842_v36  ;;  %12399 = vrsqrt.f32 %v786_v0  ;;  %v756_v40 = vmul.f32 0.0078125, %v720_v2  ;;  %v757_v10 = vmul.f32 0.0078125, %v722_v48 }
 0x160   : > { %v12388_v12 = vpop.eup %12387  ;;  %v879_v50 = vmul.f32 %v13702_v22, %v843_v1  ;;  %12401 = vrsqrt.f32 %v787_v4 }
 0x161   : > { %v12390_v15 = vpop.eup %12389  ;;  %v914_v11 = vadd.f32 %v13708_v33, %v878_v6  ;;  %v844_v42 = vmul.f32 %v12388_v12, %v13534_v13  ;;  %v788_v61 = vadd.f32 1e-05, %v756_v40  ;;  %v789_v5 = vadd.f32 1e-05, %v757_v10  ;;  %v12246_v10 = vld [vmem:[%s13306_s15 + $0x130] sm:$0xff]  }
 0x162   : > { %v845_v18 = vmul.f32 %v12390_v15, %v13541_v20  ;;  %v724_v62 = vpop.xlane.xlu1 %723  ;;  %v726_v24 = vpop.xlane.xlu0 %725  ;;  %v915_v13 = vadd.f32 %v13708_v33, %v879_v50 }
 0x163   : > { %v13719_v44 = vpack.c.bf16 %v914_v11, %v913_v59  ;;  %v880_v63 = vmul.f32 %v13702_v22, %v844_v42  ;;  %12403 = vrsqrt.f32 %v788_v61  ;;  %v758_v26 = vmul.f32 0.0078125, %v724_v62 }
 0x164   : > { %v12392_v27 = vpop.eup %12391  ;;  %v881_v30 = vmul.f32 %v13702_v22, %v845_v18  ;;  %12405 = vrsqrt.f32 %v789_v5  ;;  %v759_v54 = vmul.f32 0.0078125, %v726_v24 }
 0x165   : > { %17411 = vst [vmem:[#allocation6_spill] sm:$0xff] %v13719_v44  ;;  %v12394_v46 = vpop.eup %12393  ;;  %v916_v35 = vadd.f32 %v13708_v33, %v880_v63  ;;  %v846_v20 = vmul.f32 %v12392_v27, %v13544_v21  ;;  %v790_v36 = vadd.f32 1e-05, %v758_v26  ;;  %10922 = vmatprep.mubr.bf16.mxu1 %v13719_v44  ;;  %v12247_v27 = vld [vmem:[%s13306_s15 + $0x128] sm:$0xff]  }
 0x166   : > { %v847_v0 = vmul.f32 %v12394_v46, %v13551_v28  ;;  %v791_v4 = vadd.f32 1e-05, %v759_v54  ;;  %v728_v1 = vpop.xlane.xlu1 %727  ;;  %v666_v2 = vpop.xlane.xlu0 %665  ;;  %v917_v59 = vadd.f32 %v13708_v33, %v881_v30 }
 0x167   : > { %v13728_v48 = vpack.c.bf16 %v916_v35, %v915_v13  ;;  %v882_v6 = vmul.f32 %v13702_v22, %v846_v20  ;;  %12407 = vrsqrt.f32 %v790_v36  ;;  %v760_v40 = vmul.f32 0.0078125, %v728_v1 }
 0x168   : > { %v12396_v12 = vpop.eup %12395  ;;  %12409 = vrsqrt.f32 %v791_v4  ;;  %v729_v21 = vmul.f32 0.0078125, %v666_v2  ;;  %v883_v28 = vmul.f32 %v13702_v22, %v847_v0 }
 0x169   : > { %17412 = vst [vmem:[#allocation7_spill] sm:$0xff] %v13728_v48  ;;  %v12398_v50 = vpop.eup %12397  ;;  %v918_v15 = vadd.f32 %v13708_v33, %v882_v6  ;;  %v848_v11 = vmul.f32 %v12396_v12, %v13554_v29  ;;  %v792_v42 = vadd.f32 1e-05, %v760_v40  ;;  %10923 = vmatmul.mubr.bf16.vlgmr.msra.gmra.mxu1 %v13728_v48  ;;  %v12248_v40 = vld [vmem:[%s13306_s15 + $0x120] sm:$0xff]  }
 0x16a   : > { %v849_v61 = vmul.f32 %v12398_v50, %v13562_v37  ;;  %v761_v5 = vadd.f32 1e-05, %v729_v21  ;;  %v668_v18 = vpop.xlane.xlu1 %667  ;;  %10939 = vmatpush3.bf16.msra.mxu1 %v13647_v31  ;;  %v670_v62 = vpop.xlane.xlu0 %669  ;;  %v919_v37 = vadd.f32 %v13708_v33, %v883_v28 }
 0x16b   : > { %v13739_v24 = vpack.c.bf16 %v918_v15, %v917_v59  ;;  %v884_v63 = vmul.f32 %v13702_v22, %v848_v11  ;;  %12411 = vrsqrt.f32 %v792_v42  ;;  %v730_v26 = vmul.f32 0.0078125, %v668_v18  ;;  %10940 = vmatprep.subr.bf16.mxu1 %v12246_v10 }
 0x16c   : > { %v12400_v30 = vpop.eup %12399  ;;  %v885_v29 = vmul.f32 %v13702_v22, %v849_v61  ;;  %12413 = vrsqrt.f32 %v761_v5  ;;  %v731_v54 = vmul.f32 0.0078125, %v670_v62 }
 0x16d   : > { %17413 = vst [vmem:[#allocation8_spill] sm:$0xff] %v13739_v24  ;;  %v12402_v46 = vpop.eup %12401  ;;  %v920_v31 = vadd.f32 %v13708_v33, %v884_v63  ;;  %v850_v13 = vmul.f32 %v12400_v30, %v13565_v38  ;;  %v762_v35 = vadd.f32 1e-05, %v730_v26  ;;  %10926 = vmatprep.mubr.bf16.mxu1 %v13739_v24  ;;  %v12249_v63 = vld [vmem:[%s13306_s15 + $0x118] sm:$0xff]  }
 0x16e   : > { %v851_v20 = vmul.f32 %v12402_v46, %v13573_v41  ;;  %v763_v36 = vadd.f32 1e-05, %v731_v54  ;;  %v672_v0 = vpop.xlane.xlu1 %671  ;;  %10941 = vmatpush3.bf16.msra.mxu1 %v12246_v10  ;;  %v674_v4 = vpop.xlane.xlu0 %673  ;;  %v921_v38 = vadd.f32 %v13708_v33, %v885_v29 }
 0x16f   : > { %v13749_v1 = vpack.c.bf16 %v920_v31, %v919_v37  ;;  %v886_v2 = vmul.f32 %v13702_v22, %v850_v13  ;;  %12415 = vrsqrt.f32 %v762_v35  ;;  %v732_v6 = vmul.f32 0.0078125, %v672_v0  ;;  %10942 = vmatprep.subr.bf16.mxu1 %v12247_v27 }
 0x170   : > { %v12404_v12 = vpop.eup %12403  ;;  %12417 = vrsqrt.f32 %v763_v36  ;;  %v733_v59 = vmul.f32 0.0078125, %v674_v4  ;;  %v887_v10 = vmul.f32 %v13702_v22, %v851_v20  ;;  %v12250_v4 = vld [vmem:[%s13306_s15 + $0x110] sm:$0xff]  }
 0x171   : > { %17414 = vst [vmem:[#allocation9_spill] sm:$0xff] %v13749_v1  ;;  %v12406_v21 = vpop.eup %12405  ;;  %v922_v41 = vadd.f32 %v13708_v33, %v886_v2  ;;  %v852_v50 = vmul.f32 %v12404_v12, %v13576_v7  ;;  %v764_v15 = vadd.f32 1e-05, %v732_v6  ;;  %10927 = vmatmul.mubr.bf16.gmra.mxu1 %v13749_v1 }
 0x172   : > { %v853_v28 = vmul.f32 %v12406_v21, %v13584_v43  ;;  %v765_v11 = vadd.f32 1e-05, %v733_v59  ;;  %v676_v42 = vpop.xlane.xlu1 %675  ;;  %10943 = vmatpush3.bf16.msra.mxu1 %v12247_v27  ;;  %v678_v61 = vpop.xlane.xlu0 %677  ;;  %v923_v43 = vadd.f32 %v13708_v33, %v887_v10 }
 0x173   : > { %v13759_v5 = vpack.c.bf16 %v922_v41, %v921_v38  ;;  %v888_v18 = vmul.f32 %v13702_v22, %v852_v50  ;;  %12419 = vrsqrt.f32 %v764_v15  ;;  %v734_v62 = vmul.f32 0.0078125, %v676_v42  ;;  %10944 = vmatprep.subr.bf16.mxu1 %v12248_v40  ;;  %v12251_v42 = vld [vmem:[%s13306_s15 + $0x108] sm:$0xff]  }
 0x174   : > { %v12408_v26 = vpop.eup %12407  ;;  %v889_v7 = vmul.f32 %v13702_v22, %v853_v28  ;;  %12421 = vrsqrt.f32 %v765_v11  ;;  %v735_v30 = vmul.f32 0.0078125, %v678_v61 }
 0x175   : > { %17415 = vst [vmem:[#allocation10_spill] sm:$0xff] %v13759_v5  ;;  %v12410_v29 = vpop.eup %12409  ;;  %v924_v27 = vadd.f32 %v13708_v33, %v888_v18  ;;  %v854_v54 = vmul.f32 %v12408_v26, %v13587_v16  ;;  %v766_v46 = vadd.f32 1e-05, %v734_v62  ;;  %10930 = vmatprep.mubr.bf16.mxu1 %v13759_v5 }
 0x176   : > { %v855_v37 = vmul.f32 %v12410_v29, %v13595_v45  ;;  %v767_v31 = vadd.f32 1e-05, %v735_v30  ;;  %v680_v13 = vpop.xlane.xlu1 %679  ;;  %10945 = vmatpush3.bf16.msra.mxu1 %v12248_v40  ;;  %v682_v35 = vpop.xlane.xlu0 %681  ;;  %v925_v16 = vadd.f32 %v13708_v33, %v889_v7 }
 0x177   : > { %v13769_v20 = vpack.c.bf16 %v924_v27, %v923_v43  ;;  %v890_v36 = vmul.f32 %v13702_v22, %v854_v54  ;;  %12423 = vrsqrt.f32 %v766_v46  ;;  %v736_v0 = vmul.f32 0.0078125, %v680_v13  ;;  %10946 = vmatprep.subr.bf16.mxu1 %v12249_v63 }
 0x178   : > { %v12412_v2 = vpop.eup %12411  ;;  %12425 = vrsqrt.f32 %v767_v31  ;;  %v737_v6 = vmul.f32 0.0078125, %v682_v35  ;;  %v891_v40 = vmul.f32 %v13702_v22, %v855_v37  ;;  %v12252_v31 = vld [vmem:[%s13306_s15 + $0x100] sm:$0xff]  }
 0x179   : > { %17416 = vst [vmem:[#allocation11_spill] sm:$0xff] %v13769_v20  ;;  %v12414_v12 = vpop.eup %12413  ;;  %v926_v45 = vadd.f32 %v13708_v33, %v890_v36  ;;  %v856_v38 = vmul.f32 %v12412_v2, %v13598_v25  ;;  %v768_v59 = vadd.f32 1e-05, %v736_v0  ;;  %10931 = vmatmul.mubr.bf16.gmra.mxu1 %v13769_v20 }
 0x17a   : > { %v825_v21 = vmul.f32 %v12414_v12, %v13606_v47  ;;  %v769_v41 = vadd.f32 1e-05, %v737_v6  ;;  %v684_v10 = vpop.xlane.xlu1 %683  ;;  %10947 = vmatpush3.bf16.msra.mxu1 %v12249_v63  ;;  %v686_v50 = vpop.xlane.xlu0 %685  ;;  %v927_v47 = vadd.f32 %v13708_v33, %v891_v40 }
 0x17b   : > { %v13779_v15 = vpack.c.bf16 %v926_v45, %v925_v16  ;;  %v892_v28 = vmul.f32 %v13702_v22, %v856_v38  ;;  %12427 = vrsqrt.f32 %v768_v59  ;;  %v738_v11 = vmul.f32 0.0078125, %v684_v10  ;;  %10948 = vmatprep.subr.bf16.mxu1 %v12250_v4 }
 0x17c   : > { %v12416_v61 = vpop.eup %12415  ;;  %v861_v25 = vmul.f32 %v13702_v22, %v825_v21  ;;  %12429 = vrsqrt.f32 %v769_v41  ;;  %v739_v18 = vmul.f32 0.0078125, %v686_v50 }
 0x17d   : > { %17417 = vst [vmem:[#allocation12_spill] sm:$0xff] %v13779_v15  ;;  %v12418_v62 = vpop.eup %12417  ;;  %v928_v63 = vadd.f32 %v13708_v33, %v892_v28  ;;  %v826_v26 = vmul.f32 %v12416_v61, %v13609_v34  ;;  %v770_v7 = vadd.f32 1e-05, %v738_v11  ;;  %10934 = vmatprep.mubr.bf16.mxu1 %v13779_v15 }
 0x17e   : > { %v827_v30 = vmul.f32 %v12418_v62, %v13617_v49  ;;  %v771_v29 = vadd.f32 1e-05, %v739_v18  ;;  %v688_v43 = vpop.xlane.xlu1 %687  ;;  %10949 = vmatpush3.bf16.msra.mxu1 %v12250_v4  ;;  %v690_v27 = vpop.xlane.xlu0 %689  ;;  %v897_v34 = vadd.f32 %v13708_v33, %v861_v25 }
 0x17f   : > { %v13789_v54 = vpack.c.bf16 %v928_v63, %v927_v47  ;;  %v862_v46 = vmul.f32 %v13702_v22, %v826_v26  ;;  %12431 = vrsqrt.f32 %v770_v7  ;;  %v740_v37 = vmul.f32 0.0078125, %v688_v43  ;;  %10950 = vmatprep.subr.bf16.mxu1 %v12251_v42  ;;  %v12254_v63 = vld [vmem:[%s13306_s15 + $0x230] sm:$0xff]  }
 0x180   : > { %v12420_v13 = vpop.eup %12419  ;;  %12433 = vrsqrt.f32 %v771_v29  ;;  %v741_v35 = vmul.f32 0.0078125, %v690_v27  ;;  %v863_v0 = vmul.f32 %v13702_v22, %v827_v30 }
 0x181   : > { %17418 = vst [vmem:[#allocation13_spill] sm:$0xff] %v13789_v54  ;;  %v12422_v36 = vpop.eup %12421  ;;  %v898_v49 = vadd.f32 %v13708_v33, %v862_v46  ;;  %v828_v4 = vmul.f32 %v12420_v13, %v13620_v3  ;;  %v772_v2 = vadd.f32 1e-05, %v740_v37  ;;  %10935 = vmatmul.mubr.bf16.gmra.mxu1 %v13789_v54 }
 0x182   : > { %v829_v16 = vmul.f32 %v12422_v36, %v13628_v51  ;;  %v773_v6 = vadd.f32 1e-05, %v741_v35  ;;  %v692_v12 = vpop.xlane.xlu1 %691  ;;  %10951 = vmatpush3.bf16.msra.mxu1 %v12251_v42  ;;  %v694_v45 = vpop.xlane.xlu0 %693  ;;  %v899_v51 = vadd.f32 %v13708_v33, %v863_v0 }
 0x183   : > { %v13799_v40 = vpack.c.bf16 %v898_v49, %v897_v34  ;;  %v864_v38 = vmul.f32 %v13702_v22, %v828_v4  ;;  %12435 = vrsqrt.f32 %v772_v2  ;;  %v742_v59 = vmul.f32 0.0078125, %v692_v12  ;;  %10952 = vmatprep.subr.bf16.mxu1 %v12252_v31  ;;  %v12256_v4 = vld [vmem:[%s13306_s15 + $0x220] sm:$0xff]  }
 0x184   : > { %v12424_v21 = vpop.eup %12423  ;;  %v865_v41 = vmul.f32 %v13702_v22, %v829_v16  ;;  %12437 = vrsqrt.f32 %v773_v6  ;;  %v743_v3 = vmul.f32 0.0078125, %v694_v45 }
 0x185   : > { %17419 = vst [vmem:[#allocation14_spill] sm:$0xff] %v13799_v40  ;;  %v12426_v10 = vpop.eup %12425  ;;  %v900_v50 = vadd.f32 %v13708_v33, %v864_v38  ;;  %v830_v28 = vmul.f32 %v12424_v21, %v13631_v14  ;;  %v774_v11 = vadd.f32 1e-05, %v742_v59  ;;  %10906 = vmatprep.mubr.bf16.mxu0 %v13799_v40  ;;  %10954 = vmatprep.mubr.bf16.mxu1 %v13799_v40  ;;  %v12257_v21 = vld [vmem:[%s13306_s15 + $0x218] sm:$0xff]  }
 0x186   : > { %v831_v42 = vmul.f32 %v12426_v10, %v13639_v53  ;;  %v775_v61 = vadd.f32 1e-05, %v743_v3  ;;  %v696_v25 = vpop.xlane.xlu1 %695  ;;  %10953 = vmatpush3.bf16.msra.mxu1 %v12252_v31  ;;  %v901_v14 = vadd.f32 %v13708_v33, %v865_v41  ;;  %v12255_v31 = vld [vmem:[%s13306_s15 + $0x228] sm:$0xff]  }
 0x187   : > { %v13809_v18 = vpack.c.bf16 %v900_v50, %v899_v51  ;;  %v866_v62 = vmul.f32 %v13702_v22, %v830_v28  ;;  %12439 = vrsqrt.f32 %v774_v11  ;;  %v744_v47 = vmul.f32 0.0078125, %v696_v25 }
 0x188   : > { %v12428_v26 = vpop.eup %12427  ;;  %12441 = vrsqrt.f32 %v775_v61  ;;  %v867_v53 = vmul.f32 %v13702_v22, %v831_v42  ;;  %v12258_v42 = vld [vmem:[%s13306_s15 + $0x210] sm:$0xff]  }
 0x189   : > { %17420 = vst [vmem:[#allocation15_spill] sm:$0xff] %v13809_v18  ;;  %v12430_v7 = vpop.eup %12429  ;;  %v902_v30 = vadd.f32 %v13708_v33, %v866_v62  ;;  %v832_v29 = vmul.f32 %v12428_v26, %v13642_v23  ;;  %v776_v43 = vadd.f32 1e-05, %v744_v47  ;;  %10907 = vmatmul.mubr.bf16.vlgmr.msra.gmra.mxu0 %v13809_v18  ;;  %10955 = vmatmul.mubr.bf16.vlgmr.msra.gmra.mxu1 %v13809_v18  ;;  %v12259_v26 = vld [vmem:[%s13306_s15 + $0x208] sm:$0xff]  }
 0x18a   : > { %v833_v27 = vmul.f32 %v12430_v7, %v13652_v55  ;;  %10987 = vmatpush3.bf16.msra.mxu0 %v13693_v19  ;;  %v903_v35 = vadd.f32 %v13708_v33, %v867_v53 }
 0x18b   : > { %v13821_v46 = vpack.c.bf16 %v902_v30, %v901_v14  ;;  %v868_v37 = vmul.f32 %v13702_v22, %v832_v29  ;;  %12443 = vrsqrt.f32 %v776_v43  ;;  %10988 = vmatprep.subr.bf16.mxu0 %v12254_v63  ;;  %v12260_v30 = vld [vmem:[%s13306_s15 + $0x200] sm:$0xff]  }
 0x18c   : > { %v12432_v13 = vpop.eup %12431  ;;  %v869_v23 = vmul.f32 %v13702_v22, %v833_v27 }
 0x18d   : > { %17421 = vst [vmem:[#allocation16_spill] sm:$0xff] %v13821_v46  ;;  %v12434_v34 = vpop.eup %12433  ;;  %v904_v36 = vadd.f32 %v13708_v33, %v868_v37  ;;  %v834_v55 = vmul.f32 %v12432_v13, %v13655_v32  ;;  %10910 = vmatprep.mubr.bf16.mxu0 %v13821_v46  ;;  %10958 = vmatprep.mubr.bf16.mxu1 %v13821_v46 }
 0x18e   : > { %v835_v19 = vmul.f32 %v12434_v34, %v13663_v56  ;;  %10989 = vmatpush3.bf16.msra.mxu0 %v12254_v63  ;;  %v905_v16 = vadd.f32 %v13708_v33, %v869_v23 }
 0x18f   : > { %v13832_v49 = vpack.c.bf16 %v904_v36, %v903_v35  ;;  %v870_v0 = vmul.f32 %v13702_v22, %v834_v55  ;;  %10990 = vmatprep.subr.bf16.mxu0 %v12255_v31 }
 0x190   : > { %v12436_v2 = vpop.eup %12435  ;;  %v871_v12 = vmul.f32 %v13702_v22, %v835_v19 }
 0x191   : > { %17422 = vst [vmem:[#allocation17_spill] sm:$0xff] %v13832_v49  ;;  %v12438_v6 = vpop.eup %12437  ;;  %v906_v32 = vadd.f32 %v13708_v33, %v870_v0  ;;  %v836_v45 = vmul.f32 %v12436_v2, %v13666_v57  ;;  %10911 = vmatmul.mubr.bf16.gmra.mxu0 %v13832_v49  ;;  %10959 = vmatmul.mubr.bf16.gmra.mxu1 %v13832_v49 }
 0x192   : > { %v837_v56 = vmul.f32 %v12438_v6, %v13673_v9  ;;  %10991 = vmatpush3.bf16.msra.mxu0 %v12255_v31  ;;  %v907_v57 = vadd.f32 %v13708_v33, %v871_v12 }
 0x193   : > { %v13843_v38 = vpack.c.bf16 %v906_v32, %v905_v16  ;;  %v872_v59 = vmul.f32 %v13702_v22, %v836_v45  ;;  %10992 = vmatprep.subr.bf16.mxu0 %v12256_v4 }
 0x194   : > { %v12440_v41 = vpop.eup %12439  ;;  %v873_v3 = vmul.f32 %v13702_v22, %v837_v56 }
 0x195   : > { %17423 = vst [vmem:[#allocation18_spill] sm:$0xff] %v13843_v38  ;;  %v12442_v10 = vpop.eup %12441  ;;  %v908_v51 = vadd.f32 %v13708_v33, %v872_v59  ;;  %v838_v50 = vmul.f32 %v12440_v41, %v13676_v58  ;;  %10914 = vmatprep.mubr.bf16.mxu0 %v13843_v38  ;;  %10962 = vmatprep.mubr.bf16.mxu1 %v13843_v38 }
 0x196   : > { %v839_v9 = vmul.f32 %v12442_v10, %v13683_v17  ;;  %10993 = vmatpush3.bf16.msra.mxu0 %v12256_v4  ;;  %v909_v25 = vadd.f32 %v13708_v33, %v873_v3 }
 0x197   : > { %v13854_v28 = vpack.c.bf16 %v908_v51, %v907_v57  ;;  %v874_v11 = vmul.f32 %v13702_v22, %v838_v50  ;;  %10994 = vmatprep.subr.bf16.mxu0 %v12257_v21 }
 0x198   : > { %v12444_v61 = vpop.eup %12443  ;;  %v875_v58 = vmul.f32 %v13702_v22, %v839_v9 }
 0x199   : > { %17424 = vst [vmem:[#allocation19_spill] sm:$0xff] %v13854_v28  ;;  %v910_v62 = vadd.f32 %v13708_v33, %v874_v11  ;;  %v840_v47 = vmul.f32 %v12444_v61, %v13686_v60  ;;  %10915 = vmatmul.mubr.bf16.gmra.mxu0 %v13854_v28  ;;  %10963 = vmatmul.mubr.bf16.gmra.mxu1 %v13854_v28 }
 0x19a   : > { %10995 = vmatpush3.bf16.msra.mxu0 %v12257_v21  ;;  %v911_v14 = vadd.f32 %v13708_v33, %v875_v58 }
 0x19b   : > { %v13864_v17 = vpack.c.bf16 %v910_v62, %v909_v25  ;;  %v876_v63 = vmul.f32 %v13702_v22, %v840_v47  ;;  %10996 = vmatprep.subr.bf16.mxu0 %v12258_v42 }
 0x19d   : > { %17425 = vst [vmem:[#allocation20_spill] sm:$0xff] %v13864_v17  ;;  %v912_v7 = vadd.f32 %v13708_v33, %v876_v63  ;;  %10918 = vmatprep.mubr.bf16.mxu0 %v13864_v17  ;;  %10966 = vmatprep.mubr.bf16.mxu1 %v13864_v17 }
 0x19e   : > { %10997 = vmatpush3.bf16.msra.mxu0 %v12258_v42 }
 0x19f   : > { %v13872_v60 = vpack.c.bf16 %v912_v7, %v911_v14  ;;  %10998 = vmatprep.subr.bf16.mxu0 %v12259_v26 }
 0x1a1   : > { %17426 = vst [vmem:[#allocation21_spill] sm:$0xff] %v13872_v60  ;;  %10919 = vmatmul.mubr.bf16.gmra.mxu0 %v13872_v60  ;;  %10967 = vmatmul.mubr.bf16.gmra.mxu1 %v13872_v60 }
 0x1a2   : > { %10970 = vmatprep.mubr.bf16.mxu1 %v13719_v44  ;;  %10999 = vmatpush3.bf16.msra.mxu0 %v12259_v26 }
 0x1a3   : > { %11002 = vmatprep.mubr.bf16.mxu0 %v13799_v40  ;;  %11000 = vmatprep.subr.bf16.mxu0 %v12260_v30 }
 0x1a6   : > { %11001 = vmatpush3.bf16.msra.mxu0 %v12260_v30 }
 0x1a9   : > { %10971 = vmatmul.mubr.bf16.gmra.mxu1 %v13728_v48  ;;  %11003 = vmatmul.mubr.bf16.vlgmr.msra.gmra.mxu0 %v13809_v18 }
 0x1aa   : > { %10974 = vmatprep.mubr.bf16.mxu1 %v13739_v24  ;;  %11006 = vmatprep.mubr.bf16.mxu0 %v13821_v46 }
 0x1b1   : > { %10975 = vmatmul.mubr.bf16.gmra.mxu1 %v13749_v1  ;;  %11007 = vmatmul.mubr.bf16.gmra.mxu0 %v13832_v49 }
 0x1b2   : > { %10978 = vmatprep.mubr.bf16.mxu1 %v13759_v5  ;;  %11010 = vmatprep.mubr.bf16.mxu0 %v13843_v38 }
 0x1b9   : > { %10979 = vmatmul.mubr.bf16.gmra.mxu1 %v13769_v20  ;;  %11011 = vmatmul.mubr.bf16.gmra.mxu0 %v13854_v28 }
 0x1ba   : > { %10982 = vmatprep.mubr.bf16.mxu1 %v13779_v15  ;;  %11014 = vmatprep.mubr.bf16.mxu0 %v13864_v17 }
 0x1c1   : > { %10983 = vmatmul.mubr.bf16.gmra.mxu1 %v13789_v54  ;;  %11015 = vmatmul.mubr.bf16.gmra.mxu0 %v13872_v60 }
 0x1c2   : > { %11018 = vmatprep.mubr.bf16.mxu0 %v13719_v44 }
 0x1c9   : > { %11019 = vmatmul.mubr.bf16.gmra.mxu0 %v13728_v48 }
 0x1ca   : > { %11022 = vmatprep.mubr.bf16.mxu0 %v13739_v24 }
 0x1d1   : > { %11023 = vmatmul.mubr.bf16.gmra.mxu0 %v13749_v1 }
 0x1d2   : > { %11026 = vmatprep.mubr.bf16.mxu0 %v13759_v5 }
 0x1d9   : > { %11027 = vmatmul.mubr.bf16.gmra.mxu0 %v13769_v20 }
 0x1da   : > { %11030 = vmatprep.mubr.bf16.mxu0 %v13779_v15 }
 0x1e1   : > { %11031 = vmatmul.mubr.bf16.gmra.mxu0 %v13789_v54 }
 0x229   : > { %v13901_v22 = vpop.f32.mrf.mxu1 }
 0x22b   : > { %v1145_v33 = vpop.f32.mrf.mxu1 }
 0x22d   : > { %v13903_v53 = vpop.f32.mrf.mxu1 }
 0x22f   : > { %v1148_v43 = vpop.f32.mrf.mxu1 }
 0x230   : > { %v1634_v27 = vpack.c.bf16 %v1148_v43, %v1145_v33 }
 0x231   : > { %v13907_v37 = vpop.f32.mrf.mxu1 }
 0x232   : > { %17427 = vst [vmem:[#allocation22_spill] sm:$0xff] %v13907_v37  ;;  %11082 = vmatprep.mubr.msk.bf16.mxu0 %vm1674_vm0, %v1634_v27 }
 0x233   : > { %v13910_v31 = vpop.f32.mrf.mxu1 }
 0x235   : > { %v13912_v13 = vpop.f32.mrf.mxu1 }
 0x236   : > { %17428 = vst [vmem:[#allocation23_spill] sm:$0xff] %v13912_v13 }
 0x237   : > { %v13916_v34 = vpop.f32.mrf.mxu1 }
 0x239   : > { %v13918_v35 = vpop.f32.mrf.mxu1 }
 0x23a   : > { %17429 = vst [vmem:[#allocation24_spill] sm:$0xff] %v13918_v35 }
 0x23b   : > { %v13920_v36 = vpop.f32.mrf.mxu1 }
 0x23d   : > { %v13922_v55 = vpop.f32.mrf.mxu1 }
 0x23e   : > { %17430 = vst [vmem:[#allocation25_spill] sm:$0xff] %v13922_v55 }
 0x23f   : > { %v13926_v0 = vpop.f32.mrf.mxu1 }
 0x241   : > { %v13928_v4 = vpop.f32.mrf.mxu1 }
 0x242   : > { %17431 = vst [vmem:[#allocation26_spill] sm:$0xff] %v13928_v4 }
 0x243   : > { %v13930_v2 = vpop.f32.mrf.mxu1 }
 0x244   : > { %17432 = vst [vmem:[#allocation27_spill] sm:$0xff] %v13930_v2 }
 0x245   : > { %v13932_v16 = vpop.f32.mrf.mxu1 }
 0x246   : > { %17433 = vst [vmem:[#allocation28_spill] sm:$0xff] %v13932_v16 }
 0x247   : > { %v13936_v32 = vpop.f32.mrf.mxu1 }
 0x248   : > { %17434 = vst [vmem:[#allocation29_spill] sm:$0xff] %v13936_v32 }
 0x249   : > { %v13938_v12 = vpop.f32.mrf.mxu0  ;;  %v10956_v45 = vpop.f32.mrf.mxu1 }
 0x24b   : > { %v1081_v56 = vpop.f32.mrf.mxu0  ;;  %v13940_v59 = vpop.f32.mrf.mxu1 }
 0x24d   : > { %v13942_v21 = vpop.f32.mrf.mxu0  ;;  %v10957_v41 = vpop.f32.mrf.mxu1 }
 0x24e   : > { %v13946_v10 = vpack.c.bf16 %v10957_v41, %v10956_v45 }
 0x24f   : > { %v1084_v57 = vpop.f32.mrf.mxu0  ;;  %v13948_v51 = vpop.f32.mrf.mxu1 }
 0x250   : > { %v1626_v50 = vpack.c.bf16 %v1084_v57, %v1081_v56 }
 0x251   : > { %v13950_v9 = vpop.f32.mrf.mxu0  ;;  %v13952_v11 = vpop.f32.mrf.mxu1 }
 0x252   : > { %11050 = vmatprep.mubr.msk.bf16.mxu1 %vm1674_vm0, %v1626_v50 }
 0x253   : > { %v13955_v42 = vpop.f32.mrf.mxu0  ;;  %v13957_v61 = vpop.f32.mrf.mxu1 }
 0x255   : > { %v13959_v25 = vpop.f32.mrf.mxu0  ;;  %v10961_v62 = vpop.f32.mrf.mxu1 }
 0x256   : > { %v1645_v40 = vpack.c.bf16 %v10961_v62, %v13952_v11 }
 0x257   : > { %v13961_v58 = vpop.f32.mrf.mxu0  ;;  %v13963_v47 = vpop.f32.mrf.mxu1 }
 0x258   : > { %v1709_v37 = vsel %vm1674_vm0, %v1645_v40, 0  ;;  %v1644_v13 = vpack.c.bf16 %v13963_v47, %v13957_v61 }
 0x259   : > { %v13965_v63 = vpop.f32.mrf.mxu0  ;;  %v10964_v26 = vpop.f32.mrf.mxu1 }
 0x25a   : > { %v1706_v47 = vsel %vm1674_vm0, %v1644_v13, 0 }
 0x25b   : > { %v13967_v14 = vpop.f32.mrf.mxu0  ;;  %v1322_v7 = vpop.f32.mrf.mxu1 }
 0x25d   : > { %v13969_v30 = vpop.f32.mrf.mxu0  ;;  %v10965_v33 = vpop.f32.mrf.mxu1 }
 0x25f   : > { %v13971_v43 = vpop.f32.mrf.mxu0  ;;  %v1325_v27 = vpop.f32.mrf.mxu1 }
 0x261   : > { %v13973_v45 = vpop.f32.mrf.mxu0  ;;  %v10968_v56 = vpop.f32.mrf.mxu1 }
 0x263   : > { %v13975_v41 = vpop.f32.mrf.mxu0  ;;  %v1338_v57 = vpop.f32.mrf.mxu1 }
 0x265   : > { %v13977_v50 = vpop.f32.mrf.mxu0  ;;  %v10969_v52 = vpop.f32.mrf.mxu1 }
 0x266   : > { %v1649_v8 = vpack.c.bf16 %v10969_v52, %v10968_v56 }
 0x267   : > { %v13979_v6 = vpop.f32.mrf.mxu0  ;;  %v1341_v19 = vpop.f32.mrf.mxu1 }
 0x268   : > { %v1721_v23 = vsel %vm1674_vm0, %v1649_v8, 0  ;;  %v1648_v29 = vpack.c.bf16 %v1341_v19, %v1338_v57  ;;  %12138 = vmatprep.subr.msk.bf16.mxu1 %vm1674_vm0, %v1649_v8  ;;  %v1647_v8 = vpack.c.bf16 %v10965_v33, %v10964_v26  ;;  %v1646_v33 = vpack.c.bf16 %v1325_v27, %v1322_v7 }
 0x269   : > { %v10972_v3 = vpop.f32.mrf.mxu1  ;;  %v13983_v39 = vpop.f32.mrf.mxu0  ;;  %11035 = vmatpush3.bf16.xpose.msra.mxu1 %v1721_v23 }
 0x26a   : > { %12139 = vmatprep.subr.msk.bf16.mxu1 %vm1674_vm0, %v1648_v29  ;;  %v1718_v57 = vsel %vm1674_vm0, %v1648_v29, 0  ;;  %v1715_v29 = vsel %vm1674_vm0, %v1647_v8, 0 }
 0x26b   : > { %v13986_v54 = vpop.f32.mrf.mxu1  ;;  %v13988_v15 = vpop.f32.mrf.mxu0 }
 0x26d   : > { %v10973_v20 = vpop.f32.mrf.mxu1  ;;  %v13990_v52 = vpop.f32.mrf.mxu0 }
 0x26e   : > { %v13992_v56 = vpack.c.bf16 %v10973_v20, %v10972_v3 }
 0x26f   : > { %v13994_v5 = vpop.f32.mrf.mxu1  ;;  %v13996_v19 = vpop.f32.mrf.mxu0 }
 0x271   : > { %v13999_v1 = vpop.f32.mrf.mxu1  ;;  %v14001_v23 = vpop.f32.mrf.mxu0  ;;  %11037 = vmatpush3.bf16.xpose.msra.mxu1 %v1718_v57 }
 0x272   : > { %12140 = vmatprep.subr.msk.bf16.mxu1 %vm1674_vm0, %v1647_v8  ;;  %v1712_v8 = vsel %vm1674_vm0, %v1646_v33, 0 }
 0x273   : > { %v14004_v24 = vpop.f32.mrf.mxu1  ;;  %v14006_v48 = vpop.f32.mrf.mxu0 }
 0x275   : > { %v14008_v20 = vpop.f32.mrf.mxu1  ;;  %v14010_v3 = vpop.f32.mrf.mxu0 }
 0x277   : > { %v14012_v44 = vpop.f32.mrf.mxu1  ;;  %v14014_v26 = vpop.f32.mrf.mxu0 }
 0x279   : > { %v10980_v60 = vpop.f32.mrf.mxu1  ;;  %v14017_v17 = vpop.f32.mrf.mxu0  ;;  %11039 = vmatpush3.bf16.xpose.msra.mxu1 %v1715_v29 }
 0x27a   : > { %12141 = vmatprep.subr.msk.bf16.mxu1 %vm1674_vm0, %v1646_v33 }
 0x27b   : > { %v1386_v57 = vpop.f32.mrf.mxu1  ;;  %v14020_v28 = vpop.f32.mrf.mxu0 }
 0x27d   : > { %v10981_v38 = vpop.f32.mrf.mxu1  ;;  %v14022_v49 = vpop.f32.mrf.mxu0 }
 0x27e   : > { %v1655_v61 = vpack.c.bf16 %v10981_v38, %v10980_v60  ;;  %v1703_v38 = vsel %vm1674_vm0, %v13946_v10, 0  ;;  %v1642_v60 = vpack.c.bf16 %v13948_v51, %v13940_v59  ;;  %v1628_v51 = vpack.c.bf16 %v13961_v58, %v13955_v42 }
 0x27f   : > { %v1389_v46 = vpop.f32.mrf.mxu1  ;;  %v14024_v18 = vpop.f32.mrf.mxu0  ;;  %v1663_v42 = vpack.c.bf16 %v14022_v49, %v14017_v17  ;;  %v1629_v58 = vpack.c.bf16 %v13959_v25, %v13950_v9  ;;  %v1661_v49 = vpack.c.bf16 %v14010_v3, %v14001_v23  ;;  %v1631_v17 = vpack.c.bf16 %v13969_v30, %v13965_v63  ;;  %v12261_v25 = vld [vmem:[%s13306_s15 + $0x78] sm:$0xff]   ;;  %v12262_v30 = vld [vmem:[%s13306_s15 + $0x70] sm:$0xff]   ;;  %v12267_v3 = vld [vmem:[%s13306_s15 + $0x48] sm:$0xff]  }
 0x280   : > { %v1700_v59 = vsel %vm1674_vm0, %v1642_v60, 0  ;;  %v1658_v63 = vpack.c.bf16 %v13996_v19, %v13988_v15  ;;  %v12263_v15 = vld [vmem:[%s13306_s15 + $0x68] sm:$0xff]   ;;  %v17441_v19 = vld [vmem:[#allocation29_spill] sm:$0xff] }
 0x281   : > { %v10984_v7 = vpop.f32.mrf.mxu1  ;;  %v11016_v27 = vpop.f32.mrf.mxu0  ;;  %11041 = vmatpush3.bf16.xpose.msra.mxu1 %v1712_v8 }
 0x282   : > { %12142 = vmatprep.subr.msk.bf16.mxu1 %vm1674_vm0, %v1645_v40 }
 0x283   : > { %v1402_v29 = vpop.f32.mrf.mxu1  ;;  %v1547_v4 = vpop.f32.mrf.mxu0 }
 0x285   : > { %v10985_v16 = vpop.f32.mrf.mxu1  ;;  %v11017_v35 = vpop.f32.mrf.mxu0 }
 0x286   : > { %v1657_v55 = vpack.c.bf16 %v10985_v16, %v10984_v7 }
 0x287   : > { %v1405_v32 = vpop.f32.mrf.mxu1  ;;  %v1550_v2 = vpop.f32.mrf.mxu0 }
 0x288   : > { %v1866_v11 = vsel %vm1674_vm0, %v1657_v55, 0  ;;  %v1656_v62 = vpack.c.bf16 %v1405_v32, %v1402_v29  ;;  %12146 = vmatprep.subr.msk.bf16.mxu0 %vm1674_vm0, %v1657_v55 }
 0x289   : > { %v11020_v33 = vpop.f32.mrf.mxu0  ;;  %11043 = vmatpush3.bf16.xpose.msra.mxu1 %v1709_v37  ;;  %11067 = vmatpush3.bf16.xpose.msra.mxu0 %v1866_v11 }
 0x28a   : > { %12143 = vmatprep.subr.msk.bf16.mxu1 %vm1674_vm0, %v1644_v13  ;;  %12147 = vmatprep.subr.msk.bf16.mxu0 %vm1674_vm0, %v1656_v62  ;;  %v1863_v32 = vsel %vm1674_vm0, %v1656_v62, 0  ;;  %v1860_v13 = vsel %vm1674_vm0, %v1655_v61, 0  ;;  %v1654_v62 = vpack.c.bf16 %v1389_v46, %v1386_v57 }
 0x28b   : > { %v14036_v16 = vpop.f32.mrf.mxu0 }
 0x28c   : > { %v1857_v46 = vsel %vm1674_vm0, %v1654_v62, 0 }
 0x28d   : > { %v11021_v8 = vpop.f32.mrf.mxu0 }
 0x28e   : > { %v14038_v7 = vpack.c.bf16 %v11021_v8, %v11020_v33 }
 0x28f   : > { %v14040_v40 = vpop.f32.mrf.mxu0 }
 0x291   : > { %v11024_v55 = vpop.f32.mrf.mxu0  ;;  %11045 = vmatpush3.bf16.xpose.msra.mxu1 %v1706_v47  ;;  %11069 = vmatpush3.bf16.xpose.msra.mxu0 %v1863_v32 }
 0x292   : > { %12144 = vmatprep.subr.msk.bf16.mxu1 %vm1674_vm0, %v13946_v10  ;;  %12148 = vmatprep.subr.msk.bf16.mxu0 %vm1674_vm0, %v1655_v61  ;;  %v1653_v10 = vpack.c.bf16 %v14008_v20, %v13999_v1  ;;  %v1652_v61 = vpack.c.bf16 %v14012_v44, %v14004_v24  ;;  %v17435_v1 = vpack.c.bf16 %v13942_v21, %v13938_v12  ;;  %v17442_v20 = vld [vmem:[#allocation25_spill] sm:$0xff] }
 0x293   : > { %v14047_v37 = vpop.f32.mrf.mxu0  ;;  %v1630_v44 = vpack.c.bf16 %v13971_v43, %v13967_v14  ;;  %v1650_v12 = vpack.c.bf16 %v13994_v5, %v13986_v54  ;;  %v1660_v21 = vpack.c.bf16 %v14014_v26, %v14006_v48  ;;  %v1633_v5 = vpack.c.bf16 %v13977_v50, %v13973_v45  ;;  %v17438_v50 = vld [vmem:[#allocation22_spill] sm:$0xff]  ;;  %v12268_v26 = vld [vmem:[%s13306_s15 + $0x40] sm:$0xff]  }
 0x294   : > { %v1854_v57 = vsel %vm1674_vm0, %v1653_v10, 0  ;;  %v1851_v24 = vsel %vm1674_vm0, %v1652_v61, 0  ;;  %v1636_v43 = vpack.c.bf16 %v13916_v34, %v13910_v31  ;;  %v17436_v45 = vpack.c.bf16 %v13903_v53, %v13901_v22  ;;  %v17437_v34 = vld [vmem:[#allocation23_spill] sm:$0xff]  ;;  %v12265_v22 = vld [vmem:[%s13306_s15 + $0x58] sm:$0xff]  }
 0x295   : > { %v11025_v29 = vpop.f32.mrf.mxu0  ;;  %v1845_v48 = vsel %vm1674_vm0, %v1650_v12, 0  ;;  %v1638_v31 = vpack.c.bf16 %v13926_v0, %v13920_v36  ;;  %v12266_v53 = vld [vmem:[%s13306_s15 + $0x50] sm:$0xff]   ;;  %v17443_v36 = vld [vmem:[#allocation24_spill] sm:$0xff] }
 0x296   : > { %v14049_v11 = vpack.c.bf16 %v11025_v29, %v11024_v55  ;;  %v1665_v29 = vpack.c.bf16 %v11017_v35, %v11016_v27  ;;  %v1664_v35 = vpack.c.bf16 %v1550_v2, %v1547_v4  ;;  %v1662_v4 = vpack.c.bf16 %v14024_v18, %v14020_v28  ;;  %v17445_v27 = vld [vmem:[#allocation28_spill] sm:$0xff] }
 0x297   : > { %v14051_v33 = vpop.f32.mrf.mxu0  ;;  %v1632_v18 = vpack.c.bf16 %v13979_v6, %v13975_v41  ;;  %v1848_v28 = vsel %vm1674_vm0, %v13992_v56, 0  ;;  %v1659_v6 = vpack.c.bf16 %v13990_v52, %v13983_v39  ;;  %v12264_v41 = vld [vmem:[%s13306_s15 + $0x60] sm:$0xff]   ;;  %v17439_v52 = vpack.c.bf16 %v17437_v34, %v17438_v50 }
 0x298   : > { %v17444_v0 = vpack.c.bf16 %v17442_v20, %v17443_v36 }
 0x299   : > { %v11028_v8 = vpop.f32.mrf.mxu0  ;;  %11047 = vmatpush3.bf16.xpose.msra.mxu1 %v1703_v38  ;;  %11071 = vmatpush3.bf16.xpose.msra.mxu0 %v1860_v13  ;;  %v17446_v38 = vld [vmem:[#allocation26_spill] sm:$0xff] }
 0x29a   : > { %12145 = vmatprep.subr.msk.bf16.mxu1 %vm1674_vm0, %v1642_v60  ;;  %12149 = vmatprep.subr.msk.bf16.mxu0 %vm1674_vm0, %v1654_v62  ;;  %v17447_v60 = vpack.c.bf16 %v17445_v27, %v17446_v38  ;;  %v17448_v13 = vld [vmem:[#allocation14_spill] sm:$0xff]  ;;  %v12269_v62 = vld [vmem:[%s13306_s15 + $0x278] sm:$0xff]  }
 0x29b   : > { %v14060_v47 = vpop.f32.mrf.mxu0 }
 0x29d   : > { %v11029_v32 = vpop.f32.mrf.mxu0 }
 0x29e   : > { %v14062_v55 = vpack.c.bf16 %v11029_v32, %v11028_v8  ;;  %v12270_v8 = vld [vmem:[%s13306_s15 + $0x270] sm:$0xff]  }
 0x29f   : > { %v14097_v2 = vpop.f32.mrf.mxu0  ;;  %v17449_v32 = vld [vmem:[#allocation15_spill] sm:$0xff] }
 0x2a1   : > { %11049 = vmatpush3.bf16.xpose.msra.mxu1 %v1700_v59  ;;  %11073 = vmatpush3.bf16.xpose.msra.mxu0 %v1857_v46  ;;  %v11032_v9 = vpop.f32.mrf.mxu0  ;;  %v12272_v59 = vld [vmem:[%s13306_s15 + $0x260] sm:$0xff]  }
 0x2a2   : > { %12150 = vmatprep.subr.msk.bf16.mxu0 %vm1674_vm0, %v1653_v10  ;;  %11098 = vmatprep.subr.bf16.mxu1 %v1665_v29  ;;  %v17450_v10 = vld [vmem:[#allocation16_spill] sm:$0xff]  ;;  %v17451_v46 = vld [vmem:[#allocation17_spill] sm:$0xff] }
 0x2a3   : > { %v14114_v54 = vpop.f32.mrf.mxu0 }
 0x2a5   : > { %v11033_v14 = vpop.f32.mrf.mxu0 }
 0x2a6   : > { %v14121_v39 = vpack.c.bf16 %v11033_v14, %v11032_v9 }
 0x2a8   : > { %11051 = vmatmul.mubr.msk.bf16.vlgmr.msra.gmra.mxu1 %vm1674_vm0, %v17435_v1  ;;  %v17453_v1 = vld [vmem:[#allocation19_spill] sm:$0xff] }
 0x2a9   : > { %11054 = vmatprep.mubr.msk.bf16.mxu1 %vm1674_vm0, %v1628_v51  ;;  %11075 = vmatpush3.bf16.xpose.msra.mxu0 %v1854_v57  ;;  %v17452_v51 = vld [vmem:[#allocation18_spill] sm:$0xff]  ;;  %v12273_v57 = vld [vmem:[%s13306_s15 + $0x258] sm:$0xff]  }
 0x2aa   : > { %11099 = vmatpush3.bf16.msra.mxu1 %v1665_v29  ;;  %12151 = vmatprep.subr.msk.bf16.mxu0 %vm1674_vm0, %v1652_v61  ;;  %v12271_v29 = vld [vmem:[%s13306_s15 + $0x268] sm:$0xff]   ;;  %v12274_v61 = vld [vmem:[%s13306_s15 + $0x250] sm:$0xff]  }
 0x2ab   : > { %11100 = vmatprep.subr.bf16.mxu1 %v1664_v35 }
 0x2ae   : > { %11101 = vmatpush3.bf16.msra.mxu1 %v1664_v35  ;;  %v17454_v35 = vld [vmem:[#allocation20_spill] sm:$0xff] }
 0x2af   : > { %11102 = vmatprep.subr.bf16.mxu1 %v1663_v42 }
 0x2b0   : > { %11055 = vmatmul.mubr.msk.bf16.gmra.mxu1 %vm1674_vm0, %v1629_v58  ;;  %v12276_v58 = vld [vmem:[%s13306_s15 + $0x240] sm:$0xff]  }
 0x2b1   : > { %11058 = vmatprep.mubr.msk.bf16.mxu1 %vm1674_vm0, %v1630_v44  ;;  %11077 = vmatpush3.bf16.xpose.msra.mxu0 %v1851_v24  ;;  %v17455_v44 = vld [vmem:[#allocation21_spill] sm:$0xff]  ;;  %v17456_v24 = vld [vmem:[#allocation6_spill] sm:$0xff] }
 0x2b2   : > { %11103 = vmatpush3.bf16.msra.mxu1 %v1663_v42  ;;  %12152 = vmatprep.subr.msk.bf16.mxu0 %vm1674_vm0, %v13992_v56  ;;  %v17440_v56 = vld [vmem:[#allocation27_spill] sm:$0xff]  ;;  %v12275_v42 = vld [vmem:[%s13306_s15 + $0x248] sm:$0xff]  }
 0x2b3   : > { %11104 = vmatprep.subr.bf16.mxu1 %v1662_v4  ;;  %v1640_v23 = vpack.c.bf16 %v17441_v19, %v17440_v56 }
 0x2b6   : > { %11105 = vmatpush3.bf16.msra.mxu1 %v1662_v4  ;;  %v17457_v4 = vld [vmem:[#allocation7_spill] sm:$0xff] }
 0x2b7   : > { %11106 = vmatprep.subr.bf16.mxu1 %v1661_v49 }
 0x2b8   : > { %11059 = vmatmul.mubr.msk.bf16.gmra.mxu1 %vm1674_vm0, %v1631_v17  ;;  %v17459_v17 = vld [vmem:[#allocation9_spill] sm:$0xff] }
 0x2b9   : > { %11062 = vmatprep.mubr.msk.bf16.mxu1 %vm1674_vm0, %v1632_v18  ;;  %11079 = vmatpush3.bf16.xpose.msra.mxu0 %v1848_v28  ;;  %v17460_v18 = vld [vmem:[#allocation10_spill] sm:$0xff]  ;;  %v17461_v28 = vld [vmem:[#allocation11_spill] sm:$0xff] }
 0x2ba   : > { %11107 = vmatpush3.bf16.msra.mxu1 %v1661_v49  ;;  %12153 = vmatprep.subr.msk.bf16.mxu0 %vm1674_vm0, %v1650_v12  ;;  %v17458_v49 = vld [vmem:[#allocation8_spill] sm:$0xff] }
 0x2bb   : > { %11108 = vmatprep.subr.bf16.mxu1 %v1660_v21  ;;  %v17462_v12 = vld [vmem:[#allocation12_spill] sm:$0xff] }
 0x2be   : > { %11109 = vmatpush3.bf16.msra.mxu1 %v1660_v21  ;;  %v17463_v21 = vld [vmem:[#allocation13_spill] sm:$0xff] }
 0x2bf   : > { %11110 = vmatprep.subr.bf16.mxu1 %v1659_v6 }
 0x2c0   : > { %11063 = vmatmul.mubr.msk.bf16.gmra.mxu1 %vm1674_vm0, %v1633_v5 }
 0x2c1   : > { %11081 = vmatpush3.bf16.xpose.msra.mxu0 %v1845_v48 }
 0x2c2   : > { %11111 = vmatpush3.bf16.msra.mxu1 %v1659_v6  ;;  %11162 = vmatprep.subr.bf16.mxu0 %v12261_v25 }
 0x2c3   : > { %11112 = vmatprep.subr.bf16.mxu1 %v1658_v63 }
 0x2c6   : > { %11113 = vmatpush3.bf16.msra.mxu1 %v1658_v63 }
 0x2c7   : > { %11130 = vmatprep.subr.bf16.mxu1 %v14121_v39 }
 0x2c8   : > { %11083 = vmatmul.mubr.msk.bf16.vlgmr.msra.gmra.mxu0 %vm1674_vm0, %v17436_v45 }
 0x2c9   : > { %11086 = vmatprep.mubr.msk.bf16.mxu0 %vm1674_vm0, %v1636_v43  ;;  %11163 = vmatpush3.bf16.msra.mxu0 %v12261_v25 }
 0x2ca   : > { %11164 = vmatprep.subr.bf16.mxu0 %v12262_v30 }
 0x2cd   : > { %11165 = vmatpush3.bf16.msra.mxu0 %v12262_v30 }
 0x2ce   : > { %11166 = vmatprep.subr.bf16.mxu0 %v12263_v15 }
 0x2d0   : > { %11087 = vmatmul.mubr.msk.bf16.gmra.mxu0 %vm1674_vm0, %v17439_v52  ;;  %v14239_v52 = vpop.f32.mrf.mxu0 }
 0x2d1   : > { %11090 = vmatprep.mubr.msk.bf16.mxu0 %vm1674_vm0, %v1638_v31  ;;  %11167 = vmatpush3.bf16.msra.mxu0 %v12263_v15 }
 0x2d2   : > { %11168 = vmatprep.subr.bf16.mxu0 %v12264_v41 }
 0x2d5   : > { %11169 = vmatpush3.bf16.msra.mxu0 %v12264_v41 }
 0x2d6   : > { %11170 = vmatprep.subr.bf16.mxu0 %v12265_v22 }
 0x2d8   : > { %11091 = vmatmul.mubr.msk.bf16.gmra.mxu0 %vm1674_vm0, %v17444_v0 }
 0x2d9   : > { %11094 = vmatprep.mubr.msk.bf16.mxu0 %vm1674_vm0, %v1640_v23  ;;  %11171 = vmatpush3.bf16.msra.mxu0 %v12265_v22 }
 0x2da   : > { %11172 = vmatprep.subr.bf16.mxu0 %v12266_v53 }
 0x2dd   : > { %11173 = vmatpush3.bf16.msra.mxu0 %v12266_v53 }
 0x2de   : > { %11174 = vmatprep.subr.bf16.mxu0 %v12267_v3 }
 0x2e0   : > { %11095 = vmatmul.mubr.msk.bf16.gmra.mxu0 %vm1674_vm0, %v17447_v60 }
 0x2e1   : > { %11175 = vmatpush3.bf16.msra.mxu0 %v12267_v3  ;;  %11178 = vmatprep.mubr.bf16.mxu0 %v17448_v13 }
 0x2e2   : > { %11176 = vmatprep.subr.bf16.mxu0 %v12268_v26 }
 0x2e5   : > { %11177 = vmatpush3.bf16.msra.mxu0 %v12268_v26 }
 0x2e6   : > { %11258 = vmatprep.subr.bf16.mxu0 %v12269_v62 }
 0x2e8   : > { %11179 = vmatmul.mubr.bf16.vlgmr.msra.gmra.mxu0 %v17449_v32 }
 0x2e9   : > { %11182 = vmatprep.mubr.bf16.mxu0 %v17450_v10  ;;  %11259 = vmatpush3.bf16.msra.mxu0 %v12269_v62 }
 0x2ea   : > { %11260 = vmatprep.subr.bf16.mxu0 %v12270_v8 }
 0x2ed   : > { %11261 = vmatpush3.bf16.msra.mxu0 %v12270_v8 }
 0x2ee   : > { %11262 = vmatprep.subr.bf16.mxu0 %v12271_v29 }
 0x2f0   : > { %11183 = vmatmul.mubr.bf16.gmra.mxu0 %v17451_v46 }
 0x2f1   : > { %11186 = vmatprep.mubr.bf16.mxu0 %v17452_v51  ;;  %11263 = vmatpush3.bf16.msra.mxu0 %v12271_v29 }
 0x2f2   : > { %11264 = vmatprep.subr.bf16.mxu0 %v12272_v59 }
 0x2f5   : > { %11265 = vmatpush3.bf16.msra.mxu0 %v12272_v59 }
 0x2f6   : > { %11266 = vmatprep.subr.bf16.mxu0 %v12273_v57 }
 0x2f8   : > { %11187 = vmatmul.mubr.bf16.gmra.mxu0 %v17453_v1 }
 0x2f9   : > { %11190 = vmatprep.mubr.bf16.mxu0 %v17454_v35  ;;  %11267 = vmatpush3.bf16.msra.mxu0 %v12273_v57 }
 0x2fa   : > { %11268 = vmatprep.subr.bf16.mxu0 %v12274_v61 }
 0x2fd   : > { %11269 = vmatpush3.bf16.msra.mxu0 %v12274_v61 }
 0x2fe   : > { %11270 = vmatprep.subr.bf16.mxu0 %v12275_v42 }
 0x300   : > { %11191 = vmatmul.mubr.bf16.gmra.mxu0 %v17455_v44 }
 0x301   : > { %11194 = vmatprep.mubr.bf16.mxu0 %v17456_v24  ;;  %11271 = vmatpush3.bf16.msra.mxu0 %v12275_v42 }
 0x302   : > { %11272 = vmatprep.subr.bf16.mxu0 %v12276_v58 }
 0x305   : > { %11273 = vmatpush3.bf16.msra.mxu0 %v12276_v58 }
 0x308   : > { %11195 = vmatmul.mubr.bf16.gmra.mxu0 %v17457_v4 }
 0x309   : > { %11198 = vmatprep.mubr.bf16.mxu0 %v17458_v49 }
 0x310   : > { %11199 = vmatmul.mubr.bf16.gmra.mxu0 %v17459_v17 }
 0x311   : > { %11202 = vmatprep.mubr.bf16.mxu0 %v17460_v18 }
 0x318   : > { %11203 = vmatmul.mubr.bf16.gmra.mxu0 %v17461_v28 }
 0x319   : > { %11206 = vmatprep.mubr.bf16.mxu0 %v17462_v12 }
 0x320   : > { %11207 = vmatmul.mubr.bf16.gmra.mxu0 %v17463_v21 }
 0x321   : > { %11274 = vmatprep.mubr.bf16.mxu0 %v17448_v13 }
 0x328   : > { %11275 = vmatmul.mubr.bf16.vlgmr.msra.gmra.mxu0 %v17449_v32 }
 0x329   : > { %11278 = vmatprep.mubr.bf16.mxu0 %v17450_v10 }
 0x330   : > { %11279 = vmatmul.mubr.bf16.gmra.mxu0 %v17451_v46 }
 0x331   : > { %11282 = vmatprep.mubr.bf16.mxu0 %v17452_v51 }
 0x338   : > { %11283 = vmatmul.mubr.bf16.gmra.mxu0 %v17453_v1 }
 0x339   : > { %11286 = vmatprep.mubr.bf16.mxu0 %v17454_v35 }
 0x340   : > { %11287 = vmatmul.mubr.bf16.gmra.mxu0 %v17455_v44 }
 0x341   : > { %11290 = vmatprep.mubr.bf16.mxu0 %v17456_v24 }
 0x348   : > { %11291 = vmatmul.mubr.bf16.gmra.mxu0 %v17457_v4 }
 0x349   : > { %11294 = vmatprep.mubr.bf16.mxu0 %v17458_v49 }
 0x350   : > { %11295 = vmatmul.mubr.bf16.gmra.mxu0 %v17459_v17 }
 0x351   : > { %11298 = vmatprep.mubr.bf16.mxu0 %v17460_v18 }
 0x358   : > { %11299 = vmatmul.mubr.bf16.gmra.mxu0 %v17461_v28 }
 0x359   : > { %11302 = vmatprep.mubr.bf16.mxu0 %v17462_v12 }
 0x360   : > { %11303 = vmatmul.mubr.bf16.gmra.mxu0 %v17463_v21 }
 0x368   : > { %v14196_v9 = vpop.f32.mrf.mxu1 }
 0x36a   : > { %v14198_v6 = vpop.f32.mrf.mxu1 }
 0x36b   : > { %1965 = vmax.xlane.f32.xlu0 %v14198_v6 }
 0x36c   : > { %v14201_v5 = vpop.f32.mrf.mxu1 }
 0x36e   : > { %v14203_v25 = vpop.f32.mrf.mxu1 }
 0x36f   : > { %1969 = vmax.xlane.f32.xlu0 %v14196_v9  ;;  %1967 = vmax.xlane.f32.xlu1 %v14203_v25 }
 0x370   : > { %v14207_v48 = vpop.f32.mrf.mxu1 }
 0x372   : > { %v14209_v63 = vpop.f32.mrf.mxu1 }
 0x373   : > { %1971 = vmax.xlane.f32.xlu1 %v14201_v5  ;;  %1973 = vmax.xlane.f32.xlu0 %v14209_v63 }
 0x374   : > { %v14213_v14 = vpop.f32.mrf.mxu1 }
 0x376   : > { %v14215_v30 = vpop.f32.mrf.mxu1 }
 0x377   : > { %1977 = vmax.xlane.f32.xlu0 %v14207_v48  ;;  %1975 = vmax.xlane.f32.xlu1 %v14215_v30 }
 0x378   : > { %v14219_v43 = vpop.f32.mrf.mxu1 }
 0x37a   : > { %v14221_v45 = vpop.f32.mrf.mxu1 }
 0x37b   : > { %1979 = vmax.xlane.f32.xlu1 %v14213_v14  ;;  %1981 = vmax.xlane.f32.xlu0 %v14221_v45 }
 0x37c   : > { %v14225_v15 = vpop.f32.mrf.mxu1 }
 0x37e   : > { %v14227_v41 = vpop.f32.mrf.mxu1 }
 0x37f   : > { %1985 = vmax.xlane.f32.xlu0 %v14219_v43  ;;  %1983 = vmax.xlane.f32.xlu1 %v14227_v41 }
 0x380   : > { %v14231_v31 = vpop.f32.mrf.mxu1 }
 0x382   : > { %v14233_v34 = vpop.f32.mrf.mxu1 }
 0x383   : > { %1987 = vmax.xlane.f32.xlu1 %v14225_v15  ;;  %1989 = vmax.xlane.f32.xlu0 %v14233_v34 }
 0x384   : > { %v14237_v50 = vpop.f32.mrf.mxu1 }
 0x386   : > { %v14241_v22 = vpop.f32.mrf.mxu1 }
 0x387   : > { %1993 = vmax.xlane.f32.xlu0 %v14231_v31  ;;  %1991 = vmax.xlane.f32.xlu1 %v14241_v22 }
 0x388   : > { %v14245_v53 = vpop.f32.mrf.mxu0 }
 0x38a   : > { %v14247_v56 = vpop.f32.mrf.mxu0 }
 0x38b   : > { %1995 = vmax.xlane.f32.xlu1 %v14237_v50  ;;  %1997 = vmax.xlane.f32.xlu0 %v14247_v56 }
 0x38c   : > { %v14251_v19 = vpop.f32.mrf.mxu0 }
 0x38e   : > { %v14253_v23 = vpop.f32.mrf.mxu0 }
 0x38f   : > { %2001 = vmax.xlane.f32.xlu0 %v14245_v53  ;;  %1999 = vmax.xlane.f32.xlu1 %v14253_v23 }
 0x390   : > { %v14257_v20 = vpop.f32.mrf.mxu0 }
 0x392   : > { %v14259_v36 = vpop.f32.mrf.mxu0 }
 0x393   : > { %2003 = vmax.xlane.f32.xlu1 %v14251_v19  ;;  %2005 = vmax.xlane.f32.xlu0 %v14259_v36 }
 0x394   : > { %v14263_v0 = vpop.f32.mrf.mxu0 }
 0x396   : > { %v14265_v3 = vpop.f32.mrf.mxu0 }
 0x397   : > { %2009 = vmax.xlane.f32.xlu0 %v14257_v20  ;;  %2007 = vmax.xlane.f32.xlu1 %v14265_v3 }
 0x398   : > { %v14269_v26 = vpop.f32.mrf.mxu0 }
 0x39a   : > { %v14271_v27 = vpop.f32.mrf.mxu0 }
 0x39b   : > { %2011 = vmax.xlane.f32.xlu1 %v14263_v0  ;;  %2013 = vmax.xlane.f32.xlu0 %v14271_v27 }
 0x39c   : > { %v14275_v38 = vpop.f32.mrf.mxu0 }
 0x39e   : > { %v14277_v60 = vpop.f32.mrf.mxu0 }
 0x39f   : > { %2017 = vmax.xlane.f32.xlu0 %v14269_v26  ;;  %2015 = vmax.xlane.f32.xlu1 %v14277_v60 }
 0x3a0   : > { %v14281_v62 = vpop.f32.mrf.mxu0 }
 0x3a2   : > { %v14283_v8 = vpop.f32.mrf.mxu0 }
 0x3a3   : > { %2019 = vmax.xlane.f32.xlu1 %v14275_v38  ;;  %2021 = vmax.xlane.f32.xlu0 %v14283_v8 }
 0x3a4   : > { %v14287_v29 = vpop.f32.mrf.mxu0 }
 0x3a6   : > { %v14289_v59 = vpop.f32.mrf.mxu0 }
 0x3a7   : > { %2025 = vmax.xlane.f32.xlu0 %v14281_v62  ;;  %2023 = vmax.xlane.f32.xlu1 %v14289_v59 }
 0x3a8   : > { %v14293_v57 = vpop.f32.mrf.mxu0 }
 0x3a9   : > { %17464 = vst [vmem:[#allocation23_spill] sm:$0xff] %v14293_v57 }
 0x3aa   : > { %v14295_v61 = vpop.f32.mrf.mxu0 }
 0x3ab   : > { %17465 = vst [vmem:[#allocation22_spill] sm:$0xff] %v14295_v61  ;;  %2027 = vmax.xlane.f32.xlu1 %v14287_v29 }
 0x3ac   : > { %v14298_v42 = vpop.f32.mrf.mxu0 }
 0x3ad   : > { %17466 = vst [vmem:[#allocation27_spill] sm:$0xff] %v14298_v42 }
 0x3ae   : > { %v14302_v21 = vpop.f32.mrf.mxu0 }
 0x3af   : > { %17467 = vst [vmem:[#allocation29_spill] sm:$0xff] %v14302_v21 }
 0x3b0   : > { %v14304_v12 = vpop.f32.mrf.mxu0 }
 0x3b1   : > { %17468 = vst [vmem:[#allocation25_spill] sm:$0xff] %v14304_v12 }
 0x3b2   : > { %v14306_v28 = vpop.f32.mrf.mxu0 }
 0x3b3   : > { %17469 = vst [vmem:[#allocation24_spill] sm:$0xff] %v14306_v28 }
 0x3b4   : > { %v14308_v18 = vpop.f32.mrf.mxu0 }
 0x3b5   : > { %17470 = vst [vmem:[#allocation28_spill] sm:$0xff] %v14308_v18 }
 0x3b6   : > { %v14312_v49 = vpop.f32.mrf.mxu0 }
 0x3b7   : > { %17471 = vst [vmem:[#allocation26_spill] sm:$0xff] %v14312_v49 }
 0x3b8   : > { %v14314_v61 = vpop.f32.mrf.mxu0 }
 0x3b9   : > { %17472 = vst [vmem:[#allocation30_spill] sm:$0xff] %v14314_v61 }
 0x3ba   : > { %v14316_v4 = vpop.f32.mrf.mxu0 }
 0x3bb   : > { %17473 = vst [vmem:[#allocation31_spill] sm:$0xff] %v14316_v4 }
 0x3bc   : > { %v14318_v24 = vpop.f32.mrf.mxu0 }
 0x3bd   : > { %17474 = vst [vmem:[#allocation32_spill] sm:$0xff] %v14318_v24 }
 0x3be   : > { %v14322_v57 = vpop.f32.mrf.mxu0 }
 0x3bf   : > { %17475 = vst [vmem:[#allocation33_spill] sm:$0xff] %v14322_v57 }
 0x3c0   : > { %v14324_v42 = vpop.f32.mrf.mxu0 }
 0x3c1   : > { %17476 = vst [vmem:[#allocation34_spill] sm:$0xff] %v14324_v42 }
 0x3c2   : > { %v14326_v28 = vpop.f32.mrf.mxu0 }
 0x3c3   : > { %17477 = vst [vmem:[#allocation35_spill] sm:$0xff] %v14326_v28 }
 0x3c4   : > { %v14328_v21 = vpop.f32.mrf.mxu0 }
 0x3c5   : > { %17478 = vst [vmem:[#allocation36_spill] sm:$0xff] %v14328_v21 }
 0x3c6   : > { %v14332_v12 = vpop.f32.mrf.mxu0 }
 0x3c7   : > { %17479 = vst [vmem:[#allocation37_spill] sm:$0xff] %v14332_v12 }
 0x3c8   : > { %v14334_v18 = vpop.f32.mrf.mxu0 }
 0x3c9   : > { %17480 = vst [vmem:[#allocation38_spill] sm:$0xff] %v14334_v18 }
 0x3ca   : > { %v2681_v4 = vpop.f32.mrf.mxu0 }
 0x3cc   : > { %v14336_v49 = vpop.f32.mrf.mxu0 }
 0x3cd   : > { %17481 = vst [vmem:[#allocation39_spill] sm:$0xff] %v14336_v49 }
 0x3ce   : > { %v2684_v61 = vpop.f32.mrf.mxu0 }
 0x3cf   : > { %v3170_v24 = vpack.c.bf16 %v2684_v61, %v2681_v4 }
 0x3d0   : > { %v14340_v57 = vpop.f32.mrf.mxu0 }
 0x3d1   : > { %17482 = vst [vmem:[#allocation40_spill] sm:$0xff] %v14340_v57  ;;  %11354 = vmatprep.mubr.msk.bf16.mxu0 %vm1674_vm0, %v3170_v24 }
 0x3d2   : > { %v14343_v28 = vpop.f32.mrf.mxu0 }
 0x3d3   : > { %17483 = vst [vmem:[#allocation41_spill] sm:$0xff] %v14343_v28 }
 0x3d4   : > { %v14345_v44 = vpop.f32.mrf.mxu0 }
 0x3d5   : > { %17484 = vst [vmem:[#allocation42_spill] sm:$0xff] %v14345_v44 }
 0x3d6   : > { %v14349_v42 = vpop.f32.mrf.mxu0 }
 0x3d7   : > { %17485 = vst [vmem:[#allocation43_spill] sm:$0xff] %v14349_v42 }
 0x3d8   : > { %v14351_v21 = vpop.f32.mrf.mxu0 }
 0x3d9   : > { %17486 = vst [vmem:[#allocation44_spill] sm:$0xff] %v14351_v21 }
 0x3da   : > { %v14353_v12 = vpop.f32.mrf.mxu0 }
 0x3db   : > { %17487 = vst [vmem:[#allocation45_spill] sm:$0xff] %v14353_v12 }
 0x3dc   : > { %v14355_v58 = vpop.f32.mrf.mxu0 }
 0x3dd   : > { %17488 = vst [vmem:[#allocation46_spill] sm:$0xff] %v14355_v58 }
 0x3de   : > { %v14359_v61 = vpop.f32.mrf.mxu0 }
 0x3df   : > { %17489 = vst [vmem:[#allocation47_spill] sm:$0xff] %v14359_v61 }
 0x3e0   : > { %v14361_v24 = vpop.f32.mrf.mxu0 }
 0x3e1   : > { %17490 = vst [vmem:[#allocation48_spill] sm:$0xff] %v14361_v24 }
 0x3e2   : > { %v14363_v18 = vpop.f32.mrf.mxu0 }
 0x3e3   : > { %17491 = vst [vmem:[#allocation49_spill] sm:$0xff] %v14363_v18 }
 0x3e4   : > { %v14365_v49 = vpop.f32.mrf.mxu0 }
 0x3e5   : > { %17492 = vst [vmem:[#allocation50_spill] sm:$0xff] %v14365_v49 }
 0x3e6   : > { %v14369_v57 = vpop.f32.mrf.mxu0 }
 0x3e7   : > { %17493 = vst [vmem:[#allocation51_spill] sm:$0xff] %v14369_v57 }
 0x3e8   : > { %v14371_v44 = vpop.f32.mrf.mxu0 }
 0x3e9   : > { %17494 = vst [vmem:[#allocation52_spill] sm:$0xff] %v14371_v44 }
 0x3ea   : > { %v14373_v12 = vpop.f32.mrf.mxu0 }
 0x3eb   : > { %17495 = vst [vmem:[#allocation53_spill] sm:$0xff] %v14373_v12 }
 0x3ec   : > { %v14375_v42 = vpop.f32.mrf.mxu0 }
 0x3ed   : > { %17496 = vst [vmem:[#allocation54_spill] sm:$0xff] %v14375_v42 }
 0x3ee   : > { %v14377_v4 = vpop.f32.mrf.mxu0 }
 0x3ef   : > { %17497 = vst [vmem:[#allocation55_spill] sm:$0xff] %v14377_v4 }
 0x3f0   : > { %v14379_v21 = vpop.f32.mrf.mxu0 }
 0x3f1   : > { %17498 = vst [vmem:[#allocation56_spill] sm:$0xff] %v14379_v21 }
 0x3f2   : > { %v14381_v58 = vpop.f32.mrf.mxu0 }
 0x3f3   : > { %17499 = vst [vmem:[#allocation57_spill] sm:$0xff] %v14381_v58 }
 0x3f4   : > { %v1966_v18 = vpop.xlane.xlu0 %1965  ;;  %v14383_v61 = vpop.f32.mrf.mxu0 }
 0x3f5   : > { %17500 = vst [vmem:[#allocation58_spill] sm:$0xff] %v14383_v61  ;;  %v2029_v28 = vsub.f32 %v14198_v6, %v1966_v18 }
 0x3f6   : > { %v14386_v17 = vpop.f32.mrf.mxu0 }
 0x3f7   : > { %17501 = vst [vmem:[#allocation59_spill] sm:$0xff] %v14386_v17  ;;  %v2061_v24 = vmul.f32 1.442695, %v2029_v28 }
 0x3f8   : > { %v1970_v49 = vpop.xlane.xlu0 %1969  ;;  %v1968_v57 = vpop.xlane.xlu1 %1967 }
 0x3f9   : > { %12445 = vpow2.f32 %v2061_v24  ;;  %v2031_v12 = vsub.f32 %v14196_v9, %v1970_v49  ;;  %v2030_v42 = vsub.f32 %v14203_v25, %v1968_v57  ;;  %v14390_v4 = vpop.f32.mrf.mxu0 }
 0x3fa   : > { %17502 = vst [vmem:[#allocation60_spill] sm:$0xff] %v14390_v4 }
 0x3fb   : > { %v2065_v44 = vmul.f32 1.442695, %v2031_v12  ;;  %v2063_v21 = vmul.f32 1.442695, %v2030_v42  ;;  %v14392_v58 = vpop.f32.mrf.mxu0 }
 0x3fc   : > { %17503 = vst [vmem:[#allocation61_spill] sm:$0xff] %v14392_v58  ;;  %v1972_v35 = vpop.xlane.xlu1 %1971  ;;  %v1974_v61 = vpop.xlane.xlu0 %1973 }
 0x3fd   : > { %12447 = vpow2.f32 %v2065_v44  ;;  %v2032_v18 = vsub.f32 %v14201_v5, %v1972_v35  ;;  %v2033_v28 = vsub.f32 %v14209_v63, %v1974_v61  ;;  %v14396_v6 = vpop.f32.mrf.mxu0 }
 0x3fe   : > { %17504 = vst [vmem:[#allocation62_spill] sm:$0xff] %v14396_v6  ;;  %12449 = vpow2.f32 %v2063_v21 }
 0x3ff   : > { %v2067_v24 = vmul.f32 1.442695, %v2032_v18  ;;  %v2069_v49 = vmul.f32 1.442695, %v2033_v28  ;;  %v14398_v9 = vpop.f32.mrf.mxu0 }
 0x400   : > { %17505 = vst [vmem:[#allocation63_spill] sm:$0xff] %v14398_v9  ;;  %v1978_v25 = vpop.xlane.xlu0 %1977  ;;  %v1976_v57 = vpop.xlane.xlu1 %1975 }
 0x401   : > { %12451 = vpow2.f32 %v2067_v24  ;;  %v2035_v12 = vsub.f32 %v14207_v48, %v1978_v25  ;;  %v2034_v42 = vsub.f32 %v14215_v30, %v1976_v57  ;;  %v14402_v17 = vpop.f32.mrf.mxu0 }
 0x402   : > { %17506 = vst [vmem:[#allocation64_spill] sm:$0xff] %v14402_v17  ;;  %12453 = vpow2.f32 %v2069_v49 }
 0x403   : > { %v2073_v35 = vmul.f32 1.442695, %v2035_v12  ;;  %v2071_v44 = vmul.f32 1.442695, %v2034_v42  ;;  %v14404_v5 = vpop.f32.mrf.mxu0 }
 0x404   : > { %17507 = vst [vmem:[#allocation65_spill] sm:$0xff] %v14404_v5  ;;  %v1980_v63 = vpop.xlane.xlu1 %1979  ;;  %v1982_v21 = vpop.xlane.xlu0 %1981 }
 0x405   : > { %12455 = vpow2.f32 %v2073_v35  ;;  %v2036_v61 = vsub.f32 %v14213_v14, %v1980_v63  ;;  %v2037_v18 = vsub.f32 %v14221_v45, %v1982_v21  ;;  %v14408_v28 = vpop.f32.mrf.mxu0 }
 0x406   : > { %17508 = vst [vmem:[#allocation66_spill] sm:$0xff] %v14408_v28  ;;  %v14410_v24 = vpop.eup %12445  ;;  %12457 = vpow2.f32 %v2071_v44 }
 0x407   : > { %v2075_v48 = vmul.f32 1.442695, %v2036_v61  ;;  %v2077_v30 = vmul.f32 1.442695, %v2037_v18  ;;  %v14412_v25 = vpop.f32.mrf.mxu0  ;;  %2125 = vadd.xlane.f32.xlu0 %v14410_v24 }
 0x408   : > { %17509 = vst [vmem:[#allocation67_spill] sm:$0xff] %v14412_v25  ;;  %v1986_v49 = vpop.xlane.xlu0 %1985  ;;  %v1984_v57 = vpop.xlane.xlu1 %1983 }
 0x409   : > { %12459 = vpow2.f32 %v2075_v48  ;;  %v2039_v12 = vsub.f32 %v14219_v43, %v1986_v49  ;;  %v2038_v14 = vsub.f32 %v14227_v41, %v1984_v57  ;;  %v11292_v42 = vpop.f32.mrf.mxu0 }
 0x40a   : > { %v14417_v45 = vpop.eup %12447  ;;  %12461 = vpow2.f32 %v2077_v30 }
 0x40b   : > { %v14419_v35 = vpop.eup %12449  ;;  %v2081_v44 = vmul.f32 1.442695, %v2039_v12  ;;  %v2079_v63 = vmul.f32 1.442695, %v2038_v14  ;;  %v14421_v21 = vpop.f32.mrf.mxu0  ;;  %2129 = vadd.xlane.f32.xlu0 %v14417_v45 }
 0x40c   : > { %17510 = vst [vmem:[#allocation68_spill] sm:$0xff] %v14421_v21  ;;  %2127 = vadd.xlane.f32.xlu1 %v14419_v35  ;;  %v1988_v61 = vpop.xlane.xlu1 %1987  ;;  %v1990_v18 = vpop.xlane.xlu0 %1989 }
 0x40d   : > { %12463 = vpow2.f32 %v2081_v44  ;;  %v2040_v43 = vsub.f32 %v14225_v15, %v1988_v61  ;;  %v2041_v41 = vsub.f32 %v14233_v34, %v1990_v18  ;;  %v11293_v48 = vpop.f32.mrf.mxu0 }
 0x40e   : > { %v14427_v49 = vpop.eup %12451  ;;  %12465 = vpow2.f32 %v2079_v63  ;;  %v14429_v30 = vpack.c.bf16 %v11293_v48, %v11292_v42 }
 0x40f   : > { %v14431_v57 = vpop.eup %12453  ;;  %v2083_v12 = vmul.f32 1.442695, %v2040_v43  ;;  %v2085_v14 = vmul.f32 1.442695, %v2041_v41  ;;  %v14433_v21 = vpop.f32.mrf.mxu0 }
 0x410   : > { %17511 = vst [vmem:[#allocation69_spill] sm:$0xff] %v14429_v30  ;;  %17512 = vst [vmem:[#allocation70_spill] sm:$0xff] %v14433_v21  ;;  %2133 = vadd.xlane.f32.xlu0 %v14431_v57  ;;  %2131 = vadd.xlane.f32.xlu1 %v14427_v49  ;;  %v1994_v44 = vpop.xlane.xlu0 %1993  ;;  %v1992_v15 = vpop.xlane.xlu1 %1991 }
 0x411   : > { %12467 = vpow2.f32 %v2083_v12  ;;  %v2043_v34 = vsub.f32 %v14231_v31, %v1994_v44  ;;  %v2042_v61 = vsub.f32 %v14241_v22, %v1992_v15  ;;  %v11296_v63 = vpop.f32.mrf.mxu0 }
 0x412   : > { %v14439_v42 = vpop.eup %12455  ;;  %12469 = vpow2.f32 %v2085_v14 }
 0x413   : > { %v14441_v18 = vpop.eup %12457  ;;  %v2089_v43 = vmul.f32 1.442695, %v2043_v34  ;;  %v2087_v41 = vmul.f32 1.442695, %v2042_v61  ;;  %v14443_v48 = vpop.f32.mrf.mxu0 }
 0x414   : > { %17513 = vst [vmem:[#allocation71_spill] sm:$0xff] %v14443_v48  ;;  %2137 = vadd.xlane.f32.xlu0 %v14439_v42  ;;  %2135 = vadd.xlane.f32.xlu1 %v14441_v18  ;;  %v1996_v21 = vpop.xlane.xlu1 %1995  ;;  %v1998_v12 = vpop.xlane.xlu0 %1997 }
 0x415   : > { %12471 = vpow2.f32 %v2089_v43  ;;  %v2044_v31 = vsub.f32 %v14237_v50, %v1996_v21  ;;  %v2045_v22 = vsub.f32 %v14247_v56, %v1998_v12  ;;  %v11297_v44 = vpop.f32.mrf.mxu0 }
 0x416   : > { %v14449_v15 = vpop.eup %12459  ;;  %12473 = vpow2.f32 %v2087_v41  ;;  %v14451_v14 = vpack.c.bf16 %v11297_v44, %v11296_v63 }
 0x417   : > { %v14453_v34 = vpop.eup %12461  ;;  %v2091_v61 = vmul.f32 1.442695, %v2044_v31  ;;  %v2093_v30 = vmul.f32 1.442695, %v2045_v22  ;;  %v14455_v48 = vpop.f32.mrf.mxu0 }
 0x418   : > { %17514 = vst [vmem:[#allocation72_spill] sm:$0xff] %v14451_v14  ;;  %17515 = vst [vmem:[#allocation73_spill] sm:$0xff] %v14455_v48  ;;  %2141 = vadd.xlane.f32.xlu0 %v14453_v34  ;;  %2139 = vadd.xlane.f32.xlu1 %v14449_v15  ;;  %v2002_v43 = vpop.xlane.xlu0 %2001  ;;  %v2000_v50 = vpop.xlane.xlu1 %1999 }
 0x419   : > { %12475 = vpow2.f32 %v2091_v61  ;;  %v2047_v56 = vsub.f32 %v14245_v53, %v2002_v43  ;;  %v2046_v21 = vsub.f32 %v14253_v23, %v2000_v50  ;;  %v11300_v41 = vpop.f32.mrf.mxu0 }
 0x41a   : > { %v14461_v63 = vpop.eup %12463  ;;  %12477 = vpow2.f32 %v2093_v30 }
 0x41b   : > { %v14463_v12 = vpop.eup %12465  ;;  %v2097_v31 = vmul.f32 1.442695, %v2047_v56  ;;  %v2095_v22 = vmul.f32 1.442695, %v2046_v21  ;;  %v14465_v44 = vpop.f32.mrf.mxu0 }
 0x41c   : > { %17516 = vst [vmem:[#allocation74_spill] sm:$0xff] %v14465_v44  ;;  %2145 = vadd.xlane.f32.xlu0 %v14461_v63  ;;  %2143 = vadd.xlane.f32.xlu1 %v14463_v12  ;;  %v2004_v48 = vpop.xlane.xlu1 %2003  ;;  %v2006_v61 = vpop.xlane.xlu0 %2005 }
 0x41d   : > { %12479 = vpow2.f32 %v2097_v31  ;;  %v2048_v53 = vsub.f32 %v14251_v19, %v2004_v48  ;;  %v2049_v23 = vsub.f32 %v14259_v36, %v2006_v61  ;;  %v11301_v43 = vpop.f32.mrf.mxu0 }
 0x41e   : > { %v14471_v50 = vpop.eup %12467  ;;  %12481 = vpow2.f32 %v2095_v22  ;;  %v14473_v30 = vpack.c.bf16 %v11301_v43, %v11300_v41 }
 0x41f   : > { %v14475_v56 = vpop.eup %12469  ;;  %v2099_v21 = vmul.f32 1.442695, %v2048_v53  ;;  %v2101_v14 = vmul.f32 1.442695, %v2049_v23 }
 0x420   : > { %17517 = vst [vmem:[#allocation75_spill] sm:$0xff] %v14473_v30  ;;  %2149 = vadd.xlane.f32.xlu0 %v14475_v56  ;;  %2147 = vadd.xlane.f32.xlu1 %v14471_v50  ;;  %v2010_v44 = vpop.xlane.xlu0 %2009  ;;  %v2008_v31 = vpop.xlane.xlu1 %2007 }
 0x421   : > { %12483 = vpow2.f32 %v2099_v21  ;;  %v2051_v19 = vsub.f32 %v14257_v20, %v2010_v44  ;;  %v2050_v36 = vsub.f32 %v14265_v3, %v2008_v31 }
 0x422   : > { %v14481_v48 = vpop.eup %12471  ;;  %12485 = vpow2.f32 %v2101_v14 }
 0x423   : > { %v14483_v41 = vpop.eup %12473  ;;  %v2105_v22 = vmul.f32 1.442695, %v2051_v19  ;;  %v2103_v61 = vmul.f32 1.442695, %v2050_v36 }
 0x424   : > { %2153 = vadd.xlane.f32.xlu0 %v14481_v48  ;;  %2151 = vadd.xlane.f32.xlu1 %v14483_v41  ;;  %v2012_v53 = vpop.xlane.xlu1 %2011  ;;  %v2014_v23 = vpop.xlane.xlu0 %2013 }
 0x425   : > { %12487 = vpow2.f32 %v2105_v22  ;;  %v2052_v43 = vsub.f32 %v14263_v0, %v2012_v53  ;;  %v2053_v20 = vsub.f32 %v14271_v27, %v2014_v23 }
 0x426   : > { %v14489_v44 = vpop.eup %12475  ;;  %12489 = vpow2.f32 %v2103_v61 }
 0x427   : > { %v14491_v3 = vpop.eup %12477  ;;  %v2107_v14 = vmul.f32 1.442695, %v2052_v43  ;;  %v2109_v21 = vmul.f32 1.442695, %v2053_v20 }
 0x428   : > { %2157 = vadd.xlane.f32.xlu0 %v14491_v3  ;;  %2155 = vadd.xlane.f32.xlu1 %v14489_v44  ;;  %v2018_v31 = vpop.xlane.xlu0 %2017  ;;  %v2016_v19 = vpop.xlane.xlu1 %2015 }
 0x429   : > { %12491 = vpow2.f32 %v2107_v14  ;;  %v2055_v36 = vsub.f32 %v14269_v26, %v2018_v31  ;;  %v2054_v0 = vsub.f32 %v14277_v60, %v2016_v19 }
 0x42a   : > { %v14497_v22 = vpop.eup %12479  ;;  %12493 = vpow2.f32 %v2109_v21 }
 0x42b   : > { %v14499_v27 = vpop.eup %12481  ;;  %v2113_v61 = vmul.f32 1.442695, %v2055_v36  ;;  %v2111_v53 = vmul.f32 1.442695, %v2054_v0 }
 0x42c   : > { %2161 = vadd.xlane.f32.xlu0 %v14497_v22  ;;  %2159 = vadd.xlane.f32.xlu1 %v14499_v27  ;;  %v2020_v23 = vpop.xlane.xlu1 %2019  ;;  %v2022_v43 = vpop.xlane.xlu0 %2021 }
 0x42d   : > { %12495 = vpow2.f32 %v2113_v61  ;;  %v2056_v20 = vsub.f32 %v14275_v38, %v2020_v23  ;;  %v2057_v26 = vsub.f32 %v14283_v8, %v2022_v43 }
 0x42e   : > { %v14505_v14 = vpop.eup %12483  ;;  %12497 = vpow2.f32 %v2111_v53 }
 0x42f   : > { %v14507_v60 = vpop.eup %12485  ;;  %v2115_v21 = vmul.f32 1.442695, %v2056_v20  ;;  %v2117_v31 = vmul.f32 1.442695, %v2057_v26 }
 0x430   : > { %2165 = vadd.xlane.f32.xlu0 %v14507_v60  ;;  %2163 = vadd.xlane.f32.xlu1 %v14505_v14  ;;  %v2026_v19 = vpop.xlane.xlu0 %2025  ;;  %v2024_v36 = vpop.xlane.xlu1 %2023 }
 0x431   : > { %12499 = vpow2.f32 %v2115_v21  ;;  %v2059_v0 = vsub.f32 %v14281_v62, %v2026_v19  ;;  %v2058_v38 = vsub.f32 %v14289_v59, %v2024_v36 }
 0x432   : > { %v14513_v61 = vpop.eup %12487  ;;  %12501 = vpow2.f32 %v2117_v31 }
 0x433   : > { %v14515_v8 = vpop.eup %12489  ;;  %v2121_v53 = vmul.f32 1.442695, %v2059_v0  ;;  %v2119_v23 = vmul.f32 1.442695, %v2058_v38 }
 0x434   : > { %2169 = vadd.xlane.f32.xlu0 %v14513_v61  ;;  %2167 = vadd.xlane.f32.xlu1 %v14515_v8  ;;  %v2028_v43 = vpop.xlane.xlu1 %2027 }
 0x435   : > { %12503 = vpow2.f32 %v2121_v53  ;;  %v2060_v20 = vsub.f32 %v14287_v29, %v2028_v43 }
 0x436   : > { %v14520_v26 = vpop.eup %12491  ;;  %12505 = vpow2.f32 %v2119_v23 }
 0x437   : > { %v14522_v62 = vpop.eup %12493  ;;  %v2123_v59 = vmul.f32 1.442695, %v2060_v20 }
 0x438   : > { %2173 = vadd.xlane.f32.xlu0 %v14522_v62  ;;  %2171 = vadd.xlane.f32.xlu1 %v14520_v26 }
 0x439   : > { %12507 = vpow2.f32 %v2123_v59 }
 0x43a   : > { %v14526_v21 = vpop.eup %12495 }
 0x43b   : > { %v14528_v31 = vpop.eup %12497 }
 0x43c   : > { %2177 = vadd.xlane.f32.xlu0 %v14526_v21  ;;  %2175 = vadd.xlane.f32.xlu1 %v14528_v31 }
 0x43e   : > { %v14532_v29 = vpop.eup %12499 }
 0x43f   : > { %v14534_v19 = vpop.eup %12501 }
 0x440   : > { %2181 = vadd.xlane.f32.xlu0 %v14534_v19  ;;  %2179 = vadd.xlane.f32.xlu1 %v14532_v29 }
 0x442   : > { %v14538_v36 = vpop.eup %12503 }
 0x443   : > { %v14540_v0 = vpop.eup %12505 }
 0x444   : > { %2185 = vadd.xlane.f32.xlu0 %v14538_v36  ;;  %2183 = vadd.xlane.f32.xlu1 %v14540_v0 }
 0x446   : > { %v14544_v38 = vpop.eup %12507 }
 0x448   : > { %2187 = vadd.xlane.f32.xlu1 %v14544_v38 }
 0x490   : > { %v2126_v53 = vpop.xlane.xlu0 %2125 }
 0x491   : > { %12509 = vrcp.f32 %v2126_v53 }
 0x494   : > { %v2130_v23 = vpop.xlane.xlu0 %2129 }
 0x495   : > { %v2128_v43 = vpop.xlane.xlu1 %2127 }
 0x496   : > { %12511 = vrcp.f32 %v2128_v43 }
 0x497   : > { %12513 = vrcp.f32 %v2130_v23 }
 0x499   : > { %v2134_v20 = vpop.xlane.xlu0 %2133  ;;  %v2132_v59 = vpop.xlane.xlu1 %2131 }
 0x49a   : > { %12515 = vrcp.f32 %v2132_v59 }
 0x49b   : > { %12517 = vrcp.f32 %v2134_v20 }
 0x49d   : > { %v2138_v30 = vpop.xlane.xlu0 %2137  ;;  %v2136_v9 = vpop.xlane.xlu1 %2135 }
 0x49e   : > { %12519 = vrcp.f32 %v2136_v9  ;;  %v12510_v58 = vpop.eup %12509 }
 0x49f   : > { %12521 = vrcp.f32 %v2138_v30  ;;  %v2221_v5 = vmul.f32 %v12510_v58, %v14410_v24 }
 0x4a1   : > { %v2142_v6 = vpop.xlane.xlu0 %2141  ;;  %v2140_v4 = vpop.xlane.xlu1 %2139 }
 0x4a2   : > { %12523 = vrcp.f32 %v2140_v4 }
 0x4a3   : > { %v12512_v25 = vpop.eup %12511  ;;  %12525 = vrcp.f32 %v2142_v6  ;;  %v1672_v6 = vpack.c.bf16 %v14239_v52, %v14114_v54 }
 0x4a4   : > { %v2222_v53 = vmul.f32 %v12512_v25, %v14419_v35  ;;  %v12514_v28 = vpop.eup %12513 }
 0x4a5   : > { %v2146_v43 = vpop.xlane.xlu0 %2145  ;;  %v2144_v23 = vpop.xlane.xlu1 %2143  ;;  %v2223_v30 = vmul.f32 %v12514_v28, %v14417_v45 }
 0x4a6   : > { %v2253_v17 = vpack.c.bf16 %v2222_v53, %v2221_v5  ;;  %12527 = vrcp.f32 %v2144_v23 }
 0x4a7   : > { %v12516_v20 = vpop.eup %12515  ;;  %12529 = vrcp.f32 %v2146_v43 }
 0x4a8   : > { %11114 = vmatprep.mubr.bf16.mxu1 %v2253_v17  ;;  %v2224_v1 = vmul.f32 %v12516_v20, %v14427_v49  ;;  %v12518_v4 = vpop.eup %12517 }
 0x4a9   : > { %v2150_v9 = vpop.xlane.xlu0 %2149  ;;  %v2148_v59 = vpop.xlane.xlu1 %2147  ;;  %v2225_v17 = vmul.f32 %v12518_v4, %v14431_v57 }
 0x4aa   : > { %12531 = vrcp.f32 %v2148_v59  ;;  %v2254_v58 = vpack.c.bf16 %v2224_v1, %v2223_v30 }
 0x4ab   : > { %v12520_v24 = vpop.eup %12519  ;;  %12533 = vrcp.f32 %v2150_v9 }
 0x4ac   : > { %11115 = vmatmul.mubr.bf16.vlgmr.msra.gmra.mxu1 %v2254_v58  ;;  %v2226_v35 = vmul.f32 %v12520_v24, %v14441_v18  ;;  %v12522_v53 = vpop.eup %12521 }
 0x4ad   : > { %v2154_v5 = vpop.xlane.xlu0 %2153  ;;  %v2152_v25 = vpop.xlane.xlu1 %2151  ;;  %11131 = vmatpush3.bf16.msra.mxu1 %v14121_v39  ;;  %v2227_v54 = vmul.f32 %v12522_v53, %v14439_v42  ;;  %v1670_v39 = vpack.c.bf16 %v14097_v2, %v14060_v47 }
 0x4ae   : > { %12535 = vrcp.f32 %v2152_v25  ;;  %11132 = vmatprep.subr.bf16.mxu1 %v1672_v6  ;;  %v2255_v28 = vpack.c.bf16 %v2226_v35, %v2225_v17 }
 0x4af   : > { %v12524_v45 = vpop.eup %12523  ;;  %12537 = vrcp.f32 %v2154_v5 }
 0x4b0   : > { %11118 = vmatprep.mubr.bf16.mxu1 %v2255_v28  ;;  %v2228_v52 = vmul.f32 %v12524_v45, %v14449_v15  ;;  %v12526_v43 = vpop.eup %12525 }
 0x4b1   : > { %v2158_v1 = vpop.xlane.xlu0 %2157  ;;  %v2156_v49 = vpop.xlane.xlu1 %2155  ;;  %11133 = vmatpush3.bf16.msra.mxu1 %v1672_v6  ;;  %v2229_v9 = vmul.f32 %v12526_v43, %v14453_v34  ;;  %v12277_v43 = vld [vmem:[%s13306_s15 + $0x178] sm:$0xff]  }
 0x4b2   : > { %12539 = vrcp.f32 %v2156_v49  ;;  %11134 = vmatprep.subr.bf16.mxu1 %v14062_v55  ;;  %v2256_v57 = vpack.c.bf16 %v2228_v52, %v2227_v54 }
 0x4b3   : > { %v12528_v18 = vpop.eup %12527  ;;  %12541 = vrcp.f32 %v2158_v1 }
 0x4b4   : > { %11119 = vmatmul.mubr.bf16.gmra.mxu1 %v2256_v57  ;;  %v2230_v42 = vmul.f32 %v12528_v18, %v14463_v12  ;;  %v12530_v59 = vpop.eup %12529 }
 0x4b5   : > { %v2162_v23 = vpop.xlane.xlu0 %2161  ;;  %v2160_v20 = vpop.xlane.xlu1 %2159  ;;  %11135 = vmatpush3.bf16.msra.mxu1 %v14062_v55  ;;  %v2231_v47 = vmul.f32 %v12530_v59, %v14461_v63  ;;  %v1668_v55 = vpack.c.bf16 %v14051_v33, %v14047_v37 }
 0x4b6   : > { %12543 = vrcp.f32 %v2160_v20  ;;  %11136 = vmatprep.subr.bf16.mxu1 %v1670_v39  ;;  %v2257_v15 = vpack.c.bf16 %v2230_v42, %v2229_v9 }
 0x4b7   : > { %v12532_v30 = vpop.eup %12531  ;;  %12545 = vrcp.f32 %v2162_v23 }
 0x4b8   : > { %11122 = vmatprep.mubr.bf16.mxu1 %v2257_v15  ;;  %v2232_v2 = vmul.f32 %v12532_v30, %v14471_v50  ;;  %v12534_v24 = vpop.eup %12533 }
 0x4b9   : > { %v2166_v4 = vpop.xlane.xlu0 %2165  ;;  %v2164_v58 = vpop.xlane.xlu1 %2163  ;;  %11137 = vmatpush3.bf16.msra.mxu1 %v1670_v39  ;;  %v2233_v25 = vmul.f32 %v12534_v24, %v14475_v56 }
 0x4ba   : > { %12547 = vrcp.f32 %v2164_v58  ;;  %11138 = vmatprep.subr.bf16.mxu1 %v14049_v11  ;;  %v2258_v34 = vpack.c.bf16 %v2232_v2, %v2231_v47 }
 0x4bb   : > { %v12536_v12 = vpop.eup %12535  ;;  %12549 = vrcp.f32 %v2166_v4 }
 0x4bc   : > { %11123 = vmatmul.mubr.bf16.gmra.mxu1 %v2258_v34  ;;  %v2234_v63 = vmul.f32 %v12536_v12, %v14483_v41  ;;  %v12538_v17 = vpop.eup %12537  ;;  %v1666_v41 = vpack.c.bf16 %v14040_v40, %v14036_v16 }
 0x4bd   : > { %v2170_v6 = vpop.xlane.xlu0 %2169  ;;  %v2168_v5 = vpop.xlane.xlu1 %2167  ;;  %11139 = vmatpush3.bf16.msra.mxu1 %v14049_v11  ;;  %v2235_v37 = vmul.f32 %v12538_v17, %v14481_v48 }
 0x4be   : > { %12551 = vrcp.f32 %v2168_v5  ;;  %11140 = vmatprep.subr.bf16.mxu1 %v1668_v55  ;;  %v2259_v50 = vpack.c.bf16 %v2234_v63, %v2233_v25 }
 0x4bf   : > { %v12540_v35 = vpop.eup %12539  ;;  %12553 = vrcp.f32 %v2170_v6 }
 0x4c0   : > { %11126 = vmatprep.mubr.bf16.mxu1 %v2259_v50  ;;  %v2236_v33 = vmul.f32 %v12540_v35, %v14489_v44  ;;  %v12542_v45 = vpop.eup %12541  ;;  %v12282_v50 = vld [vmem:[%s13306_s15 + $0x150] sm:$0xff]  }
 0x4c1   : > { %v2174_v53 = vpop.xlane.xlu0 %2173  ;;  %v2172_v28 = vpop.xlane.xlu1 %2171  ;;  %11141 = vmatpush3.bf16.msra.mxu1 %v1668_v55  ;;  %v2237_v54 = vmul.f32 %v12542_v45, %v14491_v3 }
 0x4c2   : > { %12555 = vrcp.f32 %v2172_v28  ;;  %11142 = vmatprep.subr.bf16.mxu1 %v14038_v7  ;;  %v2260_v56 = vpack.c.bf16 %v2236_v33, %v2235_v37 }
 0x4c3   : > { %v12544_v11 = vpop.eup %12543  ;;  %12557 = vrcp.f32 %v2174_v53 }
 0x4c4   : > { %11127 = vmatmul.mubr.bf16.gmra.mxu1 %v2260_v56  ;;  %v2238_v48 = vmul.f32 %v12544_v11, %v14499_v27  ;;  %v12546_v44 = vpop.eup %12545  ;;  %v12284_v56 = vld [vmem:[%s13306_s15 + $0x140] sm:$0xff]   ;;  %v17522_v11 = vld [vmem:[#allocation7_spill] sm:$0xff] }
 0x4c5   : > { %v2178_v1 = vpop.xlane.xlu0 %2177  ;;  %v2176_v49 = vpop.xlane.xlu1 %2175  ;;  %11143 = vmatpush3.bf16.msra.mxu1 %v14038_v7  ;;  %v2239_v18 = vmul.f32 %v12546_v44, %v14497_v22  ;;  %v12278_v7 = vld [vmem:[%s13306_s15 + $0x170] sm:$0xff]   ;;  %v17528_v44 = vld [vmem:[#allocation22_spill] sm:$0xff] }
 0x4c6   : > { %12559 = vrcp.f32 %v2176_v49  ;;  %11144 = vmatprep.subr.bf16.mxu1 %v1666_v41  ;;  %v2261_v52 = vpack.c.bf16 %v2238_v48, %v2237_v54  ;;  %v17525_v49 = vld [vmem:[#allocation10_spill] sm:$0xff]  ;;  %v17526_v54 = vld [vmem:[#allocation11_spill] sm:$0xff]  ;;  %v17527_v48 = vld [vmem:[#allocation12_spill] sm:$0xff] }
 0x4c7   : > { %v12548_v57 = vpop.eup %12547  ;;  %12561 = vrcp.f32 %v2178_v1  ;;  %v17524_v1 = vld [vmem:[#allocation9_spill] sm:$0xff] }
 0x4c8   : > { %11146 = vmatprep.mubr.bf16.mxu1 %v2261_v52  ;;  %v2240_v39 = vmul.f32 %v12548_v57, %v14505_v14  ;;  %v12550_v3 = vpop.eup %12549  ;;  %v12279_v14 = vld [vmem:[%s13306_s15 + $0x168] sm:$0xff]   ;;  %v17529_v52 = vld [vmem:[#allocation29_spill] sm:$0xff] }
 0x4c9   : > { %v2182_v16 = vpop.xlane.xlu0 %2181  ;;  %v2180_v40 = vpop.xlane.xlu1 %2179  ;;  %11145 = vmatpush3.bf16.msra.mxu1 %v1666_v41  ;;  %v2241_v42 = vmul.f32 %v12550_v3, %v14507_v60  ;;  %v17523_v41 = vld [vmem:[#allocation8_spill] sm:$0xff]  ;;  %v17530_v57 = vld [vmem:[#allocation13_spill] sm:$0xff] }
 0x4ca   : > { %12563 = vrcp.f32 %v2180_v40  ;;  %v2262_v27 = vpack.c.bf16 %v2240_v39, %v2239_v18  ;;  %11210 = vmatprep.subr.bf16.mxu1 %v12277_v43 }
 0x4cb   : > { %v12552_v23 = vpop.eup %12551  ;;  %12565 = vrcp.f32 %v2182_v16 }
 0x4cc   : > { %11147 = vmatmul.mubr.bf16.vlgmr.msra.gmra.mxu1 %v2262_v27  ;;  %v2242_v59 = vmul.f32 %v12552_v23, %v14515_v8  ;;  %v12554_v15 = vpop.eup %12553  ;;  %v12280_v8 = vld [vmem:[%s13306_s15 + $0x160] sm:$0xff]  }
 0x4cd   : > { %v2186_v20 = vpop.xlane.xlu0 %2185  ;;  %v2184_v9 = vpop.xlane.xlu1 %2183  ;;  %11211 = vmatpush3.bf16.msra.mxu1 %v12277_v43  ;;  %v2243_v58 = vmul.f32 %v12554_v15, %v14513_v61  ;;  %v12281_v61 = vld [vmem:[%s13306_s15 + $0x158] sm:$0xff]   ;;  %v3162_v43 = vpack.c.bf16 %v17529_v52, %v17528_v44 }
 0x4ce   : > { %12567 = vrcp.f32 %v2184_v9  ;;  %v2263_v22 = vpack.c.bf16 %v2242_v59, %v2241_v42  ;;  %11212 = vmatprep.subr.bf16.mxu1 %v12278_v7 }
 0x4cf   : > { %v12556_v30 = vpop.eup %12555  ;;  %12569 = vrcp.f32 %v2186_v20 }
 0x4d0   : > { %11150 = vmatprep.mubr.bf16.mxu1 %v2263_v22  ;;  %v2244_v47 = vmul.f32 %v12556_v30, %v14520_v26  ;;  %v12558_v2 = vpop.eup %12557 }
 0x4d1   : > { %v2188_v4 = vpop.xlane.xlu1 %2187  ;;  %11213 = vmatpush3.bf16.msra.mxu1 %v12278_v7  ;;  %v2245_v34 = vmul.f32 %v12558_v2, %v14522_v62 }
 0x4d2   : > { %12571 = vrcp.f32 %v2188_v4  ;;  %v2264_v60 = vpack.c.bf16 %v2244_v47, %v2243_v58  ;;  %11214 = vmatprep.subr.bf16.mxu1 %v12279_v14 }
 0x4d3   : > { %v12560_v24 = vpop.eup %12559 }
 0x4d4   : > { %11151 = vmatmul.mubr.bf16.gmra.mxu1 %v2264_v60  ;;  %v2246_v12 = vmul.f32 %v12560_v24, %v14528_v31  ;;  %v12562_v55 = vpop.eup %12561 }
 0x4d5   : > { %11215 = vmatpush3.bf16.msra.mxu1 %v12279_v14  ;;  %v2247_v26 = vmul.f32 %v12562_v55, %v14526_v21  ;;  %v12283_v21 = vld [vmem:[%s13306_s15 + $0x148] sm:$0xff]  }
 0x4d6   : > { %v2265_v6 = vpack.c.bf16 %v2246_v12, %v2245_v34  ;;  %11216 = vmatprep.subr.bf16.mxu1 %v12280_v8 }
 0x4d7   : > { %v12564_v5 = vpop.eup %12563 }
 0x4d8   : > { %11154 = vmatprep.mubr.bf16.mxu1 %v2265_v6  ;;  %v2248_v25 = vmul.f32 %v12564_v5, %v14532_v29  ;;  %v12566_v63 = vpop.eup %12565 }
 0x4d9   : > { %11217 = vmatpush3.bf16.msra.mxu1 %v12280_v8  ;;  %v2249_v35 = vmul.f32 %v12566_v63, %v14534_v19  ;;  %v17518_v19 = vld [vmem:[#allocation19_spill] sm:$0xff] }
 0x4da   : > { %v2266_v17 = vpack.c.bf16 %v2248_v25, %v2247_v26  ;;  %11218 = vmatprep.subr.bf16.mxu1 %v12281_v61 }
 0x4db   : > { %v12568_v62 = vpop.eup %12567 }
 0x4dc   : > { %v12570_v31 = vpop.eup %12569  ;;  %11155 = vmatmul.mubr.bf16.gmra.mxu1 %v2266_v17  ;;  %v2250_v53 = vmul.f32 %v12568_v62, %v14540_v0  ;;  %v17520_v0 = vld [vmem:[#allocation21_spill] sm:$0xff] }
 0x4dd   : > { %11219 = vmatpush3.bf16.msra.mxu1 %v12281_v61  ;;  %v2251_v29 = vmul.f32 %v12570_v31, %v14538_v36  ;;  %v17519_v36 = vld [vmem:[#allocation20_spill] sm:$0xff] }
 0x4de   : > { %v2267_v37 = vpack.c.bf16 %v2250_v53, %v2249_v35  ;;  %11220 = vmatprep.subr.bf16.mxu1 %v12282_v50 }
 0x4df   : > { %v12572_v28 = vpop.eup %12571 }
 0x4e0   : > { %v2252_v33 = vmul.f32 %v12572_v28, %v14544_v38  ;;  %11158 = vmatprep.mubr.bf16.mxu1 %v2267_v37  ;;  %v17521_v38 = vld [vmem:[#allocation6_spill] sm:$0xff] }
 0x4e1   : > { %11221 = vmatpush3.bf16.msra.mxu1 %v12282_v50 }
 0x4e2   : > { %v2268_v45 = vpack.c.bf16 %v2252_v33, %v2251_v29  ;;  %11222 = vmatprep.subr.bf16.mxu1 %v12283_v21 }
 0x4e4   : > { %11159 = vmatmul.mubr.bf16.gmra.mxu1 %v2268_v45 }
 0x4e5   : > { %11223 = vmatpush3.bf16.msra.mxu1 %v12283_v21  ;;  %11226 = vmatprep.mubr.bf16.mxu1 %v17448_v13 }
 0x4e6   : > { %11224 = vmatprep.subr.bf16.mxu1 %v12284_v56 }
 0x4e9   : > { %11225 = vmatpush3.bf16.msra.mxu1 %v12284_v56 }
 0x4ec   : > { %11227 = vmatmul.mubr.bf16.vlgmr.msra.gmra.mxu1 %v17449_v32 }
 0x4ed   : > { %11230 = vmatprep.mubr.bf16.mxu1 %v17450_v10 }
 0x4f4   : > { %11231 = vmatmul.mubr.bf16.gmra.mxu1 %v17451_v46 }
 0x4f5   : > { %11234 = vmatprep.mubr.bf16.mxu1 %v17452_v51 }
 0x4fc   : > { %11235 = vmatmul.mubr.bf16.gmra.mxu1 %v17518_v19 }
 0x4fd   : > { %11238 = vmatprep.mubr.bf16.mxu1 %v17519_v36 }
 0x504   : > { %11239 = vmatmul.mubr.bf16.gmra.mxu1 %v17520_v0 }
 0x505   : > { %11242 = vmatprep.mubr.bf16.mxu1 %v17521_v38 }
 0x50c   : > { %11243 = vmatmul.mubr.bf16.gmra.mxu1 %v17522_v11 }
 0x50d   : > { %11246 = vmatprep.mubr.bf16.mxu1 %v17523_v41 }
 0x514   : > { %11247 = vmatmul.mubr.bf16.gmra.mxu1 %v17524_v1 }
 0x515   : > { %11250 = vmatprep.mubr.bf16.mxu1 %v17525_v49 }
 0x51c   : > { %11251 = vmatmul.mubr.bf16.gmra.mxu1 %v17526_v54 }
 0x51d   : > { %11254 = vmatprep.mubr.bf16.mxu1 %v17527_v48 }
 0x524   : > { %11255 = vmatmul.mubr.bf16.gmra.mxu1 %v17530_v57 }
 0x525   : > { %11322 = vmatprep.mubr.msk.bf16.mxu1 %vm1674_vm0, %v3162_v43 }
 0x56c   : > { %v14621_v16 = vpop.f32.mrf.mxu1 }
 0x56e   : > { %v14623_v40 = vpop.f32.mrf.mxu1 }
 0x570   : > { %v14625_v18 = vpop.f32.mrf.mxu1 }
 0x572   : > { %v14629_v3 = vpop.f32.mrf.mxu1 }
 0x574   : > { %v14631_v27 = vpop.f32.mrf.mxu1 }
 0x576   : > { %v14633_v7 = vpop.f32.mrf.mxu1 }
 0x578   : > { %v14635_v23 = vpop.f32.mrf.mxu1 }
 0x57a   : > { %v14639_v9 = vpop.f32.mrf.mxu1 }
 0x57c   : > { %v14641_v42 = vpop.f32.mrf.mxu1 }
 0x57d   : > { %17531 = vst [vmem:[#allocation22_spill] sm:$0xff] %v14641_v42 }
 0x57e   : > { %v14643_v59 = vpop.f32.mrf.mxu1 }
 0x580   : > { %v14645_v15 = vpop.f32.mrf.mxu1 }
 0x582   : > { %v14649_v14 = vpop.f32.mrf.mxu1 }
 0x584   : > { %v14651_v30 = vpop.f32.mrf.mxu1 }
 0x585   : > { %17532 = vst [vmem:[#allocation29_spill] sm:$0xff] %v14651_v30 }
 0x586   : > { %v14653_v4 = vpop.f32.mrf.mxu1 }
 0x588   : > { %v14655_v58 = vpop.f32.mrf.mxu1 }
 0x589   : > { %17533 = vst [vmem:[#allocation76_spill] sm:$0xff] %v14655_v58 }
 0x58a   : > { %v14659_v2 = vpop.f32.mrf.mxu1 }
 0x58c   : > { %v14661_v60 = vpop.f32.mrf.mxu1 }
 0x58d   : > { %17534 = vst [vmem:[#allocation77_spill] sm:$0xff] %v14661_v60 }
 0x58e   : > { %v14663_v8 = vpop.f32.mrf.mxu1 }
 0x58f   : > { %17535 = vst [vmem:[#allocation78_spill] sm:$0xff] %v14663_v8 }
 0x590   : > { %v14665_v24 = vpop.f32.mrf.mxu1 }
 0x591   : > { %17536 = vst [vmem:[#allocation79_spill] sm:$0xff] %v14665_v24 }
 0x592   : > { %v14669_v12 = vpop.f32.mrf.mxu1 }
 0x593   : > { %17537 = vst [vmem:[#allocation80_spill] sm:$0xff] %v14669_v12 }
 0x594   : > { %v14671_v55 = vpop.f32.mrf.mxu1 }
 0x595   : > { %17538 = vst [vmem:[#allocation81_spill] sm:$0xff] %v14671_v55 }
 0x596   : > { %v14673_v6 = vpop.f32.mrf.mxu1 }
 0x597   : > { %17539 = vst [vmem:[#allocation82_spill] sm:$0xff] %v14673_v6 }
 0x598   : > { %v14675_v61 = vpop.f32.mrf.mxu1 }
 0x599   : > { %17540 = vst [vmem:[#allocation83_spill] sm:$0xff] %v14675_v61 }
 0x59a   : > { %v14679_v26 = vpop.f32.mrf.mxu1 }
 0x59b   : > { %17541 = vst [vmem:[#allocation84_spill] sm:$0xff] %v14679_v26 }
 0x59c   : > { %v14681_v25 = vpop.f32.mrf.mxu1 }
 0x59d   : > { %17542 = vst [vmem:[#allocation85_spill] sm:$0xff] %v14681_v25 }
 0x59e   : > { %v14683_v63 = vpop.f32.mrf.mxu1 }
 0x59f   : > { %17543 = vst [vmem:[#allocation86_spill] sm:$0xff] %v14683_v63 }
 0x5a0   : > { %v14685_v17 = vpop.f32.mrf.mxu1 }
 0x5a1   : > { %17544 = vst [vmem:[#allocation87_spill] sm:$0xff] %v14685_v17 }
 0x5a2   : > { %v14689_v62 = vpop.f32.mrf.mxu1 }
 0x5a3   : > { %17545 = vst [vmem:[#allocation88_spill] sm:$0xff] %v14689_v62 }
 0x5a4   : > { %v14691_v31 = vpop.f32.mrf.mxu1 }
 0x5a5   : > { %17546 = vst [vmem:[#allocation89_spill] sm:$0xff] %v14691_v31 }
 0x5a6   : > { %v14693_v35 = vpop.f32.mrf.mxu1 }
 0x5a7   : > { %17547 = vst [vmem:[#allocation90_spill] sm:$0xff] %v14693_v35 }
 0x5a8   : > { %v14695_v53 = vpop.f32.mrf.mxu1 }
 0x5a9   : > { %17548 = vst [vmem:[#allocation91_spill] sm:$0xff] %v14695_v53 }
 0x5aa   : > { %v14699_v37 = vpop.f32.mrf.mxu1 }
 0x5ab   : > { %17549 = vst [vmem:[#allocation92_spill] sm:$0xff] %v14699_v37 }
 0x5ac   : > { %v11228_v21 = vpop.f32.mrf.mxu1 }
 0x5ae   : > { %v14701_v29 = vpop.f32.mrf.mxu1 }
 0x5b0   : > { %v11229_v33 = vpop.f32.mrf.mxu1 }
 0x5b1   : > { %v14703_v45 = vpack.c.bf16 %v11229_v33, %v11228_v21 }
 0x5b2   : > { %v14705_v56 = vpop.f32.mrf.mxu1 }
 0x5b4   : > { %v11232_v44 = vpop.f32.mrf.mxu1 }
 0x5b6   : > { %v2842_v52 = vpop.f32.mrf.mxu1 }
 0x5b8   : > { %v11233_v43 = vpop.f32.mrf.mxu1 }
 0x5ba   : > { %v2845_v50 = vpop.f32.mrf.mxu1 }
 0x5bc   : > { %v11236_v5 = vpop.f32.mrf.mxu1 }
 0x5be   : > { %v2858_v34 = vpop.f32.mrf.mxu1 }
 0x5c0   : > { %v11237_v47 = vpop.f32.mrf.mxu1 }
 0x5c1   : > { %v3183_v38 = vpack.c.bf16 %v11237_v47, %v11236_v5  ;;  %v3181_v47 = vpack.c.bf16 %v11233_v43, %v11232_v44  ;;  %v17551_v43 = vld [vmem:[#allocation66_spill] sm:$0xff] }
 0x5c2   : > { %v2861_v22 = vpop.f32.mrf.mxu1 }
 0x5c3   : > { %v3182_v0 = vpack.c.bf16 %v2861_v22, %v2858_v34  ;;  %v3180_v22 = vpack.c.bf16 %v2845_v50, %v2842_v52  ;;  %v17550_v52 = vld [vmem:[#allocation64_spill] sm:$0xff] }
 0x5c4   : > { %v11240_v20 = vpop.f32.mrf.mxu1 }
 0x5c5   : > { %v3241_v44 = vsel %vm1674_vm0, %v3180_v22, 0 }
 0x5c6   : > { %v2874_v28 = vpop.f32.mrf.mxu1 }
 0x5c8   : > { %v11241_v39 = vpop.f32.mrf.mxu1 }
 0x5c9   : > { %v3185_v57 = vpack.c.bf16 %v11241_v39, %v11240_v20 }
 0x5ca   : > { %v2877_v48 = vpop.f32.mrf.mxu1 }
 0x5cb   : > { %v3256_v54 = vsel %vm1674_vm0, %v3185_v57, 0  ;;  %v3184_v49 = vpack.c.bf16 %v2877_v48, %v2874_v28  ;;  %12154 = vmatprep.subr.msk.bf16.mxu1 %vm1674_vm0, %v3185_v57 }
 0x5cc   : > { %v11244_v21 = vpop.f32.mrf.mxu1  ;;  %11307 = vmatpush3.bf16.xpose.msra.mxu1 %v3256_v54  ;;  %v3250_v54 = vsel %vm1674_vm0, %v3183_v38, 0 }
 0x5cd   : > { %12155 = vmatprep.subr.msk.bf16.mxu1 %vm1674_vm0, %v3184_v49  ;;  %v3253_v39 = vsel %vm1674_vm0, %v3184_v49, 0  ;;  %v3247_v49 = vsel %vm1674_vm0, %v3182_v0, 0 }
 0x5ce   : > { %v14710_v33 = vpop.f32.mrf.mxu1 }
 0x5d0   : > { %v11245_v1 = vpop.f32.mrf.mxu1 }
 0x5d1   : > { %v14712_v41 = vpack.c.bf16 %v11245_v1, %v11244_v21 }
 0x5d2   : > { %v14714_v11 = vpop.f32.mrf.mxu1 }
 0x5d4   : > { %v11248_v20 = vpop.f32.mrf.mxu1  ;;  %11309 = vmatpush3.bf16.xpose.msra.mxu1 %v3253_v39 }
 0x5d5   : > { %12156 = vmatprep.subr.msk.bf16.mxu1 %vm1674_vm0, %v3183_v38  ;;  %v3244_v38 = vsel %vm1674_vm0, %v3181_v47, 0 }
 0x5d6   : > { %v2906_v48 = vpop.f32.mrf.mxu1 }
 0x5d8   : > { %v11249_v57 = vpop.f32.mrf.mxu1 }
 0x5da   : > { %v2909_v28 = vpop.f32.mrf.mxu1 }
 0x5dc   : > { %v11252_v36 = vpop.f32.mrf.mxu1  ;;  %11311 = vmatpush3.bf16.xpose.msra.mxu1 %v3250_v54 }
 0x5dd   : > { %12157 = vmatprep.subr.msk.bf16.mxu1 %vm1674_vm0, %v3182_v0 }
 0x5de   : > { %v2922_v1 = vpop.f32.mrf.mxu1 }
 0x5e0   : > { %v11253_v21 = vpop.f32.mrf.mxu1 }
 0x5e1   : > { %v3191_v0 = vpack.c.bf16 %v11253_v21, %v11252_v36  ;;  %v3201_v21 = vpack.c.bf16 %v17551_v43, %v17550_v52  ;;  %v17566_v52 = vld [vmem:[#allocation61_spill] sm:$0xff]  ;;  %v17567_v43 = vld [vmem:[#allocation63_spill] sm:$0xff] }
 0x5e2   : > { %v2925_v19 = vpop.f32.mrf.mxu1 }
 0x5e3   : > { %v3395_v50 = vsel %vm1674_vm0, %v3191_v0, 0  ;;  %v3190_v36 = vpack.c.bf16 %v2925_v19, %v2922_v1  ;;  %v17552_v19 = vld [vmem:[#allocation24_spill] sm:$0xff] }
 0x5e4   : > { %v11256_v5 = vpop.f32.mrf.mxu1  ;;  %11313 = vmatpush3.bf16.xpose.msra.mxu1 %v3247_v49 }
 0x5e5   : > { %12158 = vmatprep.subr.msk.bf16.mxu1 %vm1674_vm0, %v3181_v47  ;;  %v3189_v47 = vpack.c.bf16 %v11249_v57, %v11248_v20  ;;  %v17557_v20 = vld [vmem:[#allocation65_spill] sm:$0xff]  ;;  %v17558_v57 = vld [vmem:[#allocation67_spill] sm:$0xff] }
 0x5e6   : > { %v2938_v39 = vpop.f32.mrf.mxu1 }
 0x5e7   : > { %v3389_v1 = vsel %vm1674_vm0, %v3189_v47, 0 }
 0x5e8   : > { %v11257_v51 = vpop.f32.mrf.mxu1 }
 0x5e9   : > { %v3193_v46 = vpack.c.bf16 %v11257_v51, %v11256_v5  ;;  %v3188_v5 = vpack.c.bf16 %v2909_v28, %v2906_v48  ;;  %v17561_v48 = vld [vmem:[#allocation31_spill] sm:$0xff]  ;;  %v17562_v28 = vld [vmem:[#allocation33_spill] sm:$0xff] }
 0x5ea   : > { %v2941_v10 = vpop.f32.mrf.mxu1 }
 0x5eb   : > { %v3401_v34 = vsel %vm1674_vm0, %v3193_v46, 0  ;;  %v3192_v54 = vpack.c.bf16 %v2941_v10, %v2938_v39  ;;  %12162 = vmatprep.subr.msk.bf16.mxu0 %vm1674_vm0, %v3193_v46  ;;  %v3238_v10 = vsel %vm1674_vm0, %v14703_v45, 0  ;;  %v3178_v46 = vpack.c.bf16 %v14705_v56, %v14701_v29  ;;  %v17553_v29 = vld [vmem:[#allocation26_spill] sm:$0xff]  ;;  %v17554_v39 = vld [vmem:[#allocation27_spill] sm:$0xff] }
 0x5ec   : > { %11315 = vmatpush3.bf16.xpose.msra.mxu1 %v3244_v38  ;;  %11339 = vmatpush3.bf16.xpose.msra.mxu0 %v3401_v34  ;;  %v3164_v56 = vpack.c.bf16 %v17553_v29, %v17552_v19  ;;  %v17555_v38 = vld [vmem:[#allocation23_spill] sm:$0xff]  ;;  %v3200_v34 = vpack.c.bf16 %v17558_v57, %v17557_v20  ;;  %v14771_v19 = vpop.f32.mrf.mxu0  ;;  %v17575_v57 = vld [vmem:[#allocation57_spill] sm:$0xff] }
 0x5ed   : > { %12159 = vmatprep.subr.msk.bf16.mxu1 %vm1674_vm0, %v3180_v22  ;;  %12163 = vmatprep.subr.msk.bf16.mxu0 %vm1674_vm0, %v3192_v54  ;;  %v3398_v51 = vsel %vm1674_vm0, %v3192_v54, 0  ;;  %v3235_v49 = vsel %vm1674_vm0, %v3178_v46, 0  ;;  %v17556_v22 = vpack.c.bf16 %v17554_v39, %v17555_v38  ;;  %v17559_v54 = vld [vmem:[#allocation60_spill] sm:$0xff]  ;;  %v17570_v29 = vld [vmem:[#allocation35_spill] sm:$0xff]  ;;  %v3186_v39 = vpack.c.bf16 %v14714_v11, %v14710_v33 }
 0x5ee   : > { %v17572_v38 = vld [vmem:[#allocation32_spill] sm:$0xff] }
 0x5ef   : > { %v17579_v33 = vld [vmem:[#allocation36_spill] sm:$0xff] }
 0x5f4   : > { %11317 = vmatpush3.bf16.xpose.msra.mxu1 %v3241_v44  ;;  %11341 = vmatpush3.bf16.xpose.msra.mxu0 %v3398_v51  ;;  %v3166_v51 = vpack.c.bf16 %v17562_v28, %v17561_v48  ;;  %v17580_v28 = vld [vmem:[#allocation34_spill] sm:$0xff] }
 0x5f5   : > { %12160 = vmatprep.subr.msk.bf16.mxu1 %vm1674_vm0, %v14703_v45  ;;  %12164 = vmatprep.subr.msk.bf16.mxu0 %vm1674_vm0, %v3191_v0  ;;  %v3392_v45 = vsel %vm1674_vm0, %v3190_v36, 0  ;;  %v17560_v0 = vld [vmem:[#allocation62_spill] sm:$0xff] }
 0x5f6   : > { %v3199_v44 = vpack.c.bf16 %v17560_v0, %v17559_v54  ;;  %v11304_v0 = vpop.f32.mrf.mxu0 }
 0x5f8   : > { %v14789_v11 = vpop.f32.mrf.mxu0 }
 0x5fc   : > { %11319 = vmatpush3.bf16.xpose.msra.mxu1 %v3238_v10  ;;  %11343 = vmatpush3.bf16.xpose.msra.mxu0 %v3395_v50  ;;  %v17563_v10 = vld [vmem:[#allocation28_spill] sm:$0xff] }
 0x5fd   : > { %12161 = vmatprep.subr.msk.bf16.mxu1 %vm1674_vm0, %v3178_v46  ;;  %12165 = vmatprep.subr.msk.bf16.mxu0 %vm1674_vm0, %v3190_v36  ;;  %v17564_v46 = vld [vmem:[#allocation25_spill] sm:$0xff]  ;;  %v3386_v36 = vsel %vm1674_vm0, %v3188_v5, 0 }
 0x5fe   : > { %v17565_v50 = vpack.c.bf16 %v17563_v10, %v17564_v46  ;;  %v3380_v10 = vsel %vm1674_vm0, %v3186_v39, 0  ;;  %v17582_v46 = vld [vmem:[#allocation53_spill] sm:$0xff] }
 0x604   : > { %11321 = vmatpush3.bf16.xpose.msra.mxu1 %v3235_v49  ;;  %11345 = vmatpush3.bf16.xpose.msra.mxu0 %v3392_v45  ;;  %v17569_v49 = vld [vmem:[#allocation58_spill] sm:$0xff] }
 0x605   : > { %12166 = vmatprep.subr.msk.bf16.mxu0 %vm1674_vm0, %v3189_v47  ;;  %11370 = vmatprep.subr.bf16.mxu1 %v3201_v21  ;;  %v17568_v47 = vld [vmem:[#allocation56_spill] sm:$0xff] }
 0x606   : > { %v3197_v45 = vpack.c.bf16 %v17569_v49, %v17568_v47  ;;  %v17585_v47 = vld [vmem:[#allocation43_spill] sm:$0xff] }
 0x60b   : > { %11323 = vmatmul.mubr.msk.bf16.vlgmr.msra.gmra.mxu1 %vm1674_vm0, %v17556_v22  ;;  %v17573_v22 = vld [vmem:[#allocation30_spill] sm:$0xff] }
 0x60c   : > { %11326 = vmatprep.mubr.msk.bf16.mxu1 %vm1674_vm0, %v3164_v56  ;;  %11347 = vmatpush3.bf16.xpose.msra.mxu0 %v3389_v1  ;;  %v17571_v56 = vld [vmem:[#allocation37_spill] sm:$0xff]  ;;  %v17574_v20 = vpack.c.bf16 %v17572_v38, %v17573_v22  ;;  %v17591_v38 = vld [vmem:[#allocation42_spill] sm:$0xff]  ;;  %v17592_v22 = vld [vmem:[#allocation40_spill] sm:$0xff] }
 0x60d   : > { %11371 = vmatpush3.bf16.msra.mxu1 %v3201_v21  ;;  %12167 = vmatprep.subr.msk.bf16.mxu0 %vm1674_vm0, %v3188_v5  ;;  %v3198_v21 = vpack.c.bf16 %v17567_v43, %v17566_v52  ;;  %v3168_v1 = vpack.c.bf16 %v17571_v56, %v17570_v29  ;;  %v3383_v5 = vsel %vm1674_vm0, %v14712_v41, 0  ;;  %v11305_v52 = vpop.f32.mrf.mxu0  ;;  %v17587_v29 = vld [vmem:[#allocation38_spill] sm:$0xff] }
 0x60e   : > { %11372 = vmatprep.subr.bf16.mxu1 %v3200_v34  ;;  %v14798_v43 = vpack.c.bf16 %v11305_v52, %v11304_v0  ;;  %v17596_v0 = vld [vmem:[#allocation46_spill] sm:$0xff] }
 0x611   : > { %11373 = vmatpush3.bf16.msra.mxu1 %v3200_v34  ;;  %v17576_v34 = vld [vmem:[#allocation59_spill] sm:$0xff] }
 0x612   : > { %11374 = vmatprep.subr.bf16.mxu1 %v3199_v44  ;;  %v3196_v54 = vpack.c.bf16 %v17576_v34, %v17575_v57  ;;  %v17594_v57 = vld [vmem:[#allocation49_spill] sm:$0xff]  ;;  %v17595_v34 = vld [vmem:[#allocation51_spill] sm:$0xff] }
 0x613   : > { %11327 = vmatmul.mubr.msk.bf16.gmra.mxu1 %vm1674_vm0, %v17565_v50  ;;  %v17583_v50 = vld [vmem:[#allocation55_spill] sm:$0xff] }
 0x614   : > { %11330 = vmatprep.mubr.msk.bf16.mxu1 %vm1674_vm0, %v3166_v51  ;;  %11349 = vmatpush3.bf16.xpose.msra.mxu0 %v3386_v36  ;;  %v17581_v51 = vpack.c.bf16 %v17579_v33, %v17580_v28  ;;  %v3194_v36 = vpack.c.bf16 %v17583_v50, %v17582_v46  ;;  %v17600_v33 = vld [vmem:[#allocation48_spill] sm:$0xff] }
 0x615   : > { %11375 = vmatpush3.bf16.msra.mxu1 %v3199_v44  ;;  %12168 = vmatprep.subr.msk.bf16.mxu0 %vm1674_vm0, %v14712_v41  ;;  %v17577_v41 = vld [vmem:[#allocation52_spill] sm:$0xff]  ;;  %v17578_v44 = vld [vmem:[#allocation54_spill] sm:$0xff] }
 0x616   : > { %11376 = vmatprep.subr.bf16.mxu1 %v3198_v21  ;;  %v3195_v48 = vpack.c.bf16 %v17578_v44, %v17577_v41  ;;  %v17597_v41 = vld [vmem:[#allocation44_spill] sm:$0xff] }
 0x617   : > { %v17598_v44 = vpack.c.bf16 %v17596_v0, %v17597_v41 }
 0x619   : > { %11377 = vmatpush3.bf16.msra.mxu1 %v3198_v21  ;;  %v17584_v21 = vld [vmem:[#allocation41_spill] sm:$0xff] }
 0x61a   : > { %11378 = vmatprep.subr.bf16.mxu1 %v3197_v45  ;;  %v3172_v49 = vpack.c.bf16 %v17585_v47, %v17584_v21 }
 0x61b   : > { %11331 = vmatmul.mubr.msk.bf16.gmra.mxu1 %vm1674_vm0, %v17574_v20  ;;  %v17593_v20 = vpack.c.bf16 %v17591_v38, %v17592_v22  ;;  %v14869_v38 = vpop.f32.mrf.mxu0 }
 0x61c   : > { %11334 = vmatprep.mubr.msk.bf16.mxu1 %vm1674_vm0, %v3168_v1  ;;  %11351 = vmatpush3.bf16.xpose.msra.mxu0 %v3383_v5  ;;  %v17589_v1 = vld [vmem:[#allocation45_spill] sm:$0xff]  ;;  %v17590_v5 = vld [vmem:[#allocation47_spill] sm:$0xff] }
 0x61d   : > { %11379 = vmatpush3.bf16.msra.mxu1 %v3197_v45  ;;  %12169 = vmatprep.subr.msk.bf16.mxu0 %vm1674_vm0, %v3186_v39  ;;  %v17586_v45 = vld [vmem:[#allocation39_spill] sm:$0xff]  ;;  %v3174_v39 = vpack.c.bf16 %v17590_v5, %v17589_v1 }
 0x61e   : > { %11380 = vmatprep.subr.bf16.mxu1 %v3196_v54  ;;  %v17588_v56 = vpack.c.bf16 %v17586_v45, %v17587_v29 }
 0x621   : > { %11381 = vmatpush3.bf16.msra.mxu1 %v3196_v54  ;;  %v3176_v54 = vpack.c.bf16 %v17595_v34, %v17594_v57 }
 0x622   : > { %11382 = vmatprep.subr.bf16.mxu1 %v3195_v48 }
 0x623   : > { %11335 = vmatmul.mubr.msk.bf16.gmra.mxu1 %vm1674_vm0, %v17581_v51 }
 0x624   : > { %11353 = vmatpush3.bf16.xpose.msra.mxu0 %v3380_v10 }
 0x625   : > { %11383 = vmatpush3.bf16.msra.mxu1 %v3195_v48  ;;  %v17599_v48 = vld [vmem:[#allocation50_spill] sm:$0xff] }
 0x626   : > { %11384 = vmatprep.subr.bf16.mxu1 %v3194_v36  ;;  %v17601_v28 = vpack.c.bf16 %v17599_v48, %v17600_v33 }
 0x629   : > { %11385 = vmatpush3.bf16.msra.mxu1 %v3194_v36 }
 0x62a   : > { %11402 = vmatprep.subr.bf16.mxu1 %v14798_v43 }
 0x62b   : > { %11355 = vmatmul.mubr.msk.bf16.vlgmr.msra.gmra.mxu0 %vm1674_vm0, %v17588_v56 }
 0x62c   : > { %11358 = vmatprep.mubr.msk.bf16.mxu0 %vm1674_vm0, %v3172_v49 }
 0x633   : > { %11359 = vmatmul.mubr.msk.bf16.gmra.mxu0 %vm1674_vm0, %v17593_v20 }
 0x634   : > { %11362 = vmatprep.mubr.msk.bf16.mxu0 %vm1674_vm0, %v3174_v39 }
 0x63b   : > { %11363 = vmatmul.mubr.msk.bf16.gmra.mxu0 %vm1674_vm0, %v17598_v44 }
 0x63c   : > { %11366 = vmatprep.mubr.msk.bf16.mxu0 %vm1674_vm0, %v3176_v54 }
 0x643   : > { %11367 = vmatmul.mubr.msk.bf16.gmra.mxu0 %vm1674_vm0, %v17601_v28 }
 0x6cb   : > { %v14826_v51 = vpop.f32.mrf.mxu1 }
 0x6cd   : > { %v14828_v10 = vpop.f32.mrf.mxu1 }
 0x6ce   : > { %3500 = vmax.xlane.f32.xlu0 %v14828_v10 }
 0x6cf   : > { %v14831_v46 = vpop.f32.mrf.mxu1 }
 0x6d1   : > { %v14833_v50 = vpop.f32.mrf.mxu1 }
 0x6d2   : > { %3504 = vmax.xlane.f32.xlu0 %v14826_v51  ;;  %3502 = vmax.xlane.f32.xlu1 %v14833_v50 }
 0x6d3   : > { %v14837_v36 = vpop.f32.mrf.mxu1 }
 0x6d5   : > { %v14839_v52 = vpop.f32.mrf.mxu1 }
 0x6d6   : > { %3506 = vmax.xlane.f32.xlu1 %v14831_v46  ;;  %3508 = vmax.xlane.f32.xlu0 %v14839_v52 }
 0x6d7   : > { %v14843_v21 = vpop.f32.mrf.mxu1 }
 0x6d9   : > { %v14845_v47 = vpop.f32.mrf.mxu1 }
 0x6da   : > { %3512 = vmax.xlane.f32.xlu0 %v14837_v36  ;;  %3510 = vmax.xlane.f32.xlu1 %v14845_v47 }
 0x6db   : > { %v14849_v49 = vpop.f32.mrf.mxu1 }
 0x6dd   : > { %v14851_v45 = vpop.f32.mrf.mxu1 }
 0x6de   : > { %3514 = vmax.xlane.f32.xlu1 %v14843_v21  ;;  %3516 = vmax.xlane.f32.xlu0 %v14851_v45 }
 0x6df   : > { %v14855_v29 = vpop.f32.mrf.mxu1 }
 0x6e1   : > { %v14857_v56 = vpop.f32.mrf.mxu1 }
 0x6e2   : > { %3520 = vmax.xlane.f32.xlu0 %v14849_v49  ;;  %3518 = vmax.xlane.f32.xlu1 %v14857_v56 }
 0x6e3   : > { %v14861_v1 = vpop.f32.mrf.mxu1 }
 0x6e5   : > { %v14863_v5 = vpop.f32.mrf.mxu1 }
 0x6e6   : > { %3522 = vmax.xlane.f32.xlu1 %v14855_v29  ;;  %3524 = vmax.xlane.f32.xlu0 %v14863_v5 }
 0x6e7   : > { %v14867_v39 = vpop.f32.mrf.mxu1 }
 0x6e9   : > { %v14871_v22 = vpop.f32.mrf.mxu1 }
 0x6ea   : > { %3528 = vmax.xlane.f32.xlu0 %v14861_v1  ;;  %3526 = vmax.xlane.f32.xlu1 %v14871_v22 }
 0x6eb   : > { %v14875_v20 = vpop.f32.mrf.mxu0 }
 0x6ed   : > { %v14877_v57 = vpop.f32.mrf.mxu0 }
 0x6ee   : > { %3530 = vmax.xlane.f32.xlu1 %v14867_v39  ;;  %3532 = vmax.xlane.f32.xlu0 %v14877_v57 }
 0x6ef   : > { %v14881_v34 = vpop.f32.mrf.mxu0 }
 0x6f1   : > { %v14883_v54 = vpop.f32.mrf.mxu0 }
 0x6f2   : > { %3536 = vmax.xlane.f32.xlu0 %v14875_v20  ;;  %3534 = vmax.xlane.f32.xlu1 %v14883_v54 }
 0x6f3   : > { %v14887_v0 = vpop.f32.mrf.mxu0 }
 0x6f5   : > { %v14889_v41 = vpop.f32.mrf.mxu0 }
 0x6f6   : > { %3538 = vmax.xlane.f32.xlu1 %v14881_v34  ;;  %3540 = vmax.xlane.f32.xlu0 %v14889_v41 }
 0x6f7   : > { %v14893_v44 = vpop.f32.mrf.mxu0 }
 0x6f9   : > { %v14895_v48 = vpop.f32.mrf.mxu0 }
 0x6fa   : > { %3544 = vmax.xlane.f32.xlu0 %v14887_v0  ;;  %3542 = vmax.xlane.f32.xlu1 %v14895_v48 }
 0x6fb   : > { %v14899_v33 = vpop.f32.mrf.mxu0 }
 0x6fd   : > { %v14901_v28 = vpop.f32.mrf.mxu0 }
 0x6fe   : > { %3546 = vmax.xlane.f32.xlu1 %v14893_v44  ;;  %3548 = vmax.xlane.f32.xlu0 %v14901_v28 }
 0x6ff   : > { %v14905_v32 = vpop.f32.mrf.mxu0 }
 0x701   : > { %v14907_v13 = vpop.f32.mrf.mxu0 }
 0x702   : > { %3552 = vmax.xlane.f32.xlu0 %v14899_v33  ;;  %3550 = vmax.xlane.f32.xlu1 %v14907_v13 }
 0x703   : > { %v14911_v31 = vpop.f32.mrf.mxu0 }
 0x705   : > { %v14913_v53 = vpop.f32.mrf.mxu0 }
 0x706   : > { %3554 = vmax.xlane.f32.xlu1 %v14905_v32  ;;  %3556 = vmax.xlane.f32.xlu0 %v14913_v53 }
 0x707   : > { %v14917_v25 = vpop.f32.mrf.mxu0 }
 0x709   : > { %v14919_v17 = vpop.f32.mrf.mxu0 }
 0x70a   : > { %3560 = vmax.xlane.f32.xlu0 %v14911_v31  ;;  %3558 = vmax.xlane.f32.xlu1 %v14919_v17 }
 0x70e   : > { %3562 = vmax.xlane.f32.xlu1 %v14917_v25 }
 0x757   : > { %v3501_v37 = vpop.xlane.xlu0 %3500 }
 0x758   : > { %v3564_v35 = vsub.f32 %v14828_v10, %v3501_v37 }
 0x75a   : > { %v3596_v55 = vmul.f32 1.442695, %v3564_v35 }
 0x75b   : > { %v3505_v61 = vpop.xlane.xlu0 %3504  ;;  %v3503_v62 = vpop.xlane.xlu1 %3502 }
 0x75c   : > { %12573 = vpow2.f32 %v3596_v55  ;;  %v3566_v63 = vsub.f32 %v14826_v51, %v3505_v61  ;;  %v3565_v60 = vsub.f32 %v14833_v50, %v3503_v62 }
 0x75e   : > { %v3600_v24 = vmul.f32 1.442695, %v3566_v63  ;;  %v3598_v26 = vmul.f32 1.442695, %v3565_v60 }
 0x75f   : > { %v3507_v6 = vpop.xlane.xlu1 %3506  ;;  %v3509_v30 = vpop.xlane.xlu0 %3508 }
 0x760   : > { %12575 = vpow2.f32 %v3600_v24  ;;  %v3567_v58 = vsub.f32 %v14831_v46, %v3507_v6  ;;  %v3568_v12 = vsub.f32 %v14839_v52, %v3509_v30 }
 0x761   : > { %12577 = vpow2.f32 %v3598_v26 }
 0x762   : > { %v3602_v8 = vmul.f32 1.442695, %v3567_v58  ;;  %v3604_v37 = vmul.f32 1.442695, %v3568_v12 }
 0x763   : > { %v3513_v35 = vpop.xlane.xlu0 %3512  ;;  %v3511_v10 = vpop.xlane.xlu1 %3510 }
 0x764   : > { %12579 = vpow2.f32 %v3602_v8  ;;  %v3570_v55 = vsub.f32 %v14837_v36, %v3513_v35  ;;  %v3569_v61 = vsub.f32 %v14845_v47, %v3511_v10 }
 0x765   : > { %12581 = vpow2.f32 %v3604_v37 }
 0x766   : > { %v3608_v63 = vmul.f32 1.442695, %v3570_v55  ;;  %v3606_v60 = vmul.f32 1.442695, %v3569_v61 }
 0x767   : > { %v3515_v62 = vpop.xlane.xlu1 %3514  ;;  %v3517_v51 = vpop.xlane.xlu0 %3516 }
 0x768   : > { %12583 = vpow2.f32 %v3608_v63  ;;  %v3571_v24 = vsub.f32 %v14843_v21, %v3515_v62  ;;  %v3572_v30 = vsub.f32 %v14851_v45, %v3517_v51 }
 0x769   : > { %v14933_v6 = vpop.eup %12573  ;;  %12585 = vpow2.f32 %v3606_v60 }
 0x76a   : > { %v3610_v58 = vmul.f32 1.442695, %v3571_v24  ;;  %v3612_v12 = vmul.f32 1.442695, %v3572_v30  ;;  %3660 = vadd.xlane.f32.xlu0 %v14933_v6 }
 0x76b   : > { %v3521_v8 = vpop.xlane.xlu0 %3520  ;;  %v3519_v26 = vpop.xlane.xlu1 %3518 }
 0x76c   : > { %12587 = vpow2.f32 %v3610_v58  ;;  %v3574_v46 = vsub.f32 %v14849_v49, %v3521_v8  ;;  %v3573_v50 = vsub.f32 %v14857_v56, %v3519_v26 }
 0x76d   : > { %v14938_v36 = vpop.eup %12575  ;;  %12589 = vpow2.f32 %v3612_v12 }
 0x76e   : > { %v14940_v52 = vpop.eup %12577  ;;  %v3616_v21 = vmul.f32 1.442695, %v3574_v46  ;;  %v3614_v47 = vmul.f32 1.442695, %v3573_v50  ;;  %3664 = vadd.xlane.f32.xlu0 %v14938_v36 }
 0x76f   : > { %3662 = vadd.xlane.f32.xlu1 %v14940_v52  ;;  %v3523_v45 = vpop.xlane.xlu1 %3522  ;;  %v3525_v37 = vpop.xlane.xlu0 %3524 }
 0x770   : > { %12591 = vpow2.f32 %v3616_v21  ;;  %v3575_v35 = vsub.f32 %v14855_v29, %v3523_v45  ;;  %v3576_v49 = vsub.f32 %v14863_v5, %v3525_v37 }
 0x771   : > { %v14946_v10 = vpop.eup %12579  ;;  %12593 = vpow2.f32 %v3614_v47 }
 0x772   : > { %v14948_v56 = vpop.eup %12581  ;;  %v3618_v55 = vmul.f32 1.442695, %v3575_v35  ;;  %v3620_v61 = vmul.f32 1.442695, %v3576_v49 }
 0x773   : > { %3668 = vadd.xlane.f32.xlu0 %v14948_v56  ;;  %3666 = vadd.xlane.f32.xlu1 %v14946_v10  ;;  %v3529_v63 = vpop.xlane.xlu0 %3528  ;;  %v3527_v60 = vpop.xlane.xlu1 %3526 }
 0x774   : > { %12595 = vpow2.f32 %v3618_v55  ;;  %v3578_v62 = vsub.f32 %v14861_v1, %v3529_v63  ;;  %v3577_v29 = vsub.f32 %v14871_v22, %v3527_v60 }
 0x775   : > { %v14954_v51 = vpop.eup %12583  ;;  %12597 = vpow2.f32 %v3620_v61 }
 0x776   : > { %v14956_v5 = vpop.eup %12585  ;;  %v3624_v24 = vmul.f32 1.442695, %v3578_v62  ;;  %v3622_v30 = vmul.f32 1.442695, %v3577_v29 }
 0x777   : > { %3672 = vadd.xlane.f32.xlu0 %v14954_v51  ;;  %3670 = vadd.xlane.f32.xlu1 %v14956_v5  ;;  %v3531_v58 = vpop.xlane.xlu1 %3530  ;;  %v3533_v12 = vpop.xlane.xlu0 %3532 }
 0x778   : > { %12599 = vpow2.f32 %v3624_v24  ;;  %v3579_v8 = vsub.f32 %v14867_v39, %v3531_v58  ;;  %v3580_v1 = vsub.f32 %v14877_v57, %v3533_v12 }
 0x779   : > { %v14962_v26 = vpop.eup %12587  ;;  %12601 = vpow2.f32 %v3622_v30 }
 0x77a   : > { %v14964_v22 = vpop.eup %12589  ;;  %v3626_v46 = vmul.f32 1.442695, %v3579_v8  ;;  %v3628_v50 = vmul.f32 1.442695, %v3580_v1 }
 0x77b   : > { %3676 = vadd.xlane.f32.xlu0 %v14964_v22  ;;  %3674 = vadd.xlane.f32.xlu1 %v14962_v26  ;;  %v3537_v21 = vpop.xlane.xlu0 %3536  ;;  %v3535_v47 = vpop.xlane.xlu1 %3534 }
 0x77c   : > { %12603 = vpow2.f32 %v3626_v46  ;;  %v3582_v45 = vsub.f32 %v14875_v20, %v3537_v21  ;;  %v3581_v39 = vsub.f32 %v14883_v54, %v3535_v47 }
 0x77d   : > { %v14970_v37 = vpop.eup %12591  ;;  %12605 = vpow2.f32 %v3628_v50 }
 0x77e   : > { %v14972_v57 = vpop.eup %12593  ;;  %v3632_v35 = vmul.f32 1.442695, %v3582_v45  ;;  %v3630_v49 = vmul.f32 1.442695, %v3581_v39 }
 0x77f   : > { %3680 = vadd.xlane.f32.xlu0 %v14970_v37  ;;  %3678 = vadd.xlane.f32.xlu1 %v14972_v57  ;;  %v3539_v55 = vpop.xlane.xlu1 %3538  ;;  %v3541_v61 = vpop.xlane.xlu0 %3540 }
 0x780   : > { %12607 = vpow2.f32 %v3632_v35  ;;  %v3583_v63 = vsub.f32 %v14881_v34, %v3539_v55  ;;  %v3584_v20 = vsub.f32 %v14889_v41, %v3541_v61 }
 0x781   : > { %v14978_v60 = vpop.eup %12595  ;;  %12609 = vpow2.f32 %v3630_v49 }
 0x782   : > { %v14980_v54 = vpop.eup %12597  ;;  %v3634_v62 = vmul.f32 1.442695, %v3583_v63  ;;  %v3636_v29 = vmul.f32 1.442695, %v3584_v20 }
 0x783   : > { %3684 = vadd.xlane.f32.xlu0 %v14980_v54  ;;  %3682 = vadd.xlane.f32.xlu1 %v14978_v60  ;;  %v3545_v24 = vpop.xlane.xlu0 %3544  ;;  %v3543_v30 = vpop.xlane.xlu1 %3542 }
 0x784   : > { %12611 = vpow2.f32 %v3634_v62  ;;  %v3586_v58 = vsub.f32 %v14887_v0, %v3545_v24  ;;  %v3585_v34 = vsub.f32 %v14895_v48, %v3543_v30 }
 0x785   : > { %v14986_v12 = vpop.eup %12599  ;;  %12613 = vpow2.f32 %v3636_v29 }
 0x786   : > { %v14988_v41 = vpop.eup %12601  ;;  %v3640_v8 = vmul.f32 1.442695, %v3586_v58  ;;  %v3638_v1 = vmul.f32 1.442695, %v3585_v34 }
 0x787   : > { %3688 = vadd.xlane.f32.xlu0 %v14986_v12  ;;  %3686 = vadd.xlane.f32.xlu1 %v14988_v41  ;;  %v3547_v46 = vpop.xlane.xlu1 %3546  ;;  %v3549_v50 = vpop.xlane.xlu0 %3548 }
 0x788   : > { %12615 = vpow2.f32 %v3640_v8  ;;  %v3587_v21 = vsub.f32 %v14893_v44, %v3547_v46  ;;  %v3588_v0 = vsub.f32 %v14901_v28, %v3549_v50 }
 0x789   : > { %v14994_v47 = vpop.eup %12603  ;;  %12617 = vpow2.f32 %v3638_v1 }
 0x78a   : > { %v14996_v48 = vpop.eup %12605  ;;  %v3642_v45 = vmul.f32 1.442695, %v3587_v21  ;;  %v3644_v39 = vmul.f32 1.442695, %v3588_v0 }
 0x78b   : > { %3692 = vadd.xlane.f32.xlu0 %v14996_v48  ;;  %3690 = vadd.xlane.f32.xlu1 %v14994_v47  ;;  %v3553_v35 = vpop.xlane.xlu0 %3552  ;;  %v3551_v49 = vpop.xlane.xlu1 %3550 }
 0x78c   : > { %12619 = vpow2.f32 %v3642_v45  ;;  %v3590_v55 = vsub.f32 %v14899_v33, %v3553_v35  ;;  %v3589_v44 = vsub.f32 %v14907_v13, %v3551_v49 }
 0x78d   : > { %v15002_v61 = vpop.eup %12607  ;;  %12621 = vpow2.f32 %v3644_v39 }
 0x78e   : > { %v15004_v28 = vpop.eup %12609  ;;  %v3648_v63 = vmul.f32 1.442695, %v3590_v55  ;;  %v3646_v20 = vmul.f32 1.442695, %v3589_v44 }
 0x78f   : > { %3696 = vadd.xlane.f32.xlu0 %v15002_v61  ;;  %3694 = vadd.xlane.f32.xlu1 %v15004_v28  ;;  %v3555_v62 = vpop.xlane.xlu1 %3554  ;;  %v3557_v29 = vpop.xlane.xlu0 %3556 }
 0x790   : > { %12623 = vpow2.f32 %v3648_v63  ;;  %v3591_v24 = vsub.f32 %v14905_v32, %v3555_v62  ;;  %v3592_v33 = vsub.f32 %v14913_v53, %v3557_v29 }
 0x791   : > { %v15010_v30 = vpop.eup %12611  ;;  %12625 = vpow2.f32 %v3646_v20 }
 0x792   : > { %v15012_v13 = vpop.eup %12613  ;;  %v3650_v58 = vmul.f32 1.442695, %v3591_v24  ;;  %v3652_v34 = vmul.f32 1.442695, %v3592_v33 }
 0x793   : > { %3700 = vadd.xlane.f32.xlu0 %v15012_v13  ;;  %3698 = vadd.xlane.f32.xlu1 %v15010_v30  ;;  %v3561_v8 = vpop.xlane.xlu0 %3560  ;;  %v3559_v1 = vpop.xlane.xlu1 %3558 }
 0x794   : > { %12627 = vpow2.f32 %v3650_v58  ;;  %v3594_v46 = vsub.f32 %v14911_v31, %v3561_v8  ;;  %v3593_v32 = vsub.f32 %v14919_v17, %v3559_v1 }
 0x795   : > { %v15018_v50 = vpop.eup %12615  ;;  %12629 = vpow2.f32 %v3652_v34 }
 0x796   : > { %v15020_v53 = vpop.eup %12617  ;;  %v3656_v21 = vmul.f32 1.442695, %v3594_v46  ;;  %v3654_v0 = vmul.f32 1.442695, %v3593_v32 }
 0x797   : > { %3704 = vadd.xlane.f32.xlu0 %v15018_v50  ;;  %3702 = vadd.xlane.f32.xlu1 %v15020_v53  ;;  %v3563_v45 = vpop.xlane.xlu1 %3562 }
 0x798   : > { %12631 = vpow2.f32 %v3656_v21  ;;  %v3595_v39 = vsub.f32 %v14917_v25, %v3563_v45 }
 0x799   : > { %v15025_v35 = vpop.eup %12619  ;;  %12633 = vpow2.f32 %v3654_v0 }
 0x79a   : > { %v15027_v31 = vpop.eup %12621  ;;  %v3658_v17 = vmul.f32 1.442695, %v3595_v39 }
 0x79b   : > { %3708 = vadd.xlane.f32.xlu0 %v15027_v31  ;;  %3706 = vadd.xlane.f32.xlu1 %v15025_v35 }
 0x79c   : > { %12635 = vpow2.f32 %v3658_v17 }
 0x79d   : > { %v15031_v49 = vpop.eup %12623 }
 0x79e   : > { %v15033_v55 = vpop.eup %12625 }
 0x79f   : > { %3712 = vadd.xlane.f32.xlu0 %v15031_v49  ;;  %3710 = vadd.xlane.f32.xlu1 %v15033_v55 }
 0x7a1   : > { %v15037_v25 = vpop.eup %12627 }
 0x7a2   : > { %v15039_v44 = vpop.eup %12629 }
 0x7a3   : > { %3716 = vadd.xlane.f32.xlu0 %v15039_v44  ;;  %3714 = vadd.xlane.f32.xlu1 %v15037_v25 }
 0x7a5   : > { %v15043_v63 = vpop.eup %12631 }
 0x7a6   : > { %v15045_v20 = vpop.eup %12633 }
 0x7a7   : > { %3720 = vadd.xlane.f32.xlu0 %v15043_v63  ;;  %3718 = vadd.xlane.f32.xlu1 %v15045_v20 }
 0x7a9   : > { %v15049_v62 = vpop.eup %12635 }
 0x7ab   : > { %3722 = vadd.xlane.f32.xlu1 %v15049_v62 }
 0x7f3   : > { %v3661_v29 = vpop.xlane.xlu0 %3660 }
 0x7f4   : > { %12637 = vrcp.f32 %v3661_v29 }
 0x7f7   : > { %v3665_v24 = vpop.xlane.xlu0 %3664 }
 0x7f8   : > { %v3663_v33 = vpop.xlane.xlu1 %3662 }
 0x7f9   : > { %12639 = vrcp.f32 %v3663_v33 }
 0x7fa   : > { %12641 = vrcp.f32 %v3665_v24 }
 0x7fc   : > { %v3669_v58 = vpop.xlane.xlu0 %3668  ;;  %v3667_v34 = vpop.xlane.xlu1 %3666 }
 0x7fd   : > { %12643 = vrcp.f32 %v3667_v34 }
 0x7fe   : > { %12645 = vrcp.f32 %v3669_v58 }
 0x800   : > { %v3673_v8 = vpop.xlane.xlu0 %3672  ;;  %v3671_v1 = vpop.xlane.xlu1 %3670 }
 0x801   : > { %12647 = vrcp.f32 %v3671_v1  ;;  %v12638_v46 = vpop.eup %12637 }
 0x802   : > { %12649 = vrcp.f32 %v3673_v8  ;;  %v3756_v45 = vmul.f32 %v12638_v46, %v14933_v6 }
 0x804   : > { %v3677_v32 = vpop.xlane.xlu0 %3676  ;;  %v3675_v21 = vpop.xlane.xlu1 %3674 }
 0x805   : > { %12651 = vrcp.f32 %v3675_v21 }
 0x806   : > { %v12640_v0 = vpop.eup %12639  ;;  %12653 = vrcp.f32 %v3677_v32 }
 0x807   : > { %v3757_v39 = vmul.f32 %v12640_v0, %v14940_v52  ;;  %v12642_v24 = vpop.eup %12641  ;;  %v3208_v52 = vpack.c.bf16 %v14869_v38, %v14789_v11 }
 0x808   : > { %v3681_v17 = vpop.xlane.xlu0 %3680  ;;  %v3679_v29 = vpop.xlane.xlu1 %3678  ;;  %v3758_v34 = vmul.f32 %v12642_v24, %v14938_v36 }
 0x809   : > { %v3788_v33 = vpack.c.bf16 %v3757_v39, %v3756_v45  ;;  %12655 = vrcp.f32 %v3679_v29 }
 0x80a   : > { %v12644_v58 = vpop.eup %12643  ;;  %12657 = vrcp.f32 %v3681_v17 }
 0x80b   : > { %11386 = vmatprep.mubr.bf16.mxu1 %v3788_v33  ;;  %v3759_v8 = vmul.f32 %v12644_v58, %v14946_v10  ;;  %v12646_v21 = vpop.eup %12645 }
 0x80c   : > { %v3685_v1 = vpop.xlane.xlu0 %3684  ;;  %v3683_v42 = vpop.xlane.xlu1 %3682  ;;  %v3760_v45 = vmul.f32 %v12646_v21, %v14948_v56  ;;  %v17602_v56 = vld [vmem:[#allocation75_spill] sm:$0xff] }
 0x80d   : > { %12659 = vrcp.f32 %v3683_v42  ;;  %v3789_v6 = vpack.c.bf16 %v3759_v8, %v3758_v34 }
 0x80e   : > { %v12648_v46 = vpop.eup %12647  ;;  %12661 = vrcp.f32 %v3685_v1 }
 0x80f   : > { %11387 = vmatmul.mubr.bf16.vlgmr.msra.gmra.mxu1 %v3789_v6  ;;  %v3761_v36 = vmul.f32 %v12648_v46, %v14956_v5  ;;  %v12650_v39 = vpop.eup %12649 }
 0x810   : > { %v3689_v32 = vpop.xlane.xlu0 %3688  ;;  %v3687_v0 = vpop.xlane.xlu1 %3686  ;;  %11403 = vmatpush3.bf16.msra.mxu1 %v14798_v43  ;;  %v3762_v11 = vmul.f32 %v12650_v39, %v14954_v51  ;;  %v17603_v43 = vld [vmem:[#allocation74_spill] sm:$0xff]  ;;  %v17606_v39 = vld [vmem:[#allocation73_spill] sm:$0xff] }
 0x811   : > { %11404 = vmatprep.subr.bf16.mxu1 %v3208_v52  ;;  %12663 = vrcp.f32 %v3687_v0  ;;  %v3790_v10 = vpack.c.bf16 %v3761_v36, %v3760_v45  ;;  %v3206_v58 = vpack.c.bf16 %v14771_v19, %v17603_v43  ;;  %v17605_v36 = vld [vmem:[#allocation71_spill] sm:$0xff] }
 0x812   : > { %v12652_v42 = vpop.eup %12651  ;;  %12665 = vrcp.f32 %v3689_v32 }
 0x813   : > { %11390 = vmatprep.mubr.bf16.mxu1 %v3790_v10  ;;  %v3763_v38 = vmul.f32 %v12652_v42, %v14962_v26  ;;  %v12654_v24 = vpop.eup %12653  ;;  %v3204_v10 = vpack.c.bf16 %v17606_v39, %v17605_v36 }
 0x814   : > { %v3693_v17 = vpop.xlane.xlu0 %3692  ;;  %v3691_v29 = vpop.xlane.xlu1 %3690  ;;  %11405 = vmatpush3.bf16.msra.mxu1 %v3208_v52  ;;  %v3764_v1 = vmul.f32 %v12654_v24, %v14964_v22  ;;  %v17604_v22 = vld [vmem:[#allocation72_spill] sm:$0xff] }
 0x815   : > { %11406 = vmatprep.subr.bf16.mxu1 %v17602_v56  ;;  %12667 = vrcp.f32 %v3691_v29  ;;  %v3791_v5 = vpack.c.bf16 %v3763_v38, %v3762_v11 }
 0x816   : > { %v12656_v33 = vpop.eup %12655  ;;  %12669 = vrcp.f32 %v3693_v17 }
 0x817   : > { %11391 = vmatmul.mubr.bf16.gmra.mxu1 %v3791_v5  ;;  %v3765_v51 = vmul.f32 %v12656_v33, %v14972_v57  ;;  %v12658_v21 = vpop.eup %12657 }
 0x818   : > { %v3697_v34 = vpop.xlane.xlu0 %3696  ;;  %v3695_v8 = vpop.xlane.xlu1 %3694  ;;  %11407 = vmatpush3.bf16.msra.mxu1 %v17602_v56  ;;  %v3766_v19 = vmul.f32 %v12658_v21, %v14970_v37 }
 0x819   : > { %11408 = vmatprep.subr.bf16.mxu1 %v3206_v58  ;;  %12671 = vrcp.f32 %v3695_v8  ;;  %v3792_v26 = vpack.c.bf16 %v3765_v51, %v3764_v1  ;;  %v17609_v8 = vld [vmem:[#allocation70_spill] sm:$0xff] }
 0x81a   : > { %v12660_v6 = vpop.eup %12659  ;;  %12673 = vrcp.f32 %v3697_v34  ;;  %v17608_v34 = vld [vmem:[#allocation68_spill] sm:$0xff] }
 0x81b   : > { %11394 = vmatprep.mubr.bf16.mxu1 %v3792_v26  ;;  %v3767_v32 = vmul.f32 %v12660_v6, %v14978_v60  ;;  %v12662_v0 = vpop.eup %12661  ;;  %v3202_v1 = vpack.c.bf16 %v17609_v8, %v17608_v34 }
 0x81c   : > { %v3701_v46 = vpop.xlane.xlu0 %3700  ;;  %v3699_v52 = vpop.xlane.xlu1 %3698  ;;  %11409 = vmatpush3.bf16.msra.mxu1 %v3206_v58  ;;  %v3768_v29 = vmul.f32 %v12662_v0, %v14980_v54  ;;  %v17607_v54 = vld [vmem:[#allocation69_spill] sm:$0xff] }
 0x81d   : > { %11410 = vmatprep.subr.bf16.mxu1 %v17604_v22  ;;  %12675 = vrcp.f32 %v3699_v52  ;;  %v3793_v57 = vpack.c.bf16 %v3767_v32, %v3766_v19 }
 0x81e   : > { %v12664_v45 = vpop.eup %12663  ;;  %12677 = vrcp.f32 %v3701_v46  ;;  %v12285_v46 = vld [vmem:[%s13301_s11 + $0x8] sm:$0xff]  }
 0x81f   : > { %11395 = vmatmul.mubr.bf16.gmra.mxu1 %v3793_v57  ;;  %v3769_v37 = vmul.f32 %v12664_v45, %v14988_v41  ;;  %v12666_v11 = vpop.eup %12665  ;;  %v12286_v57 = vld [vmem:[%s13301_s11] sm:$0xff]  }
 0x820   : > { %v3705_v42 = vpop.xlane.xlu0 %3704  ;;  %v3703_v17 = vpop.xlane.xlu1 %3702  ;;  %11411 = vmatpush3.bf16.msra.mxu1 %v17604_v22  ;;  %v3770_v5 = vmul.f32 %v12666_v11, %v14986_v12 }
 0x821   : > { %11412 = vmatprep.subr.bf16.mxu1 %v3204_v10  ;;  %12679 = vrcp.f32 %v3703_v17  ;;  %v3794_v60 = vpack.c.bf16 %v3769_v37, %v3768_v29  ;;  %v12287_v17 = vld [vmem:[%s13306_s15 + $0x1b8] sm:$0xff]  }
 0x822   : > { %v12668_v38 = vpop.eup %12667  ;;  %12681 = vrcp.f32 %v3705_v42 }
 0x823   : > { %11398 = vmatprep.mubr.bf16.mxu1 %v3794_v60  ;;  %v3771_v33 = vmul.f32 %v12668_v38, %v14994_v47  ;;  %v12670_v43 = vpop.eup %12669 }
 0x824   : > { %v3709_v24 = vpop.xlane.xlu0 %3708  ;;  %v3707_v56 = vpop.xlane.xlu1 %3706  ;;  %11413 = vmatpush3.bf16.msra.mxu1 %v3204_v10  ;;  %v3772_v26 = vmul.f32 %v12670_v43, %v14996_v48 }
 0x825   : > { %11414 = vmatprep.subr.bf16.mxu1 %v17607_v54  ;;  %12683 = vrcp.f32 %v3707_v56  ;;  %v3795_v41 = vpack.c.bf16 %v3771_v33, %v3770_v5  ;;  %v12295_v33 = vld [vmem:[%s13301_s11 + $0x18] sm:$0xff]  }
 0x826   : > { %v12672_v58 = vpop.eup %12671  ;;  %12685 = vrcp.f32 %v3709_v24  ;;  %11434 = vmatprep.subr.bf16.mxu0 %v12295_v33 }
 0x827   : > { %11399 = vmatmul.mubr.bf16.gmra.mxu1 %v3795_v41  ;;  %v3773_v12 = vmul.f32 %v12672_v58, %v15004_v28  ;;  %v12674_v47 = vpop.eup %12673  ;;  %11435 = vmatpush3.bf16.msra.mxu0 %v12295_v33  ;;  %v17641_v33 = vld [vmem:[#allocation18_spill] sm:$0xff] }
 0x828   : > { %v3713_v51 = vpop.xlane.xlu0 %3712  ;;  %v3711_v21 = vpop.xlane.xlu1 %3710  ;;  %11415 = vmatpush3.bf16.msra.mxu1 %v17607_v54  ;;  %v3774_v19 = vmul.f32 %v12674_v47, %v15002_v61  ;;  %v12294_v47 = vld [vmem:[%s13306_s15 + $0x180] sm:$0xff]  }
 0x829   : > { %11416 = vmatprep.subr.bf16.mxu1 %v3202_v1  ;;  %12687 = vrcp.f32 %v3711_v21  ;;  %v3796_v6 = vpack.c.bf16 %v3773_v12, %v3772_v26  ;;  %v2463_v26 = vpack.c.bf16 %v14629_v3, %v14623_v40  ;;  %v12296_v12 = vld [vmem:[%s13301_s11 + $0x10] sm:$0xff]   ;;  %v12289_v40 = vld [vmem:[%s13306_s15 + $0x1a8] sm:$0xff]   ;;  %v12290_v3 = vld [vmem:[%s13306_s15 + $0x1a0] sm:$0xff]  }
 0x82a   : > { %v12676_v52 = vpop.eup %12675  ;;  %12689 = vrcp.f32 %v3713_v51  ;;  %11436 = vmatprep.subr.bf16.mxu0 %v12296_v12 }
 0x82b   : > { %v3775_v32 = vmul.f32 %v12676_v52, %v15010_v30  ;;  %11418 = vmatprep.mubr.bf16.mxu1 %v3796_v6  ;;  %v12678_v48 = vpop.eup %12677  ;;  %11437 = vmatpush3.bf16.msra.mxu0 %v12296_v12  ;;  %v17614_v6 = vld [vmem:[#allocation78_spill] sm:$0xff] }
 0x82c   : > { %v3717_v0 = vpop.xlane.xlu0 %3716  ;;  %v3715_v22 = vpop.xlane.xlu1 %3714  ;;  %11417 = vmatpush3.bf16.msra.mxu1 %v3202_v1  ;;  %v3776_v61 = vmul.f32 %v12678_v48, %v15012_v13  ;;  %v17622_v48 = vld [vmem:[#allocation77_spill] sm:$0xff] }
 0x82d   : > { %12691 = vrcp.f32 %v3715_v22  ;;  %v3797_v28 = vpack.c.bf16 %v3775_v32, %v3774_v19  ;;  %11470 = vmatprep.subr.bf16.mxu1 %v12285_v46  ;;  %v17616_v19 = vld [vmem:[#allocation76_spill] sm:$0xff]  ;;  %v17617_v32 = vld [vmem:[#allocation29_spill] sm:$0xff]  ;;  %v17621_v22 = vld [vmem:[#allocation79_spill] sm:$0xff] }
 0x82e   : > { %v12680_v45 = vpop.eup %12679  ;;  %12693 = vrcp.f32 %v3717_v0  ;;  %v17618_v0 = vpack.c.bf16 %v17616_v19, %v17617_v32 }
 0x82f   : > { %11419 = vmatmul.mubr.bf16.vlgmr.msra.gmra.mxu1 %v3797_v28  ;;  %v3777_v30 = vmul.f32 %v12680_v45, %v15020_v53  ;;  %v12682_v10 = vpop.eup %12681  ;;  %v17623_v28 = vpack.c.bf16 %v17621_v22, %v17622_v48  ;;  %v17625_v45 = vld [vmem:[#allocation88_spill] sm:$0xff]  ;;  %v12304_v48 = vld [vmem:[%s13306_s15 + $0x80] sm:$0xff]  }
 0x830   : > { %v3721_v36 = vpop.xlane.xlu0 %3720  ;;  %v3719_v39 = vpop.xlane.xlu1 %3718  ;;  %11471 = vmatpush3.bf16.msra.mxu1 %v12285_v46  ;;  %v3778_v11 = vmul.f32 %v12682_v10, %v15018_v50  ;;  %v17615_v46 = vld [vmem:[#allocation80_spill] sm:$0xff]  ;;  %v17629_v10 = vld [vmem:[#allocation90_spill] sm:$0xff] }
 0x831   : > { %12695 = vrcp.f32 %v3719_v39  ;;  %v3798_v42 = vpack.c.bf16 %v3777_v30, %v3776_v61  ;;  %11472 = vmatprep.subr.bf16.mxu1 %v12286_v57  ;;  %v2471_v52 = vpack.c.bf16 %v17615_v46, %v17614_v6  ;;  %v17626_v39 = vld [vmem:[#allocation83_spill] sm:$0xff]  ;;  %v17627_v61 = vld [vmem:[#allocation81_spill] sm:$0xff] }
 0x832   : > { %v12684_v29 = vpop.eup %12683  ;;  %12697 = vrcp.f32 %v3721_v36  ;;  %v17628_v30 = vpack.c.bf16 %v17626_v39, %v17627_v61 }
 0x833   : > { %11422 = vmatprep.mubr.bf16.mxu1 %v3798_v42  ;;  %v3779_v60 = vmul.f32 %v12684_v29, %v15025_v35  ;;  %v12686_v38 = vpop.eup %12685  ;;  %v17630_v42 = vld [vmem:[#allocation92_spill] sm:$0xff]  ;;  %v17631_v29 = vld [vmem:[#allocation87_spill] sm:$0xff] }
 0x834   : > { %v3723_v37 = vpop.xlane.xlu1 %3722  ;;  %11473 = vmatpush3.bf16.msra.mxu1 %v12286_v57  ;;  %v3780_v24 = vmul.f32 %v12686_v38, %v15027_v31  ;;  %v17624_v57 = vld [vmem:[#allocation86_spill] sm:$0xff]  ;;  %v17635_v38 = vld [vmem:[#allocation89_spill] sm:$0xff] }
 0x835   : > { %12699 = vrcp.f32 %v3723_v37  ;;  %v3799_v13 = vpack.c.bf16 %v3779_v60, %v3778_v11  ;;  %11554 = vmatprep.subr.bf16.mxu1 %v12287_v17  ;;  %v2475_v36 = vpack.c.bf16 %v17625_v45, %v17624_v57  ;;  %v17632_v37 = vld [vmem:[#allocation85_spill] sm:$0xff]  ;;  %v17634_v60 = vld [vmem:[#allocation91_spill] sm:$0xff]  ;;  %v12305_v45 = vld [vmem:[%s13306_s15 + $0x2b8] sm:$0xff]  }
 0x836   : > { %v12688_v53 = vpop.eup %12687  ;;  %v17633_v11 = vpack.c.bf16 %v17631_v29, %v17632_v37 }
 0x837   : > { %11423 = vmatmul.mubr.bf16.gmra.mxu1 %v3799_v13  ;;  %v3781_v56 = vmul.f32 %v12688_v53, %v15033_v55  ;;  %v12690_v5 = vpop.eup %12689  ;;  %v17636_v13 = vpack.c.bf16 %v17634_v60, %v17635_v38  ;;  %v17637_v53 = vld [vmem:[#allocation14_spill] sm:$0xff] }
 0x838   : > { %v3782_v50 = vmul.f32 %v12690_v5, %v15031_v49  ;;  %v17640_v5 = vld [vmem:[#allocation17_spill] sm:$0xff] }
 0x839   : > { %v3800_v43 = vpack.c.bf16 %v3781_v56, %v3780_v24  ;;  %v17638_v24 = vld [vmem:[#allocation15_spill] sm:$0xff]  ;;  %v17639_v56 = vld [vmem:[#allocation16_spill] sm:$0xff] }
 0x83a   : > { %v12692_v54 = vpop.eup %12691 }
 0x83b   : > { %11426 = vmatprep.mubr.bf16.mxu1 %v3800_v43  ;;  %v3783_v35 = vmul.f32 %v12692_v54, %v15037_v25  ;;  %v12694_v41 = vpop.eup %12693  ;;  %v17642_v43 = vld [vmem:[#allocation19_spill] sm:$0xff]  ;;  %v17643_v54 = vld [vmem:[#allocation20_spill] sm:$0xff] }
 0x83c   : > { %v3784_v31 = vmul.f32 %v12694_v41, %v15039_v44  ;;  %v12288_v44 = vld [vmem:[%s13306_s15 + $0x1b0] sm:$0xff]  }
 0x83d   : > { %v3801_v58 = vpack.c.bf16 %v3783_v35, %v3782_v50  ;;  %v17644_v50 = vld [vmem:[#allocation21_spill] sm:$0xff]  ;;  %v17645_v35 = vld [vmem:[#allocation6_spill] sm:$0xff]  ;;  %v17646_v41 = vld [vmem:[#allocation7_spill] sm:$0xff] }
 0x83e   : > { %v12696_v34 = vpop.eup %12695 }
 0x83f   : > { %v12698_v8 = vpop.eup %12697  ;;  %11427 = vmatmul.mubr.bf16.gmra.mxu1 %v3801_v58  ;;  %v3785_v55 = vmul.f32 %v12696_v34, %v15045_v20  ;;  %v17610_v20 = vpack.c.bf16 %v14625_v18, %v14621_v16  ;;  %v12291_v16 = vld [vmem:[%s13306_s15 + $0x198] sm:$0xff]   ;;  %v17648_v34 = vld [vmem:[#allocation9_spill] sm:$0xff] }
 0x840   : > { %v3786_v21 = vmul.f32 %v12698_v8, %v15043_v63  ;;  %v2465_v63 = vpack.c.bf16 %v14639_v9, %v14633_v7  ;;  %v17611_v7 = vpack.c.bf16 %v14635_v23, %v14631_v27  ;;  %v12297_v18 = vld [vmem:[%s13306_s15 + $0xb8] sm:$0xff]   ;;  %v12292_v9 = vld [vmem:[%s13306_s15 + $0x190] sm:$0xff]   ;;  %v12293_v23 = vld [vmem:[%s13306_s15 + $0x188] sm:$0xff]  }
 0x841   : > { %v3802_v51 = vpack.c.bf16 %v3785_v55, %v3784_v31  ;;  %11506 = vmatprep.subr.bf16.mxu0 %v12297_v18  ;;  %v17647_v58 = vld [vmem:[#allocation8_spill] sm:$0xff]  ;;  %v17649_v8 = vld [vmem:[#allocation10_spill] sm:$0xff]  ;;  %v17650_v31 = vld [vmem:[#allocation11_spill] sm:$0xff] }
 0x842   : > { %v12700_v1 = vpop.eup %12699  ;;  %v17651_v55 = vld [vmem:[#allocation12_spill] sm:$0xff] }
 0x843   : > { %v3787_v49 = vmul.f32 %v12700_v1, %v15049_v62  ;;  %11430 = vmatprep.mubr.bf16.mxu1 %v3802_v51  ;;  %v2467_v62 = vpack.c.bf16 %v14649_v14, %v14643_v59  ;;  %v2469_v59 = vpack.c.bf16 %v14659_v2, %v14653_v4  ;;  %v17612_v14 = vld [vmem:[#allocation22_spill] sm:$0xff]  ;;  %v17620_v4 = vld [vmem:[#allocation84_spill] sm:$0xff]  ;;  %v17652_v1 = vld [vmem:[#allocation13_spill] sm:$0xff] }
 0x844   : > { %v17613_v27 = vpack.c.bf16 %v14645_v15, %v17612_v14  ;;  %v17619_v15 = vld [vmem:[#allocation82_spill] sm:$0xff] }
 0x845   : > { %v3803_v25 = vpack.c.bf16 %v3787_v49, %v3786_v21  ;;  %v2473_v2 = vpack.c.bf16 %v17620_v4, %v17619_v15 }
 0x847   : > { %11431 = vmatmul.mubr.bf16.gmra.mxu1 %v3803_v25 }
 0x848   : > { %11474 = vmatprep.mubr.msk.bf16.mxu1 %vm1674_vm0, %v2463_v26 }
 0x84f   : > { %11475 = vmatmul.mubr.msk.bf16.vlgmr.msra.gmra.mxu1 %vm1674_vm0, %v17610_v20 }
 0x850   : > { %11478 = vmatprep.mubr.msk.bf16.mxu1 %vm1674_vm0, %v2465_v63  ;;  %11555 = vmatpush3.bf16.msra.mxu1 %v12287_v17  ;;  %v2477_v17 = vpack.c.bf16 %v17630_v42, %v17629_v10  ;;  %v12298_v63 = vld [vmem:[%s13306_s15 + $0xb0] sm:$0xff]  }
 0x851   : > { %11556 = vmatprep.subr.bf16.mxu1 %v12288_v44 }
 0x854   : > { %11557 = vmatpush3.bf16.msra.mxu1 %v12288_v44 }
 0x855   : > { %11558 = vmatprep.subr.bf16.mxu1 %v12289_v40 }
 0x857   : > { %11479 = vmatmul.mubr.msk.bf16.gmra.mxu1 %vm1674_vm0, %v17611_v7 }
 0x858   : > { %11482 = vmatprep.mubr.msk.bf16.mxu1 %vm1674_vm0, %v2467_v62  ;;  %11559 = vmatpush3.bf16.msra.mxu1 %v12289_v40 }
 0x859   : > { %11560 = vmatprep.subr.bf16.mxu1 %v12290_v3 }
 0x85c   : > { %11561 = vmatpush3.bf16.msra.mxu1 %v12290_v3  ;;  %v12299_v3 = vld [vmem:[%s13306_s15 + $0xa8] sm:$0xff]  }
 0x85d   : > { %11562 = vmatprep.subr.bf16.mxu1 %v12291_v16 }
 0x85f   : > { %11483 = vmatmul.mubr.msk.bf16.gmra.mxu1 %vm1674_vm0, %v17613_v27 }
 0x860   : > { %11486 = vmatprep.mubr.msk.bf16.mxu1 %vm1674_vm0, %v2469_v59  ;;  %11563 = vmatpush3.bf16.msra.mxu1 %v12291_v16  ;;  %v12300_v59 = vld [vmem:[%s13306_s15 + $0xa0] sm:$0xff]  }
 0x861   : > { %11564 = vmatprep.subr.bf16.mxu1 %v12292_v9 }
 0x864   : > { %11565 = vmatpush3.bf16.msra.mxu1 %v12292_v9 }
 0x865   : > { %11566 = vmatprep.subr.bf16.mxu1 %v12293_v23 }
 0x867   : > { %11487 = vmatmul.mubr.msk.bf16.gmra.mxu1 %vm1674_vm0, %v17618_v0  ;;  %v12303_v0 = vld [vmem:[%s13306_s15 + $0x88] sm:$0xff]  }
 0x868   : > { %11490 = vmatprep.mubr.msk.bf16.mxu1 %vm1674_vm0, %v2471_v52  ;;  %11567 = vmatpush3.bf16.msra.mxu1 %v12293_v23  ;;  %v12302_v52 = vld [vmem:[%s13306_s15 + $0x90] sm:$0xff]  }
 0x869   : > { %11568 = vmatprep.subr.bf16.mxu1 %v12294_v47 }
 0x86c   : > { %11569 = vmatpush3.bf16.msra.mxu1 %v12294_v47 }
 0x86f   : > { %11491 = vmatmul.mubr.msk.bf16.gmra.mxu1 %vm1674_vm0, %v17623_v28 }
 0x870   : > { %11494 = vmatprep.mubr.msk.bf16.mxu1 %vm1674_vm0, %v2473_v2 }
 0x877   : > { %11495 = vmatmul.mubr.msk.bf16.gmra.mxu1 %vm1674_vm0, %v17628_v30 }
 0x878   : > { %11498 = vmatprep.mubr.msk.bf16.mxu1 %vm1674_vm0, %v2475_v36 }
 0x87f   : > { %11499 = vmatmul.mubr.msk.bf16.gmra.mxu1 %vm1674_vm0, %v17633_v11 }
 0x880   : > { %11502 = vmatprep.mubr.msk.bf16.mxu1 %vm1674_vm0, %v2477_v17 }
 0x887   : > { %11503 = vmatmul.mubr.msk.bf16.gmra.mxu1 %vm1674_vm0, %v17636_v13 }
 0x888   : > { %11570 = vmatprep.mubr.bf16.mxu1 %v17637_v53 }
 0x88f   : > { %11571 = vmatmul.mubr.bf16.vlgmr.msra.gmra.mxu1 %v17638_v24 }
 0x890   : > { %11574 = vmatprep.mubr.bf16.mxu1 %v17639_v56 }
 0x897   : > { %11575 = vmatmul.mubr.bf16.gmra.mxu1 %v17640_v5 }
 0x898   : > { %11578 = vmatprep.mubr.bf16.mxu1 %v17641_v33 }
 0x89f   : > { %11579 = vmatmul.mubr.bf16.gmra.mxu1 %v17642_v43 }
 0x8a0   : > { %11582 = vmatprep.mubr.bf16.mxu1 %v17643_v54 }
 0x8a7   : > { %11583 = vmatmul.mubr.bf16.gmra.mxu1 %v17644_v50 }
 0x8a8   : > { %11586 = vmatprep.mubr.bf16.mxu1 %v17645_v35 }
 0x8af   : > { %11587 = vmatmul.mubr.bf16.gmra.mxu1 %v17646_v41 }
 0x8b0   : > { %11590 = vmatprep.mubr.bf16.mxu1 %v17647_v58 }
 0x8b7   : > { %11591 = vmatmul.mubr.bf16.gmra.mxu1 %v17648_v34 }
 0x8b8   : > { %11594 = vmatprep.mubr.bf16.mxu1 %v17649_v8 }
 0x8bf   : > { %11595 = vmatmul.mubr.bf16.gmra.mxu1 %v17650_v31 }
 0x8c0   : > { %11598 = vmatprep.mubr.bf16.mxu1 %v17651_v55 }
 0x8c7   : > { %11599 = vmatmul.mubr.bf16.gmra.mxu1 %v17652_v1 }
 0x8cf   : > { %v11388_v51 = vpop.f32.mrf.mxu1 }
 0x8d1   : > { %v3838_v21 = vpop.f32.mrf.mxu1 }
 0x8d3   : > { %v11389_v49 = vpop.f32.mrf.mxu1 }
 0x8d4   : > { %v3999_v12 = vpack.c.bf16 %v11389_v49, %v11388_v51 }
 0x8d5   : > { %v3841_v25 = vpop.f32.mrf.mxu1 }
 0x8d6   : > { %v3998_v26 = vpack.c.bf16 %v3841_v25, %v3838_v21 }
 0x8d7   : > { %v11392_v44 = vpop.f32.mrf.mxu1 }
 0x8d8   : > { %11438 = vmatprep.mubr.msk.bf16.mxu0 %vm1674_vm0, %v3998_v26 }
 0x8d9   : > { %v3854_v20 = vpop.f32.mrf.mxu1  ;;  %11439 = vmatmul.mubr.msk.bf16.vlgmr.msra.gmra.mxu0 %vm1674_vm0, %v3999_v12 }
 0x8da   : > { %11507 = vmatpush3.bf16.msra.mxu0 %v12297_v18  ;;  %v12301_v18 = vld [vmem:[%s13306_s15 + $0x98] sm:$0xff]  }
 0x8db   : > { %v11393_v40 = vpop.f32.mrf.mxu1  ;;  %11508 = vmatprep.subr.bf16.mxu0 %v12298_v63 }
 0x8dc   : > { %v4001_v16 = vpack.c.bf16 %v11393_v40, %v11392_v44 }
 0x8dd   : > { %v3857_v62 = vpop.f32.mrf.mxu1 }
 0x8de   : > { %v4000_v7 = vpack.c.bf16 %v3857_v62, %v3854_v20  ;;  %11509 = vmatpush3.bf16.msra.mxu0 %v12298_v63 }
 0x8df   : > { %v11396_v9 = vpop.f32.mrf.mxu1  ;;  %11510 = vmatprep.subr.bf16.mxu0 %v12299_v3 }
 0x8e0   : > { %11442 = vmatprep.mubr.msk.bf16.mxu0 %vm1674_vm0, %v4000_v7 }
 0x8e1   : > { %v3870_v14 = vpop.f32.mrf.mxu1  ;;  %11443 = vmatmul.mubr.msk.bf16.gmra.mxu0 %vm1674_vm0, %v4001_v16  ;;  %v12306_v16 = vld [vmem:[%s13306_s15 + $0x2b0] sm:$0xff]  }
 0x8e2   : > { %11511 = vmatpush3.bf16.msra.mxu0 %v12299_v3 }
 0x8e3   : > { %v11397_v27 = vpop.f32.mrf.mxu1  ;;  %11512 = vmatprep.subr.bf16.mxu0 %v12300_v59 }
 0x8e4   : > { %v4003_v6 = vpack.c.bf16 %v11397_v27, %v11396_v9 }
 0x8e5   : > { %v3873_v23 = vpop.f32.mrf.mxu1 }
 0x8e6   : > { %v4002_v47 = vpack.c.bf16 %v3873_v23, %v3870_v14  ;;  %11513 = vmatpush3.bf16.msra.mxu0 %v12300_v59  ;;  %v12307_v14 = vld [vmem:[%s13306_s15 + $0x2a8] sm:$0xff]   ;;  %v12308_v23 = vld [vmem:[%s13306_s15 + $0x2a0] sm:$0xff]  }
 0x8e7   : > { %v11400_v46 = vpop.f32.mrf.mxu1  ;;  %11514 = vmatprep.subr.bf16.mxu0 %v12301_v18 }
 0x8e8   : > { %11446 = vmatprep.mubr.msk.bf16.mxu0 %vm1674_vm0, %v4002_v47 }
 0x8e9   : > { %v3886_v19 = vpop.f32.mrf.mxu1  ;;  %11447 = vmatmul.mubr.msk.bf16.gmra.mxu0 %vm1674_vm0, %v4003_v6 }
 0x8ea   : > { %11515 = vmatpush3.bf16.msra.mxu0 %v12301_v18 }
 0x8eb   : > { %v11401_v32 = vpop.f32.mrf.mxu1  ;;  %11516 = vmatprep.subr.bf16.mxu0 %v12302_v52 }
 0x8ec   : > { %v4005_v2 = vpack.c.bf16 %v11401_v32, %v11400_v46  ;;  %v12309_v46 = vld [vmem:[%s13306_s15 + $0x298] sm:$0xff]   ;;  %v12310_v32 = vld [vmem:[%s13306_s15 + $0x290] sm:$0xff]  }
 0x8ed   : > { %v3889_v15 = vpop.f32.mrf.mxu1 }
 0x8ee   : > { %v4004_v4 = vpack.c.bf16 %v3889_v15, %v3886_v19  ;;  %11517 = vmatpush3.bf16.msra.mxu0 %v12302_v52 }
 0x8ef   : > { %v11420_v22 = vpop.f32.mrf.mxu1  ;;  %11518 = vmatprep.subr.bf16.mxu0 %v12303_v0 }
 0x8f0   : > { %11450 = vmatprep.mubr.msk.bf16.mxu0 %vm1674_vm0, %v4004_v4  ;;  %v12311_v4 = vld [vmem:[%s13306_s15 + $0x288] sm:$0xff]  }
 0x8f1   : > { %v3935_v28 = vpop.f32.mrf.mxu1  ;;  %11451 = vmatmul.mubr.msk.bf16.gmra.mxu0 %vm1674_vm0, %v4005_v2 }
 0x8f2   : > { %11519 = vmatpush3.bf16.msra.mxu0 %v12303_v0 }
 0x8f3   : > { %v11421_v57 = vpop.f32.mrf.mxu1  ;;  %11520 = vmatprep.subr.bf16.mxu0 %v12304_v48 }
 0x8f4   : > { %v4007_v61 = vpack.c.bf16 %v11421_v57, %v11420_v22 }
 0x8f5   : > { %v3938_v36 = vpop.f32.mrf.mxu1 }
 0x8f6   : > { %v4006_v39 = vpack.c.bf16 %v3938_v36, %v3935_v28  ;;  %11521 = vmatpush3.bf16.msra.mxu0 %v12304_v48  ;;  %v12312_v48 = vld [vmem:[%s13306_s15 + $0x280] sm:$0xff]  }
 0x8f7   : > { %v11424_v30 = vpop.f32.mrf.mxu1  ;;  %11602 = vmatprep.subr.bf16.mxu0 %v12305_v45 }
 0x8f8   : > { %11454 = vmatprep.mubr.msk.bf16.mxu0 %vm1674_vm0, %v4006_v39 }
 0x8f9   : > { %v3951_v10 = vpop.f32.mrf.mxu1  ;;  %11455 = vmatmul.mubr.msk.bf16.gmra.mxu0 %vm1674_vm0, %v4007_v61 }
 0x8fb   : > { %v11425_v42 = vpop.f32.mrf.mxu1 }
 0x8fc   : > { %v4009_v37 = vpack.c.bf16 %v11425_v42, %v11424_v30 }
 0x8fd   : > { %v3954_v17 = vpop.f32.mrf.mxu1 }
 0x8fe   : > { %v4008_v29 = vpack.c.bf16 %v3954_v17, %v3951_v10 }
 0x8ff   : > { %v11428_v11 = vpop.f32.mrf.mxu1 }
 0x900   : > { %11458 = vmatprep.mubr.msk.bf16.mxu0 %vm1674_vm0, %v4008_v29 }
 0x901   : > { %v3967_v60 = vpop.f32.mrf.mxu1  ;;  %11459 = vmatmul.mubr.msk.bf16.gmra.mxu0 %vm1674_vm0, %v4009_v37 }
 0x903   : > { %v11429_v38 = vpop.f32.mrf.mxu1 }
 0x904   : > { %v4011_v21 = vpack.c.bf16 %v11429_v38, %v11428_v11 }
 0x905   : > { %v3970_v13 = vpop.f32.mrf.mxu1 }
 0x906   : > { %v4010_v51 = vpack.c.bf16 %v3970_v13, %v3967_v60 }
 0x907   : > { %v11432_v49 = vpop.f32.mrf.mxu1 }
 0x908   : > { %11462 = vmatprep.mubr.msk.bf16.mxu0 %vm1674_vm0, %v4010_v51 }
 0x909   : > { %v3983_v25 = vpop.f32.mrf.mxu1  ;;  %11463 = vmatmul.mubr.msk.bf16.gmra.mxu0 %vm1674_vm0, %v4011_v21 }
 0x90b   : > { %v11433_v26 = vpop.f32.mrf.mxu1 }
 0x90c   : > { %v4013_v63 = vpack.c.bf16 %v11433_v26, %v11432_v49 }
 0x90d   : > { %v3986_v12 = vpop.f32.mrf.mxu1 }
 0x90e   : > { %v4012_v44 = vpack.c.bf16 %v3986_v12, %v3983_v25 }
 0x90f   : > { %v15206_v20 = vpop.f32.mrf.mxu1 }
 0x910   : > { %17653 = vst [vmem:[#allocation64_spill] sm:$0xff] %v15206_v20  ;;  %11466 = vmatprep.mubr.msk.bf16.mxu0 %vm1674_vm0, %v4012_v44 }
 0x911   : > { %11467 = vmatmul.mubr.msk.bf16.gmra.mxu0 %vm1674_vm0, %v4013_v63  ;;  %v15210_v40 = vpop.f32.mrf.mxu1 }
 0x912   : > { %17654 = vst [vmem:[#allocation66_spill] sm:$0xff] %v15210_v40  ;;  %11522 = vmatprep.mubr.bf16.mxu0 %v17637_v53 }
 0x913   : > { %v15213_v3 = vpop.f32.mrf.mxu1 }
 0x914   : > { %17655 = vst [vmem:[#allocation24_spill] sm:$0xff] %v15213_v3 }
 0x915   : > { %v15215_v62 = vpop.f32.mrf.mxu1 }
 0x916   : > { %17656 = vst [vmem:[#allocation26_spill] sm:$0xff] %v15215_v62 }
 0x917   : > { %v15217_v7 = vpop.f32.mrf.mxu1 }
 0x918   : > { %17657 = vst [vmem:[#allocation27_spill] sm:$0xff] %v15217_v7 }
 0x919   : > { %v15220_v9 = vpop.f32.mrf.mxu1  ;;  %11523 = vmatmul.mubr.bf16.vlgmr.msra.gmra.mxu0 %v17638_v24 }
 0x91a   : > { %17658 = vst [vmem:[#allocation23_spill] sm:$0xff] %v15220_v9  ;;  %11526 = vmatprep.mubr.bf16.mxu0 %v17639_v56  ;;  %11603 = vmatpush3.bf16.msra.mxu0 %v12305_v45 }
 0x91b   : > { %v15224_v59 = vpop.f32.mrf.mxu1  ;;  %11604 = vmatprep.subr.bf16.mxu0 %v12306_v16 }
 0x91c   : > { %17659 = vst [vmem:[#allocation65_spill] sm:$0xff] %v15224_v59 }
 0x91d   : > { %v15227_v27 = vpop.f32.mrf.mxu1 }
 0x91e   : > { %17660 = vst [vmem:[#allocation67_spill] sm:$0xff] %v15227_v27  ;;  %11605 = vmatpush3.bf16.msra.mxu0 %v12306_v16 }
 0x91f   : > { %v15229_v18 = vpop.f32.mrf.mxu1  ;;  %11606 = vmatprep.subr.bf16.mxu0 %v12307_v14 }
 0x920   : > { %17661 = vst [vmem:[#allocation60_spill] sm:$0xff] %v15229_v18 }
 0x921   : > { %v15232_v47 = vpop.f32.mrf.mxu1  ;;  %11527 = vmatmul.mubr.bf16.gmra.mxu0 %v17640_v5 }
 0x922   : > { %17662 = vst [vmem:[#allocation62_spill] sm:$0xff] %v15232_v47  ;;  %11530 = vmatprep.mubr.bf16.mxu0 %v17641_v33  ;;  %11607 = vmatpush3.bf16.msra.mxu0 %v12307_v14 }
 0x923   : > { %v15236_v6 = vpop.f32.mrf.mxu1  ;;  %11608 = vmatprep.subr.bf16.mxu0 %v12308_v23 }
 0x924   : > { %17663 = vst [vmem:[#allocation31_spill] sm:$0xff] %v15236_v6 }
 0x925   : > { %v15239_v52 = vpop.f32.mrf.mxu1 }
 0x926   : > { %17664 = vst [vmem:[#allocation33_spill] sm:$0xff] %v15239_v52  ;;  %11609 = vmatpush3.bf16.msra.mxu0 %v12308_v23 }
 0x927   : > { %v15241_v19 = vpop.f32.mrf.mxu1  ;;  %11610 = vmatprep.subr.bf16.mxu0 %v12309_v46 }
 0x928   : > { %17665 = vst [vmem:[#allocation28_spill] sm:$0xff] %v15241_v19 }
 0x929   : > { %v15244_v0 = vpop.f32.mrf.mxu1  ;;  %11531 = vmatmul.mubr.bf16.gmra.mxu0 %v17642_v43 }
 0x92a   : > { %17666 = vst [vmem:[#allocation25_spill] sm:$0xff] %v15244_v0  ;;  %11534 = vmatprep.mubr.bf16.mxu0 %v17643_v54  ;;  %11611 = vmatpush3.bf16.msra.mxu0 %v12309_v46 }
 0x92b   : > { %v15248_v15 = vpop.f32.mrf.mxu1  ;;  %11612 = vmatprep.subr.bf16.mxu0 %v12310_v32 }
 0x92c   : > { %17667 = vst [vmem:[#allocation61_spill] sm:$0xff] %v15248_v15 }
 0x92d   : > { %v15251_v2 = vpop.f32.mrf.mxu1 }
 0x92e   : > { %17668 = vst [vmem:[#allocation63_spill] sm:$0xff] %v15251_v2  ;;  %11613 = vmatpush3.bf16.msra.mxu0 %v12310_v32 }
 0x92f   : > { %v15253_v22 = vpop.f32.mrf.mxu1  ;;  %11614 = vmatprep.subr.bf16.mxu0 %v12311_v4 }
 0x930   : > { %17669 = vst [vmem:[#allocation56_spill] sm:$0xff] %v15253_v22 }
 0x931   : > { %v15256_v28 = vpop.f32.mrf.mxu1  ;;  %11535 = vmatmul.mubr.bf16.gmra.mxu0 %v17644_v50 }
 0x932   : > { %17670 = vst [vmem:[#allocation58_spill] sm:$0xff] %v15256_v28  ;;  %11538 = vmatprep.mubr.bf16.mxu0 %v17645_v35  ;;  %11615 = vmatpush3.bf16.msra.mxu0 %v12311_v4 }
 0x933   : > { %v15260_v57 = vpop.f32.mrf.mxu1  ;;  %11616 = vmatprep.subr.bf16.mxu0 %v12312_v48 }
 0x934   : > { %17671 = vst [vmem:[#allocation35_spill] sm:$0xff] %v15260_v57 }
 0x935   : > { %v15262_v45 = vpop.f32.mrf.mxu1 }
 0x936   : > { %17672 = vst [vmem:[#allocation37_spill] sm:$0xff] %v15262_v45  ;;  %11617 = vmatpush3.bf16.msra.mxu0 %v12312_v48 }
 0x937   : > { %v15264_v36 = vpop.f32.mrf.mxu1 }
 0x938   : > { %17673 = vst [vmem:[#allocation32_spill] sm:$0xff] %v15264_v36 }
 0x939   : > { %v15266_v39 = vpop.f32.mrf.mxu1  ;;  %11539 = vmatmul.mubr.bf16.gmra.mxu0 %v17646_v41 }
 0x93a   : > { %17674 = vst [vmem:[#allocation30_spill] sm:$0xff] %v15266_v39  ;;  %11542 = vmatprep.mubr.bf16.mxu0 %v17647_v58 }
 0x93b   : > { %v15270_v61 = vpop.f32.mrf.mxu1 }
 0x93c   : > { %17675 = vst [vmem:[#allocation57_spill] sm:$0xff] %v15270_v61 }
 0x93d   : > { %v15272_v30 = vpop.f32.mrf.mxu1 }
 0x93e   : > { %17676 = vst [vmem:[#allocation59_spill] sm:$0xff] %v15272_v30 }
 0x93f   : > { %v15274_v10 = vpop.f32.mrf.mxu1 }
 0x940   : > { %17677 = vst [vmem:[#allocation52_spill] sm:$0xff] %v15274_v10 }
 0x941   : > { %v15276_v42 = vpop.f32.mrf.mxu1  ;;  %11543 = vmatmul.mubr.bf16.gmra.mxu0 %v17648_v34 }
 0x942   : > { %17678 = vst [vmem:[#allocation54_spill] sm:$0xff] %v15276_v42  ;;  %11546 = vmatprep.mubr.bf16.mxu0 %v17649_v8 }
 0x943   : > { %v15280_v17 = vpop.f32.mrf.mxu1 }
 0x944   : > { %17679 = vst [vmem:[#allocation36_spill] sm:$0xff] %v15280_v17 }
 0x945   : > { %v15282_v29 = vpop.f32.mrf.mxu1 }
 0x946   : > { %17680 = vst [vmem:[#allocation34_spill] sm:$0xff] %v15282_v29 }
 0x947   : > { %v15284_v37 = vpop.f32.mrf.mxu1 }
 0x948   : > { %17681 = vst [vmem:[#allocation53_spill] sm:$0xff] %v15284_v37 }
 0x949   : > { %v15286_v11 = vpop.f32.mrf.mxu1  ;;  %11547 = vmatmul.mubr.bf16.gmra.mxu0 %v17650_v31 }
 0x94a   : > { %17682 = vst [vmem:[#allocation55_spill] sm:$0xff] %v15286_v11  ;;  %11550 = vmatprep.mubr.bf16.mxu0 %v17651_v55 }
 0x94b   : > { %v15290_v60 = vpop.f32.mrf.mxu1 }
 0x94c   : > { %17683 = vst [vmem:[#allocation41_spill] sm:$0xff] %v15290_v60 }
 0x94d   : > { %v15292_v38 = vpop.f32.mrf.mxu1 }
 0x94e   : > { %17684 = vst [vmem:[#allocation43_spill] sm:$0xff] %v15292_v38 }
 0x94f   : > { %v11572_v13 = vpop.f32.mrf.mxu1 }
 0x951   : > { %11551 = vmatmul.mubr.bf16.gmra.mxu0 %v17652_v1  ;;  %v15295_v51 = vpop.f32.mrf.mxu1 }
 0x952   : > { %11618 = vmatprep.mubr.bf16.mxu0 %v17637_v53 }
 0x953   : > { %v11573_v21 = vpop.f32.mrf.mxu1 }
 0x954   : > { %v15298_v49 = vpack.c.bf16 %v11573_v21, %v11572_v13 }
 0x955   : > { %v15300_v25 = vpop.f32.mrf.mxu1 }
 0x957   : > { %v11576_v26 = vpop.f32.mrf.mxu1 }
 0x959   : > { %v4819_v12 = vpop.f32.mrf.mxu1  ;;  %11619 = vmatmul.mubr.bf16.vlgmr.msra.gmra.mxu0 %v17638_v24 }
 0x95a   : > { %11622 = vmatprep.mubr.bf16.mxu0 %v17639_v56 }
 0x95b   : > { %v11577_v44 = vpop.f32.mrf.mxu1 }
 0x95d   : > { %v4822_v63 = vpop.f32.mrf.mxu1 }
 0x95e   : > { %v5157_v17 = vpack.c.bf16 %v4822_v63, %v4819_v12 }
 0x95f   : > { %v11580_v16 = vpop.f32.mrf.mxu1 }
 0x961   : > { %v4835_v14 = vpop.f32.mrf.mxu1  ;;  %11623 = vmatmul.mubr.bf16.gmra.mxu0 %v17640_v5 }
 0x962   : > { %11626 = vmatprep.mubr.bf16.mxu0 %v17641_v33 }
 0x963   : > { %v11581_v23 = vpop.f32.mrf.mxu1 }
 0x965   : > { %v4838_v46 = vpop.f32.mrf.mxu1 }
 0x967   : > { %v11584_v32 = vpop.f32.mrf.mxu1 }
 0x969   : > { %v4851_v4 = vpop.f32.mrf.mxu1  ;;  %11627 = vmatmul.mubr.bf16.gmra.mxu0 %v17642_v43 }
 0x96a   : > { %11630 = vmatprep.mubr.bf16.mxu0 %v17643_v54 }
 0x96b   : > { %v11585_v48 = vpop.f32.mrf.mxu1 }
 0x96c   : > { %v5162_v13 = vpack.c.bf16 %v11585_v48, %v11584_v32  ;;  %v5160_v48 = vpack.c.bf16 %v11581_v23, %v11580_v16 }
 0x96d   : > { %v4854_v21 = vpop.f32.mrf.mxu1 }
 0x96e   : > { %v5233_v38 = vsel %vm1674_vm0, %v5162_v13, 0  ;;  %v5161_v29 = vpack.c.bf16 %v4854_v21, %v4851_v4  ;;  %12170 = vmatprep.subr.msk.bf16.mxu1 %vm1674_vm0, %v5162_v13 }
 0x96f   : > { %v11588_v30 = vpop.f32.mrf.mxu1  ;;  %11651 = vmatpush3.bf16.xpose.msra.mxu1 %v5233_v38 }
 0x970   : > { %12171 = vmatprep.subr.msk.bf16.mxu1 %vm1674_vm0, %v5161_v29  ;;  %v5230_v4 = vsel %vm1674_vm0, %v5161_v29, 0 }
 0x971   : > { %v15311_v45 = vpop.f32.mrf.mxu1  ;;  %11631 = vmatmul.mubr.bf16.gmra.mxu0 %v17644_v50 }
 0x972   : > { %11634 = vmatprep.mubr.bf16.mxu0 %v17645_v35 }
 0x973   : > { %v11589_v2 = vpop.f32.mrf.mxu1 }
 0x974   : > { %v15315_v52 = vpack.c.bf16 %v11589_v2, %v11588_v30  ;;  %v5227_v2 = vsel %vm1674_vm0, %v5160_v48, 0  ;;  %v5159_v30 = vpack.c.bf16 %v4838_v46, %v4835_v14 }
 0x975   : > { %v15317_v32 = vpop.f32.mrf.mxu1 }
 0x976   : > { %v5224_v60 = vsel %vm1674_vm0, %v5159_v30, 0 }
 0x977   : > { %v11592_v21 = vpop.f32.mrf.mxu1  ;;  %11653 = vmatpush3.bf16.xpose.msra.mxu1 %v5230_v4  ;;  %v5158_v4 = vpack.c.bf16 %v11577_v44, %v11576_v26 }
 0x978   : > { %12172 = vmatprep.subr.msk.bf16.mxu1 %vm1674_vm0, %v5160_v48 }
 0x979   : > { %v15321_v38 = vpop.f32.mrf.mxu1  ;;  %11635 = vmatmul.mubr.bf16.gmra.mxu0 %v17646_v41  ;;  %v5221_v37 = vsel %vm1674_vm0, %v5158_v4, 0 }
 0x97a   : > { %11638 = vmatprep.mubr.bf16.mxu0 %v17647_v58 }
 0x97b   : > { %v11593_v13 = vpop.f32.mrf.mxu1 }
 0x97d   : > { %v15325_v27 = vpop.f32.mrf.mxu1 }
 0x97f   : > { %v11596_v62 = vpop.f32.mrf.mxu1  ;;  %11655 = vmatpush3.bf16.xpose.msra.mxu1 %v5227_v2 }
 0x980   : > { %12173 = vmatprep.subr.msk.bf16.mxu1 %vm1674_vm0, %v5159_v30 }
 0x981   : > { %v4899_v29 = vpop.f32.mrf.mxu1  ;;  %11639 = vmatmul.mubr.bf16.gmra.mxu0 %v17648_v34 }
 0x982   : > { %11642 = vmatprep.mubr.bf16.mxu0 %v17649_v8 }
 0x983   : > { %v11597_v16 = vpop.f32.mrf.mxu1 }
 0x985   : > { %v4902_v23 = vpop.f32.mrf.mxu1 }
 0x986   : > { %v5167_v30 = vpack.c.bf16 %v4902_v23, %v4899_v29 }
 0x987   : > { %v11600_v11 = vpop.f32.mrf.mxu1  ;;  %11657 = vmatpush3.bf16.xpose.msra.mxu1 %v5224_v60  ;;  %v5168_v60 = vpack.c.bf16 %v11597_v16, %v11596_v62  ;;  %v5215_v62 = vsel %vm1674_vm0, %v15298_v49, 0 }
 0x988   : > { %12174 = vmatprep.subr.msk.bf16.mxu1 %vm1674_vm0, %v5158_v4 }
 0x989   : > { %v4915_v48 = vpop.f32.mrf.mxu1  ;;  %11643 = vmatmul.mubr.bf16.gmra.mxu0 %v17650_v31  ;;  %v5372_v63 = vsel %vm1674_vm0, %v5168_v60, 0 }
 0x98a   : > { %11646 = vmatprep.mubr.bf16.mxu0 %v17651_v55 }
 0x98b   : > { %v11601_v14 = vpop.f32.mrf.mxu1 }
 0x98c   : > { %v5170_v46 = vpack.c.bf16 %v11601_v14, %v11600_v11  ;;  %v5218_v11 = vsel %vm1674_vm0, %v5157_v17, 0 }
 0x98d   : > { %v4918_v2 = vpop.f32.mrf.mxu1 }
 0x98e   : > { %v5378_v42 = vsel %vm1674_vm0, %v5170_v46, 0  ;;  %v5169_v26 = vpack.c.bf16 %v4918_v2, %v4915_v48  ;;  %12178 = vmatprep.subr.msk.bf16.mxu0 %vm1674_vm0, %v5170_v46 }
 0x98f   : > { %11659 = vmatpush3.bf16.xpose.msra.mxu1 %v5221_v37  ;;  %11683 = vmatpush3.bf16.xpose.msra.mxu0 %v5378_v42 }
 0x990   : > { %12175 = vmatprep.subr.msk.bf16.mxu1 %vm1674_vm0, %v5157_v17  ;;  %12179 = vmatprep.subr.msk.bf16.mxu0 %vm1674_vm0, %v5169_v26  ;;  %v5375_v44 = vsel %vm1674_vm0, %v5169_v26, 0  ;;  %v5155_v17 = vpack.c.bf16 %v15300_v25, %v15295_v51  ;;  %v5369_v25 = vsel %vm1674_vm0, %v5167_v30, 0 }
 0x991   : > { %11647 = vmatmul.mubr.bf16.gmra.mxu0 %v17652_v1 }
 0x992   : > { %v5212_v51 = vsel %vm1674_vm0, %v5155_v17, 0 }
 0x997   : > { %11661 = vmatpush3.bf16.xpose.msra.mxu1 %v5218_v11  ;;  %11685 = vmatpush3.bf16.xpose.msra.mxu0 %v5375_v44 }
 0x998   : > { %12176 = vmatprep.subr.msk.bf16.mxu1 %vm1674_vm0, %v15298_v49  ;;  %12180 = vmatprep.subr.msk.bf16.mxu0 %vm1674_vm0, %v5168_v60  ;;  %v5166_v49 = vpack.c.bf16 %v11593_v13, %v11592_v21  ;;  %v5165_v21 = vpack.c.bf16 %v15325_v27, %v15321_v38 }
 0x999   : > { %v15346_v37 = vpop.f32.mrf.mxu0 }
 0x99a   : > { %17685 = vst [vmem:[#allocation39_spill] sm:$0xff] %v15346_v37  ;;  %v5366_v26 = vsel %vm1674_vm0, %v5166_v49, 0 }
 0x99b   : > { %v15348_v42 = vpop.f32.mrf.mxu0 }
 0x99c   : > { %17686 = vst [vmem:[#allocation38_spill] sm:$0xff] %v15348_v42 }
 0x99d   : > { %v15350_v12 = vpop.f32.mrf.mxu0 }
 0x99e   : > { %17687 = vst [vmem:[#allocation45_spill] sm:$0xff] %v15350_v12 }
 0x99f   : > { %v15357_v16 = vpop.f32.mrf.mxu0  ;;  %11663 = vmatpush3.bf16.xpose.msra.mxu1 %v5215_v62  ;;  %11687 = vmatpush3.bf16.xpose.msra.mxu0 %v5372_v63  ;;  %v5363_v62 = vsel %vm1674_vm0, %v5165_v21, 0 }
 0x9a0   : > { %17688 = vst [vmem:[#allocation47_spill] sm:$0xff] %v15357_v16  ;;  %12177 = vmatprep.subr.msk.bf16.mxu1 %vm1674_vm0, %v5155_v17  ;;  %12181 = vmatprep.subr.msk.bf16.mxu0 %vm1674_vm0, %v5167_v30  ;;  %v5360_v30 = vsel %vm1674_vm0, %v15315_v52, 0 }
 0x9a1   : > { %v15361_v4 = vpop.f32.mrf.mxu0 }
 0x9a2   : > { %17689 = vst [vmem:[#allocation42_spill] sm:$0xff] %v15361_v4 }
 0x9a3   : > { %v15363_v48 = vpop.f32.mrf.mxu0 }
 0x9a4   : > { %17690 = vst [vmem:[#allocation40_spill] sm:$0xff] %v15363_v48 }
 0x9a5   : > { %v15365_v14 = vpop.f32.mrf.mxu0 }
 0x9a6   : > { %17691 = vst [vmem:[#allocation49_spill] sm:$0xff] %v15365_v14 }
 0x9a7   : > { %v15369_v29 = vpop.f32.mrf.mxu0  ;;  %11665 = vmatpush3.bf16.xpose.msra.mxu1 %v5212_v51  ;;  %11689 = vmatpush3.bf16.xpose.msra.mxu0 %v5369_v25 }
 0x9a8   : > { %17692 = vst [vmem:[#allocation51_spill] sm:$0xff] %v15369_v29  ;;  %12182 = vmatprep.subr.msk.bf16.mxu0 %vm1674_vm0, %v5166_v49  ;;  %v5163_v49 = vpack.c.bf16 %v15317_v32, %v15311_v45 }
 0x9a9   : > { %v15372_v23 = vpop.f32.mrf.mxu0 }
 0x9aa   : > { %17693 = vst [vmem:[#allocation46_spill] sm:$0xff] %v15372_v23 }
 0x9ab   : > { %v15374_v46 = vpop.f32.mrf.mxu0 }
 0x9ac   : > { %17694 = vst [vmem:[#allocation44_spill] sm:$0xff] %v15374_v46 }
 0x9ad   : > { %v15376_v2 = vpop.f32.mrf.mxu0 }
 0x9ae   : > { %17695 = vst [vmem:[#allocation50_spill] sm:$0xff] %v15376_v2 }
 0x9af   : > { %v15381_v13 = vpop.f32.mrf.mxu0  ;;  %11691 = vmatpush3.bf16.xpose.msra.mxu0 %v5366_v26 }
 0x9b0   : > { %17696 = vst [vmem:[#allocation48_spill] sm:$0xff] %v15381_v13  ;;  %12183 = vmatprep.subr.msk.bf16.mxu0 %vm1674_vm0, %v5165_v21 }
 0x9b1   : > { %v15384_v60 = vpop.f32.mrf.mxu0 }
 0x9b2   : > { %17697 = vst [vmem:[#allocation75_spill] sm:$0xff] %v15384_v60 }
 0x9b3   : > { %v15386_v11 = vpop.f32.mrf.mxu0 }
 0x9b4   : > { %17698 = vst [vmem:[#allocation74_spill] sm:$0xff] %v15386_v11 }
 0x9b5   : > { %v15388_v44 = vpop.f32.mrf.mxu0 }
 0x9b6   : > { %17699 = vst [vmem:[#allocation72_spill] sm:$0xff] %v15388_v44 }
 0x9b7   : > { %v15391_v17 = vpop.f32.mrf.mxu0  ;;  %11693 = vmatpush3.bf16.xpose.msra.mxu0 %v5363_v62  ;;  %v5357_v62 = vsel %vm1674_vm0, %v5163_v49, 0 }
 0x9b8   : > { %17700 = vst [vmem:[#allocation71_spill] sm:$0xff] %v15391_v17  ;;  %12184 = vmatprep.subr.msk.bf16.mxu0 %vm1674_vm0, %v15315_v52 }
 0x9b9   : > { %v15395_v27 = vpop.f32.mrf.mxu0 }
 0x9ba   : > { %17701 = vst [vmem:[#allocation73_spill] sm:$0xff] %v15395_v27 }
 0x9bb   : > { %v15397_v38 = vpop.f32.mrf.mxu0 }
 0x9bc   : > { %17702 = vst [vmem:[#allocation69_spill] sm:$0xff] %v15397_v38 }
 0x9bd   : > { %v15399_v63 = vpop.f32.mrf.mxu0 }
 0x9be   : > { %17703 = vst [vmem:[#allocation68_spill] sm:$0xff] %v15399_v63 }
 0x9bf   : > { %v15405_v51 = vpop.f32.mrf.mxu0  ;;  %11695 = vmatpush3.bf16.xpose.msra.mxu0 %v5360_v30 }
 0x9c0   : > { %17704 = vst [vmem:[#allocation70_spill] sm:$0xff] %v15405_v51  ;;  %12185 = vmatprep.subr.msk.bf16.mxu0 %vm1674_vm0, %v5163_v49 }
 0x9c1   : > { %v15408_v25 = vpop.f32.mrf.mxu0 }
 0x9c2   : > { %17705 = vst [vmem:[#allocation22_spill] sm:$0xff] %v15408_v25 }
 0x9c3   : > { %v15410_v26 = vpop.f32.mrf.mxu0 }
 0x9c4   : > { %17706 = vst [vmem:[#allocation78_spill] sm:$0xff] %v15410_v26 }
 0x9c5   : > { %v15412_v21 = vpop.f32.mrf.mxu0 }
 0x9c6   : > { %17707 = vst [vmem:[#allocation80_spill] sm:$0xff] %v15412_v21 }
 0x9c7   : > { %v15415_v17 = vpop.f32.mrf.mxu0  ;;  %11697 = vmatpush3.bf16.xpose.msra.mxu0 %v5357_v62 }
 0x9c8   : > { %17708 = vst [vmem:[#allocation76_spill] sm:$0xff] %v15415_v17 }
 0x9c9   : > { %v15417_v52 = vpop.f32.mrf.mxu0 }
 0x9ca   : > { %17709 = vst [vmem:[#allocation29_spill] sm:$0xff] %v15417_v52 }
 0x9cb   : > { %v15419_v13 = vpop.f32.mrf.mxu0 }
 0x9cc   : > { %17710 = vst [vmem:[#allocation82_spill] sm:$0xff] %v15419_v13 }
 0x9cd   : > { %v15421_v45 = vpop.f32.mrf.mxu0 }
 0x9ce   : > { %17711 = vst [vmem:[#allocation84_spill] sm:$0xff] %v15421_v45 }
 0x9cf   : > { %v15423_v32 = vpop.f32.mrf.mxu0 }
 0x9d0   : > { %17712 = vst [vmem:[#allocation79_spill] sm:$0xff] %v15423_v32 }
 0x9d1   : > { %v15425_v30 = vpop.f32.mrf.mxu0 }
 0x9d2   : > { %17713 = vst [vmem:[#allocation77_spill] sm:$0xff] %v15425_v30 }
 0x9d3   : > { %v15427_v51 = vpop.f32.mrf.mxu0 }
 0x9d4   : > { %17714 = vst [vmem:[#allocation86_spill] sm:$0xff] %v15427_v51 }
 0x9d5   : > { %v15429_v29 = vpop.f32.mrf.mxu0 }
 0x9d6   : > { %17715 = vst [vmem:[#allocation88_spill] sm:$0xff] %v15429_v29 }
 0x9d7   : > { %v15431_v16 = vpop.f32.mrf.mxu0 }
 0x9d8   : > { %17716 = vst [vmem:[#allocation83_spill] sm:$0xff] %v15431_v16 }
 0x9d9   : > { %v11524_v49 = vpop.f32.mrf.mxu0 }
 0x9db   : > { %v4594_v10 = vpop.f32.mrf.mxu0 }
 0x9dd   : > { %v11525_v17 = vpop.f32.mrf.mxu0 }
 0x9de   : > { %v5140_v52 = vpack.c.bf16 %v11525_v17, %v11524_v49 }
 0x9df   : > { %v4597_v62 = vpop.f32.mrf.mxu0 }
 0x9e0   : > { %v5139_v61 = vpack.c.bf16 %v4597_v62, %v4594_v10 }
 0x9e1   : > { %v11528_v21 = vpop.f32.mrf.mxu0 }
 0x9e2   : > { %11666 = vmatprep.mubr.msk.bf16.mxu1 %vm1674_vm0, %v5139_v61 }
 0x9e3   : > { %v4610_v45 = vpop.f32.mrf.mxu0  ;;  %11667 = vmatmul.mubr.msk.bf16.vlgmr.msra.gmra.mxu1 %vm1674_vm0, %v5140_v52 }
 0x9e5   : > { %v11529_v32 = vpop.f32.mrf.mxu0 }
 0x9e6   : > { %v5142_v51 = vpack.c.bf16 %v11529_v32, %v11528_v21 }
 0x9e7   : > { %v4613_v30 = vpop.f32.mrf.mxu0 }
 0x9e8   : > { %v5141_v13 = vpack.c.bf16 %v4613_v30, %v4610_v45 }
 0x9e9   : > { %v11532_v39 = vpop.f32.mrf.mxu0 }
 0x9ea   : > { %11670 = vmatprep.mubr.msk.bf16.mxu1 %vm1674_vm0, %v5141_v13 }
 0x9eb   : > { %v4626_v16 = vpop.f32.mrf.mxu0  ;;  %11671 = vmatmul.mubr.msk.bf16.gmra.mxu1 %vm1674_vm0, %v5142_v51 }
 0x9ed   : > { %v11533_v29 = vpop.f32.mrf.mxu0 }
 0x9ee   : > { %v5144_v17 = vpack.c.bf16 %v11533_v29, %v11532_v39 }
 0x9ef   : > { %v4629_v26 = vpop.f32.mrf.mxu0 }
 0x9f0   : > { %v5143_v10 = vpack.c.bf16 %v4629_v26, %v4626_v16 }
 0x9f1   : > { %v11536_v49 = vpop.f32.mrf.mxu0 }
 0x9f2   : > { %11674 = vmatprep.mubr.msk.bf16.mxu1 %vm1674_vm0, %v5143_v10 }
 0x9f3   : > { %v4642_v61 = vpop.f32.mrf.mxu0  ;;  %11675 = vmatmul.mubr.msk.bf16.gmra.mxu1 %vm1674_vm0, %v5144_v17 }
 0x9f5   : > { %v11537_v52 = vpop.f32.mrf.mxu0 }
 0x9f6   : > { %v5146_v21 = vpack.c.bf16 %v11537_v52, %v11536_v49 }
 0x9f7   : > { %v4645_v62 = vpop.f32.mrf.mxu0 }
 0x9f8   : > { %v5145_v45 = vpack.c.bf16 %v4645_v62, %v4642_v61 }
 0x9f9   : > { %v11540_v32 = vpop.f32.mrf.mxu0 }
 0x9fa   : > { %11678 = vmatprep.mubr.msk.bf16.mxu1 %vm1674_vm0, %v5145_v45 }
 0x9fb   : > { %v4658_v13 = vpop.f32.mrf.mxu0  ;;  %11679 = vmatmul.mubr.msk.bf16.gmra.mxu1 %vm1674_vm0, %v5146_v21 }
 0x9fd   : > { %v11541_v51 = vpop.f32.mrf.mxu0 }
 0x9fe   : > { %v5148_v39 = vpack.c.bf16 %v11541_v51, %v11540_v32 }
 0x9ff   : > { %v4661_v30 = vpop.f32.mrf.mxu0 }
 0xa00   : > { %v5147_v16 = vpack.c.bf16 %v4661_v30, %v4658_v13 }
 0xa01   : > { %v11544_v29 = vpop.f32.mrf.mxu0 }
 0xa02   : > { %11698 = vmatprep.mubr.msk.bf16.mxu0 %vm1674_vm0, %v5147_v16 }
 0xa03   : > { %v4674_v26 = vpop.f32.mrf.mxu0  ;;  %11699 = vmatmul.mubr.msk.bf16.vlgmr.msra.gmra.mxu0 %vm1674_vm0, %v5148_v39 }
 0xa05   : > { %v11545_v10 = vpop.f32.mrf.mxu0 }
 0xa06   : > { %v5150_v49 = vpack.c.bf16 %v11545_v10, %v11544_v29 }
 0xa07   : > { %v4677_v17 = vpop.f32.mrf.mxu0 }
 0xa08   : > { %v5149_v61 = vpack.c.bf16 %v4677_v17, %v4674_v26 }
 0xa09   : > { %v11548_v52 = vpop.f32.mrf.mxu0 }
 0xa0a   : > { %11702 = vmatprep.mubr.msk.bf16.mxu0 %vm1674_vm0, %v5149_v61 }
 0xa0b   : > { %v4690_v62 = vpop.f32.mrf.mxu0  ;;  %11703 = vmatmul.mubr.msk.bf16.gmra.mxu0 %vm1674_vm0, %v5150_v49 }
 0xa0d   : > { %v11549_v45 = vpop.f32.mrf.mxu0 }
 0xa0e   : > { %v5152_v32 = vpack.c.bf16 %v11549_v45, %v11548_v52 }
 0xa0f   : > { %v4693_v21 = vpop.f32.mrf.mxu0 }
 0xa10   : > { %v5151_v13 = vpack.c.bf16 %v4693_v21, %v4690_v62 }
 0xa11   : > { %v11552_v51 = vpop.f32.mrf.mxu0 }
 0xa12   : > { %11706 = vmatprep.mubr.msk.bf16.mxu0 %vm1674_vm0, %v5151_v13 }
 0xa13   : > { %v4706_v30 = vpop.f32.mrf.mxu0  ;;  %11707 = vmatmul.mubr.msk.bf16.gmra.mxu0 %vm1674_vm0, %v5152_v32 }
 0xa15   : > { %v11553_v16 = vpop.f32.mrf.mxu0 }
 0xa16   : > { %v5154_v29 = vpack.c.bf16 %v11553_v16, %v11552_v51 }
 0xa17   : > { %v4709_v39 = vpop.f32.mrf.mxu0 }
 0xa18   : > { %v5153_v26 = vpack.c.bf16 %v4709_v39, %v4706_v30 }
 0xa19   : > { %v11620_v10 = vpop.f32.mrf.mxu0 }
 0xa1a   : > { %11710 = vmatprep.mubr.msk.bf16.mxu0 %vm1674_vm0, %v5153_v26 }
 0xa1b   : > { %v5012_v17 = vpop.f32.mrf.mxu0  ;;  %11711 = vmatmul.mubr.msk.bf16.gmra.mxu0 %vm1674_vm0, %v5154_v29 }
 0xa1d   : > { %v11621_v61 = vpop.f32.mrf.mxu0 }
 0xa1f   : > { %v5015_v49 = vpop.f32.mrf.mxu0 }
 0xa21   : > { %v11624_v62 = vpop.f32.mrf.mxu0 }
 0xa23   : > { %v5028_v52 = vpop.f32.mrf.mxu0 }
 0xa25   : > { %v11625_v45 = vpop.f32.mrf.mxu0 }
 0xa27   : > { %v5031_v21 = vpop.f32.mrf.mxu0 }
 0xa29   : > { %v11628_v13 = vpop.f32.mrf.mxu0 }
 0xa2b   : > { %v5044_v36 = vpop.f32.mrf.mxu0 }
 0xa2d   : > { %v11629_v25 = vpop.f32.mrf.mxu0 }
 0xa2e   : > { %v5176_v28 = vpack.c.bf16 %v11629_v25, %v11628_v13  ;;  %v5173_v13 = vpack.c.bf16 %v5031_v21, %v5028_v52 }
 0xa2f   : > { %v5047_v32 = vpop.f32.mrf.mxu0 }
 0xa30   : > { %v5175_v15 = vpack.c.bf16 %v5047_v32, %v5044_v36  ;;  %v5172_v36 = vpack.c.bf16 %v11621_v61, %v11620_v10 }
 0xa31   : > { %v11632_v57 = vpop.f32.mrf.mxu0 }
 0xa33   : > { %v5060_v63 = vpop.f32.mrf.mxu0 }
 0xa35   : > { %v11633_v30 = vpop.f32.mrf.mxu0 }
 0xa36   : > { %v5178_v51 = vpack.c.bf16 %v11633_v30, %v11632_v57 }
 0xa37   : > { %v5063_v16 = vpop.f32.mrf.mxu0 }
 0xa38   : > { %v5177_v39 = vpack.c.bf16 %v5063_v16, %v5060_v63  ;;  %11714 = vmatprep.subr.bf16.mxu1 %v5178_v51  ;;  %v5174_v63 = vpack.c.bf16 %v11625_v45, %v11624_v62 }
 0xa39   : > { %v11636_v26 = vpop.f32.mrf.mxu0  ;;  %11715 = vmatpush3.bf16.msra.mxu1 %v5178_v51 }
 0xa3a   : > { %11716 = vmatprep.subr.bf16.mxu1 %v5177_v39 }
 0xa3b   : > { %v15449_v29 = vpop.f32.mrf.mxu0 }
 0xa3d   : > { %v11637_v38 = vpop.f32.mrf.mxu0  ;;  %11717 = vmatpush3.bf16.msra.mxu1 %v5177_v39 }
 0xa3e   : > { %v15451_v22 = vpack.c.bf16 %v11637_v38, %v11636_v26  ;;  %11718 = vmatprep.subr.bf16.mxu1 %v5176_v28 }
 0xa3f   : > { %v15453_v27 = vpop.f32.mrf.mxu0 }
 0xa41   : > { %v11640_v44 = vpop.f32.mrf.mxu0  ;;  %11719 = vmatpush3.bf16.msra.mxu1 %v5176_v28 }
 0xa42   : > { %11720 = vmatprep.subr.bf16.mxu1 %v5175_v15 }
 0xa43   : > { %v15455_v57 = vpop.f32.mrf.mxu0 }
 0xa45   : > { %v11641_v30 = vpop.f32.mrf.mxu0  ;;  %11721 = vmatpush3.bf16.msra.mxu1 %v5175_v15  ;;  %v5171_v15 = vpack.c.bf16 %v5015_v49, %v5012_v17 }
 0xa46   : > { %v15457_v51 = vpack.c.bf16 %v11641_v30, %v11640_v44  ;;  %11722 = vmatprep.subr.bf16.mxu1 %v5174_v63 }
 0xa47   : > { %v15459_v25 = vpop.f32.mrf.mxu0 }
 0xa49   : > { %v11644_v38 = vpop.f32.mrf.mxu0  ;;  %11723 = vmatpush3.bf16.msra.mxu1 %v5174_v63 }
 0xa4a   : > { %11724 = vmatprep.subr.bf16.mxu1 %v5173_v13 }
 0xa4b   : > { %v15461_v16 = vpop.f32.mrf.mxu0 }
 0xa4d   : > { %v11645_v32 = vpop.f32.mrf.mxu0  ;;  %11725 = vmatpush3.bf16.msra.mxu1 %v5173_v13 }
 0xa4e   : > { %v15463_v28 = vpack.c.bf16 %v11645_v32, %v11644_v38  ;;  %11726 = vmatprep.subr.bf16.mxu1 %v5172_v36 }
 0xa4f   : > { %v15465_v62 = vpop.f32.mrf.mxu0 }
 0xa51   : > { %v11648_v44 = vpop.f32.mrf.mxu0  ;;  %11727 = vmatpush3.bf16.msra.mxu1 %v5172_v36 }
 0xa52   : > { %11728 = vmatprep.subr.bf16.mxu1 %v5171_v15 }
 0xa53   : > { %v15467_v45 = vpop.f32.mrf.mxu0 }
 0xa55   : > { %v11649_v52 = vpop.f32.mrf.mxu0  ;;  %11729 = vmatpush3.bf16.msra.mxu1 %v5171_v15 }
 0xa56   : > { %v15469_v21 = vpack.c.bf16 %v11649_v52, %v11648_v44 }
 0xa57   : > { %v15515_v0 = vpop.f32.mrf.mxu0 }
 0xa58   : > { %11746 = vmatprep.subr.bf16.mxu1 %v15469_v21 }
 0xaa3   : > { %v15472_v10 = vpop.f32.mrf.mxu1 }
 0xaa5   : > { %v15474_v61 = vpop.f32.mrf.mxu1 }
 0xaa6   : > { %5477 = vmax.xlane.f32.xlu0 %v15474_v61 }
 0xaa7   : > { %v15477_v39 = vpop.f32.mrf.mxu1 }
 0xaa9   : > { %v15479_v17 = vpop.f32.mrf.mxu1 }
 0xaaa   : > { %5481 = vmax.xlane.f32.xlu0 %v15472_v10  ;;  %5479 = vmax.xlane.f32.xlu1 %v15479_v17 }
 0xaab   : > { %v15483_v49 = vpop.f32.mrf.mxu1 }
 0xaad   : > { %v15485_v26 = vpop.f32.mrf.mxu1 }
 0xaae   : > { %5483 = vmax.xlane.f32.xlu1 %v15477_v39  ;;  %5485 = vmax.xlane.f32.xlu0 %v15485_v26 }
 0xaaf   : > { %v15489_v63 = vpop.f32.mrf.mxu1 }
 0xab1   : > { %v15491_v30 = vpop.f32.mrf.mxu1 }
 0xab2   : > { %5489 = vmax.xlane.f32.xlu0 %v15483_v49  ;;  %5487 = vmax.xlane.f32.xlu1 %v15491_v30 }
 0xab3   : > { %v15495_v13 = vpop.f32.mrf.mxu1 }
 0xab5   : > { %v15497_v38 = vpop.f32.mrf.mxu1 }
 0xab6   : > { %5491 = vmax.xlane.f32.xlu1 %v15489_v63  ;;  %5493 = vmax.xlane.f32.xlu0 %v15497_v38 }
 0xab7   : > { %v15501_v36 = vpop.f32.mrf.mxu1 }
 0xab9   : > { %v15503_v32 = vpop.f32.mrf.mxu1 }
 0xaba   : > { %5497 = vmax.xlane.f32.xlu0 %v15495_v13  ;;  %5495 = vmax.xlane.f32.xlu1 %v15503_v32 }
 0xabb   : > { %v15507_v15 = vpop.f32.mrf.mxu1 }
 0xabd   : > { %v15509_v44 = vpop.f32.mrf.mxu1 }
 0xabe   : > { %5499 = vmax.xlane.f32.xlu1 %v15501_v36  ;;  %5501 = vmax.xlane.f32.xlu0 %v15509_v44 }
 0xabf   : > { %v15513_v52 = vpop.f32.mrf.mxu1 }
 0xac1   : > { %v15517_v11 = vpop.f32.mrf.mxu1 }
 0xac2   : > { %5505 = vmax.xlane.f32.xlu0 %v15507_v15  ;;  %5503 = vmax.xlane.f32.xlu1 %v15517_v11 }
 0xac3   : > { %v15521_v19 = vpop.f32.mrf.mxu0 }
 0xac5   : > { %v15523_v60 = vpop.f32.mrf.mxu0 }
 0xac6   : > { %5507 = vmax.xlane.f32.xlu1 %v15513_v52  ;;  %5509 = vmax.xlane.f32.xlu0 %v15523_v60 }
 0xac7   : > { %v15527_v6 = vpop.f32.mrf.mxu0 }
 0xac9   : > { %v15529_v2 = vpop.f32.mrf.mxu0 }
 0xaca   : > { %5513 = vmax.xlane.f32.xlu0 %v15521_v19  ;;  %5511 = vmax.xlane.f32.xlu1 %v15529_v2 }
 0xacb   : > { %v15533_v47 = vpop.f32.mrf.mxu0 }
 0xacd   : > { %v15535_v46 = vpop.f32.mrf.mxu0 }
 0xace   : > { %5515 = vmax.xlane.f32.xlu1 %v15527_v6  ;;  %5517 = vmax.xlane.f32.xlu0 %v15535_v46 }
 0xacf   : > { %v15539_v18 = vpop.f32.mrf.mxu0 }
 0xad1   : > { %v15541_v23 = vpop.f32.mrf.mxu0 }
 0xad2   : > { %5521 = vmax.xlane.f32.xlu0 %v15533_v47  ;;  %5519 = vmax.xlane.f32.xlu1 %v15541_v23 }
 0xad3   : > { %v15545_v59 = vpop.f32.mrf.mxu0 }
 0xad5   : > { %v15547_v14 = vpop.f32.mrf.mxu0 }
 0xad6   : > { %5523 = vmax.xlane.f32.xlu1 %v15539_v18  ;;  %5525 = vmax.xlane.f32.xlu0 %v15547_v14 }
 0xad7   : > { %v15551_v9 = vpop.f32.mrf.mxu0 }
 0xad9   : > { %v15553_v48 = vpop.f32.mrf.mxu0 }
 0xada   : > { %5529 = vmax.xlane.f32.xlu0 %v15545_v59  ;;  %5527 = vmax.xlane.f32.xlu1 %v15553_v48 }
 0xadb   : > { %v15557_v7 = vpop.f32.mrf.mxu0 }
 0xadd   : > { %v15559_v4 = vpop.f32.mrf.mxu0 }
 0xade   : > { %5531 = vmax.xlane.f32.xlu1 %v15551_v9  ;;  %5533 = vmax.xlane.f32.xlu0 %v15559_v4 }
 0xadf   : > { %v15563_v3 = vpop.f32.mrf.mxu0 }
 0xae1   : > { %v15565_v12 = vpop.f32.mrf.mxu0 }
 0xae2   : > { %5537 = vmax.xlane.f32.xlu0 %v15557_v7  ;;  %5535 = vmax.xlane.f32.xlu1 %v15565_v12 }
 0xae6   : > { %5539 = vmax.xlane.f32.xlu1 %v15563_v3 }
 0xb2f   : > { %v5478_v40 = vpop.xlane.xlu0 %5477 }
 0xb30   : > { %v5541_v42 = vsub.f32 %v15474_v61, %v5478_v40 }
 0xb32   : > { %v5573_v20 = vmul.f32 1.442695, %v5541_v42 }
 0xb33   : > { %v5482_v37 = vpop.xlane.xlu0 %5481  ;;  %v5480_v1 = vpop.xlane.xlu1 %5479 }
 0xb34   : > { %12701 = vpow2.f32 %v5573_v20  ;;  %v5543_v55 = vsub.f32 %v15472_v10, %v5482_v37  ;;  %v5542_v31 = vsub.f32 %v15479_v17, %v5480_v1 }
 0xb36   : > { %v5577_v8 = vmul.f32 1.442695, %v5543_v55  ;;  %v5575_v34 = vmul.f32 1.442695, %v5542_v31 }
 0xb37   : > { %v5484_v58 = vpop.xlane.xlu1 %5483  ;;  %v5486_v41 = vpop.xlane.xlu0 %5485 }
 0xb38   : > { %12703 = vpow2.f32 %v5577_v8  ;;  %v5544_v35 = vsub.f32 %v15477_v39, %v5484_v58  ;;  %v5545_v50 = vsub.f32 %v15485_v26, %v5486_v41 }
 0xb39   : > { %12705 = vpow2.f32 %v5575_v34 }
 0xb3a   : > { %v5579_v54 = vmul.f32 1.442695, %v5544_v35  ;;  %v5581_v40 = vmul.f32 1.442695, %v5545_v50 }
 0xb3b   : > { %v5490_v42 = vpop.xlane.xlu0 %5489  ;;  %v5488_v61 = vpop.xlane.xlu1 %5487 }
 0xb3c   : > { %12707 = vpow2.f32 %v5579_v54  ;;  %v5547_v20 = vsub.f32 %v15483_v49, %v5490_v42  ;;  %v5546_v37 = vsub.f32 %v15491_v30, %v5488_v61 }
 0xb3d   : > { %12709 = vpow2.f32 %v5581_v40 }
 0xb3e   : > { %v5585_v55 = vmul.f32 1.442695, %v5547_v20  ;;  %v5583_v31 = vmul.f32 1.442695, %v5546_v37 }
 0xb3f   : > { %v5492_v1 = vpop.xlane.xlu1 %5491  ;;  %v5494_v10 = vpop.xlane.xlu0 %5493 }
 0xb40   : > { %12711 = vpow2.f32 %v5585_v55  ;;  %v5548_v58 = vsub.f32 %v15489_v63, %v5492_v1  ;;  %v5549_v41 = vsub.f32 %v15497_v38, %v5494_v10 }
 0xb41   : > { %v15579_v34 = vpop.eup %12701  ;;  %12713 = vpow2.f32 %v5583_v31 }
 0xb42   : > { %v5587_v50 = vmul.f32 1.442695, %v5548_v58  ;;  %v5589_v35 = vmul.f32 1.442695, %v5549_v41  ;;  %5637 = vadd.xlane.f32.xlu0 %v15579_v34 }
 0xb43   : > { %v5498_v54 = vpop.xlane.xlu0 %5497  ;;  %v5496_v8 = vpop.xlane.xlu1 %5495 }
 0xb44   : > { %12715 = vpow2.f32 %v5587_v50  ;;  %v5551_v39 = vsub.f32 %v15495_v13, %v5498_v54  ;;  %v5550_v17 = vsub.f32 %v15503_v32, %v5496_v8 }
 0xb45   : > { %v15584_v49 = vpop.eup %12703  ;;  %12717 = vpow2.f32 %v5589_v35 }
 0xb46   : > { %v15586_v26 = vpop.eup %12705  ;;  %v5593_v63 = vmul.f32 1.442695, %v5551_v39  ;;  %v5591_v30 = vmul.f32 1.442695, %v5550_v17  ;;  %5641 = vadd.xlane.f32.xlu0 %v15584_v49 }
 0xb47   : > { %5639 = vadd.xlane.f32.xlu1 %v15586_v26  ;;  %v5500_v38 = vpop.xlane.xlu1 %5499  ;;  %v5502_v40 = vpop.xlane.xlu0 %5501 }
 0xb48   : > { %12719 = vpow2.f32 %v5593_v63  ;;  %v5552_v42 = vsub.f32 %v15501_v36, %v5500_v38  ;;  %v5553_v13 = vsub.f32 %v15509_v44, %v5502_v40 }
 0xb49   : > { %v15592_v61 = vpop.eup %12707  ;;  %12721 = vpow2.f32 %v5591_v30 }
 0xb4a   : > { %v15594_v32 = vpop.eup %12709  ;;  %v5595_v20 = vmul.f32 1.442695, %v5552_v42  ;;  %v5597_v37 = vmul.f32 1.442695, %v5553_v13 }
 0xb4b   : > { %5645 = vadd.xlane.f32.xlu0 %v15594_v32  ;;  %5643 = vadd.xlane.f32.xlu1 %v15592_v61  ;;  %v5506_v55 = vpop.xlane.xlu0 %5505  ;;  %v5504_v31 = vpop.xlane.xlu1 %5503 }
 0xb4c   : > { %12723 = vpow2.f32 %v5595_v20  ;;  %v5555_v1 = vsub.f32 %v15507_v15, %v5506_v55  ;;  %v5554_v36 = vsub.f32 %v15517_v11, %v5504_v31 }
 0xb4d   : > { %v15600_v10 = vpop.eup %12711  ;;  %12725 = vpow2.f32 %v5597_v37 }
 0xb4e   : > { %v15602_v44 = vpop.eup %12713  ;;  %v5601_v58 = vmul.f32 1.442695, %v5555_v1  ;;  %v5599_v41 = vmul.f32 1.442695, %v5554_v36 }
 0xb4f   : > { %5649 = vadd.xlane.f32.xlu0 %v15600_v10  ;;  %5647 = vadd.xlane.f32.xlu1 %v15602_v44  ;;  %v5508_v50 = vpop.xlane.xlu1 %5507  ;;  %v5510_v35 = vpop.xlane.xlu0 %5509 }
 0xb50   : > { %12727 = vpow2.f32 %v5601_v58  ;;  %v5556_v54 = vsub.f32 %v15513_v52, %v5508_v50  ;;  %v5557_v15 = vsub.f32 %v15523_v60, %v5510_v35 }
 0xb51   : > { %v15608_v8 = vpop.eup %12715  ;;  %12729 = vpow2.f32 %v5599_v41 }
 0xb52   : > { %v15610_v11 = vpop.eup %12717  ;;  %v5603_v39 = vmul.f32 1.442695, %v5556_v54  ;;  %v5605_v17 = vmul.f32 1.442695, %v5557_v15 }
 0xb53   : > { %5653 = vadd.xlane.f32.xlu0 %v15610_v11  ;;  %5651 = vadd.xlane.f32.xlu1 %v15608_v8  ;;  %v5514_v63 = vpop.xlane.xlu0 %5513  ;;  %v5512_v30 = vpop.xlane.xlu1 %5511 }
 0xb54   : > { %12731 = vpow2.f32 %v5603_v39  ;;  %v5559_v38 = vsub.f32 %v15521_v19, %v5514_v63  ;;  %v5558_v52 = vsub.f32 %v15529_v2, %v5512_v30 }
 0xb55   : > { %v15616_v40 = vpop.eup %12719  ;;  %12733 = vpow2.f32 %v5605_v17 }
 0xb56   : > { %v15618_v60 = vpop.eup %12721  ;;  %v5609_v42 = vmul.f32 1.442695, %v5559_v38  ;;  %v5607_v13 = vmul.f32 1.442695, %v5558_v52 }
 0xb57   : > { %5657 = vadd.xlane.f32.xlu0 %v15616_v40  ;;  %5655 = vadd.xlane.f32.xlu1 %v15618_v60  ;;  %v5516_v20 = vpop.xlane.xlu1 %5515  ;;  %v5518_v37 = vpop.xlane.xlu0 %5517 }
 0xb58   : > { %12735 = vpow2.f32 %v5609_v42  ;;  %v5560_v55 = vsub.f32 %v15527_v6, %v5516_v20  ;;  %v5561_v19 = vsub.f32 %v15535_v46, %v5518_v37 }
 0xb59   : > { %v15624_v31 = vpop.eup %12723  ;;  %12737 = vpow2.f32 %v5607_v13 }
 0xb5a   : > { %v15626_v2 = vpop.eup %12725  ;;  %v5611_v1 = vmul.f32 1.442695, %v5560_v55  ;;  %v5613_v36 = vmul.f32 1.442695, %v5561_v19 }
 0xb5b   : > { %5661 = vadd.xlane.f32.xlu0 %v15626_v2  ;;  %5659 = vadd.xlane.f32.xlu1 %v15624_v31  ;;  %v5522_v58 = vpop.xlane.xlu0 %5521  ;;  %v5520_v41 = vpop.xlane.xlu1 %5519 }
 0xb5c   : > { %12739 = vpow2.f32 %v5611_v1  ;;  %v5563_v50 = vsub.f32 %v15533_v47, %v5522_v58  ;;  %v5562_v6 = vsub.f32 %v15541_v23, %v5520_v41 }
 0xb5d   : > { %v15632_v35 = vpop.eup %12727  ;;  %12741 = vpow2.f32 %v5613_v36 }
 0xb5e   : > { %v15634_v46 = vpop.eup %12729  ;;  %v5617_v54 = vmul.f32 1.442695, %v5563_v50  ;;  %v5615_v15 = vmul.f32 1.442695, %v5562_v6 }
 0xb5f   : > { %5665 = vadd.xlane.f32.xlu0 %v15632_v35  ;;  %5663 = vadd.xlane.f32.xlu1 %v15634_v46  ;;  %v5524_v39 = vpop.xlane.xlu1 %5523  ;;  %v5526_v17 = vpop.xlane.xlu0 %5525 }
 0xb60   : > { %12743 = vpow2.f32 %v5617_v54  ;;  %v5564_v63 = vsub.f32 %v15539_v18, %v5524_v39  ;;  %v5565_v47 = vsub.f32 %v15547_v14, %v5526_v17 }
 0xb61   : > { %v15640_v30 = vpop.eup %12731  ;;  %12745 = vpow2.f32 %v5615_v15 }
 0xb62   : > { %v15642_v23 = vpop.eup %12733  ;;  %v5619_v38 = vmul.f32 1.442695, %v5564_v63  ;;  %v5621_v52 = vmul.f32 1.442695, %v5565_v47 }
 0xb63   : > { %5669 = vadd.xlane.f32.xlu0 %v15642_v23  ;;  %5667 = vadd.xlane.f32.xlu1 %v15640_v30  ;;  %v5530_v42 = vpop.xlane.xlu0 %5529  ;;  %v5528_v13 = vpop.xlane.xlu1 %5527 }
 0xb64   : > { %12747 = vpow2.f32 %v5619_v38  ;;  %v5567_v20 = vsub.f32 %v15545_v59, %v5530_v42  ;;  %v5566_v18 = vsub.f32 %v15553_v48, %v5528_v13 }
 0xb65   : > { %v15648_v37 = vpop.eup %12735  ;;  %12749 = vpow2.f32 %v5621_v52 }
 0xb66   : > { %v15650_v14 = vpop.eup %12737  ;;  %v5625_v55 = vmul.f32 1.442695, %v5567_v20  ;;  %v5623_v19 = vmul.f32 1.442695, %v5566_v18 }
 0xb67   : > { %5673 = vadd.xlane.f32.xlu0 %v15648_v37  ;;  %5671 = vadd.xlane.f32.xlu1 %v15650_v14  ;;  %v5532_v1 = vpop.xlane.xlu1 %5531  ;;  %v5534_v36 = vpop.xlane.xlu0 %5533 }
 0xb68   : > { %12751 = vpow2.f32 %v5625_v55  ;;  %v5568_v58 = vsub.f32 %v15551_v9, %v5532_v1  ;;  %v5569_v59 = vsub.f32 %v15559_v4, %v5534_v36 }
 0xb69   : > { %v15656_v41 = vpop.eup %12739  ;;  %12753 = vpow2.f32 %v5623_v19 }
 0xb6a   : > { %v15658_v48 = vpop.eup %12741  ;;  %v5627_v50 = vmul.f32 1.442695, %v5568_v58  ;;  %v5629_v6 = vmul.f32 1.442695, %v5569_v59 }
 0xb6b   : > { %5677 = vadd.xlane.f32.xlu0 %v15658_v48  ;;  %5675 = vadd.xlane.f32.xlu1 %v15656_v41  ;;  %v5538_v54 = vpop.xlane.xlu0 %5537  ;;  %v5536_v15 = vpop.xlane.xlu1 %5535 }
 0xb6c   : > { %12755 = vpow2.f32 %v5627_v50  ;;  %v5571_v39 = vsub.f32 %v15557_v7, %v5538_v54  ;;  %v5570_v9 = vsub.f32 %v15565_v12, %v5536_v15 }
 0xb6d   : > { %v15664_v17 = vpop.eup %12743  ;;  %12757 = vpow2.f32 %v5629_v6 }
 0xb6e   : > { %v15666_v4 = vpop.eup %12745  ;;  %v5633_v63 = vmul.f32 1.442695, %v5571_v39  ;;  %v5631_v47 = vmul.f32 1.442695, %v5570_v9 }
 0xb6f   : > { %5681 = vadd.xlane.f32.xlu0 %v15664_v17  ;;  %5679 = vadd.xlane.f32.xlu1 %v15666_v4  ;;  %v5540_v38 = vpop.xlane.xlu1 %5539 }
 0xb70   : > { %12759 = vpow2.f32 %v5633_v63  ;;  %v5572_v52 = vsub.f32 %v15563_v3, %v5540_v38 }
 0xb71   : > { %v15671_v42 = vpop.eup %12747  ;;  %12761 = vpow2.f32 %v5631_v47 }
 0xb72   : > { %v15673_v7 = vpop.eup %12749  ;;  %v5635_v12 = vmul.f32 1.442695, %v5572_v52 }
 0xb73   : > { %5685 = vadd.xlane.f32.xlu0 %v15673_v7  ;;  %5683 = vadd.xlane.f32.xlu1 %v15671_v42 }
 0xb74   : > { %12763 = vpow2.f32 %v5635_v12 }
 0xb75   : > { %v15677_v13 = vpop.eup %12751 }
 0xb76   : > { %v15679_v20 = vpop.eup %12753 }
 0xb77   : > { %5689 = vadd.xlane.f32.xlu0 %v15677_v13  ;;  %5687 = vadd.xlane.f32.xlu1 %v15679_v20 }
 0xb79   : > { %v15683_v3 = vpop.eup %12755 }
 0xb7a   : > { %v15685_v18 = vpop.eup %12757 }
 0xb7b   : > { %5693 = vadd.xlane.f32.xlu0 %v15685_v18  ;;  %5691 = vadd.xlane.f32.xlu1 %v15683_v3 }
 0xb7d   : > { %v15689_v55 = vpop.eup %12759 }
 0xb7e   : > { %v15691_v19 = vpop.eup %12761 }
 0xb7f   : > { %5697 = vadd.xlane.f32.xlu0 %v15689_v55  ;;  %5695 = vadd.xlane.f32.xlu1 %v15691_v19 }
 0xb81   : > { %v15695_v1 = vpop.eup %12763 }
 0xb83   : > { %5699 = vadd.xlane.f32.xlu1 %v15695_v1 }
 0xbcb   : > { %v5638_v36 = vpop.xlane.xlu0 %5637 }
 0xbcc   : > { %12765 = vrcp.f32 %v5638_v36 }
 0xbcf   : > { %v5642_v58 = vpop.xlane.xlu0 %5641 }
 0xbd0   : > { %v5640_v59 = vpop.xlane.xlu1 %5639 }
 0xbd1   : > { %12767 = vrcp.f32 %v5640_v59 }
 0xbd2   : > { %12769 = vrcp.f32 %v5642_v58 }
 0xbd4   : > { %v5646_v50 = vpop.xlane.xlu0 %5645  ;;  %v5644_v6 = vpop.xlane.xlu1 %5643 }
 0xbd5   : > { %12771 = vrcp.f32 %v5644_v6 }
 0xbd6   : > { %12773 = vrcp.f32 %v5646_v50 }
 0xbd8   : > { %v5650_v54 = vpop.xlane.xlu0 %5649  ;;  %v5648_v15 = vpop.xlane.xlu1 %5647 }
 0xbd9   : > { %12775 = vrcp.f32 %v5648_v15  ;;  %v12766_v39 = vpop.eup %12765 }
 0xbda   : > { %12777 = vrcp.f32 %v5650_v54  ;;  %v5733_v38 = vmul.f32 %v12766_v39, %v15579_v34 }
 0xbdc   : > { %v5654_v9 = vpop.xlane.xlu0 %5653  ;;  %v5652_v63 = vpop.xlane.xlu1 %5651 }
 0xbdd   : > { %12779 = vrcp.f32 %v5652_v63 }
 0xbde   : > { %v12768_v47 = vpop.eup %12767  ;;  %12781 = vrcp.f32 %v5654_v9 }
 0xbdf   : > { %v5734_v52 = vmul.f32 %v12768_v47, %v15586_v26  ;;  %v12770_v58 = vpop.eup %12769  ;;  %v5185_v26 = vpack.c.bf16 %v15515_v0, %v15467_v45 }
 0xbe0   : > { %v5658_v12 = vpop.xlane.xlu0 %5657  ;;  %v5656_v36 = vpop.xlane.xlu1 %5655  ;;  %v5735_v6 = vmul.f32 %v12770_v58, %v15584_v49 }
 0xbe1   : > { %v5765_v59 = vpack.c.bf16 %v5734_v52, %v5733_v38  ;;  %12783 = vrcp.f32 %v5656_v36 }
 0xbe2   : > { %v12772_v50 = vpop.eup %12771  ;;  %12785 = vrcp.f32 %v5658_v12 }
 0xbe3   : > { %11730 = vmatprep.mubr.bf16.mxu1 %v5765_v59  ;;  %v5736_v54 = vmul.f32 %v12772_v50, %v15592_v61  ;;  %v12774_v63 = vpop.eup %12773 }
 0xbe4   : > { %v5662_v15 = vpop.xlane.xlu0 %5661  ;;  %v5660_v43 = vpop.xlane.xlu1 %5659  ;;  %v5737_v38 = vmul.f32 %v12774_v63, %v15594_v32 }
 0xbe5   : > { %12787 = vrcp.f32 %v5660_v43  ;;  %v5766_v34 = vpack.c.bf16 %v5736_v54, %v5735_v6 }
 0xbe6   : > { %v12776_v39 = vpop.eup %12775  ;;  %12789 = vrcp.f32 %v5662_v15 }
 0xbe7   : > { %11731 = vmatmul.mubr.bf16.vlgmr.msra.gmra.mxu1 %v5766_v34  ;;  %v5738_v49 = vmul.f32 %v12776_v39, %v15602_v44  ;;  %v12778_v52 = vpop.eup %12777 }
 0xbe8   : > { %v5666_v9 = vpop.xlane.xlu0 %5665  ;;  %v5664_v47 = vpop.xlane.xlu1 %5663  ;;  %11747 = vmatpush3.bf16.msra.mxu1 %v15469_v21  ;;  %v5739_v0 = vmul.f32 %v12778_v52, %v15600_v10  ;;  %v5183_v21 = vpack.c.bf16 %v15465_v62, %v15461_v16 }
 0xbe9   : > { %11748 = vmatprep.subr.bf16.mxu1 %v5185_v26  ;;  %12791 = vrcp.f32 %v5664_v47  ;;  %v5767_v61 = vpack.c.bf16 %v5738_v49, %v5737_v38 }
 0xbea   : > { %v12780_v43 = vpop.eup %12779  ;;  %12793 = vrcp.f32 %v5666_v9 }
 0xbeb   : > { %11734 = vmatprep.mubr.bf16.mxu1 %v5767_v61  ;;  %v5740_v45 = vmul.f32 %v12780_v43, %v15608_v8  ;;  %v12782_v58 = vpop.eup %12781 }
 0xbec   : > { %v5670_v12 = vpop.xlane.xlu0 %5669  ;;  %v5668_v36 = vpop.xlane.xlu1 %5667  ;;  %11749 = vmatpush3.bf16.msra.mxu1 %v5185_v26  ;;  %v5741_v6 = vmul.f32 %v12782_v58, %v15610_v11  ;;  %v12313_v58 = vld [vmem:[%s13306_s15 + $0xf8] sm:$0xff]  }
 0xbed   : > { %11750 = vmatprep.subr.bf16.mxu1 %v15463_v28  ;;  %12795 = vrcp.f32 %v5668_v36  ;;  %v5768_v32 = vpack.c.bf16 %v5740_v45, %v5739_v0 }
 0xbee   : > { %v12784_v44 = vpop.eup %12783  ;;  %12797 = vrcp.f32 %v5670_v12 }
 0xbef   : > { %11735 = vmatmul.mubr.bf16.gmra.mxu1 %v5768_v32  ;;  %v5742_v10 = vmul.f32 %v12784_v44, %v15618_v60  ;;  %v12786_v54 = vpop.eup %12785 }
 0xbf0   : > { %v5674_v59 = vpop.xlane.xlu0 %5673  ;;  %v5672_v50 = vpop.xlane.xlu1 %5671  ;;  %11751 = vmatpush3.bf16.msra.mxu1 %v15463_v28  ;;  %v5743_v16 = vmul.f32 %v12786_v54, %v15616_v40  ;;  %v5181_v28 = vpack.c.bf16 %v15459_v25, %v15455_v57 }
 0xbf1   : > { %11752 = vmatprep.subr.bf16.mxu1 %v5183_v21  ;;  %12799 = vrcp.f32 %v5672_v50  ;;  %v5769_v8 = vpack.c.bf16 %v5742_v10, %v5741_v6 }
 0xbf2   : > { %v12788_v15 = vpop.eup %12787  ;;  %12801 = vrcp.f32 %v5674_v59 }
 0xbf3   : > { %11738 = vmatprep.mubr.bf16.mxu1 %v5769_v8  ;;  %v5744_v62 = vmul.f32 %v12788_v15, %v15624_v31  ;;  %v12790_v39 = vpop.eup %12789  ;;  %v12315_v8 = vld [vmem:[%s13306_s15 + $0xe8] sm:$0xff]  }
 0xbf4   : > { %v5678_v63 = vpop.xlane.xlu0 %5677  ;;  %v5676_v34 = vpop.xlane.xlu1 %5675  ;;  %11753 = vmatpush3.bf16.msra.mxu1 %v5183_v21  ;;  %v5745_v47 = vmul.f32 %v12790_v39, %v15626_v2 }
 0xbf5   : > { %11754 = vmatprep.subr.bf16.mxu1 %v15457_v51  ;;  %12803 = vrcp.f32 %v5676_v34  ;;  %v5770_v11 = vpack.c.bf16 %v5744_v62, %v5743_v16  ;;  %v12316_v62 = vld [vmem:[%s13306_s15 + $0xe0] sm:$0xff]  }
 0xbf6   : > { %v12792_v60 = vpop.eup %12791  ;;  %12805 = vrcp.f32 %v5678_v63 }
 0xbf7   : > { %11739 = vmatmul.mubr.bf16.gmra.mxu1 %v5770_v11  ;;  %v5746_v40 = vmul.f32 %v12792_v60, %v15634_v46  ;;  %v12794_v38 = vpop.eup %12793  ;;  %v5179_v46 = vpack.c.bf16 %v15453_v27, %v15449_v29 }
 0xbf8   : > { %v5682_v26 = vpop.xlane.xlu0 %5681  ;;  %v5680_v9 = vpop.xlane.xlu1 %5679  ;;  %11755 = vmatpush3.bf16.msra.mxu1 %v15457_v51  ;;  %v5747_v57 = vmul.f32 %v12794_v38, %v15632_v35 }
 0xbf9   : > { %11756 = vmatprep.subr.bf16.mxu1 %v5181_v28  ;;  %12807 = vrcp.f32 %v5680_v9  ;;  %v5771_v31 = vpack.c.bf16 %v5746_v40, %v5745_v47 }
 0xbfa   : > { %v12796_v49 = vpop.eup %12795  ;;  %12809 = vrcp.f32 %v5682_v26  ;;  %v12329_v26 = vld [vmem:[%s13301_s11 + $0x28] sm:$0xff]  }
 0xbfb   : > { %11742 = vmatprep.mubr.bf16.mxu1 %v5771_v31  ;;  %v5748_v25 = vmul.f32 %v12796_v49, %v15640_v30  ;;  %v12798_v43 = vpop.eup %12797  ;;  %11778 = vmatprep.subr.bf16.mxu0 %v12329_v26 }
 0xbfc   : > { %v5686_v52 = vpop.xlane.xlu0 %5685  ;;  %v5684_v61 = vpop.xlane.xlu1 %5683  ;;  %11757 = vmatpush3.bf16.msra.mxu1 %v5181_v28  ;;  %v5749_v0 = vmul.f32 %v12798_v43, %v15642_v23  ;;  %11779 = vmatpush3.bf16.msra.mxu0 %v12329_v26  ;;  %v12335_v26 = vld [vmem:[%s13306_s15 + $0x1d8] sm:$0xff]  }
 0xbfd   : > { %11758 = vmatprep.subr.bf16.mxu1 %v15451_v22  ;;  %12811 = vrcp.f32 %v5684_v61  ;;  %v5772_v2 = vpack.c.bf16 %v5748_v25, %v5747_v57  ;;  %v12319_v57 = vld [vmem:[%s13306_s15 + $0xc8] sm:$0xff]  }
 0xbfe   : > { %v12800_v51 = vpop.eup %12799  ;;  %12813 = vrcp.f32 %v5686_v52 }
 0xbff   : > { %11743 = vmatmul.mubr.bf16.gmra.mxu1 %v5772_v2  ;;  %v5750_v35 = vmul.f32 %v12800_v51, %v15650_v14  ;;  %v12802_v30 = vpop.eup %12801  ;;  %v12320_v51 = vld [vmem:[%s13306_s15 + $0xc0] sm:$0xff]  }
 0xc00   : > { %v5690_v12 = vpop.xlane.xlu0 %5689  ;;  %v5688_v36 = vpop.xlane.xlu1 %5687  ;;  %11759 = vmatpush3.bf16.msra.mxu1 %v15451_v22  ;;  %v5751_v44 = vmul.f32 %v12802_v30, %v15648_v37  ;;  %v12314_v22 = vld [vmem:[%s13306_s15 + $0xf0] sm:$0xff]   ;;  %v17718_v30 = vld [vmem:[#allocation20_spill] sm:$0xff] }
 0xc01   : > { %11760 = vmatprep.subr.bf16.mxu1 %v5179_v46  ;;  %12815 = vrcp.f32 %v5688_v36  ;;  %v5773_v45 = vpack.c.bf16 %v5750_v35, %v5749_v0  ;;  %v12331_v36 = vld [vmem:[%s13306_s15 + $0x1f8] sm:$0xff]   ;;  %v12326_v0 = vld [vmem:[%s13306_s15 + $0x2d0] sm:$0xff]  }
 0xc02   : > { %v12804_v32 = vpop.eup %12803  ;;  %12817 = vrcp.f32 %v5690_v12  ;;  %v12325_v12 = vld [vmem:[%s13306_s15 + $0x2d8] sm:$0xff]   ;;  %v17717_v35 = vld [vmem:[#allocation19_spill] sm:$0xff] }
 0xc03   : > { %v5752_v27 = vmul.f32 %v12804_v32, %v15656_v41  ;;  %11762 = vmatprep.mubr.bf16.mxu1 %v5773_v45  ;;  %v12806_v23 = vpop.eup %12805  ;;  %v12327_v45 = vld [vmem:[%s13306_s15 + $0x2c8] sm:$0xff]   ;;  %v17719_v32 = vld [vmem:[#allocation21_spill] sm:$0xff] }
 0xc04   : > { %v5694_v29 = vpop.xlane.xlu0 %5693  ;;  %v5692_v21 = vpop.xlane.xlu1 %5691  ;;  %11761 = vmatpush3.bf16.msra.mxu1 %v5179_v46  ;;  %v5753_v37 = vmul.f32 %v12806_v23, %v15658_v48  ;;  %v12324_v46 = vld [vmem:[%s13306_s15 + $0x2e0] sm:$0xff]   ;;  %v17724_v23 = vld [vmem:[#allocation10_spill] sm:$0xff] }
 0xc05   : > { %12819 = vrcp.f32 %v5692_v21  ;;  %v5774_v14 = vpack.c.bf16 %v5752_v27, %v5751_v44  ;;  %11814 = vmatprep.subr.bf16.mxu1 %v12313_v58  ;;  %v17720_v44 = vld [vmem:[#allocation6_spill] sm:$0xff]  ;;  %v17721_v27 = vld [vmem:[#allocation7_spill] sm:$0xff]  ;;  %v17723_v21 = vld [vmem:[#allocation9_spill] sm:$0xff] }
 0xc06   : > { %v12808_v59 = vpop.eup %12807  ;;  %12821 = vrcp.f32 %v5694_v29  ;;  %v17722_v29 = vld [vmem:[#allocation8_spill] sm:$0xff] }
 0xc07   : > { %11763 = vmatmul.mubr.bf16.vlgmr.msra.gmra.mxu1 %v5774_v14  ;;  %v5754_v41 = vmul.f32 %v12808_v59, %v15666_v4  ;;  %v12810_v10 = vpop.eup %12809  ;;  %v17725_v14 = vld [vmem:[#allocation11_spill] sm:$0xff]  ;;  %v17727_v59 = vld [vmem:[#allocation13_spill] sm:$0xff] }
 0xc08   : > { %v5698_v50 = vpop.xlane.xlu0 %5697  ;;  %v5696_v6 = vpop.xlane.xlu1 %5695  ;;  %11815 = vmatpush3.bf16.msra.mxu1 %v12313_v58  ;;  %v5755_v34 = vmul.f32 %v12810_v10, %v15664_v17  ;;  %v12328_v58 = vld [vmem:[%s13306_s15 + $0x2c0] sm:$0xff]  }
 0xc09   : > { %12823 = vrcp.f32 %v5696_v6  ;;  %v5775_v54 = vpack.c.bf16 %v5754_v41, %v5753_v37  ;;  %11816 = vmatprep.subr.bf16.mxu1 %v12314_v22 }
 0xc0a   : > { %v12812_v15 = vpop.eup %12811  ;;  %12825 = vrcp.f32 %v5698_v50 }
 0xc0b   : > { %11766 = vmatprep.mubr.bf16.mxu1 %v5775_v54  ;;  %v5756_v16 = vmul.f32 %v12812_v15, %v15671_v42  ;;  %v12814_v48 = vpop.eup %12813  ;;  %v12317_v42 = vld [vmem:[%s13306_s15 + $0xd8] sm:$0xff]   ;;  %v12332_v15 = vld [vmem:[%s13306_s15 + $0x1f0] sm:$0xff]  }
 0xc0c   : > { %v5700_v63 = vpop.xlane.xlu1 %5699  ;;  %11817 = vmatpush3.bf16.msra.mxu1 %v12314_v22  ;;  %v5757_v11 = vmul.f32 %v12814_v48, %v15673_v7  ;;  %v17726_v22 = vld [vmem:[#allocation12_spill] sm:$0xff] }
 0xc0d   : > { %12827 = vrcp.f32 %v5700_v63  ;;  %v5776_v4 = vpack.c.bf16 %v5756_v16, %v5755_v34  ;;  %11818 = vmatprep.subr.bf16.mxu1 %v12315_v8  ;;  %v12333_v16 = vld [vmem:[%s13306_s15 + $0x1e8] sm:$0xff]  }
 0xc0e   : > { %v12816_v39 = vpop.eup %12815 }
 0xc0f   : > { %11767 = vmatmul.mubr.bf16.gmra.mxu1 %v5776_v4  ;;  %v5758_v60 = vmul.f32 %v12816_v39, %v15679_v20  ;;  %v12818_v28 = vpop.eup %12817  ;;  %v12318_v20 = vld [vmem:[%s13306_s15 + $0xd0] sm:$0xff]  }
 0xc10   : > { %11819 = vmatpush3.bf16.msra.mxu1 %v12315_v8  ;;  %v5759_v47 = vmul.f32 %v12818_v28, %v15677_v13 }
 0xc11   : > { %v5777_v17 = vpack.c.bf16 %v5758_v60, %v5757_v11  ;;  %11820 = vmatprep.subr.bf16.mxu1 %v12316_v62  ;;  %v12334_v11 = vld [vmem:[%s13306_s15 + $0x1e0] sm:$0xff]  }
 0xc12   : > { %v12820_v9 = vpop.eup %12819 }
 0xc13   : > { %11770 = vmatprep.mubr.bf16.mxu1 %v5777_v17  ;;  %v5760_v40 = vmul.f32 %v12820_v9, %v15683_v3  ;;  %v12822_v38 = vpop.eup %12821 }
 0xc14   : > { %11821 = vmatpush3.bf16.msra.mxu1 %v12316_v62  ;;  %v5761_v52 = vmul.f32 %v12822_v38, %v15685_v18  ;;  %v12330_v18 = vld [vmem:[%s13301_s11 + $0x20] sm:$0xff]  }
 0xc15   : > { %v5778_v7 = vpack.c.bf16 %v5760_v40, %v5759_v47  ;;  %11822 = vmatprep.subr.bf16.mxu1 %v12317_v42  ;;  %11780 = vmatprep.subr.bf16.mxu0 %v12330_v18  ;;  %v12336_v40 = vld [vmem:[%s13306_s15 + $0x1d0] sm:$0xff]  }
 0xc16   : > { %v12824_v31 = vpop.eup %12823  ;;  %11781 = vmatpush3.bf16.msra.mxu0 %v12330_v18 }
 0xc17   : > { %v12826_v49 = vpop.eup %12825  ;;  %11771 = vmatmul.mubr.bf16.gmra.mxu1 %v5778_v7  ;;  %v5762_v61 = vmul.f32 %v12824_v31, %v15691_v19  ;;  %v12321_v19 = vld [vmem:[%s13306_s15 + $0x2f8] sm:$0xff]   ;;  %11862 = vmatprep.subr.bf16.mxu0 %v12331_v36 }
 0xc18   : > { %11823 = vmatpush3.bf16.msra.mxu1 %v12317_v42  ;;  %v5763_v25 = vmul.f32 %v12826_v49, %v15689_v55  ;;  %v12322_v55 = vld [vmem:[%s13306_s15 + $0x2f0] sm:$0xff]  }
 0xc19   : > { %v5779_v3 = vpack.c.bf16 %v5762_v61, %v5761_v52  ;;  %11824 = vmatprep.subr.bf16.mxu1 %v12318_v20 }
 0xc1a   : > { %v12828_v13 = vpop.eup %12827 }
 0xc1b   : > { %v5764_v43 = vmul.f32 %v12828_v13, %v15695_v1  ;;  %11774 = vmatprep.mubr.bf16.mxu1 %v5779_v3  ;;  %v12323_v1 = vld [vmem:[%s13306_s15 + $0x2e8] sm:$0xff]   ;;  %v12338_v13 = vld [vmem:[%s13306_s15 + $0x1c0] sm:$0xff]  }
 0xc1c   : > { %11825 = vmatpush3.bf16.msra.mxu1 %v12318_v20  ;;  %v12337_v20 = vld [vmem:[%s13306_s15 + $0x1c8] sm:$0xff]  }
 0xc1d   : > { %v5780_v2 = vpack.c.bf16 %v5764_v43, %v5763_v25  ;;  %11826 = vmatprep.subr.bf16.mxu1 %v12319_v57 }
 0xc1f   : > { %11775 = vmatmul.mubr.bf16.gmra.mxu1 %v5780_v2 }
 0xc20   : > { %11827 = vmatpush3.bf16.msra.mxu1 %v12319_v57  ;;  %11830 = vmatprep.mubr.bf16.mxu1 %v17637_v53 }
 0xc21   : > { %11828 = vmatprep.subr.bf16.mxu1 %v12320_v51 }
 0xc24   : > { %11829 = vmatpush3.bf16.msra.mxu1 %v12320_v51 }
 0xc25   : > { %11910 = vmatprep.subr.bf16.mxu1 %v12321_v19 }
 0xc27   : > { %11831 = vmatmul.mubr.bf16.vlgmr.msra.gmra.mxu1 %v17638_v24 }
 0xc28   : > { %11834 = vmatprep.mubr.bf16.mxu1 %v17639_v56  ;;  %11911 = vmatpush3.bf16.msra.mxu1 %v12321_v19 }
 0xc29   : > { %11912 = vmatprep.subr.bf16.mxu1 %v12322_v55 }
 0xc2c   : > { %11913 = vmatpush3.bf16.msra.mxu1 %v12322_v55 }
 0xc2d   : > { %11914 = vmatprep.subr.bf16.mxu1 %v12323_v1 }
 0xc2f   : > { %11835 = vmatmul.mubr.bf16.gmra.mxu1 %v17640_v5 }
 0xc30   : > { %11838 = vmatprep.mubr.bf16.mxu1 %v17641_v33  ;;  %11915 = vmatpush3.bf16.msra.mxu1 %v12323_v1 }
 0xc31   : > { %11916 = vmatprep.subr.bf16.mxu1 %v12324_v46 }
 0xc34   : > { %11917 = vmatpush3.bf16.msra.mxu1 %v12324_v46 }
 0xc35   : > { %11918 = vmatprep.subr.bf16.mxu1 %v12325_v12 }
 0xc37   : > { %11839 = vmatmul.mubr.bf16.gmra.mxu1 %v17717_v35 }
 0xc38   : > { %11842 = vmatprep.mubr.bf16.mxu1 %v17718_v30  ;;  %11919 = vmatpush3.bf16.msra.mxu1 %v12325_v12 }
 0xc39   : > { %11920 = vmatprep.subr.bf16.mxu1 %v12326_v0 }
 0xc3c   : > { %11921 = vmatpush3.bf16.msra.mxu1 %v12326_v0 }
 0xc3d   : > { %11922 = vmatprep.subr.bf16.mxu1 %v12327_v45 }
 0xc3f   : > { %11843 = vmatmul.mubr.bf16.gmra.mxu1 %v17719_v32 }
 0xc40   : > { %11846 = vmatprep.mubr.bf16.mxu1 %v17720_v44  ;;  %11923 = vmatpush3.bf16.msra.mxu1 %v12327_v45 }
 0xc41   : > { %11924 = vmatprep.subr.bf16.mxu1 %v12328_v58 }
 0xc44   : > { %11925 = vmatpush3.bf16.msra.mxu1 %v12328_v58 }
 0xc47   : > { %11847 = vmatmul.mubr.bf16.gmra.mxu1 %v17721_v27 }
 0xc48   : > { %11850 = vmatprep.mubr.bf16.mxu1 %v17722_v29 }
 0xc4f   : > { %11851 = vmatmul.mubr.bf16.gmra.mxu1 %v17723_v21 }
 0xc50   : > { %11854 = vmatprep.mubr.bf16.mxu1 %v17724_v23 }
 0xc57   : > { %11855 = vmatmul.mubr.bf16.gmra.mxu1 %v17725_v14 }
 0xc58   : > { %11858 = vmatprep.mubr.bf16.mxu1 %v17726_v22 }
 0xc5f   : > { %11859 = vmatmul.mubr.bf16.gmra.mxu1 %v17727_v59 }
 0xc60   : > { %11926 = vmatprep.mubr.bf16.mxu1 %v17637_v53 }
 0xc67   : > { %11927 = vmatmul.mubr.bf16.vlgmr.msra.gmra.mxu1 %v17638_v24 }
 0xc68   : > { %11930 = vmatprep.mubr.bf16.mxu1 %v17639_v56 }
 0xc6f   : > { %11931 = vmatmul.mubr.bf16.gmra.mxu1 %v17640_v5 }
 0xc70   : > { %11934 = vmatprep.mubr.bf16.mxu1 %v17641_v33 }
 0xc77   : > { %11935 = vmatmul.mubr.bf16.gmra.mxu1 %v17717_v35 }
 0xc78   : > { %11938 = vmatprep.mubr.bf16.mxu1 %v17718_v30 }
 0xc7f   : > { %11939 = vmatmul.mubr.bf16.gmra.mxu1 %v17719_v32 }
 0xc80   : > { %11942 = vmatprep.mubr.bf16.mxu1 %v17720_v44 }
 0xc87   : > { %11943 = vmatmul.mubr.bf16.gmra.mxu1 %v17721_v27 }
 0xc88   : > { %11946 = vmatprep.mubr.bf16.mxu1 %v17722_v29 }
 0xc8f   : > { %11947 = vmatmul.mubr.bf16.gmra.mxu1 %v17723_v21 }
 0xc90   : > { %11950 = vmatprep.mubr.bf16.mxu1 %v17724_v23 }
 0xc97   : > { %11951 = vmatmul.mubr.bf16.gmra.mxu1 %v17725_v14 }
 0xc98   : > { %11954 = vmatprep.mubr.bf16.mxu1 %v17726_v22 }
 0xc9f   : > { %11955 = vmatmul.mubr.bf16.gmra.mxu1 %v17727_v59 }
 0xca7   : > { %v11732_v50 = vpop.f32.mrf.mxu1 }
 0xca9   : > { %v5815_v6 = vpop.f32.mrf.mxu1 }
 0xcab   : > { %v11733_v37 = vpop.f32.mrf.mxu1 }
 0xcac   : > { %v5976_v54 = vpack.c.bf16 %v11733_v37, %v11732_v50 }
 0xcad   : > { %v5818_v41 = vpop.f32.mrf.mxu1 }
 0xcae   : > { %v5975_v10 = vpack.c.bf16 %v5818_v41, %v5815_v6 }
 0xcaf   : > { %v11736_v8 = vpop.f32.mrf.mxu1 }
 0xcb0   : > { %11782 = vmatprep.mubr.msk.bf16.mxu0 %vm1674_vm0, %v5975_v10 }
 0xcb1   : > { %v5831_v63 = vpop.f32.mrf.mxu1  ;;  %11783 = vmatmul.mubr.msk.bf16.vlgmr.msra.gmra.mxu0 %vm1674_vm0, %v5976_v54 }
 0xcb2   : > { %11863 = vmatpush3.bf16.msra.mxu0 %v12331_v36 }
 0xcb3   : > { %v11737_v34 = vpop.f32.mrf.mxu1  ;;  %11864 = vmatprep.subr.bf16.mxu0 %v12332_v15 }
 0xcb4   : > { %v5978_v62 = vpack.c.bf16 %v11737_v34, %v11736_v8 }
 0xcb5   : > { %v5834_v48 = vpop.f32.mrf.mxu1 }
 0xcb6   : > { %v5977_v4 = vpack.c.bf16 %v5834_v48, %v5831_v63  ;;  %11865 = vmatpush3.bf16.msra.mxu0 %v12332_v15 }
 0xcb7   : > { %v11740_v39 = vpop.f32.mrf.mxu1  ;;  %11866 = vmatprep.subr.bf16.mxu0 %v12333_v16 }
 0xcb8   : > { %11786 = vmatprep.mubr.msk.bf16.mxu0 %vm1674_vm0, %v5977_v4 }
 0xcb9   : > { %v5847_v60 = vpop.f32.mrf.mxu1  ;;  %11787 = vmatmul.mubr.msk.bf16.gmra.mxu0 %vm1674_vm0, %v5978_v62 }
 0xcba   : > { %11867 = vmatpush3.bf16.msra.mxu0 %v12333_v16  ;;  %v17794_v16 = vld [vmem:[#allocation57_spill] sm:$0xff] }
 0xcbb   : > { %v11741_v28 = vpop.f32.mrf.mxu1  ;;  %11868 = vmatprep.subr.bf16.mxu0 %v12334_v11 }
 0xcbc   : > { %v5980_v9 = vpack.c.bf16 %v11741_v28, %v11740_v39 }
 0xcbd   : > { %v5850_v17 = vpop.f32.mrf.mxu1 }
 0xcbe   : > { %v5979_v42 = vpack.c.bf16 %v5850_v17, %v5847_v60  ;;  %11869 = vmatpush3.bf16.msra.mxu0 %v12334_v11  ;;  %v17791_v11 = vld [vmem:[#allocation30_spill] sm:$0xff] }
 0xcbf   : > { %v11744_v47 = vpop.f32.mrf.mxu1  ;;  %11870 = vmatprep.subr.bf16.mxu0 %v12335_v26 }
 0xcc0   : > { %11790 = vmatprep.mubr.msk.bf16.mxu0 %vm1674_vm0, %v5979_v42 }
 0xcc1   : > { %v5863_v38 = vpop.f32.mrf.mxu1  ;;  %11791 = vmatmul.mubr.msk.bf16.gmra.mxu0 %vm1674_vm0, %v5980_v9 }
 0xcc2   : > { %11871 = vmatpush3.bf16.msra.mxu0 %v12335_v26 }
 0xcc3   : > { %v11745_v7 = vpop.f32.mrf.mxu1  ;;  %11872 = vmatprep.subr.bf16.mxu0 %v12336_v40 }
 0xcc4   : > { %v5982_v52 = vpack.c.bf16 %v11745_v7, %v11744_v47 }
 0xcc5   : > { %v5866_v31 = vpop.f32.mrf.mxu1 }
 0xcc6   : > { %v5981_v49 = vpack.c.bf16 %v5866_v31, %v5863_v38  ;;  %11873 = vmatpush3.bf16.msra.mxu0 %v12336_v40 }
 0xcc7   : > { %v11764_v61 = vpop.f32.mrf.mxu1  ;;  %11874 = vmatprep.subr.bf16.mxu0 %v12337_v20 }
 0xcc8   : > { %11794 = vmatprep.mubr.msk.bf16.mxu0 %vm1674_vm0, %v5981_v49 }
 0xcc9   : > { %v5912_v3 = vpop.f32.mrf.mxu1  ;;  %11795 = vmatmul.mubr.msk.bf16.gmra.mxu0 %vm1674_vm0, %v5982_v52 }
 0xcca   : > { %11875 = vmatpush3.bf16.msra.mxu0 %v12337_v20 }
 0xccb   : > { %v11765_v57 = vpop.f32.mrf.mxu1  ;;  %11876 = vmatprep.subr.bf16.mxu0 %v12338_v13 }
 0xccc   : > { %v5984_v2 = vpack.c.bf16 %v11765_v57, %v11764_v61 }
 0xccd   : > { %v5915_v25 = vpop.f32.mrf.mxu1 }
 0xcce   : > { %v5983_v43 = vpack.c.bf16 %v5915_v25, %v5912_v3  ;;  %11877 = vmatpush3.bf16.msra.mxu0 %v12338_v13 }
 0xccf   : > { %v11768_v51 = vpop.f32.mrf.mxu1 }
 0xcd0   : > { %11798 = vmatprep.mubr.msk.bf16.mxu0 %vm1674_vm0, %v5983_v43  ;;  %v17738_v43 = vld [vmem:[#allocation39_spill] sm:$0xff] }
 0xcd1   : > { %v5928_v18 = vpop.f32.mrf.mxu1  ;;  %11799 = vmatmul.mubr.msk.bf16.gmra.mxu0 %vm1674_vm0, %v5984_v2  ;;  %v17739_v2 = vld [vmem:[#allocation64_spill] sm:$0xff] }
 0xcd3   : > { %v11769_v19 = vpop.f32.mrf.mxu1 }
 0xcd4   : > { %v5986_v46 = vpack.c.bf16 %v11769_v19, %v11768_v51  ;;  %v4338_v51 = vadd.f32 %v17739_v2, %v17738_v43  ;;  %v17740_v19 = vld [vmem:[#allocation38_spill] sm:$0xff] }
 0xcd5   : > { %v5931_v55 = vpop.f32.mrf.mxu1 }
 0xcd6   : > { %v5985_v1 = vpack.c.bf16 %v5931_v55, %v5928_v18  ;;  %v17741_v55 = vld [vmem:[#allocation66_spill] sm:$0xff] }
 0xcd7   : > { %v11772_v12 = vpop.f32.mrf.mxu1 }
 0xcd8   : > { %11802 = vmatprep.mubr.msk.bf16.mxu0 %vm1674_vm0, %v5985_v1  ;;  %v4330_v1 = vadd.f32 %v17741_v55, %v17740_v19  ;;  %v17759_v19 = vld [vmem:[#allocation60_spill] sm:$0xff] }
 0xcd9   : > { %v5944_v36 = vpop.f32.mrf.mxu1  ;;  %11803 = vmatmul.mubr.msk.bf16.gmra.mxu0 %vm1674_vm0, %v5986_v46  ;;  %v17743_v46 = vld [vmem:[#allocation45_spill] sm:$0xff] }
 0xcdb   : > { %v11773_v0 = vpop.f32.mrf.mxu1 }
 0xcdc   : > { %v5988_v50 = vpack.c.bf16 %v11773_v0, %v11772_v12  ;;  %v17744_v12 = vld [vmem:[#allocation24_spill] sm:$0xff] }
 0xcdd   : > { %v5947_v45 = vpop.f32.mrf.mxu1 }
 0xcde   : > { %v5987_v58 = vpack.c.bf16 %v5947_v45, %v5944_v36  ;;  %v4341_v36 = vadd.f32 %v17744_v12, %v17743_v46  ;;  %v17761_v46 = vld [vmem:[#allocation62_spill] sm:$0xff] }
 0xcdf   : > { %v11776_v6 = vpop.f32.mrf.mxu1 }
 0xce0   : > { %11806 = vmatprep.mubr.msk.bf16.mxu0 %vm1674_vm0, %v5987_v58 }
 0xce1   : > { %v5960_v37 = vpop.f32.mrf.mxu1  ;;  %11807 = vmatmul.mubr.msk.bf16.gmra.mxu0 %vm1674_vm0, %v5988_v50  ;;  %v17748_v50 = vld [vmem:[#allocation42_spill] sm:$0xff] }
 0xce3   : > { %v11777_v41 = vpop.f32.mrf.mxu1 }
 0xce4   : > { %v5990_v8 = vpack.c.bf16 %v11777_v41, %v11776_v6  ;;  %v17749_v6 = vld [vmem:[#allocation27_spill] sm:$0xff] }
 0xce5   : > { %v5963_v10 = vpop.f32.mrf.mxu1 }
 0xce6   : > { %v5989_v54 = vpack.c.bf16 %v5963_v10, %v5960_v37  ;;  %v4354_v37 = vadd.f32 %v17749_v6, %v17748_v50  ;;  %v17750_v10 = vld [vmem:[#allocation40_spill] sm:$0xff]  ;;  %v17763_v50 = vld [vmem:[#allocation50_spill] sm:$0xff]  ;;  %v17764_v6 = vld [vmem:[#allocation31_spill] sm:$0xff] }
 0xce7   : > { %v15817_v15 = vpop.f32.mrf.mxu1 }
 0xce8   : > { %11810 = vmatprep.mubr.msk.bf16.mxu0 %vm1674_vm0, %v5989_v54  ;;  %v17751_v54 = vld [vmem:[#allocation23_spill] sm:$0xff] }
 0xce9   : > { %11811 = vmatmul.mubr.msk.bf16.gmra.mxu0 %vm1674_vm0, %v5990_v8  ;;  %v6382_v63 = vpop.f32.mrf.mxu1  ;;  %v4346_v8 = vadd.f32 %v17751_v54, %v17750_v10 }
 0xcea   : > { %11878 = vmatprep.mubr.bf16.mxu0 %v17637_v53 }
 0xceb   : > { %v15822_v34 = vpop.f32.mrf.mxu1 }
 0xced   : > { %v6385_v48 = vpop.f32.mrf.mxu1 }
 0xcef   : > { %v15826_v4 = vpop.f32.mrf.mxu1 }
 0xcf1   : > { %v15828_v62 = vpop.f32.mrf.mxu1  ;;  %11879 = vmatmul.mubr.bf16.vlgmr.msra.gmra.mxu0 %v17638_v24  ;;  %v17790_v24 = vld [vmem:[#allocation78_spill] sm:$0xff] }
 0xcf2   : > { %11882 = vmatprep.mubr.bf16.mxu0 %v17639_v56 }
 0xcf3   : > { %v15832_v39 = vpop.f32.mrf.mxu1 }
 0xcf5   : > { %v15836_v53 = vpop.f32.mrf.mxu1 }
 0xcf7   : > { %v15838_v60 = vpop.f32.mrf.mxu1 }
 0xcf9   : > { %v15840_v28 = vpop.f32.mrf.mxu1  ;;  %11883 = vmatmul.mubr.bf16.gmra.mxu0 %v17640_v5  ;;  %v17789_v5 = vld [vmem:[#allocation32_spill] sm:$0xff] }
 0xcfa   : > { %11886 = vmatprep.mubr.bf16.mxu0 %v17641_v33 }
 0xcfb   : > { %v15844_v26 = vpop.f32.mrf.mxu1 }
 0xcfd   : > { %v15848_v56 = vpop.f32.mrf.mxu1 }
 0xcff   : > { %v15850_v17 = vpop.f32.mrf.mxu1 }
 0xd01   : > { %v15852_v42 = vpop.f32.mrf.mxu1  ;;  %11887 = vmatmul.mubr.bf16.gmra.mxu0 %v17717_v35  ;;  %v17784_v35 = vld [vmem:[#allocation35_spill] sm:$0xff] }
 0xd02   : > { %11890 = vmatprep.mubr.bf16.mxu0 %v17718_v30 }
 0xd03   : > { %v15856_v9 = vpop.f32.mrf.mxu1 }
 0xd05   : > { %v15860_v33 = vpop.f32.mrf.mxu1 }
 0xd07   : > { %v15862_v47 = vpop.f32.mrf.mxu1 }
 0xd08   : > { %17728 = vst [vmem:[#allocation81_spill] sm:$0xff] %v15862_v47 }
 0xd09   : > { %v6446_v40 = vpop.f32.mrf.mxu1  ;;  %11891 = vmatmul.mubr.bf16.gmra.mxu0 %v17719_v32 }
 0xd0a   : > { %11894 = vmatprep.mubr.bf16.mxu0 %v17720_v44  ;;  %v17781_v44 = vld [vmem:[#allocation58_spill] sm:$0xff] }
 0xd0b   : > { %v15866_v38 = vpop.f32.mrf.mxu1 }
 0xd0d   : > { %v6449_v30 = vpop.f32.mrf.mxu1 }
 0xd0e   : > { %v6935_v7 = vpack.c.bf16 %v6449_v30, %v6446_v40  ;;  %v17753_v40 = vld [vmem:[#allocation49_spill] sm:$0xff] }
 0xd0f   : > { %v15870_v20 = vpop.f32.mrf.mxu1  ;;  %v17754_v30 = vld [vmem:[#allocation65_spill] sm:$0xff] }
 0xd10   : > { %17729 = vst [vmem:[#allocation90_spill] sm:$0xff] %v15870_v20  ;;  %12006 = vmatprep.mubr.msk.bf16.mxu1 %vm1674_vm0, %v6935_v7  ;;  %v4357_v7 = vadd.f32 %v17754_v30, %v17753_v40  ;;  %v17769_v40 = vld [vmem:[#allocation28_spill] sm:$0xff] }
 0xd11   : > { %v15873_v31 = vpop.f32.mrf.mxu1  ;;  %11895 = vmatmul.mubr.bf16.gmra.mxu0 %v17721_v27  ;;  %v17780_v27 = vld [vmem:[#allocation69_spill] sm:$0xff] }
 0xd12   : > { %11898 = vmatprep.mubr.bf16.mxu0 %v17722_v29 }
 0xd13   : > { %v15877_v32 = vpop.f32.mrf.mxu1 }
 0xd14   : > { %17730 = vst [vmem:[#allocation92_spill] sm:$0xff] %v15877_v32 }
 0xd15   : > { %v15881_v49 = vpop.f32.mrf.mxu1 }
 0xd17   : > { %v15883_v52 = vpop.f32.mrf.mxu1 }
 0xd18   : > { %17731 = vst [vmem:[#allocation87_spill] sm:$0xff] %v15883_v52 }
 0xd19   : > { %v15885_v61 = vpop.f32.mrf.mxu1  ;;  %11899 = vmatmul.mubr.bf16.gmra.mxu0 %v17723_v21  ;;  %v17779_v21 = vld [vmem:[#allocation56_spill] sm:$0xff] }
 0xd1a   : > { %17732 = vst [vmem:[#allocation85_spill] sm:$0xff] %v15885_v61  ;;  %11902 = vmatprep.mubr.bf16.mxu0 %v17724_v23  ;;  %v6927_v23 = vpack.c.bf16 %v6385_v48, %v6382_v63 }
 0xd1b   : > { %v15889_v13 = vpop.f32.mrf.mxu1 }
 0xd1c   : > { %17733 = vst [vmem:[#allocation91_spill] sm:$0xff] %v15889_v13 }
 0xd1d   : > { %v15893_v29 = vpop.f32.mrf.mxu1 }
 0xd1e   : > { %17734 = vst [vmem:[#allocation89_spill] sm:$0xff] %v15893_v29 }
 0xd1f   : > { %v15895_v3 = vpop.f32.mrf.mxu1 }
 0xd20   : > { %17735 = vst [vmem:[#allocation14_spill] sm:$0xff] %v15895_v3 }
 0xd21   : > { %v15897_v57 = vpop.f32.mrf.mxu1  ;;  %11903 = vmatmul.mubr.bf16.gmra.mxu0 %v17725_v14 }
 0xd22   : > { %17736 = vst [vmem:[#allocation15_spill] sm:$0xff] %v15897_v57  ;;  %11906 = vmatprep.mubr.bf16.mxu0 %v17726_v22 }
 0xd23   : > { %v15901_v25 = vpop.f32.mrf.mxu1 }
 0xd24   : > { %17737 = vst [vmem:[#allocation16_spill] sm:$0xff] %v15901_v25 }
 0xd29   : > { %11907 = vmatmul.mubr.bf16.gmra.mxu0 %v17727_v59 }
 0xd2a   : > { %11974 = vmatprep.mubr.msk.bf16.mxu0 %vm1674_vm0, %v6927_v23 }
 0xd71   : > { %v11784_v18 = vpop.f32.mrf.mxu0 }
 0xd72   : > { %v15911_v14 = vadd.f32 %v11784_v18, %v4338_v51  ;;  %v17758_v18 = vld [vmem:[#allocation46_spill] sm:$0xff] }
 0xd73   : > { %v6085_v22 = vpop.f32.mrf.mxu0  ;;  %v4370_v55 = vadd.f32 %v17759_v19, %v17758_v18  ;;  %v17771_v18 = vld [vmem:[#allocation25_spill] sm:$0xff] }
 0xd74   : > { %17742 = vst [vmem:[#allocation17_spill] sm:$0xff] %v15911_v14  ;;  %v15915_v0 = vadd.f32 %v6085_v22, %v4330_v1  ;;  %v17760_v22 = vld [vmem:[#allocation44_spill] sm:$0xff] }
 0xd75   : > { %v11785_v45 = vpop.f32.mrf.mxu0  ;;  %v4362_v12 = vadd.f32 %v17761_v46, %v17760_v22  ;;  %v17773_v22 = vld [vmem:[#allocation72_spill] sm:$0xff]  ;;  %v17774_v46 = vld [vmem:[#allocation61_spill] sm:$0xff] }
 0xd76   : > { %17745 = vst [vmem:[#allocation18_spill] sm:$0xff] %v15915_v0  ;;  %v15917_v58 = vadd.f32 %v11785_v45, %v4341_v36 }
 0xd77   : > { %v15919_v59 = vpop.f32.mrf.mxu0 }
 0xd78   : > { %17746 = vst [vmem:[#allocation19_spill] sm:$0xff] %v15917_v58  ;;  %17747 = vst [vmem:[#allocation20_spill] sm:$0xff] %v15919_v59 }
 0xd79   : > { %v11788_v41 = vpop.f32.mrf.mxu0 }
 0xd7a   : > { %v15925_v63 = vadd.f32 %v11788_v41, %v4354_v37  ;;  %v4373_v37 = vadd.f32 %v17764_v6, %v17763_v50  ;;  %v4389_v50 = vadd.f32 %v17774_v46, %v17773_v22 }
 0xd7b   : > { %v6101_v48 = vpop.f32.mrf.mxu0 }
 0xd7c   : > { %17752 = vst [vmem:[#allocation21_spill] sm:$0xff] %v15925_v63  ;;  %v15929_v23 = vadd.f32 %v6101_v48, %v4346_v8  ;;  %v17768_v48 = vld [vmem:[#allocation75_spill] sm:$0xff] }
 0xd7d   : > { %v11789_v43 = vpop.f32.mrf.mxu0  ;;  %v4386_v30 = vadd.f32 %v17769_v40, %v17768_v48 }
 0xd7e   : > { %17755 = vst [vmem:[#allocation6_spill] sm:$0xff] %v15929_v23  ;;  %v15931_v2 = vadd.f32 %v11789_v43, %v4357_v7  ;;  %v17770_v43 = vld [vmem:[#allocation74_spill] sm:$0xff] }
 0xd7f   : > { %v15933_v51 = vpop.f32.mrf.mxu0  ;;  %v4378_v19 = vadd.f32 %v17771_v18, %v17770_v43  ;;  %v4394_v43 = vadd.f32 %v17781_v44, %v17780_v27  ;;  %v17783_v18 = vld [vmem:[#allocation68_spill] sm:$0xff]  ;;  %v4410_v44 = vadd.f32 %v17791_v11, %v17790_v24 }
 0xd80   : > { %17756 = vst [vmem:[#allocation7_spill] sm:$0xff] %v15931_v2  ;;  %17757 = vst [vmem:[#allocation8_spill] sm:$0xff] %v15933_v51  ;;  %v4405_v22 = vadd.f32 %v17784_v35, %v17783_v18 }
 0xd81   : > { %v11792_v1 = vpop.f32.mrf.mxu0 }
 0xd82   : > { %v15939_v36 = vadd.f32 %v11792_v1, %v4370_v55 }
 0xd83   : > { %v6117_v45 = vpop.f32.mrf.mxu0 }
 0xd84   : > { %17762 = vst [vmem:[#allocation9_spill] sm:$0xff] %v15939_v36  ;;  %v15943_v41 = vadd.f32 %v6117_v45, %v4362_v12 }
 0xd85   : > { %v11793_v10 = vpop.f32.mrf.mxu0 }
 0xd86   : > { %17765 = vst [vmem:[#allocation10_spill] sm:$0xff] %v15943_v41  ;;  %v15945_v54 = vadd.f32 %v11793_v10, %v4373_v37  ;;  %v17778_v10 = vld [vmem:[#allocation73_spill] sm:$0xff] }
 0xd87   : > { %v15947_v8 = vpop.f32.mrf.mxu0  ;;  %v4402_v48 = vadd.f32 %v17779_v21, %v17778_v10 }
 0xd88   : > { %17766 = vst [vmem:[#allocation11_spill] sm:$0xff] %v15945_v54  ;;  %17767 = vst [vmem:[#allocation12_spill] sm:$0xff] %v15947_v8 }
 0xd89   : > { %v11796_v7 = vpop.f32.mrf.mxu0 }
 0xd8a   : > { %v15953_v55 = vadd.f32 %v11796_v7, %v4386_v30 }
 0xd8b   : > { %v6133_v1 = vpop.f32.mrf.mxu0 }
 0xd8c   : > { %17772 = vst [vmem:[#allocation13_spill] sm:$0xff] %v15953_v55  ;;  %v15957_v12 = vadd.f32 %v6133_v1, %v4378_v19 }
 0xd8d   : > { %v11797_v45 = vpop.f32.mrf.mxu0 }
 0xd8e   : > { %17775 = vst [vmem:[#allocation39_spill] sm:$0xff] %v15957_v12  ;;  %v15959_v6 = vadd.f32 %v11797_v45, %v4389_v50  ;;  %v17788_v45 = vld [vmem:[#allocation22_spill] sm:$0xff] }
 0xd8f   : > { %v15961_v37 = vpop.f32.mrf.mxu0  ;;  %v4418_v21 = vadd.f32 %v17789_v5, %v17788_v45 }
 0xd90   : > { %17776 = vst [vmem:[#allocation64_spill] sm:$0xff] %v15959_v6  ;;  %17777 = vst [vmem:[#allocation38_spill] sm:$0xff] %v15961_v37 }
 0xd91   : > { %v11800_v40 = vpop.f32.mrf.mxu0 }
 0xd92   : > { %v15967_v30 = vadd.f32 %v11800_v40, %v4402_v48  ;;  %v17793_v40 = vld [vmem:[#allocation80_spill] sm:$0xff] }
 0xd93   : > { %v6149_v7 = vpop.f32.mrf.mxu0  ;;  %v4421_v35 = vadd.f32 %v17794_v16, %v17793_v40 }
 0xd94   : > { %17782 = vst [vmem:[#allocation66_spill] sm:$0xff] %v15967_v30  ;;  %v15971_v19 = vadd.f32 %v6149_v7, %v4394_v43 }
 0xd95   : > { %v11801_v1 = vpop.f32.mrf.mxu0 }
 0xd96   : > { %17785 = vst [vmem:[#allocation45_spill] sm:$0xff] %v15971_v19  ;;  %v15973_v46 = vadd.f32 %v11801_v1, %v4405_v22  ;;  %v17798_v1 = vld [vmem:[#allocation29_spill] sm:$0xff]  ;;  %v17801_v19 = vld [vmem:[#allocation54_spill] sm:$0xff] }
 0xd97   : > { %v15975_v50 = vpop.f32.mrf.mxu0 }
 0xd98   : > { %17786 = vst [vmem:[#allocation24_spill] sm:$0xff] %v15973_v46  ;;  %17787 = vst [vmem:[#allocation42_spill] sm:$0xff] %v15975_v50  ;;  %v17799_v46 = vld [vmem:[#allocation52_spill] sm:$0xff]  ;;  %v17800_v50 = vld [vmem:[#allocation82_spill] sm:$0xff] }
 0xd99   : > { %v11804_v10 = vpop.f32.mrf.mxu0  ;;  %v4434_v5 = vadd.f32 %v17799_v46, %v17798_v1  ;;  %v4426_v11 = vadd.f32 %v17801_v19, %v17800_v50  ;;  %v16007_v1 = vpop.f32.mrf.mxu1  ;;  %v17811_v19 = vld [vmem:[#allocation86_spill] sm:$0xff]  ;;  %v17812_v50 = vld [vmem:[#allocation55_spill] sm:$0xff] }
 0xd9a   : > { %v15981_v27 = vadd.f32 %v11804_v10, %v4418_v21  ;;  %v17803_v10 = vld [vmem:[#allocation84_spill] sm:$0xff]  ;;  %17810 = vst [vmem:[#allocation62_spill] sm:$0xff] %v16007_v1 }
 0xd9b   : > { %v6165_v48 = vpop.f32.mrf.mxu0 }
 0xd9c   : > { %17792 = vst [vmem:[#allocation27_spill] sm:$0xff] %v15981_v27  ;;  %v15985_v43 = vadd.f32 %v6165_v48, %v4410_v44  ;;  %v17804_v27 = vld [vmem:[#allocation36_spill] sm:$0xff] }
 0xd9d   : > { %v11805_v7 = vpop.f32.mrf.mxu0  ;;  %v4437_v16 = vadd.f32 %v17804_v27, %v17803_v10  ;;  %v17814_v27 = vld [vmem:[#allocation88_spill] sm:$0xff] }
 0xd9e   : > { %17795 = vst [vmem:[#allocation40_spill] sm:$0xff] %v15985_v43  ;;  %v15987_v18 = vadd.f32 %v11805_v7, %v4421_v35  ;;  %v17808_v7 = vld [vmem:[#allocation77_spill] sm:$0xff] }
 0xd9f   : > { %v15989_v22 = vpop.f32.mrf.mxu0 }
 0xda0   : > { %17796 = vst [vmem:[#allocation23_spill] sm:$0xff] %v15987_v18  ;;  %17797 = vst [vmem:[#allocation49_spill] sm:$0xff] %v15989_v22  ;;  %v17809_v18 = vld [vmem:[#allocation53_spill] sm:$0xff] }
 0xda1   : > { %v11808_v45 = vpop.f32.mrf.mxu0  ;;  %v4450_v46 = vadd.f32 %v17809_v18, %v17808_v7 }
 0xda2   : > { %v15995_v24 = vadd.f32 %v11808_v45, %v4434_v5  ;;  %v4442_v5 = vadd.f32 %v17812_v50, %v17811_v19 }
 0xda3   : > { %v6181_v21 = vpop.f32.mrf.mxu0 }
 0xda4   : > { %17802 = vst [vmem:[#allocation65_spill] sm:$0xff] %v15995_v24  ;;  %v15999_v44 = vadd.f32 %v6181_v21, %v4426_v11  ;;  %v17815_v11 = vld [vmem:[#allocation41_spill] sm:$0xff] }
 0xda5   : > { %v11809_v48 = vpop.f32.mrf.mxu0  ;;  %v4453_v21 = vadd.f32 %v17815_v11, %v17814_v27 }
 0xda6   : > { %17805 = vst [vmem:[#allocation46_spill] sm:$0xff] %v15999_v44  ;;  %v16001_v40 = vadd.f32 %v11809_v48, %v4437_v16  ;;  %v16017_v16 = vpop.f32.mrf.mxu1 }
 0xda7   : > { %v16003_v35 = vpop.f32.mrf.mxu0 }
 0xda8   : > { %17806 = vst [vmem:[#allocation60_spill] sm:$0xff] %v16001_v40  ;;  %17807 = vst [vmem:[#allocation44_spill] sm:$0xff] %v16003_v35  ;;  %v16023_v7 = vpop.f32.mrf.mxu1 }
 0xda9   : > { %v11812_v22 = vpop.f32.mrf.mxu0 }
 0xdaa   : > { %v16011_v45 = vadd.f32 %v11812_v22, %v4450_v46  ;;  %v16027_v22 = vpop.f32.mrf.mxu1 }
 0xdab   : > { %v6197_v24 = vpop.f32.mrf.mxu0 }
 0xdac   : > { %17813 = vst [vmem:[#allocation50_spill] sm:$0xff] %v16011_v45  ;;  %v16015_v10 = vadd.f32 %v6197_v24, %v4442_v5  ;;  %v16033_v24 = vpop.f32.mrf.mxu1 }
 0xdad   : > { %v11813_v48 = vpop.f32.mrf.mxu0 }
 0xdae   : > { %17816 = vst [vmem:[#allocation31_spill] sm:$0xff] %v16015_v10  ;;  %v16019_v40 = vadd.f32 %v11813_v48, %v4453_v21  ;;  %v16035_v11 = vpop.f32.mrf.mxu1 }
 0xdaf   : > { %v16021_v18 = vpop.f32.mrf.mxu0 }
 0xdb0   : > { %17817 = vst [vmem:[#allocation75_spill] sm:$0xff] %v16019_v40  ;;  %17818 = vst [vmem:[#allocation28_spill] sm:$0xff] %v16021_v18  ;;  %v16037_v40 = vpop.f32.mrf.mxu1 }
 0xdb1   : > { %v11880_v35 = vpop.f32.mrf.mxu0 }
 0xdb2   : > { %v16039_v10 = vpop.f32.mrf.mxu1 }
 0xdb3   : > { %v16025_v44 = vpop.f32.mrf.mxu0 }
 0xdb5   : > { %v11881_v46 = vpop.f32.mrf.mxu0 }
 0xdb6   : > { %v16029_v19 = vpack.c.bf16 %v11881_v46, %v11880_v35  ;;  %v16041_v35 = vpop.f32.mrf.mxu1 }
 0xdb7   : > { %v16031_v50 = vpop.f32.mrf.mxu0 }
 0xdb8   : > { %v16043_v37 = vpop.f32.mrf.mxu1 }
 0xdb9   : > { %v11884_v5 = vpop.f32.mrf.mxu0 }
 0xdba   : > { %v16047_v36 = vpop.f32.mrf.mxu1 }
 0xdbb   : > { %v6607_v27 = vpop.f32.mrf.mxu0 }
 0xdbc   : > { %v16052_v23 = vpop.f32.mrf.mxu1 }
 0xdbd   : > { %v11885_v21 = vpop.f32.mrf.mxu0 }
 0xdbe   : > { %v6946_v52 = vpack.c.bf16 %v11885_v21, %v11884_v5 }
 0xdbf   : > { %v6610_v48 = vpop.f32.mrf.mxu0 }
 0xdc0   : > { %v7009_v32 = vsel %vm1674_vm0, %v6946_v52, 0  ;;  %v6945_v29 = vpack.c.bf16 %v6610_v48, %v6607_v27 }
 0xdc1   : > { %v11888_v45 = vpop.f32.mrf.mxu0 }
 0xdc2   : > { %v7006_v21 = vsel %vm1674_vm0, %v6945_v29, 0 }
 0xdc3   : > { %v6623_v18 = vpop.f32.mrf.mxu0 }
 0xdc5   : > { %v11889_v43 = vpop.f32.mrf.mxu0 }
 0xdc7   : > { %v6626_v30 = vpop.f32.mrf.mxu0 }
 0xdc9   : > { %v11892_v46 = vpop.f32.mrf.mxu0 }
 0xdcb   : > { %v6639_v6 = vpop.f32.mrf.mxu0 }
 0xdcd   : > { %v11893_v12 = vpop.f32.mrf.mxu0 }
 0xdce   : > { %v6950_v55 = vpack.c.bf16 %v11893_v12, %v11892_v46  ;;  %v6948_v46 = vpack.c.bf16 %v11889_v43, %v11888_v45 }
 0xdcf   : > { %v6642_v54 = vpop.f32.mrf.mxu0 }
 0xdd0   : > { %v7021_v8 = vsel %vm1674_vm0, %v6950_v55, 0  ;;  %v6949_v41 = vpack.c.bf16 %v6642_v54, %v6639_v6  ;;  %12186 = vmatprep.subr.msk.bf16.mxu0 %vm1674_vm0, %v6950_v55  ;;  %v16059_v6 = vpop.f32.mrf.mxu1 }
 0xdd1   : > { %v11896_v2 = vpop.f32.mrf.mxu0  ;;  %11959 = vmatpush3.bf16.xpose.msra.mxu0 %v7021_v8 }
 0xdd2   : > { %12187 = vmatprep.subr.msk.bf16.mxu0 %vm1674_vm0, %v6949_v41  ;;  %v7018_v54 = vsel %vm1674_vm0, %v6949_v41, 0  ;;  %v11940_v59 = vpop.f32.mrf.mxu1 }
 0xdd3   : > { %v16050_v51 = vpop.f32.mrf.mxu0 }
 0xdd4   : > { %v16067_v3 = vpop.f32.mrf.mxu1 }
 0xdd5   : > { %v11897_v63 = vpop.f32.mrf.mxu0 }
 0xdd6   : > { %v16054_v58 = vpack.c.bf16 %v11897_v63, %v11896_v2  ;;  %v7015_v63 = vsel %vm1674_vm0, %v6948_v46, 0  ;;  %v6947_v2 = vpack.c.bf16 %v6626_v30, %v6623_v18  ;;  %v11941_v45 = vpop.f32.mrf.mxu1 }
 0xdd7   : > { %v16056_v12 = vpop.f32.mrf.mxu0 }
 0xdd8   : > { %v7012_v13 = vsel %vm1674_vm0, %v6947_v2, 0  ;;  %v6851_v1 = vpop.f32.mrf.mxu1 }
 0xdd9   : > { %v11900_v55 = vpop.f32.mrf.mxu0  ;;  %11961 = vmatpush3.bf16.xpose.msra.mxu0 %v7018_v54 }
 0xdda   : > { %12188 = vmatprep.subr.msk.bf16.mxu0 %vm1674_vm0, %v6948_v46  ;;  %v16072_v30 = vpop.f32.mrf.mxu1 }
 0xddb   : > { %v16062_v8 = vpop.f32.mrf.mxu0 }
 0xddc   : > { %v16077_v5 = vpop.f32.mrf.mxu1 }
 0xddd   : > { %v11901_v0 = vpop.f32.mrf.mxu0 }
 0xddf   : > { %v16064_v14 = vpop.f32.mrf.mxu0 }
 0xde1   : > { %v11904_v43 = vpop.f32.mrf.mxu0  ;;  %11963 = vmatpush3.bf16.xpose.msra.mxu0 %v7015_v63 }
 0xde2   : > { %12189 = vmatprep.subr.msk.bf16.mxu0 %vm1674_vm0, %v6947_v2 }
 0xde3   : > { %v6687_v41 = vpop.f32.mrf.mxu0 }
 0xde5   : > { %v11905_v54 = vpop.f32.mrf.mxu0 }
 0xde7   : > { %v6690_v25 = vpop.f32.mrf.mxu0 }
 0xde9   : > { %v11908_v57 = vpop.f32.mrf.mxu0  ;;  %11965 = vmatpush3.bf16.xpose.msra.mxu0 %v7012_v13  ;;  %v16081_v13 = vpop.f32.mrf.mxu1 }
 0xdea   : > { %12190 = vmatprep.subr.msk.bf16.mxu0 %vm1674_vm0, %v6946_v52 }
 0xdeb   : > { %v6703_v46 = vpop.f32.mrf.mxu0  ;;  %v16085_v27 = vpop.f32.mrf.mxu1 }
 0xded   : > { %v11909_v18 = vpop.f32.mrf.mxu0 }
 0xdee   : > { %v6958_v20 = vpack.c.bf16 %v11909_v18, %v11908_v57  ;;  %v6956_v57 = vpack.c.bf16 %v11905_v54, %v11904_v43  ;;  %v6966_v43 = vpack.c.bf16 %v11941_v45, %v11940_v59  ;;  %v6954_v54 = vpack.c.bf16 %v11901_v0, %v11900_v55  ;;  %v17831_v18 = vld [vmem:[#allocation62_spill] sm:$0xff] }
 0xdef   : > { %v6706_v63 = vpop.f32.mrf.mxu0  ;;  %v6953_v0 = vpack.c.bf16 %v16064_v14, %v16062_v8  ;;  %v17819_v59 = vpack.c.bf16 %v15822_v34, %v15817_v15  ;;  %v6965_v55 = vpack.c.bf16 %v6851_v1, %v16067_v3  ;;  %v6931_v15 = vpack.c.bf16 %v15848_v56, %v15840_v28  ;;  %v17828_v8 = vld [vmem:[#allocation90_spill] sm:$0xff] }
 0xdf0   : > { %v7166_v61 = vsel %vm1674_vm0, %v6958_v20, 0  ;;  %v6957_v47 = vpack.c.bf16 %v6706_v63, %v6703_v46  ;;  %12194 = vmatprep.subr.msk.bf16.mxu1 %vm1674_vm0, %v6958_v20  ;;  %v16090_v20 = vpop.f32.mrf.mxu1  ;;  %v17820_v34 = vpack.c.bf16 %v15832_v39, %v15826_v4  ;;  %v6963_v14 = vpack.c.bf16 %v16059_v6, %v16047_v36  ;;  %v17827_v6 = vld [vmem:[#allocation92_spill] sm:$0xff] }
 0xdf1   : > { %11967 = vmatpush3.bf16.xpose.msra.mxu0 %v7009_v32  ;;  %11991 = vmatpush3.bf16.xpose.msra.mxu1 %v7166_v61  ;;  %v7003_v32 = vsel %vm1674_vm0, %v16029_v19, 0  ;;  %v6943_v61 = vpack.c.bf16 %v16031_v50, %v16025_v44  ;;  %v6929_v50 = vpack.c.bf16 %v15836_v53, %v15828_v62  ;;  %v6964_v62 = vpack.c.bf16 %v16052_v23, %v16043_v37 }
 0xdf2   : > { %12191 = vmatprep.subr.msk.bf16.mxu0 %vm1674_vm0, %v6945_v29  ;;  %12195 = vmatprep.subr.msk.bf16.mxu1 %vm1674_vm0, %v6957_v47  ;;  %v7163_v52 = vsel %vm1674_vm0, %v6957_v47, 0  ;;  %v7160_v29 = vsel %vm1674_vm0, %v6956_v57, 0  ;;  %v6955_v47 = vpack.c.bf16 %v6690_v25, %v6687_v41  ;;  %v16097_v48 = vpop.f32.mrf.mxu1  ;;  %v7154_v41 = vsel %vm1674_vm0, %v6954_v54, 0 }
 0xdf3   : > { %v7151_v3 = vsel %vm1674_vm0, %v6953_v0, 0  ;;  %v6962_v28 = vpack.c.bf16 %v16039_v10, %v16035_v11  ;;  %v6933_v39 = vpack.c.bf16 %v15860_v33, %v15852_v42  ;;  %v7148_v56 = vsel %vm1674_vm0, %v16054_v58, 0  ;;  %v17823_v11 = vld [vmem:[#allocation81_spill] sm:$0xff] }
 0xdf4   : > { %v16101_v2 = vpop.f32.mrf.mxu1  ;;  %v7157_v46 = vsel %vm1674_vm0, %v6955_v47, 0  ;;  %v6951_v23 = vpack.c.bf16 %v16056_v12, %v16050_v51  ;;  %v17821_v36 = vpack.c.bf16 %v15844_v26, %v15838_v60  ;;  %v6961_v37 = vpack.c.bf16 %v16041_v35, %v16037_v40 }
 0xdf5   : > { %v6960_v42 = vpack.c.bf16 %v16027_v22, %v16017_v16  ;;  %v17822_v26 = vpack.c.bf16 %v15856_v9, %v15850_v17  ;;  %v6959_v51 = vpack.c.bf16 %v16033_v24, %v16023_v7  ;;  %v6937_v16 = vpack.c.bf16 %v15881_v49, %v15873_v31  ;;  %v17825_v7 = vld [vmem:[#allocation85_spill] sm:$0xff]  ;;  %v17830_v49 = vld [vmem:[#allocation15_spill] sm:$0xff] }
 0xdf6   : > { %v16105_v44 = vpop.f32.mrf.mxu1  ;;  %v17824_v17 = vpack.c.bf16 %v15866_v38, %v17823_v11  ;;  %v17826_v24 = vld [vmem:[#allocation89_spill] sm:$0xff]  ;;  %v17829_v31 = vpack.c.bf16 %v17827_v6, %v17828_v8  ;;  %v6970_v38 = vpack.c.bf16 %v16101_v2, %v16090_v20  ;;  %v6941_v63 = vpack.c.bf16 %v17831_v18, %v17830_v49 }
 0xdf7   : > { %v6939_v35 = vpack.c.bf16 %v17826_v24, %v17825_v7  ;;  %v6968_v20 = vpack.c.bf16 %v16081_v13, %v16072_v30 }
 0xdf8   : > { %v11952_v25 = vpop.f32.mrf.mxu1 }
 0xdf9   : > { %11969 = vmatpush3.bf16.xpose.msra.mxu0 %v7006_v21  ;;  %11993 = vmatpush3.bf16.xpose.msra.mxu1 %v7163_v52  ;;  %v17832_v21 = vld [vmem:[#allocation91_spill] sm:$0xff] }
 0xdfa   : > { %12192 = vmatprep.subr.msk.bf16.mxu0 %vm1674_vm0, %v16029_v19  ;;  %12196 = vmatprep.subr.msk.bf16.mxu1 %vm1674_vm0, %v6956_v57  ;;  %v7000_v19 = vsel %vm1674_vm0, %v6943_v61, 0  ;;  %v6896_v45 = vpop.f32.mrf.mxu1  ;;  %v6969_v57 = vpack.c.bf16 %v16105_v44, %v16097_v48  ;;  %v17833_v52 = vld [vmem:[#allocation87_spill] sm:$0xff] }
 0xdfc   : > { %v11953_v53 = vpop.f32.mrf.mxu1 }
 0xdfd   : > { %v6972_v9 = vpack.c.bf16 %v11953_v53, %v11952_v25 }
 0xdfe   : > { %v6899_v1 = vpop.f32.mrf.mxu1 }
 0xdff   : > { %v6971_v12 = vpack.c.bf16 %v6899_v1, %v6896_v45 }
 0xe00   : > { %v11956_v4 = vpop.f32.mrf.mxu1 }
 0xe01   : > { %11971 = vmatpush3.bf16.xpose.msra.mxu0 %v7003_v32  ;;  %11995 = vmatpush3.bf16.xpose.msra.mxu1 %v7160_v29  ;;  %v17834_v32 = vpack.c.bf16 %v17832_v21, %v17833_v52  ;;  %v17835_v29 = vld [vmem:[#allocation16_spill] sm:$0xff] }
 0xe02   : > { %12193 = vmatprep.subr.msk.bf16.mxu0 %vm1674_vm0, %v6943_v61  ;;  %12197 = vmatprep.subr.msk.bf16.mxu1 %vm1674_vm0, %v6955_v47  ;;  %v6912_v10 = vpop.f32.mrf.mxu1  ;;  %v6967_v61 = vpack.c.bf16 %v16085_v27, %v16077_v5  ;;  %v17836_v47 = vld [vmem:[#allocation14_spill] sm:$0xff] }
 0xe03   : > { %v17837_v48 = vpack.c.bf16 %v17835_v29, %v17836_v47 }
 0xe04   : > { %v11957_v33 = vpop.f32.mrf.mxu1 }
 0xe05   : > { %v6974_v60 = vpack.c.bf16 %v11957_v33, %v11956_v4 }
 0xe06   : > { %v6915_v40 = vpop.f32.mrf.mxu1 }
 0xe07   : > { %v6973_v22 = vpack.c.bf16 %v6915_v40, %v6912_v10 }
 0xe09   : > { %11973 = vmatpush3.bf16.xpose.msra.mxu0 %v7000_v19  ;;  %11997 = vmatpush3.bf16.xpose.msra.mxu1 %v7157_v46 }
 0xe0a   : > { %12198 = vmatprep.subr.msk.bf16.mxu1 %vm1674_vm0, %v6954_v54  ;;  %12022 = vmatprep.subr.bf16.mxu0 %v6966_v43 }
 0xe10   : > { %11975 = vmatmul.mubr.msk.bf16.vlgmr.msra.gmra.mxu0 %vm1674_vm0, %v17819_v59 }
 0xe11   : > { %11978 = vmatprep.mubr.msk.bf16.mxu0 %vm1674_vm0, %v6929_v50  ;;  %11999 = vmatpush3.bf16.xpose.msra.mxu1 %v7154_v41 }
 0xe12   : > { %12023 = vmatpush3.bf16.msra.mxu0 %v6966_v43  ;;  %12199 = vmatprep.subr.msk.bf16.mxu1 %vm1674_vm0, %v6953_v0 }
 0xe13   : > { %12024 = vmatprep.subr.bf16.mxu0 %v6965_v55 }
 0xe16   : > { %12025 = vmatpush3.bf16.msra.mxu0 %v6965_v55 }
 0xe17   : > { %12026 = vmatprep.subr.bf16.mxu0 %v6964_v62 }
 0xe18   : > { %11979 = vmatmul.mubr.msk.bf16.gmra.mxu0 %vm1674_vm0, %v17820_v34 }
 0xe19   : > { %11982 = vmatprep.mubr.msk.bf16.mxu0 %vm1674_vm0, %v6931_v15  ;;  %12001 = vmatpush3.bf16.xpose.msra.mxu1 %v7151_v3 }
 0xe1a   : > { %12027 = vmatpush3.bf16.msra.mxu0 %v6964_v62  ;;  %12200 = vmatprep.subr.msk.bf16.mxu1 %vm1674_vm0, %v16054_v58  ;;  %v7145_v58 = vsel %vm1674_vm0, %v6951_v23, 0 }
 0xe1b   : > { %12028 = vmatprep.subr.bf16.mxu0 %v6963_v14 }
 0xe1e   : > { %12029 = vmatpush3.bf16.msra.mxu0 %v6963_v14 }
 0xe1f   : > { %12030 = vmatprep.subr.bf16.mxu0 %v6962_v28 }
 0xe20   : > { %11983 = vmatmul.mubr.msk.bf16.gmra.mxu0 %vm1674_vm0, %v17821_v36 }
 0xe21   : > { %11986 = vmatprep.mubr.msk.bf16.mxu0 %vm1674_vm0, %v6933_v39  ;;  %12003 = vmatpush3.bf16.xpose.msra.mxu1 %v7148_v56 }
 0xe22   : > { %12031 = vmatpush3.bf16.msra.mxu0 %v6962_v28  ;;  %12201 = vmatprep.subr.msk.bf16.mxu1 %vm1674_vm0, %v6951_v23 }
 0xe23   : > { %12032 = vmatprep.subr.bf16.mxu0 %v6961_v37 }
 0xe26   : > { %12033 = vmatpush3.bf16.msra.mxu0 %v6961_v37 }
 0xe27   : > { %12034 = vmatprep.subr.bf16.mxu0 %v6960_v42 }
 0xe28   : > { %11987 = vmatmul.mubr.msk.bf16.gmra.mxu0 %vm1674_vm0, %v17822_v26 }
 0xe29   : > { %12005 = vmatpush3.bf16.xpose.msra.mxu1 %v7145_v58 }
 0xe2a   : > { %12035 = vmatpush3.bf16.msra.mxu0 %v6960_v42  ;;  %12054 = vmatprep.subr.bf16.mxu1 %v6974_v60 }
 0xe2b   : > { %12036 = vmatprep.subr.bf16.mxu0 %v6959_v51 }
 0xe2e   : > { %12037 = vmatpush3.bf16.msra.mxu0 %v6959_v51 }
 0xe30   : > { %12007 = vmatmul.mubr.msk.bf16.vlgmr.msra.gmra.mxu1 %vm1674_vm0, %v17824_v17 }
 0xe31   : > { %12010 = vmatprep.mubr.msk.bf16.mxu1 %vm1674_vm0, %v6937_v16  ;;  %12055 = vmatpush3.bf16.msra.mxu1 %v6974_v60 }
 0xe32   : > { %12056 = vmatprep.subr.bf16.mxu1 %v6973_v22 }
 0xe35   : > { %12057 = vmatpush3.bf16.msra.mxu1 %v6973_v22 }
 0xe36   : > { %12058 = vmatprep.subr.bf16.mxu1 %v6972_v9 }
 0xe38   : > { %12011 = vmatmul.mubr.msk.bf16.gmra.mxu1 %vm1674_vm0, %v17829_v31 }
 0xe39   : > { %12014 = vmatprep.mubr.msk.bf16.mxu1 %vm1674_vm0, %v6939_v35  ;;  %12059 = vmatpush3.bf16.msra.mxu1 %v6972_v9 }
 0xe3a   : > { %12060 = vmatprep.subr.bf16.mxu1 %v6971_v12 }
 0xe3d   : > { %12061 = vmatpush3.bf16.msra.mxu1 %v6971_v12 }
 0xe3e   : > { %12062 = vmatprep.subr.bf16.mxu1 %v6970_v38 }
 0xe40   : > { %12015 = vmatmul.mubr.msk.bf16.gmra.mxu1 %vm1674_vm0, %v17834_v32 }
 0xe41   : > { %12018 = vmatprep.mubr.msk.bf16.mxu1 %vm1674_vm0, %v6941_v63  ;;  %12063 = vmatpush3.bf16.msra.mxu1 %v6970_v38 }
 0xe42   : > { %12064 = vmatprep.subr.bf16.mxu1 %v6969_v57 }
 0xe45   : > { %12065 = vmatpush3.bf16.msra.mxu1 %v6969_v57 }
 0xe46   : > { %12066 = vmatprep.subr.bf16.mxu1 %v6968_v20 }
 0xe48   : > { %12019 = vmatmul.mubr.msk.bf16.gmra.mxu1 %vm1674_vm0, %v17837_v48 }
 0xe49   : > { %12067 = vmatpush3.bf16.msra.mxu1 %v6968_v20 }
 0xe4a   : > { %12068 = vmatprep.subr.bf16.mxu1 %v6967_v61 }
 0xe4d   : > { %12069 = vmatpush3.bf16.msra.mxu1 %v6967_v61 }
 0xed0   : > { %v11976_v2 = vpop.f32.mrf.mxu0 }
 0xed2   : > { %v7057_v43 = vpop.f32.mrf.mxu0 }
 0xed3   : > { %7265 = vmax.xlane.f32.xlu0 %v7057_v43 }
 0xed4   : > { %v11977_v54 = vpop.f32.mrf.mxu0 }
 0xed6   : > { %v7060_v19 = vpop.f32.mrf.mxu0 }
 0xed7   : > { %7269 = vmax.xlane.f32.xlu0 %v11976_v2  ;;  %7267 = vmax.xlane.f32.xlu1 %v7060_v19 }
 0xed8   : > { %v16192_v30 = vpop.f32.mrf.mxu0 }
 0xeda   : > { %v7073_v13 = vpop.f32.mrf.mxu0 }
 0xedb   : > { %7271 = vmax.xlane.f32.xlu1 %v11977_v54  ;;  %7273 = vmax.xlane.f32.xlu0 %v7073_v13 }
 0xedc   : > { %v16194_v5 = vpop.f32.mrf.mxu0 }
 0xede   : > { %v16196_v27 = vpop.f32.mrf.mxu0 }
 0xedf   : > { %7277 = vmax.xlane.f32.xlu0 %v16192_v30  ;;  %7275 = vmax.xlane.f32.xlu1 %v16196_v27 }
 0xee0   : > { %v16200_v46 = vpop.f32.mrf.mxu0 }
 0xee2   : > { %v16202_v44 = vpop.f32.mrf.mxu0 }
 0xee3   : > { %7279 = vmax.xlane.f32.xlu1 %v16194_v5  ;;  %7281 = vmax.xlane.f32.xlu0 %v16202_v44 }
 0xee4   : > { %v16206_v25 = vpop.f32.mrf.mxu0 }
 0xee6   : > { %v16208_v50 = vpop.f32.mrf.mxu0 }
 0xee7   : > { %7285 = vmax.xlane.f32.xlu0 %v16200_v46  ;;  %7283 = vmax.xlane.f32.xlu1 %v16208_v50 }
 0xee8   : > { %v16212_v41 = vpop.f32.mrf.mxu0 }
 0xeea   : > { %v16214_v0 = vpop.f32.mrf.mxu0 }
 0xeeb   : > { %7287 = vmax.xlane.f32.xlu1 %v16206_v25  ;;  %7289 = vmax.xlane.f32.xlu0 %v16214_v0 }
 0xeec   : > { %v16218_v59 = vpop.f32.mrf.mxu0 }
 0xeee   : > { %v16220_v55 = vpop.f32.mrf.mxu0 }
 0xeef   : > { %7293 = vmax.xlane.f32.xlu0 %v16212_v41  ;;  %7291 = vmax.xlane.f32.xlu1 %v16220_v55 }
 0xef0   : > { %v16224_v45 = vpop.f32.mrf.mxu1 }
 0xef2   : > { %v16226_v62 = vpop.f32.mrf.mxu1 }
 0xef3   : > { %7295 = vmax.xlane.f32.xlu1 %v16218_v59  ;;  %7297 = vmax.xlane.f32.xlu0 %v16226_v62 }
 0xef4   : > { %v16230_v53 = vpop.f32.mrf.mxu1 }
 0xef6   : > { %v16232_v15 = vpop.f32.mrf.mxu1 }
 0xef7   : > { %7301 = vmax.xlane.f32.xlu0 %v16224_v45  ;;  %7299 = vmax.xlane.f32.xlu1 %v16232_v15 }
 0xef8   : > { %v16236_v34 = vpop.f32.mrf.mxu1 }
 0xefa   : > { %v16238_v3 = vpop.f32.mrf.mxu1 }
 0xefb   : > { %7303 = vmax.xlane.f32.xlu1 %v16230_v53  ;;  %7305 = vmax.xlane.f32.xlu0 %v16238_v3 }
 0xefc   : > { %v16242_v14 = vpop.f32.mrf.mxu1 }
 0xefe   : > { %v16244_v1 = vpop.f32.mrf.mxu1 }
 0xeff   : > { %7309 = vmax.xlane.f32.xlu0 %v16236_v34  ;;  %7307 = vmax.xlane.f32.xlu1 %v16244_v1 }
 0xf00   : > { %v16253_v35 = vpop.f32.mrf.mxu1 }
 0xf02   : > { %v16261_v63 = vpop.f32.mrf.mxu1 }
 0xf03   : > { %7311 = vmax.xlane.f32.xlu1 %v16242_v14 }
 0xf04   : > { %v16267_v20 = vpop.f32.mrf.mxu1 }
 0xf06   : > { %v16272_v48 = vpop.f32.mrf.mxu1 }
 0xf5c   : > { %v7266_v28 = vpop.xlane.xlu0 %7265 }
 0xf5d   : > { %v7329_v4 = vsub.f32 %v7057_v43, %v7266_v28 }
 0xf5f   : > { %v7361_v39 = vmul.f32 1.442695, %v7329_v4 }
 0xf60   : > { %v7270_v56 = vpop.xlane.xlu0 %7269  ;;  %v7268_v23 = vpop.xlane.xlu1 %7267 }
 0xf61   : > { %12829 = vpow2.f32 %v7361_v39  ;;  %v7331_v36 = vsub.f32 %v11976_v2, %v7270_v56  ;;  %v7330_v37 = vsub.f32 %v7060_v19, %v7268_v23 }
 0xf63   : > { %v7365_v10 = vmul.f32 1.442695, %v7331_v36  ;;  %v7363_v42 = vmul.f32 1.442695, %v7330_v37 }
 0xf64   : > { %v7272_v33 = vpop.xlane.xlu1 %7271  ;;  %v7274_v60 = vpop.xlane.xlu0 %7273 }
 0xf65   : > { %12831 = vpow2.f32 %v7365_v10  ;;  %v7332_v26 = vsub.f32 %v11977_v54, %v7272_v33  ;;  %v7333_v16 = vsub.f32 %v7073_v13, %v7274_v60 }
 0xf66   : > { %12833 = vpow2.f32 %v7363_v42 }
 0xf67   : > { %v7367_v58 = vmul.f32 1.442695, %v7332_v26  ;;  %v7369_v17 = vmul.f32 1.442695, %v7333_v16 }
 0xf68   : > { %v7278_v51 = vpop.xlane.xlu0 %7277  ;;  %v7276_v40 = vpop.xlane.xlu1 %7275 }
 0xf69   : > { %12835 = vpow2.f32 %v7367_v58  ;;  %v7335_v9 = vsub.f32 %v16192_v30, %v7278_v51  ;;  %v7334_v24 = vsub.f32 %v16196_v27, %v7276_v40  ;;  %v16280_v30 = vpop.f32.mrf.mxu1 }
 0xf6a   : > { %12837 = vpow2.f32 %v7369_v17 }
 0xf6b   : > { %v7373_v8 = vmul.f32 1.442695, %v7335_v9  ;;  %v7371_v38 = vmul.f32 1.442695, %v7334_v24 }
 0xf6c   : > { %v7280_v22 = vpop.xlane.xlu1 %7279  ;;  %v7282_v11 = vpop.xlane.xlu0 %7281 }
 0xf6d   : > { %v7336_v49 = vsub.f32 %v16194_v5, %v7280_v22  ;;  %12839 = vpow2.f32 %v7373_v8  ;;  %v7337_v61 = vsub.f32 %v16202_v44, %v7282_v11 }
 0xf6e   : > { %v16250_v7 = vpop.eup %12829  ;;  %12841 = vpow2.f32 %v7371_v38 }
 0xf6f   : > { %7425 = vadd.xlane.f32.xlu0 %v16250_v7  ;;  %v7375_v32 = vmul.f32 1.442695, %v7336_v49  ;;  %v7377_v2 = vmul.f32 1.442695, %v7337_v61 }
 0xf70   : > { %v7286_v12 = vpop.xlane.xlu0 %7285  ;;  %v7284_v6 = vpop.xlane.xlu1 %7283 }
 0xf71   : > { %12843 = vpow2.f32 %v7375_v32  ;;  %v7339_v43 = vsub.f32 %v16200_v46, %v7286_v12  ;;  %v7338_v19 = vsub.f32 %v16208_v50, %v7284_v6  ;;  %v16290_v50 = vpop.f32.mrf.mxu1 }
 0xf72   : > { %v16256_v31 = vpop.eup %12831  ;;  %12845 = vpow2.f32 %v7377_v2 }
 0xf73   : > { %v16259_v18 = vpop.eup %12833  ;;  %7429 = vadd.xlane.f32.xlu0 %v16256_v31  ;;  %v7381_v27 = vmul.f32 1.442695, %v7339_v43  ;;  %v7379_v4 = vmul.f32 1.442695, %v7338_v19 }
 0xf74   : > { %7427 = vadd.xlane.f32.xlu1 %v16259_v18  ;;  %v7288_v57 = vpop.xlane.xlu1 %7287  ;;  %v7290_v21 = vpop.xlane.xlu0 %7289 }
 0xf75   : > { %v7341_v44 = vsub.f32 %v16214_v0, %v7290_v21  ;;  %v7340_v46 = vsub.f32 %v16206_v25, %v7288_v57  ;;  %12847 = vpow2.f32 %v7381_v27  ;;  %v16298_v25 = vpop.f32.mrf.mxu1 }
 0xf76   : > { %v16265_v52 = vpop.eup %12835  ;;  %12849 = vpow2.f32 %v7379_v4 }
 0xf77   : > { %7313 = vmax.xlane.f32.xlu0 %v16261_v63  ;;  %v16277_v54 = vpop.eup %12837  ;;  %v7385_v56 = vmul.f32 1.442695, %v7341_v44  ;;  %v7383_v0 = vmul.f32 1.442695, %v7340_v46  ;;  %v16304_v58 = vpop.f32.mrf.mxu1 }
 0xf78   : > { %7431 = vadd.xlane.f32.xlu1 %v16265_v52  ;;  %v7292_v29 = vpop.xlane.xlu1 %7291  ;;  %v7294_v47 = vpop.xlane.xlu0 %7293 }
 0xf79   : > { %v7343_v23 = vsub.f32 %v16212_v41, %v7294_v47  ;;  %v7342_v37 = vsub.f32 %v16220_v55, %v7292_v29  ;;  %12851 = vpow2.f32 %v7385_v56 }
 0xf7a   : > { %v16285_v28 = vpop.eup %12839  ;;  %12853 = vpow2.f32 %v7383_v0 }
 0xf7b   : > { %7317 = vmax.xlane.f32.xlu0 %v16253_v35  ;;  %v16288_v39 = vpop.eup %12841  ;;  %v7389_v33 = vmul.f32 1.442695, %v7343_v23  ;;  %v7387_v41 = vmul.f32 1.442695, %v7342_v37 }
 0xf7c   : > { %7315 = vmax.xlane.f32.xlu1 %v16272_v48  ;;  %v7296_v13 = vpop.xlane.xlu1 %7295  ;;  %v7298_v5 = vpop.xlane.xlu0 %7297 }
 0xf7d   : > { %v7345_v60 = vsub.f32 %v16226_v62, %v7298_v5  ;;  %v7344_v26 = vsub.f32 %v16218_v59, %v7296_v13  ;;  %12855 = vpow2.f32 %v7389_v33 }
 0xf7e   : > { %v16296_v42 = vpop.eup %12843  ;;  %12857 = vpow2.f32 %v7387_v41 }
 0xf7f   : > { %7433 = vadd.xlane.f32.xlu0 %v16277_v54  ;;  %v7393_v40 = vmul.f32 1.442695, %v7345_v60  ;;  %v16309_v22 = vpop.eup %12845  ;;  %v7391_v62 = vmul.f32 1.442695, %v7344_v26 }
 0xf80   : > { %7319 = vmax.xlane.f32.xlu1 %v16267_v20  ;;  %v7300_v36 = vpop.xlane.xlu1 %7299  ;;  %v7302_v10 = vpop.xlane.xlu0 %7301 }
 0xf81   : > { %v7347_v16 = vsub.f32 %v16224_v45, %v7302_v10  ;;  %v7346_v11 = vsub.f32 %v16232_v15, %v7300_v36  ;;  %12859 = vpow2.f32 %v7393_v40 }
 0xf82   : > { %v16315_v24 = vpop.eup %12847  ;;  %12861 = vpow2.f32 %v7391_v62 }
 0xf83   : > { %7437 = vadd.xlane.f32.xlu0 %v16285_v28  ;;  %v7397_v59 = vmul.f32 1.442695, %v7347_v16  ;;  %v7395_v12 = vmul.f32 1.442695, %v7346_v11  ;;  %v16318_v8 = vpop.eup %12849 }
 0xf84   : > { %7435 = vadd.xlane.f32.xlu1 %v16288_v39  ;;  %v7304_v55 = vpop.xlane.xlu1 %7303  ;;  %v7306_v51 = vpop.xlane.xlu0 %7305 }
 0xf85   : > { %v7349_v17 = vsub.f32 %v16238_v3, %v7306_v51  ;;  %v7348_v45 = vsub.f32 %v16230_v53, %v7304_v55  ;;  %12863 = vpow2.f32 %v7397_v59 }
 0xf86   : > { %v16323_v49 = vpop.eup %12851  ;;  %12865 = vpow2.f32 %v7395_v12 }
 0xf87   : > { %7321 = vmax.xlane.f32.xlu0 %v16290_v50  ;;  %v7401_v15 = vmul.f32 1.442695, %v7349_v17  ;;  %v7399_v3 = vmul.f32 1.442695, %v7348_v45  ;;  %v16326_v21 = vpop.eup %12853 }
 0xf88   : > { %7439 = vadd.xlane.f32.xlu1 %v16296_v42  ;;  %v7308_v9 = vpop.xlane.xlu1 %7307  ;;  %v7310_v6 = vpop.xlane.xlu0 %7309 }
 0xf89   : > { %v7351_v38 = vsub.f32 %v16236_v34, %v7310_v6  ;;  %v7350_v57 = vsub.f32 %v16244_v1, %v7308_v9  ;;  %12867 = vpow2.f32 %v7401_v15 }
 0xf8a   : > { %v16330_v61 = vpop.eup %12855  ;;  %12869 = vpow2.f32 %v7399_v3 }
 0xf8b   : > { %7325 = vmax.xlane.f32.xlu0 %v16280_v30  ;;  %v7405_v32 = vmul.f32 1.442695, %v7351_v38  ;;  %v7403_v29 = vmul.f32 1.442695, %v7350_v57  ;;  %v16333_v47 = vpop.eup %12857 }
 0xf8c   : > { %7323 = vmax.xlane.f32.xlu1 %v16304_v58  ;;  %v7312_v53 = vpop.xlane.xlu1 %7311 }
 0xf8d   : > { %v7352_v34 = vsub.f32 %v16242_v14, %v7312_v53  ;;  %12871 = vpow2.f32 %v7405_v32 }
 0xf8e   : > { %v16337_v1 = vpop.eup %12859  ;;  %12873 = vpow2.f32 %v7403_v29 }
 0xf8f   : > { %7441 = vadd.xlane.f32.xlu0 %v16309_v22  ;;  %v7407_v2 = vmul.f32 1.442695, %v7352_v34  ;;  %v16339_v43 = vpop.eup %12861 }
 0xf90   : > { %7327 = vmax.xlane.f32.xlu1 %v16298_v25 }
 0xf91   : > { %12875 = vpow2.f32 %v7407_v2 }
 0xf92   : > { %v16343_v19 = vpop.eup %12863 }
 0xf93   : > { %7445 = vadd.xlane.f32.xlu0 %v16315_v24  ;;  %v16345_v14 = vpop.eup %12865 }
 0xf94   : > { %7443 = vadd.xlane.f32.xlu1 %v16318_v8 }
 0xf96   : > { %v16349_v13 = vpop.eup %12867 }
 0xf97   : > { %7449 = vadd.xlane.f32.xlu0 %v16323_v49  ;;  %v16351_v5 = vpop.eup %12869 }
 0xf98   : > { %7447 = vadd.xlane.f32.xlu1 %v16326_v21 }
 0xf9a   : > { %v16355_v27 = vpop.eup %12871 }
 0xf9b   : > { %7453 = vadd.xlane.f32.xlu0 %v16330_v61  ;;  %v16357_v44 = vpop.eup %12873 }
 0xf9c   : > { %7451 = vadd.xlane.f32.xlu1 %v16333_v47 }
 0xf9e   : > { %v16361_v4 = vpop.eup %12875 }
 0xf9f   : > { %7457 = vadd.xlane.f32.xlu0 %v16337_v1 }
 0xfa0   : > { %7455 = vadd.xlane.f32.xlu1 %v16339_v43 }
 0xfa3   : > { %7461 = vadd.xlane.f32.xlu0 %v16343_v19 }
 0xfa4   : > { %7459 = vadd.xlane.f32.xlu1 %v16345_v14 }
 0xfa7   : > { %7465 = vadd.xlane.f32.xlu0 %v16349_v13 }
 0xfa8   : > { %7463 = vadd.xlane.f32.xlu1 %v16351_v5 }
 0xfab   : > { %7469 = vadd.xlane.f32.xlu0 %v16355_v27 }
 0xfac   : > { %7467 = vadd.xlane.f32.xlu1 %v16357_v44 }
 0xfb0   : > { %7471 = vadd.xlane.f32.xlu1 %v16361_v4 }
 0xff8   : > { %v7426_v46 = vpop.xlane.xlu0 %7425 }
 0xff9   : > { %12877 = vrcp.f32 %v7426_v46 }
 0xffc   : > { %v7430_v56 = vpop.xlane.xlu0 %7429 }
 0xffd   : > { %v7428_v23 = vpop.xlane.xlu1 %7427 }
 0xffe   : > { %12879 = vrcp.f32 %v7428_v23 }
 0xfff   : > { %12881 = vrcp.f32 %v7430_v56 }
0x1000   : > { %v7314_v36 = vpop.xlane.xlu0 %7313 }
0x1001   : > { %v7432_v0 = vpop.xlane.xlu1 %7431  ;;  %v7353_v37 = vsub.f32 %v16261_v63, %v7314_v36 }
0x1002   : > { %12883 = vrcp.f32 %v7432_v0 }
0x1003   : > { %v7409_v10 = vmul.f32 1.442695, %v7353_v37 }
0x1004   : > { %v7318_v33 = vpop.xlane.xlu0 %7317 }
0x1005   : > { %12885 = vpow2.f32 %v7409_v10  ;;  %v7355_v60 = vsub.f32 %v16253_v35, %v7318_v33  ;;  %v7316_v41 = vpop.xlane.xlu1 %7315 }
0x1006   : > { %v7354_v26 = vsub.f32 %v16272_v48, %v7316_v41  ;;  %v12878_v16 = vpop.eup %12877 }
0x1007   : > { %v7413_v55 = vmul.f32 1.442695, %v7355_v60  ;;  %v7521_v9 = vmul.f32 %v12878_v16, %v16250_v7 }
0x1008   : > { %v7411_v51 = vmul.f32 1.442695, %v7354_v26  ;;  %v7434_v40 = vpop.xlane.xlu0 %7433 }
0x1009   : > { %12887 = vpow2.f32 %v7413_v55  ;;  %v7320_v62 = vpop.xlane.xlu1 %7319 }
0x100a   : > { %12889 = vpow2.f32 %v7411_v51  ;;  %v7356_v11 = vsub.f32 %v16267_v20, %v7320_v62 }
0x100b   : > { %v12880_v59 = vpop.eup %12879  ;;  %12891 = vrcp.f32 %v7434_v40 }
0x100c   : > { %v7415_v63 = vmul.f32 1.442695, %v7356_v11  ;;  %v7438_v17 = vpop.xlane.xlu0 %7437  ;;  %v7522_v12 = vmul.f32 %v12880_v59, %v16259_v18  ;;  %v12882_v35 = vpop.eup %12881 }
0x100d   : > { %v7436_v45 = vpop.xlane.xlu1 %7435  ;;  %v7523_v15 = vmul.f32 %v12882_v35, %v16256_v31 }
0x100e   : > { %12893 = vpow2.f32 %v7415_v63  ;;  %v7553_v48 = vpack.c.bf16 %v7522_v12, %v7521_v9 }
0x100f   : > { %v12884_v6 = vpop.eup %12883  ;;  %12895 = vrcp.f32 %v7436_v45 }
0x1010   : > { %v7524_v38 = vmul.f32 %v12884_v6, %v16265_v52  ;;  %12897 = vrcp.f32 %v7438_v17  ;;  %12038 = vmatprep.mubr.bf16.mxu0 %v7553_v48  ;;  %v7322_v20 = vpop.xlane.xlu0 %7321 }
0x1011   : > { %v7440_v3 = vpop.xlane.xlu1 %7439  ;;  %v7357_v57 = vsub.f32 %v16290_v50, %v7322_v20 }
0x1012   : > { %v16373_v7 = vpop.eup %12885  ;;  %12899 = vrcp.f32 %v7440_v3  ;;  %v7554_v18 = vpack.c.bf16 %v7524_v38, %v7523_v15 }
0x1013   : > { %v7417_v53 = vmul.f32 1.442695, %v7357_v57  ;;  %7473 = vadd.xlane.f32.xlu0 %v16373_v7 }
0x1014   : > { %12039 = vmatmul.mubr.bf16.vlgmr.msra.gmra.mxu0 %v7554_v18  ;;  %v7326_v32 = vpop.xlane.xlu0 %7325 }
0x1015   : > { %12901 = vpow2.f32 %v7417_v53  ;;  %v7359_v31 = vsub.f32 %v16280_v30, %v7326_v32  ;;  %v7324_v29 = vpop.xlane.xlu1 %7323 }
0x1016   : > { %v16377_v52 = vpop.eup %12887  ;;  %v7358_v34 = vsub.f32 %v16304_v58, %v7324_v29 }
0x1017   : > { %v16380_v2 = vpop.eup %12889  ;;  %v7421_v50 = vmul.f32 1.442695, %v7359_v31  ;;  %7477 = vadd.xlane.f32.xlu0 %v16377_v52 }
0x1018   : > { %v7419_v46 = vmul.f32 1.442695, %v7358_v34  ;;  %7475 = vadd.xlane.f32.xlu1 %v16380_v2  ;;  %v7442_v56 = vpop.xlane.xlu0 %7441  ;;  %v12892_v36 = vpop.eup %12891 }
0x1019   : > { %12903 = vpow2.f32 %v7421_v50  ;;  %v7328_v23 = vpop.xlane.xlu1 %7327  ;;  %v7525_v41 = vmul.f32 %v12892_v36, %v16277_v54 }
0x101a   : > { %12905 = vpow2.f32 %v7419_v46  ;;  %v7360_v30 = vsub.f32 %v16298_v25, %v7328_v23 }
0x101b   : > { %v16385_v0 = vpop.eup %12893  ;;  %12907 = vrcp.f32 %v7442_v56 }
0x101c   : > { %v12896_v37 = vpop.eup %12895  ;;  %v7423_v10 = vmul.f32 1.442695, %v7360_v30  ;;  %7479 = vadd.xlane.f32.xlu1 %v16385_v0  ;;  %v7446_v58 = vpop.xlane.xlu0 %7445  ;;  %v12339_v30 = vld [vmem:[%s13301_s11 + $0x38] sm:$0xff]  }
0x101d   : > { %v12898_v33 = vpop.eup %12897  ;;  %v7444_v60 = vpop.xlane.xlu1 %7443  ;;  %v7526_v26 = vmul.f32 %v12896_v37, %v16288_v39  ;;  %12086 = vmatprep.subr.bf16.mxu0 %v12339_v30 }
0x101e   : > { %12909 = vpow2.f32 %v7423_v10  ;;  %v7527_v40 = vmul.f32 %v12898_v33, %v16285_v28  ;;  %12087 = vmatpush3.bf16.msra.mxu0 %v12339_v30 }
0x101f   : > { %v12900_v55 = vpop.eup %12899  ;;  %12911 = vrcp.f32 %v7444_v60  ;;  %v7555_v51 = vpack.c.bf16 %v7526_v26, %v7525_v41 }
0x1020   : > { %12913 = vrcp.f32 %v7446_v58  ;;  %v7450_v25 = vpop.xlane.xlu0 %7449  ;;  %v7528_v16 = vmul.f32 %v12900_v55, %v16296_v42 }
0x1021   : > { %12042 = vmatprep.mubr.bf16.mxu0 %v7555_v51  ;;  %v7448_v62 = vpop.xlane.xlu1 %7447 }
0x1022   : > { %v16392_v11 = vpop.eup %12901  ;;  %12915 = vrcp.f32 %v7448_v62  ;;  %v7556_v59 = vpack.c.bf16 %v7528_v16, %v7527_v40 }
0x1023   : > { %7481 = vadd.xlane.f32.xlu0 %v16392_v11  ;;  %12917 = vrcp.f32 %v7450_v25 }
0x1024   : > { %12043 = vmatmul.mubr.bf16.gmra.mxu0 %v7556_v59  ;;  %v7454_v54 = vpop.xlane.xlu0 %7453 }
0x1025   : > { %v7452_v39 = vpop.xlane.xlu1 %7451 }
0x1026   : > { %v16395_v63 = vpop.eup %12903  ;;  %12919 = vrcp.f32 %v7452_v39 }
0x1027   : > { %v16397_v17 = vpop.eup %12905  ;;  %7485 = vadd.xlane.f32.xlu0 %v16395_v63  ;;  %12921 = vrcp.f32 %v7454_v54 }
0x1028   : > { %7483 = vadd.xlane.f32.xlu1 %v16397_v17  ;;  %v7458_v28 = vpop.xlane.xlu0 %7457  ;;  %v12908_v9 = vpop.eup %12907 }
0x1029   : > { %v7456_v42 = vpop.xlane.xlu1 %7455  ;;  %v7529_v15 = vmul.f32 %v12908_v9, %v16309_v22 }
0x102a   : > { %12923 = vrcp.f32 %v7456_v42 }
0x102b   : > { %v16401_v12 = vpop.eup %12909  ;;  %12925 = vrcp.f32 %v7458_v28 }
0x102c   : > { %v12912_v35 = vpop.eup %12911  ;;  %7487 = vadd.xlane.f32.xlu1 %v16401_v12  ;;  %v7462_v45 = vpop.xlane.xlu0 %7461 }
0x102d   : > { %v12914_v48 = vpop.eup %12913  ;;  %v7460_v6 = vpop.xlane.xlu1 %7459  ;;  %v7530_v38 = vmul.f32 %v12912_v35, %v16318_v8 }
0x102e   : > { %12927 = vrcp.f32 %v7460_v6  ;;  %v7531_v18 = vmul.f32 %v12914_v48, %v16315_v24 }
0x102f   : > { %v12916_v20 = vpop.eup %12915  ;;  %v7557_v3 = vpack.c.bf16 %v7530_v38, %v7529_v15  ;;  %12929 = vrcp.f32 %v7462_v45 }
0x1030   : > { %v7466_v57 = vpop.xlane.xlu0 %7465  ;;  %v7532_v53 = vmul.f32 %v12916_v20, %v16326_v21  ;;  %v12918_v32 = vpop.eup %12917 }
0x1031   : > { %12046 = vmatprep.mubr.bf16.mxu0 %v7557_v3  ;;  %v7464_v31 = vpop.xlane.xlu1 %7463  ;;  %v7533_v22 = vmul.f32 %v12918_v32, %v16323_v49 }
0x1032   : > { %12931 = vrcp.f32 %v7464_v31  ;;  %v7558_v29 = vpack.c.bf16 %v7532_v53, %v7531_v18 }
0x1033   : > { %v12920_v34 = vpop.eup %12919  ;;  %12933 = vrcp.f32 %v7466_v57 }
0x1034   : > { %12047 = vmatmul.mubr.bf16.gmra.mxu0 %v7558_v29  ;;  %v7534_v8 = vmul.f32 %v12920_v34, %v16333_v47  ;;  %v12922_v50 = vpop.eup %12921  ;;  %v7470_v46 = vpop.xlane.xlu0 %7469 }
0x1035   : > { %v7468_v56 = vpop.xlane.xlu1 %7467  ;;  %v7535_v21 = vmul.f32 %v12922_v50, %v16330_v61 }
0x1036   : > { %12935 = vrcp.f32 %v7468_v56  ;;  %v7559_v24 = vpack.c.bf16 %v7534_v8, %v7533_v22 }
0x1037   : > { %v12924_v23 = vpop.eup %12923  ;;  %12937 = vrcp.f32 %v7470_v46 }
0x1038   : > { %12050 = vmatprep.mubr.bf16.mxu0 %v7559_v24  ;;  %v7536_v36 = vmul.f32 %v12924_v23, %v16339_v43  ;;  %v12926_v37 = vpop.eup %12925 }
0x1039   : > { %v7472_v10 = vpop.xlane.xlu1 %7471  ;;  %v7537_v47 = vmul.f32 %v12926_v37, %v16337_v1 }
0x103a   : > { %12939 = vrcp.f32 %v7472_v10  ;;  %v7560_v58 = vpack.c.bf16 %v7536_v36, %v7535_v21 }
0x103b   : > { %v12928_v49 = vpop.eup %12927 }
0x103c   : > { %12051 = vmatmul.mubr.bf16.gmra.mxu0 %v7560_v58  ;;  %v7538_v33 = vmul.f32 %v12928_v49, %v16345_v14  ;;  %v12930_v60 = vpop.eup %12929 }
0x103d   : > { %v7539_v61 = vmul.f32 %v12930_v60, %v16343_v19  ;;  %v12340_v19 = vld [vmem:[%s13301_s11 + $0x30] sm:$0xff]   ;;  %s13236_s11 = smov [#allocation2]  }
0x103e   : > { %v7561_v41 = vpack.c.bf16 %v7538_v33, %v7537_v47  ;;  %12088 = vmatprep.subr.bf16.mxu0 %v12340_v19  ;;  %s9560_s15 = sshll.u32 %s13236_s11, 4  ;;  %s9561_s15 = int_to_ptr.vmem [resolvable:$true] %s9560_s15 }
0x103f   : > { %v12932_v26 = vpop.eup %12931  ;;  %12089 = vmatpush3.bf16.msra.mxu0 %v12340_v19  ;;  %p13190_p10 = scmp.lt.s32.totalorder %s9561_s15, %s9561_s15 }
0x1040   : > { %v7540_v43 = vmul.f32 %v12932_v26, %v16351_v5  ;;  %12070 = vmatprep.mubr.bf16.mxu1 %v7561_v41  ;;  %v12934_v55 = vpop.eup %12933 }
0x1041   : > { %v7541_v40 = vmul.f32 %v12934_v55, %v16349_v13 }
0x1042   : > { %v7562_v51 = vpack.c.bf16 %v7540_v43, %v7539_v61 }
0x1043   : > { %v12936_v25 = vpop.eup %12935 }
0x1044   : > { %12071 = vmatmul.mubr.bf16.vlgmr.msra.gmra.mxu1 %v7562_v51  ;;  %v7542_v16 = vmul.f32 %v12936_v25, %v16357_v44  ;;  %v12938_v1 = vpop.eup %12937 }
0x1045   : > { %v7543_v59 = vmul.f32 %v12938_v1, %v16355_v27 }
0x1046   : > { %v7563_v62 = vpack.c.bf16 %v7542_v16, %v7541_v40 }
0x1047   : > { %v12940_v14 = vpop.eup %12939 }
0x1048   : > { %12074 = vmatprep.mubr.bf16.mxu1 %v7563_v62  ;;  %v7544_v54 = vmul.f32 %v12940_v14, %v16361_v4 }
0x104a   : > { %v7564_v39 = vpack.c.bf16 %v7544_v54, %v7543_v59 }
0x104c   : > { %12075 = vmatmul.mubr.bf16.gmra.mxu1 %v7564_v39 }
0x109c   : > { %v7474_v5 = vpop.xlane.xlu0 %7473 }
0x109d   : > { %12941 = vrcp.f32 %v7474_v5 }
0x10a0   : > { %v7478_v28 = vpop.xlane.xlu0 %7477 }
0x10a1   : > { %v7476_v42 = vpop.xlane.xlu1 %7475 }
0x10a2   : > { %12943 = vrcp.f32 %v7476_v42 }
0x10a3   : > { %12945 = vrcp.f32 %v7478_v28 }
0x10a5   : > { %v7480_v13 = vpop.xlane.xlu1 %7479 }
0x10a6   : > { %12947 = vrcp.f32 %v7480_v13 }
0x10aa   : > { %v12942_v9 = vpop.eup %12941 }
0x10ab   : > { %v7545_v27 = vmul.f32 %v12942_v9, %v16373_v7 }
0x10ac   : > { %v7482_v44 = vpop.xlane.xlu0 %7481 }
0x10ad   : > { %12949 = vrcp.f32 %v7482_v44 }
0x10af   : > { %v12944_v35 = vpop.eup %12943 }
0x10b0   : > { %v7546_v4 = vmul.f32 %v12944_v35, %v16380_v2  ;;  %v12946_v45 = vpop.eup %12945  ;;  %v7486_v48 = vpop.xlane.xlu0 %7485 }
0x10b1   : > { %v7484_v6 = vpop.xlane.xlu1 %7483  ;;  %v7547_v20 = vmul.f32 %v12946_v45, %v16377_v52 }
0x10b2   : > { %12951 = vrcp.f32 %v7484_v6  ;;  %v7565_v15 = vpack.c.bf16 %v7546_v4, %v7545_v27 }
0x10b3   : > { %v12948_v38 = vpop.eup %12947  ;;  %12953 = vrcp.f32 %v7486_v48 }
0x10b4   : > { %12078 = vmatprep.mubr.bf16.mxu1 %v7565_v15  ;;  %v7548_v3 = vmul.f32 %v12948_v38, %v16385_v0  ;;  %v17838_v38 = vld [vmem:[#allocation5_spill] sm:$0xff] }
0x10b5   : > { %v7488_v57 = vpop.xlane.xlu1 %7487 }
0x10b6   : > { %12955 = vrcp.f32 %v7488_v57  ;;  %v7566_v18 = vpack.c.bf16 %v7548_v3, %v7547_v20  ;;  %v8066_v20 = vsub.s32 2, %v17838_v38  ;;  %v17839_v57 = vld [vmem:[#allocation47_spill] sm:$0xff] }
0x10b8   : > { %12079 = vmatmul.mubr.bf16.gmra.mxu1 %v7566_v18  ;;  %v17840_v18 = vld [vmem:[#allocation26_spill] sm:$0xff] }
0x10ba   : > { %v12950_v53 = vpop.eup %12949 }
0x10bb   : > { %v7549_v2 = vmul.f32 %v12950_v53, %v16392_v11  ;;  %v4333_v53 = vadd.f32 %v17840_v18, %v17839_v57  ;;  %v17854_v57 = vld [vmem:[#allocation10_spill] sm:$0xff] }
0x10bf   : > { %v12952_v7 = vpop.eup %12951 }
0x10c0   : > { %v7550_v32 = vmul.f32 %v12952_v7, %v16397_v17  ;;  %v12954_v31 = vpop.eup %12953  ;;  %v17841_v7 = vld [vmem:[#allocation17_spill] sm:$0xff] }
0x10c1   : > { %v7551_v22 = vmul.f32 %v12954_v31, %v16395_v63 }
0x10c2   : > { %v7567_v29 = vpack.c.bf16 %v7550_v32, %v7549_v2  ;;  %v17842_v32 = vld [vmem:[#allocation18_spill] sm:$0xff] }
0x10c3   : > { %v12956_v34 = vpop.eup %12955 }
0x10c4   : > { %12082 = vmatprep.mubr.bf16.mxu1 %v7567_v29  ;;  %v7552_v52 = vmul.f32 %v12956_v34, %v16401_v12  ;;  %v17843_v34 = vld [vmem:[#allocation20_spill] sm:$0xff] }
0x10c6   : > { %v7568_v8 = vpack.c.bf16 %v7552_v52, %v7551_v22  ;;  %v6213_v22 = vadd.f32 %v17843_v34, %v4333_v53  ;;  %v13149_v52 = vld [vmem:[#allocation2] sm:$0xff] }
0x10c8   : > { %12083 = vmatmul.mubr.bf16.gmra.mxu1 %v7568_v8 }
0x10d4   : > { %v12040_v0 = vpop.f32.mrf.mxu0 }
0x10d6   : > { %v7603_v50 = vpop.f32.mrf.mxu0 }
0x10d8   : > { %v12041_v46 = vpop.f32.mrf.mxu0 }
0x10d9   : > { %v7764_v23 = vpack.c.bf16 %v12041_v46, %v12040_v0  ;;  %v16453_v0 = vld [vmem:[%s13321_s9] sm:$0x3f] }
0x10da   : > { %v7606_v56 = vpop.f32.mrf.mxu0 }
0x10db   : > { %v7763_v24 = vpack.c.bf16 %v7606_v56, %v7603_v50  ;;  %v16456_v50 = vrot.slane %v16453_v0, %v8066_v20  ;;  %v13151_v56 = vld [vmem:[#allocation2 + $0x10] sm:$0xff]  ;;  %v17853_v20 = vld [vmem:[#allocation33_spill] sm:$0xff] }
0x10dd   : > { %12090 = vmatprep.mubr.msk.bf16.mxu0 %vm1674_vm0, %v7763_v24 }
0x10de   : > { %12091 = vmatmul.mubr.msk.bf16.vlgmr.msra.gmra.mxu0 %vm1674_vm0, %v7764_v23  ;;  %v17844_v23 = vld [vmem:[#allocation19_spill] sm:$0xff] }
0x10e4   : > { %v12044_v11 = vpop.f32.mrf.mxu0 }
0x10e6   : > { %v7619_v17 = vpop.f32.mrf.mxu0 }
0x10e8   : > { %v12045_v21 = vpop.f32.mrf.mxu0 }
0x10e9   : > { %v7766_v63 = vpack.c.bf16 %v12045_v21, %v12044_v11 }
0x10ea   : > { %v7622_v36 = vpop.f32.mrf.mxu0 }
0x10eb   : > { %v7765_v30 = vpack.c.bf16 %v7622_v36, %v7619_v17  ;;  %v13152_v36 = vld [vmem:[#allocation2 + $0x8] sm:$0xff] }
0x10ed   : > { %12094 = vmatprep.mubr.msk.bf16.mxu0 %vm1674_vm0, %v7765_v30 }
0x10ee   : > { %12095 = vmatmul.mubr.msk.bf16.gmra.mxu0 %vm1674_vm0, %v7766_v63  ;;  %v13153_v63 = vld [vmem:[#allocation2 + $0x18] sm:$0xff] }
0x10f4   : > { %v12048_v12 = vpop.f32.mrf.mxu0 }
0x10f6   : > { %v7635_v37 = vpop.f32.mrf.mxu0 }
0x10f8   : > { %v12049_v10 = vpop.f32.mrf.mxu0 }
0x10f9   : > { %v7768_v47 = vpack.c.bf16 %v12049_v10, %v12048_v12 }
0x10fa   : > { %v7638_v58 = vpop.f32.mrf.mxu0 }
0x10fb   : > { %v7767_v49 = vpack.c.bf16 %v7638_v58, %v7635_v37 }
0x10fc   : > { %v12052_v33 = vpop.f32.mrf.mxu0 }
0x10fd   : > { %12098 = vmatprep.mubr.msk.bf16.mxu0 %vm1674_vm0, %v7767_v49 }
0x10fe   : > { %v7651_v60 = vpop.f32.mrf.mxu0  ;;  %12099 = vmatmul.mubr.msk.bf16.gmra.mxu0 %vm1674_vm0, %v7768_v47 }
0x1100   : > { %v12053_v41 = vpop.f32.mrf.mxu0 }
0x1101   : > { %v7770_v43 = vpack.c.bf16 %v12053_v41, %v12052_v33  ;;  %v17845_v33 = vld [vmem:[#allocation51_spill] sm:$0xff] }
0x1102   : > { %v7654_v26 = vpop.f32.mrf.mxu0 }
0x1103   : > { %v7769_v61 = vpack.c.bf16 %v7654_v26, %v7651_v60  ;;  %v17846_v60 = vld [vmem:[#allocation67_spill] sm:$0xff]  ;;  %v17847_v26 = vld [vmem:[#allocation21_spill] sm:$0xff] }
0x1104   : > { %v12072_v55 = vpop.f32.mrf.mxu1  ;;  %v4349_v41 = vadd.f32 %v17846_v60, %v17845_v33  ;;  %v17859_v33 = vld [vmem:[#allocation13_spill] sm:$0xff] }
0x1105   : > { %12102 = vmatprep.mubr.msk.bf16.mxu0 %vm1674_vm0, %v7769_v61 }
0x1106   : > { %v7700_v51 = vpop.f32.mrf.mxu1  ;;  %12103 = vmatmul.mubr.msk.bf16.gmra.mxu0 %vm1674_vm0, %v7770_v43  ;;  %v17848_v43 = vld [vmem:[#allocation6_spill] sm:$0xff] }
0x1108   : > { %v12073_v25 = vpop.f32.mrf.mxu1 }
0x1109   : > { %v7772_v1 = vpack.c.bf16 %v12073_v25, %v12072_v55  ;;  %v17849_v25 = vld [vmem:[#allocation8_spill] sm:$0xff] }
0x110a   : > { %v7703_v40 = vpop.f32.mrf.mxu1 }
0x110b   : > { %v7771_v16 = vpack.c.bf16 %v7703_v40, %v7700_v51  ;;  %v6217_v40 = vadd.f32 %v17849_v25, %v4349_v41  ;;  %v17860_v41 = vld [vmem:[#allocation39_spill] sm:$0xff]  ;;  %v13162_v25 = vld [vmem:[#allocation2 + $0x60] sm:$0xff] }
0x110c   : > { %v12076_v62 = vpop.f32.mrf.mxu1 }
0x110d   : > { %12106 = vmatprep.mubr.msk.bf16.mxu0 %vm1674_vm0, %v7771_v16  ;;  %v13154_v16 = vld [vmem:[#allocation2 + $0x20] sm:$0xff] }
0x110e   : > { %v7716_v14 = vpop.f32.mrf.mxu1  ;;  %12107 = vmatmul.mubr.msk.bf16.gmra.mxu0 %vm1674_vm0, %v7772_v1 }
0x1110   : > { %v12077_v59 = vpop.f32.mrf.mxu1 }
0x1111   : > { %v7774_v39 = vpack.c.bf16 %v12077_v59, %v12076_v62 }
0x1112   : > { %v7719_v54 = vpop.f32.mrf.mxu1 }
0x1113   : > { %v7773_v19 = vpack.c.bf16 %v7719_v54, %v7716_v14  ;;  %v13155_v14 = vld [vmem:[#allocation2 + $0x30] sm:$0xff] }
0x1114   : > { %v17850_v54 = vld [vmem:[#allocation7_spill] sm:$0xff] }
0x1115   : > { %12110 = vmatprep.mubr.msk.bf16.mxu0 %vm1674_vm0, %v7773_v19 }
0x1116   : > { %12111 = vmatmul.mubr.msk.bf16.gmra.mxu0 %vm1674_vm0, %v7774_v39 }
0x1178   : > { %v12080_v5 = vpop.f32.mrf.mxu1 }
0x117a   : > { %v7732_v28 = vpop.f32.mrf.mxu1 }
0x117c   : > { %v12081_v42 = vpop.f32.mrf.mxu1 }
0x117d   : > { %v7776_v9 = vpack.c.bf16 %v12081_v42, %v12080_v5 }
0x117e   : > { %v7735_v13 = vpop.f32.mrf.mxu1 }
0x117f   : > { %v7775_v44 = vpack.c.bf16 %v7735_v13, %v7732_v28  ;;  %v13156_v28 = vld [vmem:[#allocation2 + $0x28] sm:$0xff]  ;;  %v13157_v13 = vld [vmem:[#allocation2 + $0x38] sm:$0xff] }
0x1181   : > { %12114 = vmatprep.mubr.msk.bf16.mxu0 %vm1674_vm0, %v7775_v44 }
0x1182   : > { %12115 = vmatmul.mubr.msk.bf16.gmra.mxu0 %vm1674_vm0, %v7776_v9 }
0x1188   : > { %v12084_v35 = vpop.f32.mrf.mxu1 }
0x118a   : > { %v7748_v27 = vpop.f32.mrf.mxu1 }
0x118c   : > { %v12085_v4 = vpop.f32.mrf.mxu1 }
0x118d   : > { %v7778_v6 = vpack.c.bf16 %v12085_v4, %v12084_v35 }
0x118e   : > { %v7751_v45 = vpop.f32.mrf.mxu1 }
0x118f   : > { %v7777_v48 = vpack.c.bf16 %v7751_v45, %v7748_v27  ;;  %v17851_v45 = vld [vmem:[#allocation9_spill] sm:$0xff] }
0x1191   : > { %12118 = vmatprep.mubr.msk.bf16.mxu0 %vm1674_vm0, %v7777_v48 }
0x1192   : > { %12119 = vmatmul.mubr.msk.bf16.gmra.mxu0 %vm1674_vm0, %v7778_v6 }
0x119e   : > { %v12092_v15 = vpop.f32.mrf.mxu0 }
0x119f   : > { %v8002_v2 = vadd.f32 %v12092_v15, %v17841_v7  ;;  %v17852_v15 = vld [vmem:[#allocation48_spill] sm:$0xff] }
0x11a0   : > { %v7873_v3 = vpop.f32.mrf.mxu0  ;;  %v17855_v7 = vld [vmem:[#allocation12_spill] sm:$0xff] }
0x11a1   : > { %v8000_v31 = vadd.f32 %v7873_v3, %v17842_v32  ;;  %v8034_v24 = vadd.f32 %v13151_v56, %v8002_v2  ;;  %v4365_v3 = vadd.f32 %v17853_v20, %v17852_v15  ;;  %v13158_v32 = vld [vmem:[#allocation2 + $0x40] sm:$0xff]  ;;  %v17866_v20 = vld [vmem:[#allocation66_spill] sm:$0xff] }
0x11a2   : > { %v12093_v29 = vpop.f32.mrf.mxu0 }
0x11a3   : > { %v8032_v8 = vadd.f32 %v13149_v52, %v8000_v31  ;;  %v8003_v11 = vadd.f32 %v12093_v29, %v17844_v23  ;;  %v16464_v37 = vadd.f32 %v16456_v50, %v8034_v24  ;;  %v6221_v2 = vadd.f32 %v17855_v7, %v4365_v3  ;;  %v13159_v29 = vld [vmem:[#allocation2 + $0x50] sm:$0xff]  ;;  %v13160_v23 = vld [vmem:[#allocation2 + $0x48] sm:$0xff] }
0x11a4   : > { %v7876_v46 = vpop.f32.mrf.mxu0  ;;  %v17856_v52 = vld [vmem:[#allocation11_spill] sm:$0xff] }
0x11a5   : > { %v8001_v17 = vadd.f32 %v7876_v46, %v6213_v22  ;;  %v16460_v21 = vadd.f32 %v16456_v50, %v8032_v8  ;;  %v8035_v12 = vadd.f32 %v13153_v63, %v8003_v11 }
0x11a7   : > { %v8033_v30 = vadd.f32 %v13152_v36, %v8001_v17  ;;  %8100 = vadd.xlane.f32.xlu0 %v16460_v21  ;;  %v16472_v58 = vadd.f32 %v16456_v50, %v8035_v12  ;;  %v17857_v17 = vld [vmem:[#allocation71_spill] sm:$0xff] }
0x11a8   : > { %v17858_v36 = vld [vmem:[#allocation63_spill] sm:$0xff] }
0x11a9   : > { %v16467_v10 = vadd.f32 %v16456_v50, %v8033_v30  ;;  %v4381_v30 = vadd.f32 %v17858_v36, %v17857_v17  ;;  %v13168_v36 = vld [vmem:[#allocation2 + $0x88] sm:$0xff] }
0x11ab   : > { %8104 = vadd.xlane.f32.xlu0 %v16464_v37  ;;  %8102 = vadd.xlane.f32.xlu1 %v16467_v10 }
0x11ae   : > { %v12096_v49 = vpop.f32.mrf.mxu0 }
0x11af   : > { %8106 = vadd.xlane.f32.xlu1 %v16472_v58  ;;  %v8006_v61 = vadd.f32 %v12096_v49, %v17847_v26  ;;  %v13161_v49 = vld [vmem:[#allocation2 + $0x58] sm:$0xff] }
0x11b0   : > { %v7889_v47 = vpop.f32.mrf.mxu0 }
0x11b1   : > { %v8004_v55 = vadd.f32 %v7889_v47, %v17848_v43  ;;  %v8038_v59 = vadd.f32 %v13155_v14, %v8006_v61  ;;  %v13163_v14 = vld [vmem:[#allocation2 + $0x70] sm:$0xff] }
0x11b2   : > { %v12097_v51 = vpop.f32.mrf.mxu0 }
0x11b3   : > { %v8036_v1 = vadd.f32 %v13154_v16, %v8004_v55  ;;  %v8007_v19 = vadd.f32 %v12097_v51, %v17850_v54  ;;  %v16486_v9 = vadd.f32 %v16456_v50, %v8038_v59  ;;  %v17861_v55 = vld [vmem:[#allocation38_spill] sm:$0xff]  ;;  %v17862_v16 = vld [vmem:[#allocation64_spill] sm:$0xff] }
0x11b4   : > { %v7892_v62 = vpop.f32.mrf.mxu0  ;;  %v6225_v51 = vadd.f32 %v17861_v55, %v4381_v30 }
0x11b5   : > { %v8005_v39 = vadd.f32 %v7892_v62, %v6217_v40  ;;  %v16482_v5 = vadd.f32 %v16456_v50, %v8036_v1  ;;  %v8039_v44 = vadd.f32 %v13157_v13, %v8007_v19 }
0x11b7   : > { %v8037_v42 = vadd.f32 %v13156_v28, %v8005_v39  ;;  %8108 = vadd.xlane.f32.xlu0 %v16482_v5  ;;  %v16494_v27 = vadd.f32 %v16456_v50, %v8039_v44  ;;  %v17864_v44 = vld [vmem:[#allocation70_spill] sm:$0xff] }
0x11b9   : > { %v16489_v35 = vadd.f32 %v16456_v50, %v8037_v42  ;;  %v13164_v42 = vld [vmem:[#allocation2 + $0x68] sm:$0xff] }
0x11bb   : > { %8112 = vadd.xlane.f32.xlu0 %v16486_v9  ;;  %8110 = vadd.xlane.f32.xlu1 %v16489_v35 }
0x11be   : > { %v12100_v4 = vpop.f32.mrf.mxu0 }
0x11bf   : > { %8114 = vadd.xlane.f32.xlu1 %v16494_v27  ;;  %v8010_v48 = vadd.f32 %v12100_v4, %v17851_v45  ;;  %v17865_v4 = vld [vmem:[#allocation37_spill] sm:$0xff] }
0x11c0   : > { %v7905_v6 = vpop.f32.mrf.mxu0  ;;  %v4397_v45 = vadd.f32 %v17865_v4, %v17864_v44  ;;  %v13170_v44 = vld [vmem:[#allocation2 + $0xa0] sm:$0xff] }
0x11c1   : > { %v8008_v18 = vadd.f32 %v7905_v6, %v17854_v57  ;;  %v8042_v34 = vadd.f32 %v13159_v29, %v8010_v48  ;;  %v13165_v48 = vld [vmem:[#allocation2 + $0x78] sm:$0xff]  ;;  %v17867_v57 = vld [vmem:[#allocation45_spill] sm:$0xff] }
0x11c2   : > { %v12101_v53 = vpop.f32.mrf.mxu0  ;;  %v13166_v29 = vld [vmem:[#allocation2 + $0x80] sm:$0xff] }
0x11c3   : > { %v8040_v31 = vadd.f32 %v13158_v32, %v8008_v18  ;;  %v8011_v8 = vadd.f32 %v12101_v53, %v17856_v52  ;;  %v16510_v12 = vadd.f32 %v16456_v50, %v8042_v34  ;;  %v17870_v32 = vld [vmem:[#allocation42_spill] sm:$0xff] }
0x11c4   : > { %v7908_v22 = vpop.f32.mrf.mxu0 }
0x11c5   : > { %v8009_v46 = vadd.f32 %v7908_v22, %v6221_v2  ;;  %v16504_v56 = vadd.f32 %v16456_v50, %v8040_v31  ;;  %v8043_v47 = vadd.f32 %v13161_v49, %v8011_v8  ;;  %v6229_v31 = vadd.f32 %v17870_v32, %v4397_v45  ;;  %v13167_v8 = vld [vmem:[#allocation2 + $0x90] sm:$0xff] }
0x11c6   : > { %v12104_v24 = vpop.f32.mrf.mxu0 }
0x11c7   : > { %v8041_v11 = vadd.f32 %v13160_v23, %v8009_v46  ;;  %8116 = vadd.xlane.f32.xlu0 %v16504_v56  ;;  %v8014_v60 = vadd.f32 %v12104_v24, %v17859_v33  ;;  %v16522_v19 = vadd.f32 %v16456_v50, %v8043_v47  ;;  %v17872_v24 = vld [vmem:[#allocation24_spill] sm:$0xff] }
0x11c8   : > { %v7921_v63 = vpop.f32.mrf.mxu0 }
0x11c9   : > { %v8012_v26 = vadd.f32 %v7921_v63, %v17860_v41  ;;  %v16515_v61 = vadd.f32 %v16456_v50, %v8041_v11  ;;  %v8046_v59 = vadd.f32 %v13163_v14, %v8014_v60  ;;  %v13169_v63 = vld [vmem:[#allocation2 + $0x98] sm:$0xff] }
0x11ca   : > { %v12105_v43 = vpop.f32.mrf.mxu0  ;;  %v12341_v41 = vld [vmem:[%s13311_s18 + $0x70] ss:$8 sps:$4 sm:$0xff]  }
0x11cb   : > { %v8044_v40 = vadd.f32 %v13162_v25, %v8012_v26  ;;  %8120 = vadd.xlane.f32.xlu0 %v16510_v12  ;;  %8118 = vadd.xlane.f32.xlu1 %v16515_v61  ;;  %v8015_v1 = vadd.f32 %v12105_v43, %v17862_v16  ;;  %v16534_v53 = vadd.f32 %v16456_v50, %v8046_v59  ;;  %v12343_v26 = vld [vmem:[%s13311_s18 + $0x74] ss:$8 sps:$4 sm:$0xff]  }
0x11cc   : > { %v7924_v62 = vpop.f32.mrf.mxu0  ;;  %8648 = vmatprep.subr.bf16.mxu1 %v12343_v26  ;;  %v17877_v25 = vld [vmem:[#allocation40_spill] sm:$0xff] }
0x11cd   : > { %v8013_v54 = vadd.f32 %v7924_v62, %v6225_v51  ;;  %v16525_v39 = vadd.f32 %v16456_v50, %v8044_v40  ;;  %v8047_v6 = vadd.f32 %v13165_v48, %v8015_v1  ;;  %17868 = vst [vmem:[#allocation25_spill] sm:$0xff] %v16534_v53  ;;  %8649 = vmatpush1.bf16.msra.mxu1 %v12341_v41  ;;  %v17878_v1 = vld [vmem:[#allocation76_spill] sm:$0xff]  ;;  %v17879_v62 = vld [vmem:[#allocation59_spill] sm:$0xff] }
0x11ce   : > { %v12108_v28 = vpop.f32.mrf.mxu0  ;;  %v4413_v14 = vadd.f32 %v17879_v62, %v17878_v1  ;;  %v13173_v26 = vld [vmem:[#allocation2 + $0xb8] sm:$0xff]  ;;  %v12344_v62 = vld [vmem:[%s13311_s18 + $0x60] ss:$8 sps:$4 sm:$0xff]  }
0x11cf   : > { %17863 = vst [vmem:[#allocation74_spill] sm:$0xff] %v16525_v39  ;;  %v8045_v13 = vadd.f32 %v13164_v42, %v8013_v54  ;;  %8122 = vadd.xlane.f32.xlu1 %v16522_v19  ;;  %8124 = vadd.xlane.f32.xlu0 %v16525_v39  ;;  %v8018_v3 = vadd.f32 %v12108_v28, %v17866_v20  ;;  %v17880_v28 = vld [vmem:[#allocation49_spill] sm:$0xff] }
0x11d0   : > { %v7937_v15 = vpop.f32.mrf.mxu0  ;;  %v16543_v52 = vadd.f32 %v16456_v50, %v8047_v6  ;;  %v6233_v42 = vadd.f32 %v17880_v28, %v4413_v14  ;;  %v17886_v14 = vld [vmem:[#allocation79_spill] sm:$0xff] }
0x11d1   : > { %v8016_v18 = vadd.f32 %v7937_v15, %v17867_v57  ;;  %v16537_v7 = vadd.f32 %v16456_v50, %v8045_v13  ;;  %v8050_v46 = vadd.f32 %v13167_v8, %v8018_v3 }
0x11d2   : > { %v12109_v2 = vpop.f32.mrf.mxu0  ;;  %17871 = vst [vmem:[#allocation61_spill] sm:$0xff] %v16543_v52 }
0x11d3   : > { %17869 = vst [vmem:[#allocation72_spill] sm:$0xff] %v16537_v7  ;;  %v8048_v34 = vadd.f32 %v13166_v29, %v8016_v18  ;;  %8128 = vadd.xlane.f32.xlu0 %v16534_v53  ;;  %8126 = vadd.xlane.f32.xlu1 %v16537_v7  ;;  %v8019_v23 = vadd.f32 %v12109_v2, %v17872_v24  ;;  %v17881_v18 = vld [vmem:[#allocation27_spill] sm:$0xff]  ;;  %v13171_v29 = vld [vmem:[#allocation2 + $0xa8] sm:$0xff] }
0x11d4   : > { %v7940_v22 = vpop.f32.mrf.mxu0  ;;  %v16552_v47 = vadd.f32 %v16456_v50, %v8050_v46  ;;  %v13172_v24 = vld [vmem:[#allocation2 + $0xb0] sm:$0xff] }
0x11d5   : > { %v8017_v11 = vadd.f32 %v7940_v22, %v6229_v31  ;;  %v16547_v17 = vadd.f32 %v16456_v50, %v8048_v34  ;;  %v8051_v49 = vadd.f32 %v13169_v63, %v8019_v23 }
0x11d6   : > { %17874 = vst [vmem:[#allocation56_spill] sm:$0xff] %v16552_v47  ;;  %v12112_v43 = vpop.f32.mrf.mxu0 }
0x11d7   : > { %17873 = vst [vmem:[#allocation73_spill] sm:$0xff] %v16547_v17  ;;  %v8049_v30 = vadd.f32 %v13168_v36, %v8017_v11  ;;  %8130 = vadd.xlane.f32.xlu1 %v16543_v52  ;;  %8132 = vadd.xlane.f32.xlu0 %v16547_v17  ;;  %v16560_v60 = vadd.f32 %v16456_v50, %v8051_v49  ;;  %v17883_v11 = vld [vmem:[#allocation23_spill] sm:$0xff] }
0x11d8   : > { %v7953_v55 = vpop.f32.mrf.mxu0  ;;  %v8022_v2 = vadd.f32 %v12112_v43, %v17881_v18  ;;  %v12349_v18 = vld [vmem:[%s13311_s18 + $0x54] ss:$8 sps:$4 sm:$0xff]  }
0x11d9   : > { %v16555_v33 = vadd.f32 %v16456_v50, %v8049_v30  ;;  %17876 = vst [vmem:[#allocation58_spill] sm:$0xff] %v16560_v60  ;;  %v8020_v40 = vadd.f32 %v7953_v55, %v17877_v25 }
0x11da   : > { %v12113_v51 = vpop.f32.mrf.mxu0  ;;  %v8054_v23 = vadd.f32 %v13172_v24, %v8022_v2  ;;  %v17890_v2 = vld [vmem:[#allocation44_spill] sm:$0xff] }
0x11db   : > { %17875 = vst [vmem:[#allocation69_spill] sm:$0xff] %v16555_v33  ;;  %8136 = vadd.xlane.f32.xlu0 %v16552_v47  ;;  %8134 = vadd.xlane.f32.xlu1 %v16555_v33  ;;  %v8052_v4 = vadd.f32 %v13170_v44, %v8020_v40  ;;  %v8023_v36 = vadd.f32 %v12113_v51, %v17883_v11 }
0x11dc   : > { %v7956_v54 = vpop.f32.mrf.mxu0  ;;  %v16598_v25 = vadd.f32 %v16456_v50, %v8054_v23  ;;  %v17891_v23 = vld [vmem:[#allocation65_spill] sm:$0xff] }
0x11dd   : > { %v8021_v6 = vadd.f32 %v7956_v54, %v6233_v42  ;;  %v16579_v31 = vadd.f32 %v16456_v50, %v8052_v4  ;;  %v8055_v43 = vadd.f32 %v13173_v26, %v8023_v36  ;;  %v17888_v4 = vld [vmem:[#allocation46_spill] sm:$0xff] }
0x11de   : > { %17885 = vst [vmem:[#allocation22_spill] sm:$0xff] %v16598_v25 }
0x11df   : > { %8138 = vadd.xlane.f32.xlu1 %v16560_v60  ;;  %17882 = vst [vmem:[#allocation68_spill] sm:$0xff] %v16579_v31  ;;  %v8053_v34 = vadd.f32 %v13171_v29, %v8021_v6  ;;  %v13174_v29 = vld [vmem:[#allocation2 + $0xc0] sm:$0xff] }
0x11e1   : > { %v16594_v49 = vadd.f32 %v16456_v50, %v8053_v34 }
0x11e3   : > { %17884 = vst [vmem:[#allocation35_spill] sm:$0xff] %v16594_v49 }
0x1230   : > { %v8101_v16 = vpop.xlane.xlu0 %8100 }
0x1231   : > { %v8164_v59 = vmul.f32 0.0078125, %v8101_v16  ;;  %v12346_v16 = vld [vmem:[%s13311_s18 + $0x64] ss:$8 sps:$4 sm:$0xff]  }
0x1232   : > { %8650 = vmatprep.subr.bf16.mxu1 %v12346_v16  ;;  %v13175_v16 = vld [vmem:[#allocation2 + $0xc8] sm:$0xff] }
0x1233   : > { %v16570_v13 = vsub.f32 %v16460_v21, %v8164_v59  ;;  %v17887_v59 = vld [vmem:[#allocation34_spill] sm:$0xff]  ;;  %8651 = vmatpush1.bf16.msra.mxu1 %v12344_v62 }
0x1234   : > { %v8105_v45 = vpop.xlane.xlu0 %8104  ;;  %v8103_v48 = vpop.xlane.xlu1 %8102  ;;  %v4429_v54 = vadd.f32 %v17887_v59, %v17886_v14  ;;  %8652 = vmatprep.subr.bf16.mxu1 %v12349_v18  ;;  %v13176_v14 = vld [vmem:[#allocation2 + $0xd0] sm:$0xff] }
0x1235   : > { %v8166_v15 = vmul.f32 0.0078125, %v8105_v45  ;;  %v8165_v20 = vmul.f32 0.0078125, %v8103_v48  ;;  %v8228_v3 = vmul.f32 %v16570_v13, %v16570_v13 }
0x1237   : > { %v16575_v57 = vsub.f32 %v16467_v10, %v8165_v20  ;;  %8260 = vadd.xlane.f32.xlu0 %v8228_v3  ;;  %v16582_v22 = vsub.f32 %v16464_v37, %v8166_v15  ;;  %v16614_v15 = vadd.f32 %v16456_v50, %v8055_v43 }
0x1238   : > { %v8107_v32 = vpop.xlane.xlu1 %8106 }
0x1239   : > { %v8167_v8 = vmul.f32 0.0078125, %v8107_v32  ;;  %v8229_v46 = vmul.f32 %v16575_v57, %v16575_v57  ;;  %v8230_v63 = vmul.f32 %v16582_v22, %v16582_v22  ;;  %17889 = vst [vmem:[#allocation32_spill] sm:$0xff] %v16614_v15  ;;  %v6237_v32 = vadd.f32 %v17890_v2, %v4429_v54  ;;  %v13177_v2 = vld [vmem:[#allocation2 + $0xd8] sm:$0xff] }
0x123b   : > { %8140 = vadd.xlane.f32.xlu0 %v16579_v31  ;;  %8262 = vadd.xlane.f32.xlu1 %v8229_v46  ;;  %v16589_v30 = vsub.f32 %v16472_v58, %v8167_v8  ;;  %v12347_v8 = vld [vmem:[%s13311_s18 + $0x50] ss:$8 sps:$4 sm:$0xff]  }
0x123c   : > { %8653 = vmatpush1.bf16.msra.mxu1 %v12347_v8 }
0x123d   : > { %v8231_v51 = vmul.f32 %v16589_v30, %v16589_v30 }
0x123f   : > { %8264 = vadd.xlane.f32.xlu0 %v8230_v63  ;;  %8142 = vadd.xlane.f32.xlu1 %v16594_v49 }
0x1240   : > { %v8109_v41 = vpop.xlane.xlu0 %8108 }
0x1241   : > { %v8168_v55 = vmul.f32 0.0078125, %v8109_v41 }
0x1242   : > { %v12116_v40 = vpop.f32.mrf.mxu0 }
0x1243   : > { %v16604_v1 = vsub.f32 %v16482_v5, %v8168_v55  ;;  %8144 = vadd.xlane.f32.xlu0 %v16598_v25  ;;  %8266 = vadd.xlane.f32.xlu1 %v8231_v51  ;;  %v8026_v11 = vadd.f32 %v12116_v40, %v17891_v23  ;;  %v12352_v51 = vld [vmem:[%s13311_s18 + $0x44] ss:$8 sps:$4 sm:$0xff]   ;;  %v12350_v40 = vld [vmem:[%s13311_s18 + $0x40] ss:$8 sps:$4 sm:$0xff]  }
0x1244   : > { %v8113_v28 = vpop.xlane.xlu0 %8112  ;;  %v7969_v42 = vpop.f32.mrf.mxu0  ;;  %8654 = vmatprep.subr.bf16.mxu1 %v12352_v51  ;;  %v17896_v51 = vld [vmem:[#allocation31_spill] sm:$0xff] }
0x1245   : > { %v8170_v44 = vmul.f32 0.0078125, %v8113_v28  ;;  %v8024_v45 = vadd.f32 %v7969_v42, %v17888_v4  ;;  %v8111_v48 = vpop.xlane.xlu1 %8110  ;;  %v8232_v6 = vmul.f32 %v16604_v1, %v16604_v1  ;;  %v8058_v59 = vadd.f32 %v13176_v14, %v8026_v11  ;;  %8655 = vmatpush1.bf16.msra.mxu1 %v12350_v40  ;;  %v17893_v42 = vld [vmem:[#allocation60_spill] sm:$0xff] }
0x1246   : > { %v8169_v20 = vmul.f32 0.0078125, %v8111_v48  ;;  %v12117_v3 = vpop.f32.mrf.mxu0  ;;  %v12353_v48 = vld [vmem:[%s13311_s18 + $0x30] ss:$8 sps:$4 sm:$0xff]  }
0x1247   : > { %v8056_v34 = vadd.f32 %v13174_v29, %v8024_v45  ;;  %8268 = vadd.xlane.f32.xlu0 %v8232_v6  ;;  %8146 = vadd.xlane.f32.xlu1 %v16614_v15  ;;  %v16625_v36 = vsub.f32 %v16486_v9, %v8170_v44  ;;  %v8027_v44 = vadd.f32 %v12117_v3, %v17893_v42  ;;  %v12355_v45 = vld [vmem:[%s13311_s18 + $0x34] ss:$8 sps:$4 sm:$0xff]  }
0x1248   : > { %v16621_v46 = vsub.f32 %v16489_v35, %v8169_v20  ;;  %v7972_v24 = vpop.f32.mrf.mxu0  ;;  %8656 = vmatprep.subr.bf16.mxu1 %v12355_v45  ;;  %v16648_v18 = vadd.f32 %v16456_v50, %v8058_v59  ;;  %v12361_v42 = vld [vmem:[%s13311_s18 + $0x14] ss:$8 sps:$4 sm:$0xff]  }
0x1249   : > { %v8025_v63 = vadd.f32 %v7972_v24, %v6237_v32  ;;  %v8115_v41 = vpop.xlane.xlu1 %8114  ;;  %v16628_v26 = vadd.f32 %v16456_v50, %v8056_v34  ;;  %v8234_v54 = vmul.f32 %v16625_v36, %v16625_v36  ;;  %8657 = vmatpush1.bf16.msra.mxu1 %v12353_v48  ;;  %v8059_v32 = vadd.f32 %v13177_v2, %v8027_v44  ;;  %v12358_v34 = vld [vmem:[%s13311_s18 + $0x24] ss:$8 sps:$4 sm:$0xff]   ;;  %v12356_v24 = vld [vmem:[%s13311_s18 + $0x20] ss:$8 sps:$4 sm:$0xff]   ;;  %v17897_v44 = vld [vmem:[#allocation28_spill] sm:$0xff] }
0x124a   : > { %v8171_v43 = vmul.f32 0.0078125, %v8115_v41  ;;  %v8233_v55 = vmul.f32 %v16621_v46, %v16621_v46  ;;  %8658 = vmatprep.subr.bf16.mxu1 %v12358_v34  ;;  %v17895_v41 = vld [vmem:[#allocation43_spill] sm:$0xff]  ;;  %v13178_v48 = vld [vmem:[#allocation2 + $0xe0] sm:$0xff] }
0x124b   : > { %17892 = vst [vmem:[#allocation78_spill] sm:$0xff] %v16628_v26  ;;  %v8057_v62 = vadd.f32 %v13175_v16, %v8025_v63  ;;  %8148 = vadd.xlane.f32.xlu0 %v16628_v26  ;;  %v17894_v63 = vld [vmem:[#allocation83_spill] sm:$0xff] }
0x124c   : > { %8270 = vadd.xlane.f32.xlu1 %v8233_v55  ;;  %v16642_v4 = vsub.f32 %v16494_v27, %v8171_v43  ;;  %v4445_v43 = vadd.f32 %v17895_v41, %v17894_v63 }
0x124d   : > { %v16638_v28 = vadd.f32 %v16456_v50, %v8057_v62  ;;  %8659 = vmatpush1.bf16.msra.mxu1 %v12356_v24  ;;  %v17898_v24 = vld [vmem:[#allocation50_spill] sm:$0xff] }
0x124e   : > { %v8235_v3 = vmul.f32 %v16642_v4, %v16642_v4  ;;  %v6241_v45 = vadd.f32 %v17897_v44, %v4445_v43  ;;  %8660 = vmatprep.subr.bf16.mxu1 %v12361_v42 }
0x124f   : > { %8272 = vadd.xlane.f32.xlu0 %v8234_v54  ;;  %v16664_v54 = vadd.f32 %v16456_v50, %v8059_v32 }
0x1250   : > { %8150 = vadd.xlane.f32.xlu1 %v16638_v28  ;;  %v8117_v6 = vpop.xlane.xlu0 %8116 }
0x1251   : > { %v8172_v20 = vmul.f32 0.0078125, %v8117_v6 }
0x1252   : > { %v12120_v29 = vpop.f32.mrf.mxu0 }
0x1253   : > { %v16654_v8 = vsub.f32 %v16504_v56, %v8172_v20  ;;  %8152 = vadd.xlane.f32.xlu0 %v16648_v18  ;;  %v12359_v20 = vld [vmem:[%s13311_s18 + $0x10] ss:$8 sps:$4 sm:$0xff]   ;;  %v8030_v32 = vadd.f32 %v12120_v29, %v17898_v24 }
0x1254   : > { %8274 = vadd.xlane.f32.xlu1 %v8235_v3  ;;  %v8121_v23 = vpop.xlane.xlu0 %8120  ;;  %v7985_v11 = vpop.f32.mrf.mxu0  ;;  %8661 = vmatpush1.bf16.msra.mxu1 %v12359_v20  ;;  %v17899_v20 = vld [vmem:[#allocation75_spill] sm:$0xff] }
0x1255   : > { %v8174_v55 = vmul.f32 0.0078125, %v8121_v23  ;;  %v8028_v16 = vadd.f32 %v7985_v11, %v17896_v51  ;;  %v8119_v62 = vpop.xlane.xlu1 %8118  ;;  %v8236_v40 = vmul.f32 %v16654_v8, %v16654_v8 }
0x1256   : > { %v8173_v14 = vmul.f32 0.0078125, %v8119_v62  ;;  %v12121_v59 = vpop.f32.mrf.mxu0  ;;  %v13179_v62 = vld [vmem:[#allocation2 + $0xe8] sm:$0xff] }
0x1257   : > { %v8060_v6 = vadd.f32 %v13178_v48, %v8028_v16  ;;  %8276 = vadd.xlane.f32.xlu0 %v8236_v40  ;;  %v16675_v23 = vsub.f32 %v16510_v12, %v8174_v55  ;;  %v12364_v16 = vld [vmem:[%s13311_s18 + $0x4] ss:$8 sps:$4 sm:$0xff]   ;;  %v13180_v55 = vld [vmem:[#allocation2 + $0xf0] sm:$0xff] }
0x1258   : > { %v16670_v2 = vsub.f32 %v16515_v61, %v8173_v14  ;;  %8154 = vadd.xlane.f32.xlu1 %v16664_v54  ;;  %v8125_v3 = vpop.xlane.xlu0 %8124  ;;  %v7988_v34 = vpop.f32.mrf.mxu0  ;;  %v12362_v14 = vld [vmem:[%s13311_s18] ss:$8 sps:$4 sm:$0xff]   ;;  %8662 = vmatprep.subr.bf16.mxu1 %v12364_v16  ;;  %v8062_v42 = vadd.f32 %v13180_v55, %v8030_v32 }
0x1259   : > { %v8029_v11 = vadd.f32 %v7988_v34, %v6241_v45  ;;  %v8123_v63 = vpop.xlane.xlu1 %8122  ;;  %v16678_v41 = vadd.f32 %v16456_v50, %v8060_v6  ;;  %v8176_v44 = vmul.f32 0.0078125, %v8125_v3  ;;  %v8238_v6 = vmul.f32 %v16675_v23, %v16675_v23  ;;  %8663 = vmatpush1.bf16.msra.mxu1 %v12362_v14 }
0x125a   : > { %v8175_v43 = vmul.f32 0.0078125, %v8123_v63  ;;  %v8237_v51 = vmul.f32 %v16670_v2, %v16670_v2  ;;  %v8031_v34 = vadd.f32 %v12121_v59, %v17899_v20  ;;  %v16700_v16 = vadd.f32 %v16456_v50, %v8062_v42 }
0x125b   : > { %v8061_v40 = vadd.f32 %v13179_v62, %v8029_v11  ;;  %8156 = vadd.xlane.f32.xlu0 %v16678_v41  ;;  %v17394_v11 = vmov 0   ;;  %v16697_v32 = vsub.f32 %v16525_v39, %v8176_v44  ;;  %v13181_v62 = vld [vmem:[#allocation2 + $0xf8] sm:$0xff] }
0x125c   : > { %8278 = vadd.xlane.f32.xlu1 %v8237_v51  ;;  %v8129_v29 = vpop.xlane.xlu0 %8128  ;;  %v16692_v24 = vsub.f32 %v16522_v19, %v8175_v43  ;;  %8680 = vmatprep.mubr.bf16.mxu1 %v17394_v11  ;;  %v8063_v59 = vadd.f32 %v13181_v62, %v8031_v34 }
0x125d   : > { %v8127_v45 = vpop.xlane.xlu1 %8126  ;;  %v16686_v48 = vadd.f32 %v16456_v50, %v8061_v40  ;;  %v8178_v63 = vmul.f32 0.0078125, %v8129_v29  ;;  %v8240_v29 = vmul.f32 %v16697_v32, %v16697_v32 }
0x125e   : > { %v8177_v40 = vmul.f32 0.0078125, %v8127_v45  ;;  %v8239_v43 = vmul.f32 %v16692_v24, %v16692_v24  ;;  %v16714_v45 = vadd.f32 %v16456_v50, %v8063_v59 }
0x125f   : > { %8280 = vadd.xlane.f32.xlu0 %v8238_v6  ;;  %v16706_v14 = vsub.f32 %v16534_v53, %v8178_v63 }
0x1260   : > { %8158 = vadd.xlane.f32.xlu1 %v16686_v48  ;;  %v8133_v3 = vpop.xlane.xlu0 %8132  ;;  %v16711_v42 = vsub.f32 %v16537_v7, %v8177_v40  ;;  %17900 = vst [vmem:[#allocation30_spill] sm:$0xff] %v16714_v45 }
0x1261   : > { %v8131_v51 = vpop.xlane.xlu1 %8130  ;;  %v8180_v55 = vmul.f32 0.0078125, %v8133_v3  ;;  %v8242_v3 = vmul.f32 %v16706_v14, %v16706_v14 }
0x1262   : > { %v8179_v6 = vmul.f32 0.0078125, %v8131_v51  ;;  %v8241_v51 = vmul.f32 %v16711_v42, %v16711_v42 }
0x1263   : > { %8160 = vadd.xlane.f32.xlu0 %v16700_v16  ;;  %v16718_v34 = vsub.f32 %v16547_v17, %v8180_v55 }
0x1264   : > { %8282 = vadd.xlane.f32.xlu1 %v8239_v43  ;;  %v8137_v20 = vpop.xlane.xlu0 %8136  ;;  %v16723_v62 = vsub.f32 %v16543_v52, %v8179_v6 }
0x1265   : > { %v8135_v44 = vpop.xlane.xlu1 %8134  ;;  %v8182_v63 = vmul.f32 0.0078125, %v8137_v20  ;;  %v8244_v59 = vmul.f32 %v16718_v34, %v16718_v34 }
0x1266   : > { %v8181_v40 = vmul.f32 0.0078125, %v8135_v44  ;;  %v8243_v6 = vmul.f32 %v16723_v62, %v16723_v62 }
0x1267   : > { %8284 = vadd.xlane.f32.xlu0 %v8240_v29  ;;  %v16728_v50 = vsub.f32 %v16552_v47, %v8182_v63 }
0x1268   : > { %8162 = vadd.xlane.f32.xlu1 %v16714_v45  ;;  %v16733_v55 = vsub.f32 %v16555_v33, %v8181_v40 }
0x1269   : > { %v8139_v43 = vpop.xlane.xlu1 %8138  ;;  %v8246_v44 = vmul.f32 %v16728_v50, %v16728_v50 }
0x126a   : > { %v8183_v29 = vmul.f32 0.0078125, %v8139_v43  ;;  %v8245_v63 = vmul.f32 %v16733_v55, %v16733_v55 }
0x126b   : > { %8288 = vadd.xlane.f32.xlu0 %v8242_v3 }
0x126c   : > { %8286 = vadd.xlane.f32.xlu1 %v8241_v51  ;;  %v16740_v20 = vsub.f32 %v16560_v60, %v8183_v29 }
0x126e   : > { %v8247_v3 = vmul.f32 %v16740_v20, %v16740_v20 }
0x126f   : > { %8292 = vadd.xlane.f32.xlu0 %v8244_v59 }
0x1270   : > { %8290 = vadd.xlane.f32.xlu1 %v8243_v6 }
0x1273   : > { %8296 = vadd.xlane.f32.xlu0 %v8246_v44 }
0x1274   : > { %8294 = vadd.xlane.f32.xlu1 %v8245_v63 }
0x1278   : > { %8298 = vadd.xlane.f32.xlu1 %v8247_v3 }
0x12c0   : > { %v8261_v40 = vpop.xlane.xlu0 %8260 }
0x12c1   : > { %v8324_v51 = vmul.f32 0.0078125, %v8261_v40 }
0x12c3   : > { %v8356_v43 = vadd.f32 1e-05, %v8324_v51 }
0x12c4   : > { %v8141_v59 = vpop.xlane.xlu0 %8140  ;;  %v8263_v6 = vpop.xlane.xlu1 %8262 }
0x12c5   : > { %12957 = vrsqrt.f32 %v8356_v43  ;;  %v8184_v11 = vmul.f32 0.0078125, %v8141_v59  ;;  %v8325_v47 = vmul.f32 0.0078125, %v8263_v6 }
0x12c7   : > { %v16747_v29 = vsub.f32 %v16579_v31, %v8184_v11  ;;  %v8357_v60 = vadd.f32 1e-05, %v8325_v47 }
0x12c8   : > { %v8265_v33 = vpop.xlane.xlu0 %8264  ;;  %v8143_v17 = vpop.xlane.xlu1 %8142 }
0x12c9   : > { %12959 = vrsqrt.f32 %v8357_v60  ;;  %v8326_v44 = vmul.f32 0.0078125, %v8265_v33  ;;  %v8185_v63 = vmul.f32 0.0078125, %v8143_v17  ;;  %v8248_v3 = vmul.f32 %v16747_v29, %v16747_v29 }
0x12ca   : > { %v8454_v60 = vsub.s32 3, %v17838_v38 }
0x12cb   : > { %v8358_v52 = vadd.f32 1e-05, %v8326_v44  ;;  %v16752_v40 = vsub.f32 %v16594_v49, %v8185_v63  ;;  %8300 = vadd.xlane.f32.xlu0 %v8248_v3 }
0x12cc   : > { %v8145_v51 = vpop.xlane.xlu0 %8144  ;;  %v8267_v43 = vpop.xlane.xlu1 %8266 }
0x12cd   : > { %12961 = vrsqrt.f32 %v8358_v52  ;;  %v8186_v59 = vmul.f32 0.0078125, %v8145_v51  ;;  %v8327_v11 = vmul.f32 0.0078125, %v8267_v43  ;;  %v8249_v47 = vmul.f32 %v16752_v40, %v16752_v40 }
0x12ce   : > { %v16763_v43 = vrot.slane %v16453_v0, %v8454_v60 }
0x12cf   : > { %v16758_v17 = vsub.f32 %v16598_v25, %v8186_v59  ;;  %v8359_v33 = vadd.f32 1e-05, %v8327_v11  ;;  %8302 = vadd.xlane.f32.xlu1 %v8249_v47  ;;  %v8490_v11 = vsub.s32 4, %v17838_v38 }
0x12d0   : > { %v8269_v6 = vpop.xlane.xlu0 %8268  ;;  %v8147_v44 = vpop.xlane.xlu1 %8146 }
0x12d1   : > { %12963 = vrsqrt.f32 %v8359_v33  ;;  %v8328_v63 = vmul.f32 0.0078125, %v8269_v6  ;;  %v8187_v3 = vmul.f32 0.0078125, %v8147_v44  ;;  %v8250_v52 = vmul.f32 %v16758_v17, %v16758_v17 }
0x12d2   : > { %v12958_v51 = vpop.eup %12957 }
0x12d3   : > { %v8420_v49 = vmul.f32 %v12958_v51, %v16570_v13  ;;  %v8360_v31 = vadd.f32 1e-05, %v8328_v63  ;;  %v16767_v59 = vsub.f32 %v16614_v15, %v8187_v3  ;;  %8304 = vadd.xlane.f32.xlu0 %v8250_v52  ;;  %v16778_v3 = vrot.slane %v16453_v0, %v8490_v11 }
0x12d4   : > { %v8149_v47 = vpop.xlane.xlu0 %8148 }
0x12d5   : > { %12965 = vrsqrt.f32 %v8360_v31  ;;  %v8188_v33 = vmul.f32 0.0078125, %v8149_v47  ;;  %v8271_v6 = vpop.xlane.xlu1 %8270  ;;  %v8251_v44 = vmul.f32 %v16767_v59, %v16767_v59  ;;  %v8456_v60 = vmul.f32 %v16763_v43, %v8420_v49 }
0x12d6   : > { %v12960_v25 = vpop.eup %12959  ;;  %v8329_v53 = vmul.f32 0.0078125, %v8271_v6 }
0x12d7   : > { %v8421_v13 = vmul.f32 %v12960_v25, %v16575_v57  ;;  %v16775_v63 = vsub.f32 %v16628_v26, %v8188_v33  ;;  %8306 = vadd.xlane.f32.xlu1 %v8251_v44  ;;  %v8492_v25 = vadd.f32 %v16778_v3, %v8456_v60 }
0x12d8   : > { %v8361_v52 = vadd.f32 1e-05, %v8329_v53  ;;  %v8273_v31 = vpop.xlane.xlu0 %8272 }
0x12d9   : > { %v8457_v51 = vmul.f32 %v16763_v43, %v8421_v13  ;;  %v8330_v47 = vmul.f32 0.0078125, %v8273_v31  ;;  %v8151_v15 = vpop.xlane.xlu1 %8150  ;;  %v8252_v6 = vmul.f32 %v16775_v63, %v16775_v63 }
0x12da   : > { %v12962_v7 = vpop.eup %12961  ;;  %12967 = vrsqrt.f32 %v8361_v52  ;;  %v8189_v49 = vmul.f32 0.0078125, %v8151_v15 }
0x12db   : > { %v8362_v57 = vadd.f32 1e-05, %v8330_v47  ;;  %8308 = vadd.xlane.f32.xlu0 %v8252_v6  ;;  %v8493_v33 = vadd.f32 %v16778_v3, %v8457_v51  ;;  %v8422_v0 = vmul.f32 %v12962_v7, %v16582_v22  ;;  %v17901_v47 = vmov 0  }
0x12dc   : > { %v16787_v53 = vsub.f32 %v16638_v28, %v8189_v49  ;;  %v8153_v11 = vpop.xlane.xlu0 %8152 }
0x12dd   : > { %12969 = vrsqrt.f32 %v8362_v57  ;;  %v8190_v44 = vmul.f32 0.0078125, %v8153_v11  ;;  %v8275_v13 = vpop.xlane.xlu1 %8274  ;;  %v8524_v31 = vpack.c.bf16 %v8493_v33, %v8492_v25  ;;  %v8458_v7 = vmul.f32 %v16763_v43, %v8422_v0 }
0x12de   : > { %v12964_v26 = vpop.eup %12963  ;;  %v8331_v39 = vmul.f32 0.0078125, %v8275_v13  ;;  %v8253_v15 = vmul.f32 %v16787_v53, %v16787_v53 }
0x12df   : > { %v16792_v52 = vsub.f32 %v16648_v18, %v8190_v44  ;;  %8681 = vmatmul.mubr.bf16.vlgmr.msra.gmra.mxu1 %v8524_v31  ;;  %v8423_v60 = vmul.f32 %v12964_v26, %v16589_v30  ;;  %v8494_v30 = vadd.f32 %v16778_v3, %v8458_v7 }
0x12e0   : > { %v8363_v22 = vadd.f32 1e-05, %v8331_v39  ;;  %8310 = vadd.xlane.f32.xlu1 %v8253_v15  ;;  %v8277_v51 = vpop.xlane.xlu0 %8276  ;;  %8690 = vmatprep.mubr.bf16.mxu1 %v17901_v47 }
0x12e1   : > { %v8332_v6 = vmul.f32 0.0078125, %v8277_v51  ;;  %v8155_v49 = vpop.xlane.xlu1 %8154  ;;  %v8254_v57 = vmul.f32 %v16792_v52, %v16792_v52  ;;  %v8459_v25 = vmul.f32 %v16763_v43, %v8423_v60 }
0x12e2   : > { %v12966_v33 = vpop.eup %12965  ;;  %12971 = vrsqrt.f32 %v8363_v22  ;;  %v8191_v11 = vmul.f32 0.0078125, %v8155_v49 }
0x12e3   : > { %v8364_v44 = vadd.f32 1e-05, %v8332_v6  ;;  %8312 = vadd.xlane.f32.xlu0 %v8254_v57  ;;  %v8495_v39 = vadd.f32 %v16778_v3, %v8459_v25  ;;  %v8424_v13 = vmul.f32 %v12966_v33, %v16604_v1 }
0x12e4   : > { %v16803_v26 = vsub.f32 %v16664_v54, %v8191_v11  ;;  %v8157_v0 = vpop.xlane.xlu0 %8156 }
0x12e5   : > { %12973 = vrsqrt.f32 %v8364_v44  ;;  %v8279_v31 = vpop.xlane.xlu1 %8278  ;;  %v8192_v15 = vmul.f32 0.0078125, %v8157_v0  ;;  %v8525_v51 = vpack.c.bf16 %v8495_v39, %v8494_v30  ;;  %v8460_v25 = vmul.f32 %v16763_v43, %v8424_v13 }
0x12e6   : > { %v8333_v60 = vmul.f32 0.0078125, %v8279_v31  ;;  %v8255_v22 = vmul.f32 %v16803_v26, %v16803_v26 }
0x12e7   : > { %v12968_v6 = vpop.eup %12967  ;;  %v16809_v49 = vsub.f32 %v16678_v41, %v8192_v15  ;;  %8691 = vmatmul.mubr.bf16.gmra.mxu1 %v8525_v51 }
0x12e8   : > { %v8365_v7 = vadd.f32 1e-05, %v8333_v60  ;;  %8314 = vadd.xlane.f32.xlu1 %v8255_v22  ;;  %v8281_v57 = vpop.xlane.xlu0 %8280  ;;  %8700 = vmatprep.mubr.bf16.mxu1 %v17901_v47  ;;  %v8425_v1 = vmul.f32 %v12968_v6, %v16621_v46  ;;  %v8496_v46 = vadd.f32 %v16778_v3, %v8460_v25 }
0x12e9   : > { %v8159_v33 = vpop.xlane.xlu1 %8158  ;;  %v8334_v11 = vmul.f32 0.0078125, %v8281_v57  ;;  %v8256_v44 = vmul.f32 %v16809_v49, %v16809_v49 }
0x12ea   : > { %v12970_v30 = vpop.eup %12969  ;;  %12975 = vrsqrt.f32 %v8365_v7  ;;  %v8193_v39 = vmul.f32 0.0078125, %v8159_v33  ;;  %v8461_v0 = vmul.f32 %v16763_v43, %v8425_v1 }
0x12eb   : > { %v8366_v31 = vadd.f32 1e-05, %v8334_v11  ;;  %8316 = vadd.xlane.f32.xlu0 %v8256_v44  ;;  %v8426_v60 = vmul.f32 %v12970_v30, %v16625_v36 }
0x12ec   : > { %v16818_v15 = vsub.f32 %v16686_v48, %v8193_v39  ;;  %v8161_v51 = vpop.xlane.xlu0 %8160  ;;  %v8497_v13 = vadd.f32 %v16778_v3, %v8461_v0 }
0x12ed   : > { %12977 = vrsqrt.f32 %v8366_v31  ;;  %v8283_v22 = vpop.xlane.xlu1 %8282  ;;  %v8194_v6 = vmul.f32 0.0078125, %v8161_v51  ;;  %v8462_v36 = vmul.f32 %v16763_v43, %v8426_v60 }
0x12ee   : > { %v8335_v57 = vmul.f32 0.0078125, %v8283_v22  ;;  %v8526_v7 = vpack.c.bf16 %v8497_v13, %v8496_v46  ;;  %v8257_v1 = vmul.f32 %v16818_v15, %v16818_v15 }
0x12ef   : > { %v12972_v33 = vpop.eup %12971  ;;  %v16826_v11 = vsub.f32 %v16700_v16, %v8194_v6 }
0x12f0   : > { %v8367_v44 = vadd.f32 1e-05, %v8335_v57  ;;  %8701 = vmatmul.mubr.bf16.gmra.mxu1 %v8526_v7  ;;  %8318 = vadd.xlane.f32.xlu1 %v8257_v1  ;;  %v8285_v25 = vpop.xlane.xlu0 %8284  ;;  %v8427_v39 = vmul.f32 %v12972_v33, %v16642_v4  ;;  %v8498_v57 = vadd.f32 %v16778_v3, %v8462_v36 }
0x12f1   : > { %v8163_v30 = vpop.xlane.xlu1 %8162  ;;  %v8336_v0 = vmul.f32 0.0078125, %v8285_v25  ;;  %v8258_v31 = vmul.f32 %v16826_v11, %v16826_v11  ;;  %8710 = vmatprep.mubr.bf16.mxu1 %v17901_v47 }
0x12f2   : > { %v12974_v51 = vpop.eup %12973  ;;  %12979 = vrsqrt.f32 %v8367_v44  ;;  %v8195_v46 = vmul.f32 0.0078125, %v8163_v30  ;;  %v8463_v13 = vmul.f32 %v16763_v43, %v8427_v39 }
0x12f3   : > { %v8368_v22 = vadd.f32 1e-05, %v8336_v0  ;;  %8320 = vadd.xlane.f32.xlu0 %v8258_v31  ;;  %v8428_v6 = vmul.f32 %v12974_v51, %v16654_v8 }
0x12f4   : > { %v16836_v4 = vsub.f32 %v16714_v45, %v8195_v46  ;;  %v8289_v60 = vpop.xlane.xlu0 %8288  ;;  %v8499_v7 = vadd.f32 %v16778_v3, %v8463_v13 }
0x12f5   : > { %12981 = vrsqrt.f32 %v8368_v22  ;;  %v8287_v1 = vpop.xlane.xlu1 %8286  ;;  %v8338_v33 = vmul.f32 0.0078125, %v8289_v60  ;;  %v8464_v8 = vmul.f32 %v16763_v43, %v8428_v6 }
0x12f6   : > { %v8337_v25 = vmul.f32 0.0078125, %v8287_v1  ;;  %v8527_v44 = vpack.c.bf16 %v8499_v7, %v8498_v57  ;;  %v8259_v39 = vmul.f32 %v16836_v4, %v16836_v4 }
0x12f7   : > { %v12976_v30 = vpop.eup %12975  ;;  %v8370_v0 = vadd.f32 1e-05, %v8338_v33  ;;  %v8500_v57 = vadd.f32 %v16778_v3, %v8464_v8 }
0x12f8   : > { %v8369_v31 = vadd.f32 1e-05, %v8337_v25  ;;  %8711 = vmatmul.mubr.bf16.gmra.mxu1 %v8527_v44  ;;  %8322 = vadd.xlane.f32.xlu1 %v8259_v39  ;;  %v8429_v51 = vmul.f32 %v12976_v30, %v16670_v2  ;;  %v8293_v46 = vpop.xlane.xlu0 %8292 }
0x12f9   : > { %v8291_v36 = vpop.xlane.xlu1 %8290  ;;  %8720 = vmatprep.mubr.bf16.mxu1 %v17901_v47  ;;  %v8340_v1 = vmul.f32 0.0078125, %v8293_v46 }
0x12fa   : > { %v12978_v13 = vpop.eup %12977  ;;  %12983 = vrsqrt.f32 %v8369_v31  ;;  %v8339_v22 = vmul.f32 0.0078125, %v8291_v36  ;;  %v8465_v60 = vmul.f32 %v16763_v43, %v8429_v51 }
0x12fb   : > { %12985 = vrsqrt.f32 %v8370_v0  ;;  %v8430_v33 = vmul.f32 %v12978_v13, %v16675_v23  ;;  %v8372_v30 = vadd.f32 1e-05, %v8340_v1 }
0x12fc   : > { %v8371_v7 = vadd.f32 1e-05, %v8339_v22  ;;  %v8501_v6 = vadd.f32 %v16778_v3, %v8465_v60  ;;  %v8297_v31 = vpop.xlane.xlu0 %8296 }
0x12fd   : > { %v8295_v25 = vpop.xlane.xlu1 %8294  ;;  %v8466_v0 = vmul.f32 %v16763_v43, %v8430_v33  ;;  %v8342_v13 = vmul.f32 0.0078125, %v8297_v31 }
0x12fe   : > { %12987 = vrsqrt.f32 %v8371_v7  ;;  %v8341_v2 = vmul.f32 0.0078125, %v8295_v25  ;;  %v8528_v44 = vpack.c.bf16 %v8501_v6, %v8500_v57 }
0x12ff   : > { %v12980_v39 = vpop.eup %12979  ;;  %v8502_v22 = vadd.f32 %v16778_v3, %v8466_v0  ;;  %v8374_v6 = vadd.f32 1e-05, %v8342_v13 }
0x1300   : > { %v8373_v45 = vadd.f32 1e-05, %v8341_v2  ;;  %8721 = vmatmul.mubr.bf16.gmra.mxu1 %v8528_v44  ;;  %v8431_v51 = vmul.f32 %v12980_v39, %v16692_v24 }
0x1301   : > { %v8299_v8 = vpop.xlane.xlu1 %8298  ;;  %8730 = vmatprep.mubr.bf16.mxu1 %v17901_v47 }
0x1302   : > { %v12982_v36 = vpop.eup %12981  ;;  %12989 = vrsqrt.f32 %v8373_v45  ;;  %v8343_v46 = vmul.f32 0.0078125, %v8299_v8  ;;  %v8467_v23 = vmul.f32 %v16763_v43, %v8431_v51 }
0x1303   : > { %12991 = vrsqrt.f32 %v8372_v30  ;;  %v8432_v57 = vmul.f32 %v12982_v36, %v16697_v32 }
0x1304   : > { %v8503_v60 = vadd.f32 %v16778_v3, %v8467_v23  ;;  %v8375_v7 = vadd.f32 1e-05, %v8343_v46 }
0x1305   : > { %v8468_v45 = vmul.f32 %v16763_v43, %v8432_v57 }
0x1306   : > { %v8529_v24 = vpack.c.bf16 %v8503_v60, %v8502_v22  ;;  %12993 = vrsqrt.f32 %v8375_v7 }
0x1307   : > { %v12984_v1 = vpop.eup %12983  ;;  %12995 = vrsqrt.f32 %v8374_v6  ;;  %v8504_v39 = vadd.f32 %v16778_v3, %v8468_v45  ;;  %v12366_v45 = vld [vmem:[%s13316_s21 + $0x38] sm:$0xff]  }
0x1308   : > { %v12986_v33 = vpop.eup %12985  ;;  %8731 = vmatmul.mubr.bf16.gmra.mxu1 %v8529_v24  ;;  %v8433_v25 = vmul.f32 %v12984_v1, %v16711_v42 }
0x1309   : > { %8740 = vmatprep.mubr.bf16.mxu1 %v17901_v47  ;;  %v8434_v30 = vmul.f32 %v12986_v33, %v16706_v14 }
0x130a   : > { %v8469_v2 = vmul.f32 %v16763_v43, %v8433_v25  ;;  %v12365_v25 = vld [vmem:[%s13316_s21 + $0x78] sm:$0xff]  }
0x130b   : > { %v12988_v44 = vpop.eup %12987  ;;  %v8470_v8 = vmul.f32 %v16763_v43, %v8434_v30  ;;  %10778 = vmatprep.subr.bf16.mxu0 %v12365_v25  ;;  %v12369_v30 = vld [vmem:[%s13316_s21 + $0x68] sm:$0xff]  }
0x130c   : > { %v8505_v32 = vadd.f32 %v16778_v3, %v8469_v2  ;;  %v8435_v31 = vmul.f32 %v12988_v44, %v16723_v62  ;;  %10779 = vmatpush3.bf16.msra.mxu0 %v12366_v45  ;;  %v12367_v44 = vld [vmem:[%s13316_s21 + $0x70] sm:$0xff]  }
0x130d   : > { %v8506_v13 = vadd.f32 %v16778_v3, %v8470_v8  ;;  %10780 = vmatprep.subr.bf16.mxu0 %v12367_v44  ;;  %v12374_v8 = vld [vmem:[%s13316_s21 + $0x18] sm:$0xff]  }
0x130e   : > { %v8530_v51 = vpack.c.bf16 %v8505_v32, %v8504_v39  ;;  %v8471_v42 = vmul.f32 %v16763_v43, %v8435_v31  ;;  %v12370_v31 = vld [vmem:[%s13316_s21 + $0x28] sm:$0xff]  }
0x130f   : > { %v12990_v0 = vpop.eup %12989 }
0x1310   : > { %8741 = vmatmul.mubr.bf16.gmra.mxu1 %v8530_v51  ;;  %v12992_v36 = vpop.eup %12991  ;;  %v8507_v46 = vadd.f32 %v16778_v3, %v8471_v42  ;;  %v8437_v23 = vmul.f32 %v12990_v0, %v16733_v55  ;;  %v12371_v51 = vld [vmem:[%s13316_s21 + $0x60] sm:$0xff]   ;;  %v12373_v0 = vld [vmem:[%s13316_s21 + $0x58] sm:$0xff]  }
0x1311   : > { %8750 = vmatprep.mubr.bf16.mxu1 %v17901_v47  ;;  %v8436_v14 = vmul.f32 %v12992_v36, %v16718_v34  ;;  %v12372_v42 = vld [vmem:[%s13316_s21 + $0x20] sm:$0xff]   ;;  %v12375_v36 = vld [vmem:[%s13316_s21 + $0x50] sm:$0xff]  }
0x1312   : > { %v8531_v62 = vpack.c.bf16 %v8507_v46, %v8506_v13  ;;  %v8473_v22 = vmul.f32 %v16763_v43, %v8437_v23  ;;  %v12376_v46 = vld [vmem:[%s13316_s21 + $0x10] sm:$0xff]   ;;  %v12377_v23 = vld [vmem:[%s13316_s21 + $0x48] sm:$0xff]  }
0x1313   : > { %v12994_v60 = vpop.eup %12993  ;;  %v8472_v7 = vmul.f32 %v16763_v43, %v8436_v14  ;;  %v12378_v13 = vld [vmem:[%s13316_s21 + $0x8] sm:$0xff]   ;;  %v12379_v14 = vld [vmem:[%s13316_s21 + $0x40] sm:$0xff]  }
0x1314   : > { %v12996_v57 = vpop.eup %12995  ;;  %v8509_v55 = vadd.f32 %v16778_v3, %v8473_v22  ;;  %v8439_v24 = vmul.f32 %v12994_v60, %v16740_v20 }
0x1315   : > { %v8508_v1 = vadd.f32 %v16778_v3, %v8472_v7  ;;  %v8438_v34 = vmul.f32 %v12996_v57, %v16728_v50  ;;  %v12368_v50 = vld [vmem:[%s13316_s21 + $0x30] sm:$0xff]  }
0x1316   : > { %v8475_v33 = vmul.f32 %v16763_v43, %v8439_v24  ;;  %10781 = vmatpush3.bf16.msra.mxu0 %v12368_v50 }
0x1317   : > { %v8532_v6 = vpack.c.bf16 %v8509_v55, %v8508_v1  ;;  %v8474_v2 = vmul.f32 %v16763_v43, %v8438_v34  ;;  %10782 = vmatprep.subr.bf16.mxu0 %v12369_v30 }
0x1318   : > { %8751 = vmatmul.mubr.bf16.gmra.mxu1 %v8531_v62  ;;  %v8511_v20 = vadd.f32 %v16778_v3, %v8475_v33  ;;  %v12380_v62 = vld [vmem:[%s13316_s21] sm:$0xff]   ;;  %s13183_s21 = scalar_lea.vmem %s9561_s15, 4096 }
0x1319   : > { %8760 = vmatprep.mubr.bf16.mxu1 %v17901_v47  ;;  %v8510_v39 = vadd.f32 %v16778_v3, %v8474_v2  ;;  %p13184_p7 = scmp.ne.s32.totalorder %s9561_s15, %s13183_s21  ;;  %p13191_p11 = scmp.lt.s32.totalorder %s13183_s21, %s13183_s21 }
0x131a   : > { %10783 = vmatpush3.bf16.msra.mxu0 %v12370_v31 }
0x131b   : > { %v8533_v32 = vpack.c.bf16 %v8511_v20, %v8510_v39  ;;  %10784 = vmatprep.subr.bf16.mxu0 %v12371_v51  ;;  %p13185_p8 = pnand %p13184_p7, %p17255_p6  ;;  %p13192_p12 = por %p13191_p11, %p13190_p10 }
0x131d   : > { %p13186_p9 = pneg %p13185_p8 }
0x131e   : > { %10785 = vmatpush3.bf16.msra.mxu0 %v12372_v42 }
0x131f   : > { %10786 = vmatprep.subr.bf16.mxu0 %v12373_v0  ;;  %p13193_p13 = pnand %p13192_p12, %p13186_p9 }
0x1320   : > { %8761 = vmatmul.mubr.bf16.gmra.mxu1 %v8532_v6 }
0x1321   : > { %8770 = vmatprep.mubr.bf16.mxu1 %v17901_v47 }
0x1322   : > { %10787 = vmatpush3.bf16.msra.mxu0 %v12374_v8 }
0x1323   : > { %10788 = vmatprep.subr.bf16.mxu0 %v12375_v36 }
0x1326   : > { %10789 = vmatpush3.bf16.msra.mxu0 %v12376_v46 }
0x1327   : > { %10790 = vmatprep.subr.bf16.mxu0 %v12377_v23 }
0x1328   : > { %8771 = vmatmul.mubr.bf16.gmra.mxu1 %v8533_v32 }
0x1329   : > { %8780 = vmatprep.mubr.bf16.mxu1 %v17901_v47 }
0x132a   : > { %10791 = vmatpush3.bf16.msra.mxu0 %v12378_v13 }
0x132b   : > { %10792 = vmatprep.subr.bf16.mxu0 %v12379_v14 }
0x132e   : > { %10793 = vmatpush3.bf16.msra.mxu0 %v12380_v62 }
0x1354   : > { %v8301_v22 = vpop.xlane.xlu0 %8300 }
0x1355   : > { %v8344_v60 = vmul.f32 0.0078125, %v8301_v22 }
0x1357   : > { %v8376_v57 = vadd.f32 1e-05, %v8344_v60 }
0x1358   : > { %v8303_v7 = vpop.xlane.xlu1 %8302 }
0x1359   : > { %12997 = vrsqrt.f32 %v8376_v57  ;;  %v8345_v55 = vmul.f32 0.0078125, %v8303_v7 }
0x135b   : > { %v8377_v24 = vadd.f32 1e-05, %v8345_v55 }
0x135c   : > { %v8305_v1 = vpop.xlane.xlu0 %8304 }
0x135d   : > { %12999 = vrsqrt.f32 %v8377_v24  ;;  %v8346_v34 = vmul.f32 0.0078125, %v8305_v1 }
0x135f   : > { %v8378_v6 = vadd.f32 1e-05, %v8346_v34 }
0x1360   : > { %v8307_v33 = vpop.xlane.xlu1 %8306 }
0x1361   : > { %13001 = vrsqrt.f32 %v8378_v6  ;;  %v8347_v25 = vmul.f32 0.0078125, %v8307_v33 }
0x1363   : > { %v8379_v45 = vadd.f32 1e-05, %v8347_v25 }
0x1364   : > { %v8309_v2 = vpop.xlane.xlu0 %8308 }
0x1365   : > { %13003 = vrsqrt.f32 %v8379_v45  ;;  %v8348_v20 = vmul.f32 0.0078125, %v8309_v2 }
0x1366   : > { %v12998_v44 = vpop.eup %12997 }
0x1367   : > { %v8380_v50 = vadd.f32 1e-05, %v8348_v20  ;;  %v8440_v39 = vmul.f32 %v12998_v44, %v16747_v29 }
0x1369   : > { %13005 = vrsqrt.f32 %v8380_v50  ;;  %v8311_v32 = vpop.xlane.xlu1 %8310  ;;  %v8476_v42 = vmul.f32 %v16763_v43, %v8440_v39 }
0x136a   : > { %v13000_v30 = vpop.eup %12999  ;;  %v8349_v31 = vmul.f32 0.0078125, %v8311_v32 }
0x136b   : > { %v8441_v51 = vmul.f32 %v13000_v30, %v16752_v40  ;;  %v8512_v14 = vadd.f32 %v16778_v3, %v8476_v42 }
0x136c   : > { %v8381_v0 = vadd.f32 1e-05, %v8349_v31  ;;  %v8313_v8 = vpop.xlane.xlu0 %8312 }
0x136d   : > { %v8350_v36 = vmul.f32 0.0078125, %v8313_v8  ;;  %v8477_v46 = vmul.f32 %v16763_v43, %v8441_v51 }
0x136e   : > { %v13002_v23 = vpop.eup %13001  ;;  %13007 = vrsqrt.f32 %v8381_v0 }
0x136f   : > { %v8382_v13 = vadd.f32 1e-05, %v8350_v36  ;;  %v8513_v29 = vadd.f32 %v16778_v3, %v8477_v46  ;;  %v8442_v62 = vmul.f32 %v13002_v23, %v16758_v17 }
0x1371   : > { %13009 = vrsqrt.f32 %v8382_v13  ;;  %v8315_v22 = vpop.xlane.xlu1 %8314  ;;  %v8534_v60 = vpack.c.bf16 %v8513_v29, %v8512_v14  ;;  %v8478_v55 = vmul.f32 %v16763_v43, %v8442_v62 }
0x1372   : > { %v13004_v40 = vpop.eup %13003  ;;  %v8351_v57 = vmul.f32 0.0078125, %v8315_v22 }
0x1373   : > { %8781 = vmatmul.mubr.bf16.gmra.mxu1 %v8534_v60  ;;  %v8443_v7 = vmul.f32 %v13004_v40, %v16767_v59  ;;  %v8514_v25 = vadd.f32 %v16778_v3, %v8478_v55 }
0x1374   : > { %v8383_v24 = vadd.f32 1e-05, %v8351_v57  ;;  %v8317_v1 = vpop.xlane.xlu0 %8316  ;;  %8790 = vmatprep.mubr.bf16.mxu1 %v17901_v47 }
0x1375   : > { %v8352_v34 = vmul.f32 0.0078125, %v8317_v1  ;;  %v8479_v6 = vmul.f32 %v16763_v43, %v8443_v7 }
0x1376   : > { %v13006_v33 = vpop.eup %13005  ;;  %13011 = vrsqrt.f32 %v8383_v24 }
0x1377   : > { %v8384_v17 = vadd.f32 1e-05, %v8352_v34  ;;  %v8515_v45 = vadd.f32 %v16778_v3, %v8479_v6  ;;  %v8444_v2 = vmul.f32 %v13006_v33, %v16775_v63 }
0x1379   : > { %13013 = vrsqrt.f32 %v8384_v17  ;;  %v8319_v59 = vpop.xlane.xlu1 %8318  ;;  %v8535_v20 = vpack.c.bf16 %v8515_v45, %v8514_v25  ;;  %v8480_v31 = vmul.f32 %v16763_v43, %v8444_v2 }
0x137a   : > { %v8353_v44 = vmul.f32 0.0078125, %v8319_v59 }
0x137b   : > { %v13008_v50 = vpop.eup %13007  ;;  %8791 = vmatmul.mubr.bf16.gmra.mxu1 %v8535_v20  ;;  %v8516_v8 = vadd.f32 %v16778_v3, %v8480_v31 }
0x137c   : > { %v8385_v39 = vadd.f32 1e-05, %v8353_v44  ;;  %v8321_v32 = vpop.xlane.xlu0 %8320  ;;  %8800 = vmatprep.mubr.bf16.mxu1 %v17901_v47  ;;  %v8445_v30 = vmul.f32 %v13008_v50, %v16787_v53  ;;  %v8556_v50 = vld [vmem:[%s13326_s14] sm:$0x3] }
0x137d   : > { %v8354_v51 = vmul.f32 0.0078125, %v8321_v32 }
0x137e   : > { %v13010_v42 = vpop.eup %13009  ;;  %13015 = vrsqrt.f32 %v8385_v39  ;;  %v8481_v0 = vmul.f32 %v16763_v43, %v8445_v30  ;;  %v17903_v30 = vsub.s32 1, %v17838_v38 }
0x137f   : > { %v8386_v63 = vadd.f32 1e-05, %v8354_v51  ;;  %v8446_v46 = vmul.f32 %v13010_v42, %v16792_v52 }
0x1380   : > { %v8517_v36 = vadd.f32 %v16778_v3, %v8481_v0 }
0x1381   : > { %13017 = vrsqrt.f32 %v8386_v63  ;;  %v8323_v23 = vpop.xlane.xlu1 %8322  ;;  %v8482_v22 = vmul.f32 %v16763_v43, %v8446_v46 }
0x1382   : > { %v8355_v13 = vmul.f32 0.0078125, %v8323_v23  ;;  %v8536_v14 = vpack.c.bf16 %v8517_v36, %v8516_v8 }
0x1383   : > { %v13012_v29 = vpop.eup %13011  ;;  %v8518_v57 = vadd.f32 %v16778_v3, %v8482_v22 }
0x1384   : > { %v8387_v53 = vadd.f32 1e-05, %v8355_v13  ;;  %8801 = vmatmul.mubr.bf16.gmra.mxu1 %v8536_v14  ;;  %v8447_v62 = vmul.f32 %v13012_v29, %v16803_v26 }
0x1385   : > { %8810 = vmatprep.mubr.bf16.mxu1 %v17901_v47 }
0x1386   : > { %v13014_v60 = vpop.eup %13013  ;;  %13019 = vrsqrt.f32 %v8387_v53  ;;  %v8483_v40 = vmul.f32 %v16763_v43, %v8447_v62 }
0x1387   : > { %v8448_v7 = vmul.f32 %v13014_v60, %v16809_v49 }
0x1388   : > { %v8519_v52 = vadd.f32 %v16778_v3, %v8483_v40 }
0x1389   : > { %v8484_v26 = vmul.f32 %v16763_v43, %v8448_v7 }
0x138a   : > { %v8537_v55 = vpack.c.bf16 %v8519_v52, %v8518_v57 }
0x138b   : > { %v13016_v24 = vpop.eup %13015  ;;  %v8520_v33 = vadd.f32 %v16778_v3, %v8484_v26 }
0x138c   : > { %8811 = vmatmul.mubr.bf16.gmra.mxu1 %v8537_v55  ;;  %v8449_v1 = vmul.f32 %v13016_v24, %v16818_v15 }
0x138d   : > { %8820 = vmatprep.mubr.bf16.mxu1 %v17901_v47 }
0x138e   : > { %v13018_v34 = vpop.eup %13017  ;;  %v8485_v6 = vmul.f32 %v16763_v43, %v8449_v1 }
0x138f   : > { %v8450_v25 = vmul.f32 %v13018_v34, %v16826_v11  ;;  %v17902_v11 = vsub.s32 0, %v17838_v38 }
0x1390   : > { %v8521_v17 = vadd.f32 %v16778_v3, %v8485_v6 }
0x1391   : > { %v8486_v15 = vmul.f32 %v16763_v43, %v8450_v25  ;;  %v16944_v32 = vrot.slane %v8556_v50, %v17902_v11 }
0x1392   : > { %v8538_v49 = vpack.c.bf16 %v8521_v17, %v8520_v33 }
0x1393   : > { %v13020_v45 = vpop.eup %13019  ;;  %v8522_v20 = vadd.f32 %v16778_v3, %v8486_v15 }
0x1394   : > { %8821 = vmatmul.mubr.bf16.gmra.mxu1 %v8538_v49  ;;  %v8451_v2 = vmul.f32 %v13020_v45, %v16836_v4  ;;  %v16948_v4 = vrot.slane %v8556_v50, %v17903_v30 }
0x1395   : > { %8830 = vmatprep.mubr.bf16.mxu1 %v17901_v47 }
0x1396   : > { %v8487_v59 = vmul.f32 %v16763_v43, %v8451_v2 }
0x1398   : > { %v8523_v44 = vadd.f32 %v16778_v3, %v8487_v59 }
0x139a   : > { %v8539_v39 = vpack.c.bf16 %v8523_v44, %v8522_v20 }
0x139c   : > { %8831 = vmatmul.mubr.bf16.gmra.mxu1 %v8539_v39 }
0x139f   : > { %v8682_v31 = vpop.f32.mrf.mxu1 }
0x13a0   : > { %v8683_v47 = vadd.f32 %v8682_v31, %v16944_v32 }
0x13a1   : > { %v8684_v51 = vpop.f32.mrf.mxu1 }
0x13a2   : > { %v8685_v43 = vadd.f32 %v8684_v51, %v16948_v4  ;;  %v8905_v42 = vmul.f32 0.70710677, %v8683_v47  ;;  %v8841_v15 = vmul.f32 0.5, %v8683_v47 }
0x13a3   : > { %v8686_v0 = vpop.f32.mrf.mxu1 }
0x13a4   : > { %v8906_v3 = vmul.f32 0.70710677, %v8685_v43  ;;  %v8687_v63 = vadd.f32 %v8686_v0, %v16944_v32  ;;  %v8842_v51 = vmul.f32 0.5, %v8685_v43 }
0x13a5   : > { %v8688_v8 = vpop.f32.mrf.mxu1 }
0x13a6   : > { %13021 = verf.f32 %v8906_v3  ;;  %v8907_v36 = vmul.f32 0.70710677, %v8687_v63  ;;  %v8689_v46 = vadd.f32 %v8688_v8, %v16948_v4  ;;  %v8843_v20 = vmul.f32 0.5, %v8687_v63 }
0x13a7   : > { %13023 = verf.f32 %v8905_v42  ;;  %v8692_v23 = vpop.f32.mrf.mxu1 }
0x13a8   : > { %13025 = verf.f32 %v8907_v36  ;;  %v8908_v13 = vmul.f32 0.70710677, %v8689_v46  ;;  %v8693_v14 = vadd.f32 %v8692_v23, %v16944_v32  ;;  %v8844_v42 = vmul.f32 0.5, %v8689_v46 }
0x13a9   : > { %v8694_v29 = vpop.f32.mrf.mxu1 }
0x13aa   : > { %13027 = verf.f32 %v8908_v13  ;;  %v16956_v53 = vadd.f32 %v8694_v29, %v16948_v4  ;;  %v8909_v62 = vmul.f32 0.70710677, %v8693_v14 }
0x13ab   : > { %v8696_v22 = vpop.f32.mrf.mxu1 }
0x13ac   : > { %v8910_v60 = vmul.f32 0.70710677, %v16956_v53  ;;  %v8697_v40 = vadd.f32 %v8696_v22, %v16944_v32 }
0x13ad   : > { %v8698_v57 = vpop.f32.mrf.mxu1 }
0x13ae   : > { %13029 = verf.f32 %v8910_v60  ;;  %v8911_v52 = vmul.f32 0.70710677, %v8697_v40  ;;  %v8699_v7 = vadd.f32 %v8698_v57, %v16948_v4 }
0x13af   : > { %13031 = verf.f32 %v8909_v62 }
0x13b0   : > { %13033 = verf.f32 %v8911_v52  ;;  %v8912_v55 = vmul.f32 0.70710677, %v8699_v7  ;;  %v8702_v24 = vpop.f32.mrf.mxu1 }
0x13b1   : > { %v16962_v1 = vadd.f32 %v8702_v24, %v16944_v32 }
0x13b2   : > { %13035 = verf.f32 %v8912_v55  ;;  %v8704_v26 = vpop.f32.mrf.mxu1 }
0x13b3   : > { %v13022_v34 = vpop.eup %13021  ;;  %v16965_v6 = vadd.f32 %v8704_v26, %v16948_v4  ;;  %v8913_v17 = vmul.f32 0.70710677, %v16962_v1 }
0x13b4   : > { %v13024_v33 = vpop.eup %13023  ;;  %v8706_v25 = vpop.f32.mrf.mxu1  ;;  %v9034_v59 = vadd.f32 1.0, %v13022_v34  ;;  %v8845_v34 = vmul.f32 0.5, %v8693_v14 }
0x13b5   : > { %v13026_v49 = vpop.eup %13025  ;;  %v8914_v45 = vmul.f32 0.70710677, %v16965_v6  ;;  %v16970_v2 = vadd.f32 %v8706_v25, %v16944_v32  ;;  %v9033_v11 = vadd.f32 1.0, %v13024_v33 }
0x13b6   : > { %v9035_v44 = vadd.f32 1.0, %v13026_v49  ;;  %v8708_v50 = vpop.f32.mrf.mxu1  ;;  %v9098_v36 = vmul.f32 %v9034_v59, %v8842_v51 }
0x13b7   : > { %v13028_v39 = vpop.eup %13027  ;;  %13037 = verf.f32 %v8914_v45  ;;  %v8915_v30 = vmul.f32 0.70710677, %v16970_v2  ;;  %v16974_v31 = vadd.f32 %v8708_v50, %v16948_v4  ;;  %v9097_v62 = vmul.f32 %v9033_v11, %v8841_v15 }
0x13b8   : > { %v9036_v0 = vadd.f32 1.0, %v13028_v39  ;;  %13039 = verf.f32 %v8913_v17  ;;  %v8712_v3 = vpop.f32.mrf.mxu1  ;;  %v9099_v8 = vmul.f32 %v9035_v44, %v8843_v20  ;;  %v8847_v17 = vmul.f32 0.5, %v8697_v40 }
0x13b9   : > { %13041 = verf.f32 %v8915_v30  ;;  %v8916_v47 = vmul.f32 0.70710677, %v16974_v31  ;;  %v16978_v63 = vadd.f32 %v8712_v3, %v16944_v32  ;;  %v8846_v44 = vmul.f32 0.5, %v16956_v53 }
0x13ba   : > { %v9100_v23 = vmul.f32 %v9036_v0, %v8844_v42  ;;  %v8714_v13 = vpop.f32.mrf.mxu1  ;;  %v9161_v55 = vpack.c.bf16 %v9099_v8, %v9097_v62  ;;  %v8848_v50 = vmul.f32 0.5, %v8699_v7 }
0x13bb   : > { %v13030_v29 = vpop.eup %13029  ;;  %13043 = verf.f32 %v8916_v47  ;;  %v16981_v22 = vadd.f32 %v8714_v13, %v16948_v4  ;;  %v8917_v46 = vmul.f32 0.70710677, %v16978_v63 }
0x13bc   : > { %v13032_v43 = vpop.eup %13031  ;;  %v8716_v60 = vpop.f32.mrf.mxu1  ;;  %v9162_v57 = vpack.c.bf16 %v9100_v23, %v9098_v36  ;;  %v9038_v33 = vadd.f32 1.0, %v13030_v29 }
0x13bd   : > { %v13034_v52 = vpop.eup %13033  ;;  %v8918_v24 = vmul.f32 0.70710677, %v16981_v22  ;;  %v16986_v26 = vadd.f32 %v8716_v60, %v16944_v32  ;;  %v9037_v15 = vadd.f32 1.0, %v13032_v43  ;;  %v8850_v43 = vmul.f32 0.5, %v16965_v6 }
0x13be   : > { %v9039_v25 = vadd.f32 1.0, %v13034_v52  ;;  %v8718_v49 = vpop.f32.mrf.mxu1  ;;  %9357 = vmatprep.mubr.bf16.mxu0 %v9162_v57  ;;  %v9102_v51 = vmul.f32 %v9038_v33, %v8846_v44  ;;  %v8851_v33 = vmul.f32 0.5, %v16970_v2  ;;  %v8852_v6 = vmul.f32 0.5, %v16974_v31 }
0x13bf   : > { %v13036_v45 = vpop.eup %13035  ;;  %13045 = verf.f32 %v8918_v24  ;;  %v8919_v59 = vmul.f32 0.70710677, %v16986_v26  ;;  %v16990_v20 = vadd.f32 %v8718_v49, %v16948_v4  ;;  %9358 = vmatmul.mubr.bf16.vlgmr.msra.gmra.mxu0 %v9161_v55  ;;  %v9101_v3 = vmul.f32 %v9037_v15, %v8845_v34 }
0x13c0   : > { %v9040_v39 = vadd.f32 1.0, %v13036_v45  ;;  %13047 = verf.f32 %v8917_v46  ;;  %v8722_v14 = vpop.f32.mrf.mxu1  ;;  %v9103_v11 = vmul.f32 %v9039_v25, %v8847_v17  ;;  %v8849_v15 = vmul.f32 0.5, %v16962_v1 }
0x13c1   : > { %13049 = verf.f32 %v8919_v59  ;;  %v8920_v40 = vmul.f32 0.70710677, %v16990_v20  ;;  %v16995_v30 = vadd.f32 %v8722_v14, %v16944_v32 }
0x13c2   : > { %v9104_v42 = vmul.f32 %v9040_v39, %v8848_v50  ;;  %v8724_v0 = vpop.f32.mrf.mxu1  ;;  %v9163_v13 = vpack.c.bf16 %v9103_v11, %v9101_v3 }
0x13c3   : > { %13051 = verf.f32 %v8920_v40  ;;  %v8921_v8 = vmul.f32 0.70710677, %v16995_v30  ;;  %v16999_v53 = vadd.f32 %v8724_v0, %v16948_v4 }
0x13c4   : > { %v13038_v47 = vpop.eup %13037  ;;  %v8726_v7 = vpop.f32.mrf.mxu1  ;;  %v9164_v36 = vpack.c.bf16 %v9104_v42, %v9102_v51 }
0x13c5   : > { %v13040_v23 = vpop.eup %13039  ;;  %v17002_v29 = vadd.f32 %v8726_v7, %v16944_v32  ;;  %v8922_v46 = vmul.f32 0.70710677, %v16999_v53  ;;  %v9042_v57 = vadd.f32 1.0, %v13038_v47  ;;  %13053 = verf.f32 %v8921_v8 }
0x13c6   : > { %v13042_v62 = vpop.eup %13041  ;;  %v8728_v60 = vpop.f32.mrf.mxu1  ;;  %9365 = vmatprep.mubr.bf16.mxu0 %v9164_v36  ;;  %v9041_v34 = vadd.f32 1.0, %v13040_v23  ;;  %v8854_v47 = vmul.f32 0.5, %v16981_v22  ;;  %v8856_v22 = vmul.f32 0.5, %v16990_v20 }
0x13c7   : > { %v9043_v52 = vadd.f32 1.0, %v13042_v62  ;;  %v8923_v55 = vmul.f32 0.70710677, %v17002_v29  ;;  %9366 = vmatmul.mubr.bf16.gmra.mxu0 %v9163_v13  ;;  %13055 = verf.f32 %v8922_v46  ;;  %v17009_v17 = vadd.f32 %v8728_v60, %v16948_v4 }
0x13c8   : > { %v13044_v24 = vpop.eup %13043  ;;  %v8732_v25 = vpop.f32.mrf.mxu1  ;;  %v9106_v39 = vmul.f32 %v9042_v57, %v8850_v43  ;;  %v9105_v11 = vmul.f32 %v9041_v34, %v8849_v15  ;;  %v8855_v60 = vmul.f32 0.5, %v16986_v26  ;;  %v8853_v34 = vmul.f32 0.5, %v16978_v63 }
0x13c9   : > { %v9044_v49 = vadd.f32 1.0, %v13044_v24  ;;  %13057 = verf.f32 %v8923_v55  ;;  %v17013_v45 = vadd.f32 %v8732_v25, %v16944_v32  ;;  %v9107_v59 = vmul.f32 %v9043_v52, %v8851_v33 }
0x13ca   : > { %v8924_v44 = vmul.f32 0.70710677, %v17009_v17  ;;  %v8734_v50 = vpop.f32.mrf.mxu1 }
0x13cb   : > { %v9108_v2 = vmul.f32 %v9044_v49, %v8852_v6  ;;  %v8925_v40 = vmul.f32 0.70710677, %v17013_v45  ;;  %v17019_v31 = vadd.f32 %v8734_v50, %v16948_v4  ;;  %v9165_v8 = vpack.c.bf16 %v9107_v59, %v9105_v11 }
0x13cc   : > { %v13046_v14 = vpop.eup %13045  ;;  %13059 = verf.f32 %v8924_v44  ;;  %v8736_v51 = vpop.f32.mrf.mxu1 }
0x13cd   : > { %v13048_v42 = vpop.eup %13047  ;;  %v17022_v0 = vadd.f32 %v8736_v51, %v16944_v32  ;;  %v9166_v1 = vpack.c.bf16 %v9108_v2, %v9106_v39  ;;  %v8926_v7 = vmul.f32 0.70710677, %v17019_v31  ;;  %v9046_v23 = vadd.f32 1.0, %v13046_v14 }
0x13ce   : > { %v13050_v3 = vpop.eup %13049  ;;  %v8738_v36 = vpop.f32.mrf.mxu1  ;;  %13061 = verf.f32 %v8925_v40  ;;  %v9045_v46 = vadd.f32 1.0, %v13048_v42 }
0x13cf   : > { %v9047_v13 = vadd.f32 1.0, %v13050_v3  ;;  %v8927_v62 = vmul.f32 0.70710677, %v17022_v0  ;;  %9373 = vmatprep.mubr.bf16.mxu0 %v9166_v1  ;;  %13063 = verf.f32 %v8926_v7  ;;  %v17029_v57 = vadd.f32 %v8738_v36, %v16948_v4 }
0x13d0   : > { %v13052_v43 = vpop.eup %13051  ;;  %v8742_v52 = vpop.f32.mrf.mxu1  ;;  %9374 = vmatmul.mubr.bf16.gmra.mxu0 %v9165_v8  ;;  %v9110_v26 = vmul.f32 %v9046_v23, %v8854_v47  ;;  %v9109_v59 = vmul.f32 %v9045_v46, %v8853_v34  ;;  %v8859_v23 = vmul.f32 0.5, %v17002_v29 }
0x13d1   : > { %v9048_v55 = vadd.f32 1.0, %v13052_v43  ;;  %13065 = verf.f32 %v8927_v62  ;;  %v17033_v24 = vadd.f32 %v8742_v52, %v16944_v32  ;;  %v9111_v33 = vmul.f32 %v9047_v13, %v8855_v60 }
0x13d2   : > { %v8928_v25 = vmul.f32 0.70710677, %v17029_v57  ;;  %v8744_v6 = vpop.f32.mrf.mxu1  ;;  %v13054_v15 = vpop.eup %13053  ;;  %v8858_v62 = vmul.f32 0.5, %v16999_v53  ;;  %v8860_v43 = vmul.f32 0.5, %v17009_v17 }
0x13d3   : > { %v9112_v49 = vmul.f32 %v9048_v55, %v8856_v22  ;;  %v8929_v44 = vmul.f32 0.70710677, %v17033_v24  ;;  %v17039_v20 = vadd.f32 %v8744_v6, %v16948_v4  ;;  %v9167_v11 = vpack.c.bf16 %v9111_v33, %v9109_v59 }
0x13d4   : > { %13067 = verf.f32 %v8928_v25  ;;  %v8746_v50 = vpop.f32.mrf.mxu1  ;;  %v13056_v39 = vpop.eup %13055  ;;  %v9049_v36 = vadd.f32 1.0, %v13054_v15  ;;  %v8857_v22 = vmul.f32 0.5, %v16995_v30  ;;  %v8863_v30 = vmul.f32 0.5, %v17022_v0 }
0x13d5   : > { %v17042_v2 = vadd.f32 %v8746_v50, %v16944_v32  ;;  %v9168_v63 = vpack.c.bf16 %v9112_v49, %v9110_v26  ;;  %v8930_v40 = vmul.f32 0.70710677, %v17039_v20  ;;  %13069 = verf.f32 %v8929_v44 }
0x13d6   : > { %v13058_v14 = vpop.eup %13057  ;;  %v8748_v51 = vpop.f32.mrf.mxu1  ;;  %v9050_v8 = vadd.f32 1.0, %v13056_v39  ;;  %v9113_v17 = vmul.f32 %v9049_v36, %v8857_v22  ;;  %v8862_v0 = vmul.f32 0.5, %v17019_v31  ;;  %v8864_v36 = vmul.f32 0.5, %v17029_v57 }
0x13d7   : > { %v9051_v42 = vadd.f32 1.0, %v13058_v14  ;;  %v8931_v1 = vmul.f32 0.70710677, %v17042_v2  ;;  %v17047_v3 = vadd.f32 %v8748_v51, %v16948_v4  ;;  %9381 = vmatprep.mubr.bf16.mxu0 %v9168_v63  ;;  %13071 = verf.f32 %v8930_v40 }
0x13d8   : > { %v8752_v47 = vpop.f32.mrf.mxu1  ;;  %9382 = vmatmul.mubr.bf16.gmra.mxu0 %v9167_v11  ;;  %v9114_v33 = vmul.f32 %v9050_v8, %v8858_v62  ;;  %v8861_v8 = vmul.f32 0.5, %v17013_v45 }
0x13d9   : > { %v13060_v7 = vpop.eup %13059  ;;  %13073 = verf.f32 %v8931_v1  ;;  %v8932_v13 = vmul.f32 0.70710677, %v17047_v3  ;;  %v17054_v60 = vadd.f32 %v8752_v47, %v16944_v32  ;;  %v9115_v55 = vmul.f32 %v9051_v42, %v8859_v23 }
0x13da   : > { %v9052_v46 = vadd.f32 1.0, %v13060_v7  ;;  %v8754_v52 = vpop.f32.mrf.mxu1 }
0x13db   : > { %13075 = verf.f32 %v8932_v13  ;;  %v17058_v34 = vadd.f32 %v8754_v52, %v16948_v4  ;;  %v13062_v29 = vpop.eup %13061  ;;  %v8933_v6 = vmul.f32 0.70710677, %v17054_v60  ;;  %v9169_v39 = vpack.c.bf16 %v9115_v55, %v9113_v17 }
0x13dc   : > { %v9116_v25 = vmul.f32 %v9052_v46, %v8860_v43  ;;  %v8756_v53 = vpop.f32.mrf.mxu1  ;;  %v13064_v26 = vpop.eup %13063  ;;  %v9053_v11 = vadd.f32 1.0, %v13062_v29 }
0x13dd   : > { %v8934_v49 = vmul.f32 0.70710677, %v17058_v34  ;;  %v17063_v15 = vadd.f32 %v8756_v53, %v16944_v32  ;;  %13077 = verf.f32 %v8933_v6  ;;  %v9054_v40 = vadd.f32 1.0, %v13064_v26 }
0x13de   : > { %v13066_v59 = vpop.eup %13065  ;;  %v8758_v44 = vpop.f32.mrf.mxu1  ;;  %v9170_v50 = vpack.c.bf16 %v9116_v25, %v9114_v33  ;;  %v9117_v52 = vmul.f32 %v9053_v11, %v8861_v8  ;;  %v8866_v53 = vmul.f32 0.5, %v17039_v20 }
0x13df   : > { %v9055_v63 = vadd.f32 1.0, %v13066_v59  ;;  %v8935_v14 = vmul.f32 0.70710677, %v17063_v15  ;;  %13079 = verf.f32 %v8934_v49  ;;  %v17068_v51 = vadd.f32 %v8758_v44, %v16948_v4 }
0x13e0   : > { %9389 = vmatprep.mubr.bf16.mxu0 %v9170_v50  ;;  %v8762_v42 = vpop.f32.mrf.mxu1  ;;  %v9118_v31 = vmul.f32 %v9054_v40, %v8862_v0  ;;  %v8867_v50 = vmul.f32 0.5, %v17042_v2 }
0x13e1   : > { %v13068_v1 = vpop.eup %13067  ;;  %13081 = verf.f32 %v8935_v14  ;;  %v17073_v47 = vadd.f32 %v8762_v42, %v16944_v32  ;;  %9390 = vmatmul.mubr.bf16.gmra.mxu0 %v9169_v39  ;;  %v9119_v7 = vmul.f32 %v9055_v63, %v8863_v30  ;;  %v8936_v13 = vmul.f32 0.70710677, %v17068_v51 }
0x13e2   : > { %v9056_v23 = vadd.f32 1.0, %v13068_v1  ;;  %v8764_v62 = vpop.f32.mrf.mxu1  ;;  %v13070_v45 = vpop.eup %13069  ;;  %v8868_v39 = vmul.f32 0.5, %v17047_v3  ;;  %v8865_v42 = vmul.f32 0.5, %v17033_v24 }
0x13e3   : > { %v8937_v43 = vmul.f32 0.70710677, %v17073_v47  ;;  %v17079_v46 = vadd.f32 %v8764_v62, %v16948_v4  ;;  %13083 = verf.f32 %v8936_v13  ;;  %v9171_v6 = vpack.c.bf16 %v9119_v7, %v9117_v52 }
0x13e4   : > { %v9120_v22 = vmul.f32 %v9056_v23, %v8864_v36  ;;  %v8766_v55 = vpop.f32.mrf.mxu1  ;;  %v13072_v29 = vpop.eup %13071  ;;  %v9057_v11 = vadd.f32 1.0, %v13070_v45 }
0x13e5   : > { %v8938_v33 = vmul.f32 0.70710677, %v17079_v46  ;;  %v17083_v57 = vadd.f32 %v8766_v55, %v16944_v32  ;;  %v9058_v49 = vadd.f32 1.0, %v13072_v29  ;;  %13085 = verf.f32 %v8937_v43 }
0x13e6   : > { %v13074_v25 = vpop.eup %13073  ;;  %v8768_v26 = vpop.f32.mrf.mxu1  ;;  %v9172_v17 = vpack.c.bf16 %v9120_v22, %v9118_v31  ;;  %v9121_v43 = vmul.f32 %v9057_v11, %v8865_v42 }
0x13e7   : > { %v9059_v59 = vadd.f32 1.0, %v13074_v25  ;;  %v8939_v30 = vmul.f32 0.70710677, %v17083_v57  ;;  %13087 = verf.f32 %v8938_v33  ;;  %v8769_v63 = vadd.f32 %v8768_v26, %v16948_v4 }
0x13e8   : > { %v13076_v44 = vpop.eup %13075  ;;  %9397 = vmatprep.mubr.bf16.mxu0 %v9172_v17  ;;  %v8772_v14 = vpop.f32.mrf.mxu1  ;;  %v9122_v0 = vmul.f32 %v9058_v49, %v8866_v53  ;;  %v8871_v17 = vmul.f32 0.5, %v17063_v15  ;;  %v8870_v49 = vmul.f32 0.5, %v17058_v34 }
0x13e9   : > { %v9060_v40 = vadd.f32 1.0, %v13076_v44  ;;  %13089 = verf.f32 %v8939_v30  ;;  %v17091_v20 = vadd.f32 %v8772_v14, %v16944_v32  ;;  %9398 = vmatmul.mubr.bf16.gmra.mxu0 %v9171_v6  ;;  %v8940_v1 = vmul.f32 0.70710677, %v8769_v63 }
0x13ea   : > { %v8774_v8 = vpop.f32.mrf.mxu1  ;;  %v9123_v2 = vmul.f32 %v9059_v59, %v8867_v50  ;;  %v13078_v36 = vpop.eup %13077  ;;  %v8872_v59 = vmul.f32 0.5, %v17068_v51  ;;  %v8869_v50 = vmul.f32 0.5, %v17054_v60  ;;  %v8875_v51 = vmul.f32 0.5, %v17083_v57 }
0x13eb   : > { %v9124_v7 = vmul.f32 %v9060_v40, %v8868_v39  ;;  %v8941_v3 = vmul.f32 0.70710677, %v17091_v20  ;;  %13091 = verf.f32 %v8940_v1  ;;  %v17096_v23 = vadd.f32 %v8774_v8, %v16948_v4 }
0x13ec   : > { %v8776_v13 = vpop.f32.mrf.mxu1  ;;  %v13080_v62 = vpop.eup %13079  ;;  %v9173_v55 = vpack.c.bf16 %v9123_v2, %v9121_v43  ;;  %v9061_v26 = vadd.f32 1.0, %v13078_v36  ;;  %v8874_v60 = vmul.f32 0.5, %v17079_v46  ;;  %v8876_v36 = vmul.f32 0.5, %v8769_v63 }
0x13ed   : > { %v8777_v45 = vadd.f32 %v8776_v13, %v16944_v32  ;;  %v9174_v52 = vpack.c.bf16 %v9124_v7, %v9122_v0  ;;  %v8942_v24 = vmul.f32 0.70710677, %v17096_v23  ;;  %13093 = verf.f32 %v8941_v3 }
0x13ee   : > { %v13082_v31 = vpop.eup %13081  ;;  %v8778_v22 = vpop.f32.mrf.mxu1  ;;  %v9062_v25 = vadd.f32 1.0, %v13080_v62  ;;  %v9125_v1 = vmul.f32 %v9061_v26, %v8869_v50  ;;  %v8873_v62 = vmul.f32 0.5, %v17073_v47  ;;  %v8878_v46 = vmul.f32 0.5, %v17096_v23 }
0x13ef   : > { %v9063_v29 = vadd.f32 1.0, %v13082_v31  ;;  %v8943_v33 = vmul.f32 0.70710677, %v8777_v45  ;;  %9405 = vmatprep.mubr.bf16.mxu0 %v9174_v52  ;;  %13095 = verf.f32 %v8942_v24  ;;  %v8779_v6 = vadd.f32 %v8778_v22, %v16948_v4 }
0x13f0   : > { %v13084_v53 = vpop.eup %13083  ;;  %v9126_v11 = vmul.f32 %v9062_v25, %v8870_v49  ;;  %v8879_v49 = vmul.f32 0.5, %v8777_v45 }
0x13f1   : > { %13097 = verf.f32 %v8943_v33  ;;  %9406 = vmatmul.mubr.bf16.gmra.mxu0 %v9173_v55  ;;  %v9064_v30 = vadd.f32 1.0, %v13084_v53  ;;  %v8944_v44 = vmul.f32 0.70710677, %v8779_v6  ;;  %v9127_v39 = vmul.f32 %v9063_v29, %v8871_v17 }
0x13f2   : > { %v13086_v14 = vpop.eup %13085  ;;  %v8880_v63 = vmul.f32 0.5, %v8779_v6 }
0x13f3   : > { %v9128_v40 = vmul.f32 %v9064_v30, %v8872_v59  ;;  %13099 = verf.f32 %v8944_v44  ;;  %v9175_v15 = vpack.c.bf16 %v9127_v39, %v9125_v1  ;;  %v9065_v3 = vadd.f32 1.0, %v13086_v14 }
0x13f4   : > { %v13088_v42 = vpop.eup %13087  ;;  %v8877_v59 = vmul.f32 0.5, %v17091_v20 }
0x13f5   : > { %v9176_v0 = vpack.c.bf16 %v9128_v40, %v9126_v11  ;;  %v9066_v7 = vadd.f32 1.0, %v13088_v42  ;;  %v9129_v55 = vmul.f32 %v9065_v3, %v8873_v62 }
0x13f6   : > { %v13090_v8 = vpop.eup %13089 }
0x13f7   : > { %v9067_v2 = vadd.f32 1.0, %v13090_v8  ;;  %9413 = vmatprep.mubr.bf16.mxu0 %v9176_v0  ;;  %v9130_v31 = vmul.f32 %v9066_v7, %v8874_v60 }
0x13f8   : > { %v13092_v34 = vpop.eup %13091 }
0x13f9   : > { %9414 = vmatmul.mubr.bf16.gmra.mxu0 %v9175_v15  ;;  %v9068_v13 = vadd.f32 1.0, %v13092_v34  ;;  %v9131_v43 = vmul.f32 %v9067_v2, %v8875_v51 }
0x13fa   : > { %v13094_v52 = vpop.eup %13093 }
0x13fb   : > { %v9132_v24 = vmul.f32 %v9068_v13, %v8876_v36  ;;  %v9177_v25 = vpack.c.bf16 %v9131_v43, %v9129_v55  ;;  %v9069_v17 = vadd.f32 1.0, %v13094_v52 }
0x13fc   : > { %v13096_v22 = vpop.eup %13095 }
0x13fd   : > { %v9178_v33 = vpack.c.bf16 %v9132_v24, %v9130_v31  ;;  %v9070_v26 = vadd.f32 1.0, %v13096_v22  ;;  %v9133_v39 = vmul.f32 %v9069_v17, %v8877_v59 }
0x13fe   : > { %v13098_v29 = vpop.eup %13097 }
0x13ff   : > { %v9071_v53 = vadd.f32 1.0, %v13098_v29  ;;  %9421 = vmatprep.mubr.bf16.mxu0 %v9178_v33  ;;  %v9134_v44 = vmul.f32 %v9070_v26, %v8878_v46 }
0x1400   : > { %v13100_v57 = vpop.eup %13099 }
0x1401   : > { %9422 = vmatmul.mubr.bf16.gmra.mxu0 %v9177_v25  ;;  %v9072_v47 = vadd.f32 1.0, %v13100_v57  ;;  %v9135_v30 = vmul.f32 %v9071_v53, %v8879_v49 }
0x1403   : > { %v9136_v50 = vmul.f32 %v9072_v47, %v8880_v63  ;;  %v9179_v11 = vpack.c.bf16 %v9135_v30, %v9133_v39 }
0x1405   : > { %v9180_v14 = vpack.c.bf16 %v9136_v50, %v9134_v44 }
0x1407   : > { %9429 = vmatprep.mubr.bf16.mxu0 %v9180_v14 }
0x1409   : > { %9430 = vmatmul.mubr.bf16.gmra.mxu0 %v9179_v11 }
0x1433   : > { %v8782_v40 = vpop.f32.mrf.mxu1 }
0x1434   : > { %v8783_v42 = vadd.f32 %v8782_v40, %v16944_v32 }
0x1435   : > { %v8784_v1 = vpop.f32.mrf.mxu1 }
0x1436   : > { %v8785_v45 = vadd.f32 %v8784_v1, %v16948_v4  ;;  %v8945_v8 = vmul.f32 0.70710677, %v8783_v42  ;;  %v8881_v47 = vmul.f32 0.5, %v8783_v42 }
0x1437   : > { %v8786_v23 = vpop.f32.mrf.mxu1 }
0x1438   : > { %v8946_v6 = vmul.f32 0.70710677, %v8785_v45  ;;  %v8787_v0 = vadd.f32 %v8786_v23, %v16944_v32  ;;  %v8882_v1 = vmul.f32 0.5, %v8785_v45 }
0x1439   : > { %v8788_v20 = vpop.f32.mrf.mxu1 }
0x143a   : > { %13101 = verf.f32 %v8946_v6  ;;  %v8947_v15 = vmul.f32 0.70710677, %v8787_v0  ;;  %v8789_v2 = vadd.f32 %v8788_v20, %v16948_v4  ;;  %v8883_v30 = vmul.f32 0.5, %v8787_v0 }
0x143b   : > { %13103 = verf.f32 %v8945_v8  ;;  %v8792_v7 = vpop.f32.mrf.mxu1 }
0x143c   : > { %13105 = verf.f32 %v8947_v15  ;;  %v8948_v34 = vmul.f32 0.70710677, %v8789_v2  ;;  %v8793_v3 = vadd.f32 %v8792_v7, %v16944_v32  ;;  %v8884_v8 = vmul.f32 0.5, %v8789_v2 }
0x143d   : > { %v8794_v51 = vpop.f32.mrf.mxu1 }
0x143e   : > { %13107 = verf.f32 %v8948_v34  ;;  %v17116_v60 = vadd.f32 %v8794_v51, %v16948_v4  ;;  %v8949_v36 = vmul.f32 0.70710677, %v8793_v3 }
0x143f   : > { %v8796_v13 = vpop.f32.mrf.mxu1 }
0x1440   : > { %v8950_v62 = vmul.f32 0.70710677, %v17116_v60  ;;  %v8797_v43 = vadd.f32 %v8796_v13, %v16944_v32 }
0x1441   : > { %v8798_v52 = vpop.f32.mrf.mxu1 }
0x1442   : > { %13109 = verf.f32 %v8950_v62  ;;  %v8951_v31 = vmul.f32 0.70710677, %v8797_v43  ;;  %v8799_v24 = vadd.f32 %v8798_v52, %v16948_v4 }
0x1443   : > { %13111 = verf.f32 %v8949_v36 }
0x1444   : > { %13113 = verf.f32 %v8951_v31  ;;  %v8952_v22 = vmul.f32 0.70710677, %v8799_v24  ;;  %v8802_v55 = vpop.f32.mrf.mxu1 }
0x1445   : > { %v17122_v29 = vadd.f32 %v8802_v55, %v16944_v32 }
0x1446   : > { %13115 = verf.f32 %v8952_v22  ;;  %v8804_v33 = vpop.f32.mrf.mxu1 }
0x1447   : > { %v13102_v25 = vpop.eup %13101  ;;  %v17125_v53 = vadd.f32 %v8804_v33, %v16948_v4  ;;  %v8953_v57 = vmul.f32 0.70710677, %v17122_v29 }
0x1448   : > { %v13104_v26 = vpop.eup %13103  ;;  %v8806_v17 = vpop.f32.mrf.mxu1  ;;  %v9074_v59 = vadd.f32 1.0, %v13102_v25  ;;  %v8885_v25 = vmul.f32 0.5, %v8793_v3 }
0x1449   : > { %v13106_v49 = vpop.eup %13105  ;;  %v8954_v46 = vmul.f32 0.70710677, %v17125_v53  ;;  %v17130_v63 = vadd.f32 %v8806_v17, %v16944_v32  ;;  %v9073_v14 = vadd.f32 1.0, %v13104_v26 }
0x144a   : > { %v9075_v44 = vadd.f32 1.0, %v13106_v49  ;;  %v8808_v50 = vpop.f32.mrf.mxu1  ;;  %v9138_v15 = vmul.f32 %v9074_v59, %v8882_v1 }
0x144b   : > { %v13108_v39 = vpop.eup %13107  ;;  %13117 = verf.f32 %v8954_v46  ;;  %v8955_v11 = vmul.f32 0.70710677, %v17130_v63  ;;  %v17134_v40 = vadd.f32 %v8808_v50, %v16948_v4  ;;  %v9137_v36 = vmul.f32 %v9073_v14, %v8881_v47 }
0x144c   : > { %v9076_v23 = vadd.f32 1.0, %v13108_v39  ;;  %13119 = verf.f32 %v8953_v57  ;;  %v8812_v6 = vpop.f32.mrf.mxu1  ;;  %v9139_v20 = vmul.f32 %v9075_v44, %v8883_v30  ;;  %v8887_v57 = vmul.f32 0.5, %v8797_v43 }
0x144d   : > { %13121 = verf.f32 %v8955_v11  ;;  %v8956_v42 = vmul.f32 0.70710677, %v17134_v40  ;;  %v17138_v0 = vadd.f32 %v8812_v6, %v16944_v32  ;;  %v8886_v44 = vmul.f32 0.5, %v17116_v60 }
0x144e   : > { %v9140_v7 = vmul.f32 %v9076_v23, %v8884_v8  ;;  %v8814_v34 = vpop.f32.mrf.mxu1  ;;  %v9181_v22 = vpack.c.bf16 %v9139_v20, %v9137_v36  ;;  %v8888_v50 = vmul.f32 0.5, %v8799_v24 }
0x144f   : > { %v13110_v51 = vpop.eup %13109  ;;  %13123 = verf.f32 %v8956_v42  ;;  %v17141_v13 = vadd.f32 %v8814_v34, %v16948_v4  ;;  %v8957_v2 = vmul.f32 0.70710677, %v17138_v0 }
0x1450   : > { %v13112_v45 = vpop.eup %13111  ;;  %v8816_v62 = vpop.f32.mrf.mxu1  ;;  %v9182_v52 = vpack.c.bf16 %v9140_v7, %v9138_v15  ;;  %v9078_v26 = vadd.f32 1.0, %v13110_v51 }
0x1451   : > { %v13114_v31 = vpop.eup %13113  ;;  %v8958_v55 = vmul.f32 0.70710677, %v17141_v13  ;;  %v17146_v33 = vadd.f32 %v8816_v62, %v16944_v32  ;;  %v9077_v47 = vadd.f32 1.0, %v13112_v45  ;;  %v8890_v45 = vmul.f32 0.5, %v17125_v53 }
0x1452   : > { %v9079_v17 = vadd.f32 1.0, %v13114_v31  ;;  %v8818_v49 = vpop.f32.mrf.mxu1  ;;  %9437 = vmatprep.mubr.bf16.mxu0 %v9182_v52  ;;  %v9142_v1 = vmul.f32 %v9078_v26, %v8886_v44  ;;  %v8891_v26 = vmul.f32 0.5, %v17130_v63  ;;  %v8892_v53 = vmul.f32 0.5, %v17134_v40 }
0x1453   : > { %v13116_v46 = vpop.eup %13115  ;;  %13125 = verf.f32 %v8958_v55  ;;  %v8959_v59 = vmul.f32 0.70710677, %v17146_v33  ;;  %v17150_v30 = vadd.f32 %v8818_v49, %v16948_v4  ;;  %9438 = vmatmul.mubr.bf16.gmra.mxu0 %v9181_v22  ;;  %v9141_v6 = vmul.f32 %v9077_v47, %v8885_v25 }
0x1454   : > { %v9080_v39 = vadd.f32 1.0, %v13116_v46  ;;  %13127 = verf.f32 %v8957_v2  ;;  %v8822_v3 = vpop.f32.mrf.mxu1  ;;  %v9143_v14 = vmul.f32 %v9079_v17, %v8887_v57  ;;  %v8889_v47 = vmul.f32 0.5, %v17122_v29 }
0x1455   : > { %13129 = verf.f32 %v8959_v59  ;;  %v8960_v43 = vmul.f32 0.70710677, %v17150_v30  ;;  %v17155_v11 = vadd.f32 %v8822_v3, %v16944_v32 }
0x1456   : > { %v9144_v8 = vmul.f32 %v9080_v39, %v8888_v50  ;;  %v8824_v23 = vpop.f32.mrf.mxu1  ;;  %v9183_v34 = vpack.c.bf16 %v9143_v14, %v9141_v6 }
0x1457   : > { %13131 = verf.f32 %v8960_v43  ;;  %v8961_v20 = vmul.f32 0.70710677, %v17155_v11  ;;  %v17159_v60 = vadd.f32 %v8824_v23, %v16948_v4 }
0x1458   : > { %v13118_v42 = vpop.eup %13117  ;;  %v8826_v24 = vpop.f32.mrf.mxu1  ;;  %v9184_v15 = vpack.c.bf16 %v9144_v8, %v9142_v1 }
0x1459   : > { %v13120_v7 = vpop.eup %13119  ;;  %v17162_v51 = vadd.f32 %v8826_v24, %v16944_v32  ;;  %v8962_v2 = vmul.f32 0.70710677, %v17159_v60  ;;  %v9082_v52 = vadd.f32 1.0, %v13118_v42  ;;  %13133 = verf.f32 %v8961_v20 }
0x145a   : > { %v13122_v36 = vpop.eup %13121  ;;  %v8828_v62 = vpop.f32.mrf.mxu1  ;;  %9445 = vmatprep.mubr.bf16.mxu0 %v9184_v15  ;;  %v9081_v25 = vadd.f32 1.0, %v13120_v7 }
0x145b   : > { %v9083_v31 = vadd.f32 1.0, %v13122_v36  ;;  %v8963_v22 = vmul.f32 0.70710677, %v17162_v51  ;;  %9446 = vmatmul.mubr.bf16.gmra.mxu0 %v9183_v34  ;;  %13135 = verf.f32 %v8962_v2  ;;  %v8829_v57 = vadd.f32 %v8828_v62, %v16948_v4 }
0x145c   : > { %v13124_v55 = vpop.eup %13123  ;;  %v8832_v17 = vpop.f32.mrf.mxu1  ;;  %v9146_v39 = vmul.f32 %v9082_v52, %v8890_v45  ;;  %v9145_v63 = vmul.f32 %v9081_v25, %v8889_v47  ;;  %v8895_v2 = vmul.f32 0.5, %v17146_v33  ;;  %v8896_v52 = vmul.f32 0.5, %v17150_v30 }
0x145d   : > { %v9084_v49 = vadd.f32 1.0, %v13124_v55  ;;  %13137 = verf.f32 %v8963_v22  ;;  %v17171_v46 = vadd.f32 %v8832_v17, %v16944_v32  ;;  %v9147_v59 = vmul.f32 %v9083_v31, %v8891_v26 }
0x145e   : > { %v8964_v44 = vmul.f32 0.70710677, %v8829_v57  ;;  %v8834_v50 = vpop.f32.mrf.mxu1  ;;  %v8893_v22 = vmul.f32 0.5, %v17138_v0  ;;  %v8898_v0 = vmul.f32 0.5, %v17159_v60 }
0x145f   : > { %v9148_v3 = vmul.f32 %v9084_v49, %v8892_v53  ;;  %v8965_v43 = vmul.f32 0.70710677, %v17171_v46  ;;  %v8835_v1 = vadd.f32 %v8834_v50, %v16948_v4  ;;  %v9185_v42 = vpack.c.bf16 %v9147_v59, %v9145_v63 }
0x1460   : > { %v13126_v14 = vpop.eup %13125  ;;  %13139 = verf.f32 %v8964_v44  ;;  %v8836_v40 = vpop.f32.mrf.mxu1  ;;  %v8897_v63 = vmul.f32 0.5, %v17155_v11 }
0x1461   : > { %v13128_v8 = vpop.eup %13127  ;;  %v8837_v23 = vadd.f32 %v8836_v40, %v16944_v32  ;;  %v9186_v6 = vpack.c.bf16 %v9148_v3, %v9146_v39  ;;  %v8966_v29 = vmul.f32 0.70710677, %v8835_v1  ;;  %v9086_v15 = vadd.f32 1.0, %v13126_v14 }
0x1462   : > { %v13130_v20 = vpop.eup %13129  ;;  %v8838_v24 = vpop.f32.mrf.mxu1  ;;  %13141 = verf.f32 %v8965_v43  ;;  %v9085_v45 = vadd.f32 1.0, %v13128_v8  ;;  %v8894_v32 = vmul.f32 0.5, %v17141_v13  ;;  %v8899_v39 = vmul.f32 0.5, %v17162_v51 }
0x1463   : > { %v9087_v7 = vadd.f32 1.0, %v13130_v20  ;;  %v8967_v34 = vmul.f32 0.70710677, %v8837_v23  ;;  %9453 = vmatprep.mubr.bf16.mxu0 %v9186_v6  ;;  %13143 = verf.f32 %v8966_v29  ;;  %v8839_v62 = vadd.f32 %v8838_v24, %v16948_v4 }
0x1464   : > { %v13132_v36 = vpop.eup %13131  ;;  %9454 = vmatmul.mubr.bf16.gmra.mxu0 %v9185_v42  ;;  %v9150_v26 = vmul.f32 %v9086_v15, %v8894_v32  ;;  %v9149_v49 = vmul.f32 %v9085_v45, %v8893_v22  ;;  %v8900_v3 = vmul.f32 0.5, %v8829_v57  ;;  %v8903_v45 = vmul.f32 0.5, %v8837_v23 }
0x1465   : > { %v9088_v31 = vadd.f32 1.0, %v13132_v36  ;;  %13145 = verf.f32 %v8967_v34  ;;  %v9151_v55 = vmul.f32 %v9087_v7, %v8895_v2  ;;  %v8968_v25 = vmul.f32 0.70710677, %v8839_v62 }
0x1466   : > { %v13134_v53 = vpop.eup %13133  ;;  %v8902_v60 = vmul.f32 0.5, %v8835_v1  ;;  %v8904_v57 = vmul.f32 0.5, %v8839_v62  ;;  %v8901_v2 = vmul.f32 0.5, %v17171_v46 }
0x1467   : > { %v9152_v17 = vmul.f32 %v9088_v31, %v8896_v52  ;;  %13147 = verf.f32 %v8968_v25  ;;  %v9187_v4 = vpack.c.bf16 %v9151_v55, %v9149_v49  ;;  %v9089_v50 = vadd.f32 1.0, %v13134_v53  ;;  %v13182_v53 = vld [vmem:[%s13321_s9] sm:$0x3f] }
0x1468   : > { %v13136_v33 = vpop.eup %13135 }
0x1469   : > { %v9188_v47 = vpack.c.bf16 %v9152_v17, %v9150_v26  ;;  %v9090_v13 = vadd.f32 1.0, %v13136_v33  ;;  %v9153_v42 = vmul.f32 %v9089_v50, %v8897_v63  ;;  %v9227_v26 = vsub.s32 5, %v17838_v38 }
0x146a   : > { %v13138_v59 = vpop.eup %13137 }
0x146b   : > { %v9091_v44 = vadd.f32 1.0, %v13138_v59  ;;  %9461 = vmatprep.mubr.bf16.mxu0 %v9188_v47  ;;  %v9154_v8 = vmul.f32 %v9090_v13, %v8898_v0  ;;  %v17188_v23 = vrot.slane %v13182_v53, %v9227_v26 }
0x146c   : > { %9462 = vmatmul.mubr.bf16.gmra.mxu0 %v9187_v4 }
0x146d   : > { %v13140_v30 = vpop.eup %13139  ;;  %v9155_v43 = vmul.f32 %v9091_v44, %v8899_v39 }
0x146e   : > { %v9092_v14 = vadd.f32 1.0, %v13140_v30 }
0x146f   : > { %v13142_v40 = vpop.eup %13141  ;;  %v9189_v15 = vpack.c.bf16 %v9155_v43, %v9153_v42 }
0x1470   : > { %v9156_v6 = vmul.f32 %v9092_v14, %v8900_v3  ;;  %v13144_v20 = vpop.eup %13143  ;;  %v9093_v51 = vadd.f32 1.0, %v13142_v40 }
0x1471   : > { %v9094_v34 = vadd.f32 1.0, %v13144_v20 }
0x1472   : > { %v13146_v29 = vpop.eup %13145  ;;  %v9190_v24 = vpack.c.bf16 %v9156_v6, %v9154_v8  ;;  %v9157_v22 = vmul.f32 %v9093_v51, %v8901_v2 }
0x1473   : > { %v9095_v7 = vadd.f32 1.0, %v13146_v29  ;;  %v9158_v52 = vmul.f32 %v9094_v34, %v8902_v60 }
0x1474   : > { %9469 = vmatprep.mubr.bf16.mxu0 %v9190_v24  ;;  %v13148_v36 = vpop.eup %13147 }
0x1475   : > { %9470 = vmatmul.mubr.bf16.gmra.mxu0 %v9189_v15  ;;  %v9096_v11 = vadd.f32 1.0, %v13148_v36  ;;  %v9159_v32 = vmul.f32 %v9095_v7, %v8903_v45 }
0x1477   : > { %v9160_v31 = vmul.f32 %v9096_v11, %v8904_v57  ;;  %v9191_v25 = vpack.c.bf16 %v9159_v32, %v9157_v22 }
0x1479   : > { %v9192_v55 = vpack.c.bf16 %v9160_v31, %v9158_v52 }
0x147b   : > { %9477 = vmatprep.mubr.bf16.mxu0 %v9192_v55 }
0x147d   : > { %9478 = vmatmul.mubr.bf16.gmra.mxu0 %v9191_v25 }
0x147f   : > { %v10794_v17 = vpop.f32.mrf.mxu0 }
0x1481   : > { %v10795_v49 = vpop.f32.mrf.mxu0 }
0x1482   : > { %v10796_v1 = vadd.f32 %v10795_v49, %v10794_v17 }
0x1483   : > { %v10797_v62 = vpop.f32.mrf.mxu0 }
0x1484   : > { %v9360_v33 = vadd.f32 %v10796_v1, %v17188_v23 }
0x1485   : > { %v10798_v46 = vpop.f32.mrf.mxu0 }
0x1486   : > { %v9486_v47 = vadd.f32 %v9360_v33, %v16460_v21  ;;  %v10799_v59 = vadd.f32 %v10798_v46, %v10797_v62 }
0x1487   : > { %v10800_v4 = vpop.f32.mrf.mxu0 }
0x1488   : > { %9518 = vst [vmem:[#allocation2] sm:$0xff] %v9486_v47  ;;  %v9363_v44 = vadd.f32 %v10799_v59, %v17188_v23 }
0x1489   : > { %v10801_v38 = vpop.f32.mrf.mxu0 }
0x148a   : > { %v9487_v13 = vadd.f32 %v9363_v44, %v16467_v10  ;;  %v10802_v30 = vadd.f32 %v10801_v38, %v10800_v4 }
0x148b   : > { %v10803_v50 = vpop.f32.mrf.mxu0 }
0x148c   : > { %9519 = vst [vmem:[#allocation2 + $0x8] sm:$0xff] %v9487_v13  ;;  %v9368_v39 = vadd.f32 %v10802_v30, %v17188_v23  ;;  %v17904_v13 = vld [vmem:[#allocation74_spill] sm:$0xff] }
0x148d   : > { %v10804_v0 = vpop.f32.mrf.mxu0 }
0x148e   : > { %v9488_v3 = vadd.f32 %v9368_v39, %v16464_v37  ;;  %v10805_v14 = vadd.f32 %v10804_v0, %v10803_v50 }
0x1490   : > { %9520 = vst [vmem:[#allocation2 + $0x10] sm:$0xff] %v9488_v3  ;;  %v9371_v21 = vadd.f32 %v10805_v14, %v17188_v23  ;;  %v10806_v63 = vpop.f32.mrf.mxu0  ;;  %v17905_v3 = vld [vmem:[#allocation72_spill] sm:$0xff] }
0x1492   : > { %v9489_v43 = vadd.f32 %v9371_v21, %v16472_v58  ;;  %v10807_v40 = vpop.f32.mrf.mxu0 }
0x1493   : > { %v10808_v8 = vadd.f32 %v10807_v40, %v10806_v63  ;;  %v17906_v40 = vld [vmem:[#allocation25_spill] sm:$0xff] }
0x1494   : > { %9521 = vst [vmem:[#allocation2 + $0x18] sm:$0xff] %v9489_v43  ;;  %v10809_v6 = vpop.f32.mrf.mxu0 }
0x1495   : > { %v9376_v10 = vadd.f32 %v10808_v8, %v17188_v23 }
0x1496   : > { %v10810_v20 = vpop.f32.mrf.mxu0 }
0x1497   : > { %v9490_v42 = vadd.f32 %v9376_v10, %v16482_v5  ;;  %v10811_v29 = vadd.f32 %v10810_v20, %v10809_v6 }
0x1498   : > { %v10812_v24 = vpop.f32.mrf.mxu0 }
0x1499   : > { %9522 = vst [vmem:[#allocation2 + $0x20] sm:$0xff] %v9490_v42  ;;  %v9379_v37 = vadd.f32 %v10811_v29, %v17188_v23  ;;  %v17907_v29 = vld [vmem:[#allocation61_spill] sm:$0xff] }
0x149a   : > { %v10813_v15 = vpop.f32.mrf.mxu0 }
0x149b   : > { %v9491_v7 = vadd.f32 %v9379_v37, %v16489_v35  ;;  %v10814_v34 = vadd.f32 %v10813_v15, %v10812_v24 }
0x149c   : > { %v10815_v36 = vpop.f32.mrf.mxu0 }
0x149d   : > { %9523 = vst [vmem:[#allocation2 + $0x28] sm:$0xff] %v9491_v7  ;;  %v9384_v58 = vadd.f32 %v10814_v34, %v17188_v23 }
0x149e   : > { %v10816_v51 = vpop.f32.mrf.mxu0 }
0x149f   : > { %v9492_v45 = vadd.f32 %v9384_v58, %v16486_v9  ;;  %v10817_v60 = vadd.f32 %v10816_v51, %v10815_v36  ;;  %v17908_v36 = vld [vmem:[#allocation73_spill] sm:$0xff] }
0x14a1   : > { %9524 = vst [vmem:[#allocation2 + $0x30] sm:$0xff] %v9492_v45  ;;  %v9387_v5 = vadd.f32 %v10817_v60, %v17188_v23  ;;  %v10818_v57 = vpop.f32.mrf.mxu0 }
0x14a3   : > { %v9493_v11 = vadd.f32 %v9387_v5, %v16494_v27  ;;  %v10819_v2 = vpop.f32.mrf.mxu0 }
0x14a4   : > { %v10820_v32 = vadd.f32 %v10819_v2, %v10818_v57  ;;  %v17909_v57 = vld [vmem:[#allocation69_spill] sm:$0xff] }
0x14a5   : > { %9525 = vst [vmem:[#allocation2 + $0x38] sm:$0xff] %v9493_v11  ;;  %v10821_v52 = vpop.f32.mrf.mxu0 }
0x14a6   : > { %v9392_v35 = vadd.f32 %v10820_v32, %v17188_v23 }
0x14a7   : > { %v10822_v31 = vpop.f32.mrf.mxu0 }
0x14a8   : > { %v9494_v22 = vadd.f32 %v9392_v35, %v16504_v56  ;;  %v10823_v55 = vadd.f32 %v10822_v31, %v10821_v52  ;;  %v17910_v31 = vld [vmem:[#allocation56_spill] sm:$0xff] }
0x14a9   : > { %v10824_v25 = vpop.f32.mrf.mxu0 }
0x14aa   : > { %9526 = vst [vmem:[#allocation2 + $0x40] sm:$0xff] %v9494_v22  ;;  %v9395_v9 = vadd.f32 %v10823_v55, %v17188_v23 }
0x14ab   : > { %v10825_v26 = vpop.f32.mrf.mxu0 }
0x14ac   : > { %v9495_v17 = vadd.f32 %v9395_v9, %v16515_v61  ;;  %v10826_v53 = vadd.f32 %v10825_v26, %v10824_v25  ;;  %v17911_v9 = vld [vmem:[#allocation58_spill] sm:$0xff] }
0x14ad   : > { %v10827_v49 = vpop.f32.mrf.mxu0 }
0x14ae   : > { %9527 = vst [vmem:[#allocation2 + $0x48] sm:$0xff] %v9495_v17  ;;  %v9400_v27 = vadd.f32 %v10826_v53, %v17188_v23 }
0x14af   : > { %v10828_v1 = vpop.f32.mrf.mxu0 }
0x14b0   : > { %v9496_v62 = vadd.f32 %v9400_v27, %v16510_v12  ;;  %v10829_v33 = vadd.f32 %v10828_v1, %v10827_v49 }
0x14b1   : > { %v10830_v46 = vpop.f32.mrf.mxu0 }
0x14b2   : > { %9528 = vst [vmem:[#allocation2 + $0x50] sm:$0xff] %v9496_v62  ;;  %v9403_v56 = vadd.f32 %v10829_v33, %v17188_v23  ;;  %v17912_v33 = vld [vmem:[#allocation68_spill] sm:$0xff] }
0x14b3   : > { %v10831_v47 = vpop.f32.mrf.mxu0 }
0x14b4   : > { %v9497_v59 = vadd.f32 %v9403_v56, %v16522_v19  ;;  %v10832_v4 = vadd.f32 %v10831_v47, %v10830_v46 }
0x14b5   : > { %v10833_v44 = vpop.f32.mrf.mxu0 }
0x14b6   : > { %9529 = vst [vmem:[#allocation2 + $0x58] sm:$0xff] %v9497_v59  ;;  %v9408_v61 = vadd.f32 %v10832_v4, %v17188_v23 }
0x14b7   : > { %v10834_v38 = vpop.f32.mrf.mxu0 }
0x14b8   : > { %v9498_v30 = vadd.f32 %v9408_v61, %v17904_v13  ;;  %v10835_v50 = vadd.f32 %v10834_v38, %v10833_v44  ;;  %v17913_v44 = vld [vmem:[#allocation35_spill] sm:$0xff] }
0x14b9   : > { %v10836_v39 = vpop.f32.mrf.mxu0 }
0x14ba   : > { %9530 = vst [vmem:[#allocation2 + $0x60] sm:$0xff] %v9498_v30  ;;  %v9411_v12 = vadd.f32 %v10835_v50, %v17188_v23 }
0x14bb   : > { %v10837_v0 = vpop.f32.mrf.mxu0 }
0x14bc   : > { %v9499_v14 = vadd.f32 %v9411_v12, %v17905_v3  ;;  %v10838_v21 = vadd.f32 %v10837_v0, %v10836_v39  ;;  %v17914_v39 = vld [vmem:[#allocation22_spill] sm:$0xff] }
0x14bd   : > { %v10839_v63 = vpop.f32.mrf.mxu0 }
0x14be   : > { %9531 = vst [vmem:[#allocation2 + $0x68] sm:$0xff] %v9499_v14  ;;  %v9416_v19 = vadd.f32 %v10838_v21, %v17188_v23  ;;  %v17915_v21 = vld [vmem:[#allocation32_spill] sm:$0xff] }
0x14bf   : > { %v10840_v43 = vpop.f32.mrf.mxu0 }
0x14c0   : > { %v9500_v8 = vadd.f32 %v9416_v19, %v17906_v40  ;;  %v10841_v6 = vadd.f32 %v10840_v43, %v10839_v63 }
0x14c1   : > { %v10842_v10 = vpop.f32.mrf.mxu0 }
0x14c2   : > { %9532 = vst [vmem:[#allocation2 + $0x70] sm:$0xff] %v9500_v8  ;;  %v9419_v20 = vadd.f32 %v10841_v6, %v17188_v23 }
0x14c3   : > { %v10843_v42 = vpop.f32.mrf.mxu0 }
0x14c4   : > { %v9501_v24 = vadd.f32 %v9419_v20, %v17907_v29  ;;  %v10844_v37 = vadd.f32 %v10843_v42, %v10842_v10  ;;  %v17916_v10 = vld [vmem:[#allocation78_spill] sm:$0xff] }
0x14c5   : > { %v10845_v15 = vpop.f32.mrf.mxu0 }
0x14c6   : > { %9533 = vst [vmem:[#allocation2 + $0x78] sm:$0xff] %v9501_v24  ;;  %v9424_v7 = vadd.f32 %v10844_v37, %v17188_v23 }
0x14c7   : > { %v10846_v34 = vpop.f32.mrf.mxu0 }
0x14c8   : > { %v9502_v58 = vadd.f32 %v9424_v7, %v17908_v36  ;;  %v10847_v51 = vadd.f32 %v10846_v34, %v10845_v15 }
0x14c9   : > { %v10848_v45 = vpop.f32.mrf.mxu0 }
0x14ca   : > { %9534 = vst [vmem:[#allocation2 + $0x80] sm:$0xff] %v9502_v58  ;;  %v9427_v60 = vadd.f32 %v10847_v51, %v17188_v23 }
0x14cb   : > { %v10849_v5 = vpop.f32.mrf.mxu0 }
0x14cc   : > { %v9503_v11 = vadd.f32 %v9427_v60, %v17909_v57  ;;  %v10850_v2 = vadd.f32 %v10849_v5, %v10848_v45 }
0x14cd   : > { %v10851_v32 = vpop.f32.mrf.mxu0 }
0x14ce   : > { %9535 = vst [vmem:[#allocation2 + $0x88] sm:$0xff] %v9503_v11  ;;  %v9432_v52 = vadd.f32 %v10850_v2, %v17188_v23 }
0x14cf   : > { %v10852_v35 = vpop.f32.mrf.mxu0 }
0x14d0   : > { %v9504_v22 = vadd.f32 %v9432_v52, %v17910_v31  ;;  %v10853_v55 = vadd.f32 %v10852_v35, %v10851_v32 }
0x14d2   : > { %9536 = vst [vmem:[#allocation2 + $0x90] sm:$0xff] %v9504_v22  ;;  %v9435_v25 = vadd.f32 %v10853_v55, %v17188_v23 }
0x14d4   : > { %v9505_v26 = vadd.f32 %v9435_v25, %v17911_v9 }
0x14d6   : > { %9537 = vst [vmem:[#allocation2 + $0x98] sm:$0xff] %v9505_v26 }
0x1513   : > { %v10854_v17 = vpop.f32.mrf.mxu0 }
0x1515   : > { %v10855_v53 = vpop.f32.mrf.mxu0 }
0x1516   : > { %v10856_v49 = vadd.f32 %v10855_v53, %v10854_v17 }
0x1517   : > { %v10857_v27 = vpop.f32.mrf.mxu0 }
0x1518   : > { %v9440_v1 = vadd.f32 %v10856_v49, %v17188_v23 }
0x1519   : > { %v10858_v62 = vpop.f32.mrf.mxu0 }
0x151a   : > { %v9506_v46 = vadd.f32 %v9440_v1, %v17912_v33  ;;  %v10859_v56 = vadd.f32 %v10858_v62, %v10857_v27 }
0x151b   : > { %v10860_v47 = vpop.f32.mrf.mxu0 }
0x151c   : > { %9538 = vst [vmem:[#allocation2 + $0xa0] sm:$0xff] %v9506_v46  ;;  %v9443_v59 = vadd.f32 %v10859_v56, %v17188_v23 }
0x151d   : > { %v10861_v4 = vpop.f32.mrf.mxu0 }
0x151e   : > { %v9507_v61 = vadd.f32 %v9443_v59, %v17913_v44  ;;  %v10862_v38 = vadd.f32 %v10861_v4, %v10860_v47 }
0x151f   : > { %v10863_v13 = vpop.f32.mrf.mxu0 }
0x1520   : > { %9539 = vst [vmem:[#allocation2 + $0xa8] sm:$0xff] %v9507_v61  ;;  %v9448_v30 = vadd.f32 %v10862_v38, %v17188_v23 }
0x1521   : > { %v10864_v50 = vpop.f32.mrf.mxu0 }
0x1522   : > { %v9508_v12 = vadd.f32 %v9448_v30, %v17914_v39  ;;  %v10865_v0 = vadd.f32 %v10864_v50, %v10863_v13 }
0x1524   : > { %9540 = vst [vmem:[#allocation2 + $0xb0] sm:$0xff] %v9508_v12  ;;  %v9451_v3 = vadd.f32 %v10865_v0, %v17188_v23  ;;  %v10866_v14 = vpop.f32.mrf.mxu0 }
0x1526   : > { %v9509_v63 = vadd.f32 %v9451_v3, %v17915_v21  ;;  %v10867_v19 = vpop.f32.mrf.mxu0 }
0x1527   : > { %v10868_v43 = vadd.f32 %v10867_v19, %v10866_v14 }
0x1528   : > { %9541 = vst [vmem:[#allocation2 + $0xb8] sm:$0xff] %v9509_v63  ;;  %v10869_v40 = vpop.f32.mrf.mxu0 }
0x1529   : > { %v9456_v8 = vadd.f32 %v10868_v43, %v17188_v23 }
0x152a   : > { %v10870_v6 = vpop.f32.mrf.mxu0 }
0x152b   : > { %v9510_v20 = vadd.f32 %v9456_v8, %v17916_v10  ;;  %v10871_v42 = vadd.f32 %v10870_v6, %v10869_v40 }
0x152c   : > { %v10872_v29 = vpop.f32.mrf.mxu0 }
0x152d   : > { %9542 = vst [vmem:[#allocation2 + $0xc0] sm:$0xff] %v9510_v20  ;;  %v9459_v24 = vadd.f32 %v10871_v42, %v17188_v23 }
0x152e   : > { %v10873_v37 = vpop.f32.mrf.mxu0 }
0x152f   : > { %v9511_v15 = vadd.f32 %v9459_v24, %v16638_v28  ;;  %v10874_v7 = vadd.f32 %v10873_v37, %v10872_v29 }
0x1530   : > { %v10875_v34 = vpop.f32.mrf.mxu0 }
0x1531   : > { %9543 = vst [vmem:[#allocation2 + $0xc8] sm:$0xff] %v9511_v15  ;;  %v9464_v36 = vadd.f32 %v10874_v7, %v17188_v23 }
0x1532   : > { %v10876_v58 = vpop.f32.mrf.mxu0 }
0x1533   : > { %v9512_v51 = vadd.f32 %v9464_v36, %v16648_v18  ;;  %v10877_v45 = vadd.f32 %v10876_v58, %v10875_v34 }
0x1535   : > { %9544 = vst [vmem:[#allocation2 + $0xd0] sm:$0xff] %v9512_v51  ;;  %v9467_v60 = vadd.f32 %v10877_v45, %v17188_v23  ;;  %v10878_v5 = vpop.f32.mrf.mxu0 }
0x1537   : > { %v9513_v57 = vadd.f32 %v9467_v60, %v16664_v54  ;;  %v10879_v11 = vpop.f32.mrf.mxu0 }
0x1538   : > { %v10880_v2 = vadd.f32 %v10879_v11, %v10878_v5 }
0x1539   : > { %9545 = vst [vmem:[#allocation2 + $0xd8] sm:$0xff] %v9513_v57  ;;  %v10881_v32 = vpop.f32.mrf.mxu0 }
0x153a   : > { %v9472_v28 = vadd.f32 %v10880_v2, %v17188_v23 }
0x153b   : > { %v10882_v52 = vpop.f32.mrf.mxu0 }
0x153c   : > { %v9514_v35 = vadd.f32 %v9472_v28, %v16678_v41  ;;  %v10883_v31 = vadd.f32 %v10882_v52, %v10881_v32 }
0x153d   : > { %v10884_v22 = vpop.f32.mrf.mxu0 }
0x153e   : > { %9546 = vst [vmem:[#allocation2 + $0xe0] sm:$0xff] %v9514_v35  ;;  %v9475_v18 = vadd.f32 %v10883_v31, %v17188_v23 }
0x153f   : > { %v10885_v55 = vpop.f32.mrf.mxu0 }
0x1540   : > { %v9515_v25 = vadd.f32 %v9475_v18, %v16686_v48  ;;  %v10886_v9 = vadd.f32 %v10885_v55, %v10884_v22  ;;  %v17918_v48 = vld [vmem:[#allocation30_spill] sm:$0xff] }
0x1541   : > { %v10887_v54 = vpop.f32.mrf.mxu0 }
0x1542   : > { %9547 = vst [vmem:[#allocation2 + $0xe8] sm:$0xff] %v9515_v25  ;;  %v9480_v26 = vadd.f32 %v10886_v9, %v17188_v23 }
0x1543   : > { %v10888_v17 = vpop.f32.mrf.mxu0 }
0x1544   : > { %v9516_v53 = vadd.f32 %v9480_v26, %v16700_v16  ;;  %v10889_v49 = vadd.f32 %v10888_v17, %v10887_v54 }
0x1546   : > { %9548 = vst [vmem:[#allocation2 + $0xf0] sm:$0xff] %v9516_v53  ;;  %v9483_v41 = vadd.f32 %v10889_v49, %v17188_v23 }
0x1548   : > { %v9517_v27 = vadd.f32 %v9483_v41, %v17918_v48 }
0x154a   : > { %9549 = vst [vmem:[#allocation2 + $0xf8] sm:$0xff] %v9517_v27 }
0x154b   : > { %13196 = shalt.err (!%p13193_p13)
}
0x154c   : > { %s13237_s9 = smov 128   ;;  %s13238_s27 = smov 8  }
0x154d   : > { %12204 = dma.vmem_to_hbm [thread:$0]  (%p17255_p6), %s9561_s15, 4096, %s17287_s7, [#allocation3], %s13237_s9, %s13237_s9, %s13238_s27  }
0x154e   : > { %13220 = dma.done.wait (%p17255_p6), [#allocation3], 4096  }
0x154f   : > { %13222 = vsyncadd (%p17255_p6), [#allocation3], 4294963200 }
0x1550 PF: > { %s18_s26 = sadd.s32 1, %s13233_s26   ;;  %s17919_s24 = smov %s13229_s25 }
0x1551   : > { %p15_p0 = scmp.ge.s32.totalorder %s18_s26, 4   ;;  %s17920_s25 = smov %s17922_s28 }
0x1553   :  { %17 = sbr.rel (!%p15_p0) target bundleno = 2 (0x2), region = 112 }
0x1558   :  { %9576 = vsyncpa [#allocation3], 1 }
0x1559   :  { %9578 = vsyncpa [#allocation3 + $0x1], 1 }

</bundles_post_ra>
